<compile_context>
chip_gen: v5e
topology: v5e:2x2
jax: 0.10.0
libtpu: 0.0.40
codegen_flags: <defaults>
</compile_context>

<pallas_src>
import functools

import jax
import jax.numpy as jnp
from jax.experimental import pallas as pl
from jax.experimental.pallas import tpu as pltpu


# ============================================================================
# In-kernel helpers (pure jnp, traced inside the Pallas kernel body)
# ============================================================================
def _shift_rows(x, k):
    """y[n] = x[n + k] along axis 0, zero-filled outside [0, R)."""
    if k == 0:
        return x
    _, c = x.shape
    z = jnp.zeros((abs(k), c), x.dtype)
    if k > 0:
        return jnp.concatenate([x[k:], z], axis=0)
    return jnp.concatenate([z, x[:k]], axis=0)


def _conv3x3(h, w8_ref, w2_off, m_m1, m_p1, W):
    """3x3 'same' conv (BN scale pre-folded) as nine accumulating (R,P)@(P,P)
    matmuls -- no lane-axis im2col concat.  m_m1 / m_p1 are hoisted {0,1}
    masks zeroing rows whose w-1 / w+1 neighbour falls off the image; the h
    edges are handled by the zero fill of _shift_rows."""
    P = h.shape[1]
    acc = None
    k = 0
    for dh in (-1, 0, 1):
        for dw in (-1, 0, 1):
            tap = _shift_rows(h, dh * W + dw)
            if dw == -1:
                tap = tap * m_m1
            elif dw == 1:
                tap = tap * m_p1
            wk = w8_ref[w2_off + P * k:w2_off + P * (k + 1), :]
            t = jnp.dot(tap, wk, preferred_element_type=jnp.float32)
            acc = t if acc is None else acc + t
            k += 1
    return acc


def _bottleneck(x, w8_ref, w32_ref, shf_ref, off, m_m1, m_p1, W):
    """1x1 -> BN -> ReLU -> 3x3 -> BN -> ReLU -> 1x1 -> BN -> +x -> ReLU.
    BN (inference mode) scales are folded into the conv weights host-side."""
    C = x.shape[1]
    h = jnp.dot(x, w8_ref[off["w1"]:off["w1"] + C, :],
                preferred_element_type=jnp.float32)
    P = h.shape[1]
    h = jnp.maximum(h + shf_ref[off["b1"]:off["b1"] + 1, 0:P], 0.0)
    h = _conv3x3(h, w8_ref, off["w2"], m_m1, m_p1, W)
    h = jnp.maximum(h + shf_ref[off["b2"]:off["b2"] + 1, 0:P], 0.0)
    h = jnp.dot(h, w32_ref[off["w3"]:off["w3"] + P, :],
                preferred_element_type=jnp.float32)
    h = h + shf_ref[off["b3"]:off["b3"] + 1, :]
    return jnp.maximum(h + x, 0.0)


def _maxpool2x2(x, sel, W):
    """MaxPool2d(2,2): shifted maxima + one-hot row-selection matmul.
    Rows with odd h or odd w are never selected, so no edge masks needed."""
    m = jnp.maximum(jnp.maximum(x, _shift_rows(x, 1)),
                    jnp.maximum(_shift_rows(x, W), _shift_rows(x, W + 1)))
    return jnp.dot(sel, m, preferred_element_type=jnp.float32)


def _deconv(x, w32_ref, shf_ref, off, m_p1, perm, W):
    """ConvTranspose2d(C, C, 3, stride=2, padding=1, output_padding=1) + BN
    + ReLU.  4-phase decomposition; the phase blocks are mapped back to
    row-major order with a one-hot matmul.  BN scale and the transpose-conv
    bias are pre-folded host-side."""
    C = x.shape[1]
    x01 = _shift_rows(x, 1) * m_p1         # x[m,   n+1]
    x10 = _shift_rows(x, W)                # x[m+1, n  ]
    x11 = _shift_rows(x, W + 1) * m_p1     # x[m+1, n+1]

    def tap_dot(a, k):
        w = w32_ref[off["w"] + C * k:off["w"] + C * (k + 1), :]
        return jnp.dot(a, w, preferred_element_type=jnp.float32)

    p_ee = tap_dot(x, 4)                                      # W[1,1]
    p_eo = tap_dot(x, 5) + tap_dot(x01, 3)                    # W[1,2], W[1,0]
    p_oe = tap_dot(x, 7) + tap_dot(x10, 1)                    # W[2,1], W[0,1]
    p_oo = (tap_dot(x, 8) + tap_dot(x01, 6)
            + tap_dot(x10, 2) + tap_dot(x11, 0))              # W[2,2],W[2,0],W[0,2],W[0,0]
    pcat = jnp.concatenate([p_ee, p_eo, p_oe, p_oo], axis=0)  # (4R, C)
    y = jnp.dot(perm, pcat, preferred_element_type=jnp.float32)
    y = y + shf_ref[off["b"]:off["b"] + 1, :]
    return jnp.maximum(y, 0.0)


# ============================================================================
# Fused kernel: whole AttentionModule forward for one image per grid step.
# ============================================================================
def fused_attention_kernel(x_ref, w8_ref, w32_ref, shf_ref, sel_a_ref,
                           sel_b_ref, out_ref, *, lay):
    W0, W1, W2 = lay["W0"], lay["W1"], lay["W2"]
    R0, R1, R2 = lay["R0"], lay["R1"], lay["R2"]
    f32 = jnp.float32

    x = x_ref[0]                                              # (R0, C) f32

    # hoisted w-edge masks (precomputed host-side, loaded once per image)
    m8f_m1 = w8_ref[lay["m8_f_m1"]:lay["m8_f_m1"] + R0, :]
    m8f_p1 = w8_ref[lay["m8_f_p1"]:lay["m8_f_p1"] + R0, :]
    m8h_m1 = w8_ref[lay["m8_h_m1"]:lay["m8_h_m1"] + R1, :]
    m8h_p1 = w8_ref[lay["m8_h_p1"]:lay["m8_h_p1"] + R1, :]
    m8q_m1 = w8_ref[lay["m8_q_m1"]:lay["m8_q_m1"] + R2, :]
    m8q_p1 = w8_ref[lay["m8_q_p1"]:lay["m8_q_p1"] + R2, :]
    m32h_p1 = w32_ref[lay["m32_h_p1"]:lay["m32_h_p1"] + R1, :]
    m32q_p1 = w32_ref[lay["m32_q_p1"]:lay["m32_q_p1"] + R2, :]

    bn, dc = lay["bn"], lay["dc"]

    # shallow branch (attention mask input)
    x1 = _bottleneck(x, w8_ref, w32_ref, shf_ref, bn[0], m8f_m1, m8f_p1, W0)

    # deep branch (trunk)
    pool1 = sel_a_ref[lay["pool1"]:lay["pool1"] + R0 // 4, :].astype(f32)
    x2 = _maxpool2x2(x, pool1, W0)                                     # -> H/2
    x2 = _bottleneck(x2, w8_ref, w32_ref, shf_ref, bn[1], m8h_m1, m8h_p1, W1)
    pool2 = sel_b_ref[lay["pool2"]:lay["pool2"] + R1 // 4, :].astype(f32)
    x2 = _maxpool2x2(x2, pool2, W1)                                    # -> H/4
    x2 = _bottleneck(x2, w8_ref, w32_ref, shf_ref, bn[2], m8q_m1, m8q_p1, W2)
    perm1 = sel_b_ref[lay["perm1"]:lay["perm1"] + 4 * R2, :].astype(f32)
    x2 = _deconv(x2, w32_ref, shf_ref, dc[0], m32q_p1, perm1, W2)      # -> H/2
    x2 = _bottleneck(x2, w8_ref, w32_ref, shf_ref, bn[3], m8h_m1, m8h_p1, W1)
    perm2 = sel_a_ref[lay["perm2"]:lay["perm2"] + 4 * R1, :].astype(f32)
    x2 = _deconv(x2, w32_ref, shf_ref, dc[1], m32h_p1, perm2, W1)      # -> H

    # attention residual learning: (1 + mask) * sigmoid(trunk), then conv_down
    att = (1.0 + x1) * jax.nn.sigmoid(x2)
    y = jnp.dot(att, w32_ref[lay["wd"]:lay["wd"] + att.shape[1], :],
                preferred_element_type=jnp.float32)
    y = y + shf_ref[lay["bd"]:lay["bd"] + 1, :]
    # TODO(synk): a lane-dense (128-wide) output store would avoid masked
    # 16-lane vst; kept as (R, C/2) to stay on reshape-free lowering paths.
    out_ref[0] = y[:, :out_ref.shape[2]].astype(out_ref.dtype)


# ============================================================================
# pallas_call wrapper
# ============================================================================
def attention_module_forward(x_nchw, packed, *, lay):
    """Forward pass of AttentionModule.  x_nchw: (N, C, H, W) as in PyTorch."""
    w8, w32, shifts, sel_a, sel_b = packed
    N, C, H, W = x_nchw.shape
    R = H * W
    x_flat = jnp.transpose(x_nchw, (0, 2, 3, 1)).reshape(N, R, C)

    kernel = functools.partial(fused_attention_kernel, lay=lay)

    def const_spec(arr):                       # whole-array, grid-invariant
        return pl.BlockSpec(arr.shape, lambda b: (0, 0))

    out = pl.pallas_call(
        kernel,
        out_shape=jax.ShapeDtypeStruct((N, R, C // 2), x_nchw.dtype),
        grid=(N,),
        in_specs=[pl.BlockSpec((1, R, C), lambda b: (b, 0, 0)),
                  const_spec(w8), const_spec(w32), const_spec(shifts),
                  const_spec(sel_a), const_spec(sel_b)],
        out_specs=pl.BlockSpec((1, R, C // 2), lambda b: (b, 0, 0)),
        # TODO(synk): on v7x verify the batch axis actually shards across the
        # two TensorCores (switch to CORE_PARALLEL / core_map if it does not).
        compiler_params=pltpu.CompilerParams(
            dimension_semantics=("parallel",)),
    )(x_flat, w8, w32, shifts, sel_a, sel_b)

    return jnp.transpose(out.reshape(N, H, W, C // 2), (0, 3, 1, 2))


# ============================================================================
# Host-side parameter construction: random torch-equivalent weights,
# inference-mode BN folded into the conv weights, packed into 5 slabs.
# ============================================================================
class _RowPacker:
    """Row-stacks same-width 2-D blocks into one slab and records each block's
    static row offset (every block here has a row count that is a multiple of
    8, so all in-kernel slices stay sublane-aligned)."""

    def __init__(self):
        self._rows, self._off = [], 0

    def push(self, block):
        off = self._off
        self._rows.append(block)
        self._off += block.shape[0]
        return off

    def pack(self, dtype):
        return jnp.concatenate(self._rows, axis=0).astype(dtype)


def _fold_bn(key, n, eps=1e-5):
    """Random inference-mode BatchNorm params folded to (scale, shift)."""
    k1, k2, k3, k4 = jax.random.split(key, 4)
    gamma = 1.0 + 0.1 * jax.random.normal(k1, (n,), jnp.float32)
    beta = 0.1 * jax.random.normal(k2, (n,), jnp.float32)
    mean = 0.1 * jax.random.normal(k3, (n,), jnp.float32)
    var = 1.0 + 0.05 * jnp.abs(jax.random.normal(k4, (n,), jnp.float32))
    scale = gamma / jnp.sqrt(var + eps)
    return scale, beta - mean * scale


def _bottleneck_weights(key, C, P):
    k1, k2, k3, kb1, kb2, kb3 = jax.random.split(key, 6)
    w1 = jax.random.normal(k1, (C, P), jnp.float32) / jnp.sqrt(float(C))
    w2 = jax.random.normal(k2, (3, 3, P, P), jnp.float32) / jnp.sqrt(9.0 * P)
    w3 = jax.random.normal(k3, (P, C), jnp.float32) / jnp.sqrt(float(P))
    s1, b1 = _fold_bn(kb1, P)
    s2, b2 = _fold_bn(kb2, P)
    s3, b3 = _fold_bn(kb3, C)
    return dict(w1=w1 * s1, b1=b1,                        # BN scale folded in
                w2=(w2 * s2).reshape(9 * P, P), b2=b2,    # tap-major (9*Cin, Cout)
                w3=w3 * s3, b3=b3)


def _deconv_weights(key, C):
    k1, k2, kb = jax.random.split(key, 3)
    # torch ConvTranspose2d weight layout (Cin, Cout, kh, kw), bias per Cout.
    wt = jax.random.normal(k1, (C, C, 3, 3), jnp.float32) / jnp.sqrt(9.0 * C)
    bias = 0.1 * jax.random.normal(k2, (C,), jnp.float32)
    scale, shift = _fold_bn(kb, C)
    taps = jnp.transpose(wt, (2, 3, 0, 1)).reshape(9 * C, C)  # [kh*3+kw]->(Cin,Cout)
    return dict(w=taps * scale, b=scale * bias + shift)       # bias + BN folded


def make_pool_select(H, W):
    """((H/2)*(W/2), H*W) one-hot picking the top-left pixel of each 2x2 window."""
    o = jnp.arange((H // 2) * (W // 2))
    m, n = o // (W // 2), o % (W // 2)
    return jax.nn.one_hot(2 * m * W + 2 * n, H * W, dtype=jnp.float32)


def make_deconv_perm(H, W):
    """(4HW, 4HW) one-hot: phase-concatenated rows -> row-major (2H, 2W)."""
    R = H * W
    o = jnp.arange(4 * R)
    oh, ow = o // (2 * W), o % (2 * W)
    src = (2 * (oh % 2) + (ow % 2)) * R + (oh // 2) * W + (ow // 2)
    return jax.nn.one_hot(src, 4 * R, dtype=jnp.float32)


def make_edge_mask(H, W, dw, width):
    """(H*W, width) {0,1} mask: 1 where column w+dw stays inside [0, W)."""
    w = jnp.arange(H * W) % W
    valid = jnp.logical_and(w + dw >= 0, w + dw < W).astype(jnp.float32)
    return jnp.broadcast_to(valid[:, None], (H * W, width))


def build_packed_params(key, inplanes, planes, H, W):
    assert inplanes == planes, "BottleNeck residual adds need inplanes == planes"
    C, P = inplanes, planes // 4
    ks = jax.random.split(key, 8)
    bns = [_bottleneck_weights(ks[i], C, P) for i in range(4)]
    dcs = [_deconv_weights(ks[4], C), _deconv_weights(ks[5], C)]
    wd = jax.random.normal(ks[6], (C, C // 2), jnp.float32) / jnp.sqrt(float(C))
    bd = 0.1 * jax.random.normal(ks[7], (C // 2,), jnp.float32)

    H0, W0, H1, W1, H2, W2 = H, W, H // 2, W // 2, H // 4, W // 4
    lay = dict(W0=W0, W1=W1, W2=W2, R0=H0 * W0, R1=H1 * W1, R2=H2 * W2)

    # --- slab of P-lane weights + P-lane edge masks --------------------------
    p8 = _RowPacker()
    lay["bn"] = [dict(w1=p8.push(b["w1"]), w2=p8.push(b["w2"])) for b in bns]
    lay["m8_f_m1"] = p8.push(make_edge_mask(H0, W0, -1, P))
    lay["m8_f_p1"] = p8.push(make_edge_mask(H0, W0, +1, P))
    lay["m8_h_m1"] = p8.push(make_edge_mask(H1, W1, -1, P))
    lay["m8_h_p1"] = p8.push(make_edge_mask(H1, W1, +1, P))
    lay["m8_q_m1"] = p8.push(make_edge_mask(H2, W2, -1, P))
    lay["m8_q_p1"] = p8.push(make_edge_mask(H2, W2, +1, P))
    w8 = p8.pack(jnp.float32)

    # --- slab of C-lane weights + C-lane edge masks --------------------------
    p32 = _RowPacker()
    for i, b in enumerate(bns):
        lay["bn"][i]["w3"] = p32.push(b["w3"])
    lay["dc"] = [dict(w=p32.push(d["w"])) for d in dcs]
    wd_pad = jnp.zeros((C, C), jnp.float32).at[:, :C // 2].set(wd)
    lay["wd"] = p32.push(wd_pad)
    lay["m32_h_p1"] = p32.push(make_edge_mask(H1, W1, +1, C))
    lay["m32_q_p1"] = p32.push(make_edge_mask(H2, W2, +1, C))
    w32 = p32.pack(jnp.float32)

    # --- per-layer BN shifts / biases (one row each, padded to C lanes) ------
    def crow(v):
        return jnp.zeros((C,), jnp.float32).at[:v.shape[0]].set(v)
    rows = ([crow(b["b1"]) for b in bns] + [crow(b["b2"]) for b in bns] +
            [crow(b["b3"]) for b in bns] +
            [crow(dcs[0]["b"]), crow(dcs[1]["b"]), crow(bd),
             jnp.zeros((C,), jnp.float32)])
    for i in range(4):
        lay["bn"][i]["b1"], lay["bn"][i]["b2"], lay["bn"][i]["b3"] = i, 4 + i, 8 + i
    lay["dc"][0]["b"], lay["dc"][1]["b"], lay["bd"] = 12, 13, 14
    shifts = jnp.stack(rows, axis=0)                          # (16, C)

    # --- one-hot reorder matrices, stored bf16 (exact 0/1), two lane widths --
    pa = _RowPacker()
    lay["pool1"] = pa.push(make_pool_select(H0, W0))          # (R0/4, R0)
    lay["perm2"] = pa.push(make_deconv_perm(H1, W1))          # (4R1, 4R1) == (R0, R0)
    sel_a = pa.pack(jnp.bfloat16)

    pb = _RowPacker()
    lay["pool2"] = pb.push(make_pool_select(H1, W1))          # (R1/4, R1)
    lay["perm1"] = pb.push(make_deconv_perm(H2, W2))          # (4R2, 4R2) == (R1, R1)
    sel_b = pb.pack(jnp.bfloat16)

    return w8, w32, shifts, sel_a, sel_b, lay


# ============================================================================
if __name__ == "__main__":
    key = jax.random.PRNGKey(0)
    k_x, k_p = jax.random.split(key)

    # NCHW, matching the PyTorch module; residual adds need inplanes == planes.
    N, C, H, W = 2, 32, 16, 16
    x = jax.random.normal(k_x, (N, C, H, W), jnp.float32)
    w8, w32, shifts, sel_a, sel_b, lay = build_packed_params(k_p, C, C, H, W)

    fwd = jax.jit(functools.partial(attention_module_forward, lay=lay))
    out = fwd(x, (w8, w32, shifts, sel_a, sel_b))
    out = jax.block_until_ready(out)

    assert out.shape == (N, C // 2, H, W), out.shape
    assert bool(jnp.all(jnp.isfinite(out)))
    print("KERNEL_OK")
</pallas_src>

<mosaic_0001>
module attributes {stable_mosaic.version = 11 : i64} {
  func.func @fused_attention_kernel(%arg0: i32, %arg1: memref<1x256x32xf32, #tpu.memory_space<vmem>>, %arg2: memref<1088x8xf32, #tpu.memory_space<vmem>>, %arg3: memref<720x32xf32, #tpu.memory_space<vmem>>, %arg4: memref<16x32xf32, #tpu.memory_space<vmem>>, %arg5: memref<320x256xbf16, #tpu.memory_space<vmem>>, %arg6: memref<80x64xbf16, #tpu.memory_space<vmem>>, %arg7: memref<1x256x16xf32, #tpu.memory_space<vmem>>) attributes {dimension_semantics = [#tpu.dimension_semantics<parallel>], iteration_bounds = array<i64: 2>, scalar_prefetch = 0 : i64, scratch_operands = 0 : i64, tpu.core_type = #tpu.core_type<tc>, window_params = [{transform_indices = @transform_0, window_bounds = array<i64: 1, 256, 32>}, {pipeline_mode = #tpu.pipeline_mode<synchronous>, transform_indices = @transform_1, window_bounds = array<i64: 1088, 8>}, {pipeline_mode = #tpu.pipeline_mode<synchronous>, transform_indices = @transform_2, window_bounds = array<i64: 720, 32>}, {pipeline_mode = #tpu.pipeline_mode<synchronous>, transform_indices = @transform_3, window_bounds = array<i64: 16, 32>}, {pipeline_mode = #tpu.pipeline_mode<synchronous>, transform_indices = @transform_4, window_bounds = array<i64: 320, 256>}, {pipeline_mode = #tpu.pipeline_mode<synchronous>, transform_indices = @transform_5, window_bounds = array<i64: 80, 64>}, {transform_indices = @transform_6, window_bounds = array<i64: 1, 256, 16>}]} {
    %c0 = arith.constant 0 : index
    %c0_0 = arith.constant 0 : index
    %c0_1 = arith.constant 0 : index
    %0 = vector.load %arg1[%c0, %c0_0, %c0_1] : memref<1x256x32xf32, #tpu.memory_space<vmem>>, vector<1x256x32xf32>
    %1 = vector.shape_cast %0 : vector<1x256x32xf32> to vector<256x32xf32>
    %c416 = arith.constant 416 : index
    %c0_2 = arith.constant 0 : index
    %2 = vector.load %arg2[%c416, %c0_2] : memref<1088x8xf32, #tpu.memory_space<vmem>>, vector<256x8xf32>
    %c672 = arith.constant 672 : index
    %c0_3 = arith.constant 0 : index
    %3 = vector.load %arg2[%c672, %c0_3] : memref<1088x8xf32, #tpu.memory_space<vmem>>, vector<256x8xf32>
    %c928 = arith.constant 928 : index
    %c0_4 = arith.constant 0 : index
    %4 = vector.load %arg2[%c928, %c0_4] : memref<1088x8xf32, #tpu.memory_space<vmem>>, vector<64x8xf32>
    %c992 = arith.constant 992 : index
    %c0_5 = arith.constant 0 : index
    %5 = vector.load %arg2[%c992, %c0_5] : memref<1088x8xf32, #tpu.memory_space<vmem>>, vector<64x8xf32>
    %c1056 = arith.constant 1056 : index
    %c0_6 = arith.constant 0 : index
    %6 = vector.load %arg2[%c1056, %c0_6] : memref<1088x8xf32, #tpu.memory_space<vmem>>, vector<16x8xf32>
    %c1072 = arith.constant 1072 : index
    %c0_7 = arith.constant 0 : index
    %7 = vector.load %arg2[%c1072, %c0_7] : memref<1088x8xf32, #tpu.memory_space<vmem>>, vector<16x8xf32>
    %c640 = arith.constant 640 : index
    %c0_8 = arith.constant 0 : index
    %8 = vector.load %arg3[%c640, %c0_8] : memref<720x32xf32, #tpu.memory_space<vmem>>, vector<64x32xf32>
    %c704 = arith.constant 704 : index
    %c0_9 = arith.constant 0 : index
    %9 = vector.load %arg3[%c704, %c0_9] : memref<720x32xf32, #tpu.memory_space<vmem>>, vector<16x32xf32>
    %c0_10 = arith.constant 0 : index
    %c0_11 = arith.constant 0 : index
    %10 = vector.load %arg2[%c0_10, %c0_11] : memref<1088x8xf32, #tpu.memory_space<vmem>>, vector<32x8xf32>
    %cst = arith.constant dense<0.000000e+00> : vector<256x8xf32>
    %11 = tpu.matmul %1, %10, %cst {dimension_numbers = #tpu.dot_dimension_numbers<[1], [0], [0], [1], [0, 0, 1, 1], [], []>} : vector<256x32xf32>, vector<32x8xf32>, vector<256x8xf32> -> vector<256x8xf32>
    %c0_12 = arith.constant 0 : index
    %c0_13 = arith.constant 0 : index
    %12 = vector.load %arg4[%c0_12, %c0_13] : memref<16x32xf32, #tpu.memory_space<vmem>>, vector<1x8xf32>
    %13 = vector.broadcast %12 : vector<1x8xf32> to vector<256x8xf32>
    %14 = arith.addf %11, %13 : vector<256x8xf32>
    %cst_14 = arith.constant 0.000000e+00 : f32
    %15 = vector.broadcast %cst_14 : f32 to vector<256x8xf32>
    %16 = arith.maximumf %14, %15 : vector<256x8xf32>
    %cst_15 = arith.constant 0.000000e+00 : f32
    %17 = vector.broadcast %cst_15 : f32 to vector<17x8xf32>
    %18 = vector.extract_strided_slice %16 {offsets = [0, 0], sizes = [239, 8], strides = [1, 1]} : vector<256x8xf32> to vector<239x8xf32>
    %19 = tpu.concatenate %17, %18 in 0 : vector<17x8xf32>, vector<239x8xf32> -> vector<256x8xf32>
    %20 = arith.mulf %19, %2 : vector<256x8xf32>
    %c32 = arith.constant 32 : index
    %c0_16 = arith.constant 0 : index
    %21 = vector.load %arg2[%c32, %c0_16] : memref<1088x8xf32, #tpu.memory_space<vmem>>, vector<8x8xf32>
    %cst_17 = arith.constant dense<0.000000e+00> : vector<256x8xf32>
    %22 = tpu.matmul %20, %21, %cst_17 {dimension_numbers = #tpu.dot_dimension_numbers<[1], [0], [0], [1], [0, 0, 1, 1], [], []>} : vector<256x8xf32>, vector<8x8xf32>, vector<256x8xf32> -> vector<256x8xf32>
    %cst_18 = arith.constant 0.000000e+00 : f32
    %23 = vector.broadcast %cst_18 : f32 to vector<16x8xf32>
    %24 = vector.extract_strided_slice %16 {offsets = [0, 0], sizes = [240, 8], strides = [1, 1]} : vector<256x8xf32> to vector<240x8xf32>
    %25 = tpu.concatenate %23, %24 in 0 : vector<16x8xf32>, vector<240x8xf32> -> vector<256x8xf32>
    %c40 = arith.constant 40 : index
    %c0_19 = arith.constant 0 : index
    %26 = vector.load %arg2[%c40, %c0_19] : memref<1088x8xf32, #tpu.memory_space<vmem>>, vector<8x8xf32>
    %cst_20 = arith.constant dense<0.000000e+00> : vector<256x8xf32>
    %27 = tpu.matmul %25, %26, %cst_20 {dimension_numbers = #tpu.dot_dimension_numbers<[1], [0], [0], [1], [0, 0, 1, 1], [], []>} : vector<256x8xf32>, vector<8x8xf32>, vector<256x8xf32> -> vector<256x8xf32>
    %28 = arith.addf %22, %27 : vector<256x8xf32>
    %cst_21 = arith.constant 0.000000e+00 : f32
    %29 = vector.broadcast %cst_21 : f32 to vector<15x8xf32>
    %30 = vector.extract_strided_slice %16 {offsets = [0, 0], sizes = [241, 8], strides = [1, 1]} : vector<256x8xf32> to vector<241x8xf32>
    %31 = tpu.concatenate %29, %30 in 0 : vector<15x8xf32>, vector<241x8xf32> -> vector<256x8xf32>
    %32 = arith.mulf %31, %3 : vector<256x8xf32>
    %c48 = arith.constant 48 : index
    %c0_22 = arith.constant 0 : index
    %33 = vector.load %arg2[%c48, %c0_22] : memref<1088x8xf32, #tpu.memory_space<vmem>>, vector<8x8xf32>
    %cst_23 = arith.constant dense<0.000000e+00> : vector<256x8xf32>
    %34 = tpu.matmul %32, %33, %cst_23 {dimension_numbers = #tpu.dot_dimension_numbers<[1], [0], [0], [1], [0, 0, 1, 1], [], []>} : vector<256x8xf32>, vector<8x8xf32>, vector<256x8xf32> -> vector<256x8xf32>
    %35 = arith.addf %28, %34 : vector<256x8xf32>
    %cst_24 = arith.constant 0.000000e+00 : f32
    %36 = vector.broadcast %cst_24 : f32 to vector<1x8xf32>
    %37 = vector.extract_strided_slice %16 {offsets = [0, 0], sizes = [255, 8], strides = [1, 1]} : vector<256x8xf32> to vector<255x8xf32>
    %38 = tpu.concatenate %36, %37 in 0 : vector<1x8xf32>, vector<255x8xf32> -> vector<256x8xf32>
    %39 = arith.mulf %38, %2 : vector<256x8xf32>
    %c56 = arith.constant 56 : index
    %c0_25 = arith.constant 0 : index
    %40 = vector.load %arg2[%c56, %c0_25] : memref<1088x8xf32, #tpu.memory_space<vmem>>, vector<8x8xf32>
    %cst_26 = arith.constant dense<0.000000e+00> : vector<256x8xf32>
    %41 = tpu.matmul %39, %40, %cst_26 {dimension_numbers = #tpu.dot_dimension_numbers<[1], [0], [0], [1], [0, 0, 1, 1], [], []>} : vector<256x8xf32>, vector<8x8xf32>, vector<256x8xf32> -> vector<256x8xf32>
    %42 = arith.addf %35, %41 : vector<256x8xf32>
    %c64 = arith.constant 64 : index
    %c0_27 = arith.constant 0 : index
    %43 = vector.load %arg2[%c64, %c0_27] : memref<1088x8xf32, #tpu.memory_space<vmem>>, vector<8x8xf32>
    %cst_28 = arith.constant dense<0.000000e+00> : vector<256x8xf32>
    %44 = tpu.matmul %16, %43, %cst_28 {dimension_numbers = #tpu.dot_dimension_numbers<[1], [0], [0], [1], [0, 0, 1, 1], [], []>} : vector<256x8xf32>, vector<8x8xf32>, vector<256x8xf32> -> vector<256x8xf32>
    %45 = arith.addf %42, %44 : vector<256x8xf32>
    %cst_29 = arith.constant 0.000000e+00 : f32
    %46 = vector.broadcast %cst_29 : f32 to vector<1x8xf32>
    %47 = vector.extract_strided_slice %16 {offsets = [1, 0], sizes = [255, 8], strides = [1, 1]} : vector<256x8xf32> to vector<255x8xf32>
    %48 = tpu.concatenate %47, %46 in 0 : vector<255x8xf32>, vector<1x8xf32> -> vector<256x8xf32>
    %49 = arith.mulf %48, %3 : vector<256x8xf32>
    %c72 = arith.constant 72 : index
    %c0_30 = arith.constant 0 : index
    %50 = vector.load %arg2[%c72, %c0_30] : memref<1088x8xf32, #tpu.memory_space<vmem>>, vector<8x8xf32>
    %cst_31 = arith.constant dense<0.000000e+00> : vector<256x8xf32>
    %51 = tpu.matmul %49, %50, %cst_31 {dimension_numbers = #tpu.dot_dimension_numbers<[1], [0], [0], [1], [0, 0, 1, 1], [], []>} : vector<256x8xf32>, vector<8x8xf32>, vector<256x8xf32> -> vector<256x8xf32>
    %52 = arith.addf %45, %51 : vector<256x8xf32>
    %cst_32 = arith.constant 0.000000e+00 : f32
    %53 = vector.broadcast %cst_32 : f32 to vector<15x8xf32>
    %54 = vector.extract_strided_slice %16 {offsets = [15, 0], sizes = [241, 8], strides = [1, 1]} : vector<256x8xf32> to vector<241x8xf32>
    %55 = tpu.concatenate %54, %53 in 0 : vector<241x8xf32>, vector<15x8xf32> -> vector<256x8xf32>
    %56 = arith.mulf %55, %2 : vector<256x8xf32>
    %c80 = arith.constant 80 : index
    %c0_33 = arith.constant 0 : index
    %57 = vector.load %arg2[%c80, %c0_33] : memref<1088x8xf32, #tpu.memory_space<vmem>>, vector<8x8xf32>
    %cst_34 = arith.constant dense<0.000000e+00> : vector<256x8xf32>
    %58 = tpu.matmul %56, %57, %cst_34 {dimension_numbers = #tpu.dot_dimension_numbers<[1], [0], [0], [1], [0, 0, 1, 1], [], []>} : vector<256x8xf32>, vector<8x8xf32>, vector<256x8xf32> -> vector<256x8xf32>
    %59 = arith.addf %52, %58 : vector<256x8xf32>
    %cst_35 = arith.constant 0.000000e+00 : f32
    %60 = vector.broadcast %cst_35 : f32 to vector<16x8xf32>
    %61 = vector.extract_strided_slice %16 {offsets = [16, 0], sizes = [240, 8], strides = [1, 1]} : vector<256x8xf32> to vector<240x8xf32>
    %62 = tpu.concatenate %61, %60 in 0 : vector<240x8xf32>, vector<16x8xf32> -> vector<256x8xf32>
    %c88 = arith.constant 88 : index
    %c0_36 = arith.constant 0 : index
    %63 = vector.load %arg2[%c88, %c0_36] : memref<1088x8xf32, #tpu.memory_space<vmem>>, vector<8x8xf32>
    %cst_37 = arith.constant dense<0.000000e+00> : vector<256x8xf32>
    %64 = tpu.matmul %62, %63, %cst_37 {dimension_numbers = #tpu.dot_dimension_numbers<[1], [0], [0], [1], [0, 0, 1, 1], [], []>} : vector<256x8xf32>, vector<8x8xf32>, vector<256x8xf32> -> vector<256x8xf32>
    %65 = arith.addf %59, %64 : vector<256x8xf32>
    %cst_38 = arith.constant 0.000000e+00 : f32
    %66 = vector.broadcast %cst_38 : f32 to vector<17x8xf32>
    %67 = vector.extract_strided_slice %16 {offsets = [17, 0], sizes = [239, 8], strides = [1, 1]} : vector<256x8xf32> to vector<239x8xf32>
    %68 = tpu.concatenate %67, %66 in 0 : vector<239x8xf32>, vector<17x8xf32> -> vector<256x8xf32>
    %69 = arith.mulf %68, %3 : vector<256x8xf32>
    %c96 = arith.constant 96 : index
    %c0_39 = arith.constant 0 : index
    %70 = vector.load %arg2[%c96, %c0_39] : memref<1088x8xf32, #tpu.memory_space<vmem>>, vector<8x8xf32>
    %cst_40 = arith.constant dense<0.000000e+00> : vector<256x8xf32>
    %71 = tpu.matmul %69, %70, %cst_40 {dimension_numbers = #tpu.dot_dimension_numbers<[1], [0], [0], [1], [0, 0, 1, 1], [], []>} : vector<256x8xf32>, vector<8x8xf32>, vector<256x8xf32> -> vector<256x8xf32>
    %72 = arith.addf %65, %71 : vector<256x8xf32>
    %c4 = arith.constant 4 : index
    %c0_41 = arith.constant 0 : index
    %73 = vector.load %arg4[%c4, %c0_41] : memref<16x32xf32, #tpu.memory_space<vmem>>, vector<1x8xf32>
    %74 = vector.broadcast %73 : vector<1x8xf32> to vector<256x8xf32>
    %75 = arith.addf %72, %74 : vector<256x8xf32>
    %cst_42 = arith.constant 0.000000e+00 : f32
    %76 = vector.broadcast %cst_42 : f32 to vector<256x8xf32>
    %77 = arith.maximumf %75, %76 : vector<256x8xf32>
    %c0_43 = arith.constant 0 : index
    %c0_44 = arith.constant 0 : index
    %78 = vector.load %arg3[%c0_43, %c0_44] : memref<720x32xf32, #tpu.memory_space<vmem>>, vector<8x32xf32>
    %cst_45 = arith.constant dense<0.000000e+00> : vector<256x32xf32>
    %79 = tpu.matmul %77, %78, %cst_45 {dimension_numbers = #tpu.dot_dimension_numbers<[1], [0], [0], [1], [0, 0, 1, 1], [], []>} : vector<256x8xf32>, vector<8x32xf32>, vector<256x32xf32> -> vector<256x32xf32>
    %c8 = arith.constant 8 : index
    %c0_46 = arith.constant 0 : index
    %80 = vector.load %arg4[%c8, %c0_46] : memref<16x32xf32, #tpu.memory_space<vmem>>, vector<1x32xf32>
    %81 = vector.broadcast %80 : vector<1x32xf32> to vector<256x32xf32>
    %82 = arith.addf %79, %81 : vector<256x32xf32>
    %83 = arith.addf %82, %1 : vector<256x32xf32>
    %cst_47 = arith.constant 0.000000e+00 : f32
    %84 = vector.broadcast %cst_47 : f32 to vector<256x32xf32>
    %85 = arith.maximumf %83, %84 : vector<256x32xf32>
    %c0_48 = arith.constant 0 : index
    %c0_49 = arith.constant 0 : index
    %86 = vector.load %arg5[%c0_48, %c0_49] : memref<320x256xbf16, #tpu.memory_space<vmem>>, vector<64x256xbf16>
    %87 = arith.extf %86 : vector<64x256xbf16> to vector<64x256xf32>
    %cst_50 = arith.constant 0.000000e+00 : f32
    %88 = vector.broadcast %cst_50 : f32 to vector<1x32xf32>
    %89 = vector.extract_strided_slice %1 {offsets = [1, 0], sizes = [255, 32], strides = [1, 1]} : vector<256x32xf32> to vector<255x32xf32>
    %90 = tpu.concatenate %89, %88 in 0 : vector<255x32xf32>, vector<1x32xf32> -> vector<256x32xf32>
    %91 = arith.maximumf %1, %90 : vector<256x32xf32>
    %cst_51 = arith.constant 0.000000e+00 : f32
    %92 = vector.broadcast %cst_51 : f32 to vector<16x32xf32>
    %93 = vector.extract_strided_slice %1 {offsets = [16, 0], sizes = [240, 32], strides = [1, 1]} : vector<256x32xf32> to vector<240x32xf32>
    %94 = tpu.concatenate %93, %92 in 0 : vector<240x32xf32>, vector<16x32xf32> -> vector<256x32xf32>
    %cst_52 = arith.constant 0.000000e+00 : f32
    %95 = vector.broadcast %cst_52 : f32 to vector<17x32xf32>
    %96 = vector.extract_strided_slice %1 {offsets = [17, 0], sizes = [239, 32], strides = [1, 1]} : vector<256x32xf32> to vector<239x32xf32>
    %97 = tpu.concatenate %96, %95 in 0 : vector<239x32xf32>, vector<17x32xf32> -> vector<256x32xf32>
    %98 = arith.maximumf %94, %97 : vector<256x32xf32>
    %99 = arith.maximumf %91, %98 : vector<256x32xf32>
    %cst_53 = arith.constant dense<0.000000e+00> : vector<64x32xf32>
    %100 = tpu.matmul %87, %99, %cst_53 {dimension_numbers = #tpu.dot_dimension_numbers<[1], [0], [0], [1], [0, 0, 1, 1], [], []>} : vector<64x256xf32>, vector<256x32xf32>, vector<64x32xf32> -> vector<64x32xf32>
    %c104 = arith.constant 104 : index
    %c0_54 = arith.constant 0 : index
    %101 = vector.load %arg2[%c104, %c0_54] : memref<1088x8xf32, #tpu.memory_space<vmem>>, vector<32x8xf32>
    %cst_55 = arith.constant dense<0.000000e+00> : vector<64x8xf32>
    %102 = tpu.matmul %100, %101, %cst_55 {dimension_numbers = #tpu.dot_dimension_numbers<[1], [0], [0], [1], [0, 0, 1, 1], [], []>} : vector<64x32xf32>, vector<32x8xf32>, vector<64x8xf32> -> vector<64x8xf32>
    %c1 = arith.constant 1 : index
    %c0_56 = arith.constant 0 : index
    %103 = vector.load %arg4[%c1, %c0_56] : memref<16x32xf32, #tpu.memory_space<vmem>>, vector<1x8xf32>
    %104 = vector.broadcast %103 : vector<1x8xf32> to vector<64x8xf32>
    %105 = arith.addf %102, %104 : vector<64x8xf32>
    %cst_57 = arith.constant 0.000000e+00 : f32
    %106 = vector.broadcast %cst_57 : f32 to vector<64x8xf32>
    %107 = arith.maximumf %105, %106 : vector<64x8xf32>
    %cst_58 = arith.constant 0.000000e+00 : f32
    %108 = vector.broadcast %cst_58 : f32 to vector<9x8xf32>
    %109 = vector.extract_strided_slice %107 {offsets = [0, 0], sizes = [55, 8], strides = [1, 1]} : vector<64x8xf32> to vector<55x8xf32>
    %110 = tpu.concatenate %108, %109 in 0 : vector<9x8xf32>, vector<55x8xf32> -> vector<64x8xf32>
    %111 = arith.mulf %110, %4 : vector<64x8xf32>
    %c136 = arith.constant 136 : index
    %c0_59 = arith.constant 0 : index
    %112 = vector.load %arg2[%c136, %c0_59] : memref<1088x8xf32, #tpu.memory_space<vmem>>, vector<8x8xf32>
    %cst_60 = arith.constant dense<0.000000e+00> : vector<64x8xf32>
    %113 = tpu.matmul %111, %112, %cst_60 {dimension_numbers = #tpu.dot_dimension_numbers<[1], [0], [0], [1], [0, 0, 1, 1], [], []>} : vector<64x8xf32>, vector<8x8xf32>, vector<64x8xf32> -> vector<64x8xf32>
    %cst_61 = arith.constant 0.000000e+00 : f32
    %114 = vector.broadcast %cst_61 : f32 to vector<8x8xf32>
    %115 = vector.extract_strided_slice %107 {offsets = [0, 0], sizes = [56, 8], strides = [1, 1]} : vector<64x8xf32> to vector<56x8xf32>
    %116 = tpu.concatenate %114, %115 in 0 : vector<8x8xf32>, vector<56x8xf32> -> vector<64x8xf32>
    %c144 = arith.constant 144 : index
    %c0_62 = arith.constant 0 : index
    %117 = vector.load %arg2[%c144, %c0_62] : memref<1088x8xf32, #tpu.memory_space<vmem>>, vector<8x8xf32>
    %cst_63 = arith.constant dense<0.000000e+00> : vector<64x8xf32>
    %118 = tpu.matmul %116, %117, %cst_63 {dimension_numbers = #tpu.dot_dimension_numbers<[1], [0], [0], [1], [0, 0, 1, 1], [], []>} : vector<64x8xf32>, vector<8x8xf32>, vector<64x8xf32> -> vector<64x8xf32>
    %119 = arith.addf %113, %118 : vector<64x8xf32>
    %cst_64 = arith.constant 0.000000e+00 : f32
    %120 = vector.broadcast %cst_64 : f32 to vector<7x8xf32>
    %121 = vector.extract_strided_slice %107 {offsets = [0, 0], sizes = [57, 8], strides = [1, 1]} : vector<64x8xf32> to vector<57x8xf32>
    %122 = tpu.concatenate %120, %121 in 0 : vector<7x8xf32>, vector<57x8xf32> -> vector<64x8xf32>
    %123 = arith.mulf %122, %5 : vector<64x8xf32>
    %c152 = arith.constant 152 : index
    %c0_65 = arith.constant 0 : index
    %124 = vector.load %arg2[%c152, %c0_65] : memref<1088x8xf32, #tpu.memory_space<vmem>>, vector<8x8xf32>
    %cst_66 = arith.constant dense<0.000000e+00> : vector<64x8xf32>
    %125 = tpu.matmul %123, %124, %cst_66 {dimension_numbers = #tpu.dot_dimension_numbers<[1], [0], [0], [1], [0, 0, 1, 1], [], []>} : vector<64x8xf32>, vector<8x8xf32>, vector<64x8xf32> -> vector<64x8xf32>
    %126 = arith.addf %119, %125 : vector<64x8xf32>
    %cst_67 = arith.constant 0.000000e+00 : f32
    %127 = vector.broadcast %cst_67 : f32 to vector<1x8xf32>
    %128 = vector.extract_strided_slice %107 {offsets = [0, 0], sizes = [63, 8], strides = [1, 1]} : vector<64x8xf32> to vector<63x8xf32>
    %129 = tpu.concatenate %127, %128 in 0 : vector<1x8xf32>, vector<63x8xf32> -> vector<64x8xf32>
    %130 = arith.mulf %129, %4 : vector<64x8xf32>
    %c160 = arith.constant 160 : index
    %c0_68 = arith.constant 0 : index
    %131 = vector.load %arg2[%c160, %c0_68] : memref<1088x8xf32, #tpu.memory_space<vmem>>, vector<8x8xf32>
    %cst_69 = arith.constant dense<0.000000e+00> : vector<64x8xf32>
    %132 = tpu.matmul %130, %131, %cst_69 {dimension_numbers = #tpu.dot_dimension_numbers<[1], [0], [0], [1], [0, 0, 1, 1], [], []>} : vector<64x8xf32>, vector<8x8xf32>, vector<64x8xf32> -> vector<64x8xf32>
    %133 = arith.addf %126, %132 : vector<64x8xf32>
    %c168 = arith.constant 168 : index
    %c0_70 = arith.constant 0 : index
    %134 = vector.load %arg2[%c168, %c0_70] : memref<1088x8xf32, #tpu.memory_space<vmem>>, vector<8x8xf32>
    %cst_71 = arith.constant dense<0.000000e+00> : vector<64x8xf32>
    %135 = tpu.matmul %107, %134, %cst_71 {dimension_numbers = #tpu.dot_dimension_numbers<[1], [0], [0], [1], [0, 0, 1, 1], [], []>} : vector<64x8xf32>, vector<8x8xf32>, vector<64x8xf32> -> vector<64x8xf32>
    %136 = arith.addf %133, %135 : vector<64x8xf32>
    %cst_72 = arith.constant 0.000000e+00 : f32
    %137 = vector.broadcast %cst_72 : f32 to vector<1x8xf32>
    %138 = vector.extract_strided_slice %107 {offsets = [1, 0], sizes = [63, 8], strides = [1, 1]} : vector<64x8xf32> to vector<63x8xf32>
    %139 = tpu.concatenate %138, %137 in 0 : vector<63x8xf32>, vector<1x8xf32> -> vector<64x8xf32>
    %140 = arith.mulf %139, %5 : vector<64x8xf32>
    %c176 = arith.constant 176 : index
    %c0_73 = arith.constant 0 : index
    %141 = vector.load %arg2[%c176, %c0_73] : memref<1088x8xf32, #tpu.memory_space<vmem>>, vector<8x8xf32>
    %cst_74 = arith.constant dense<0.000000e+00> : vector<64x8xf32>
    %142 = tpu.matmul %140, %141, %cst_74 {dimension_numbers = #tpu.dot_dimension_numbers<[1], [0], [0], [1], [0, 0, 1, 1], [], []>} : vector<64x8xf32>, vector<8x8xf32>, vector<64x8xf32> -> vector<64x8xf32>
    %143 = arith.addf %136, %142 : vector<64x8xf32>
    %cst_75 = arith.constant 0.000000e+00 : f32
    %144 = vector.broadcast %cst_75 : f32 to vector<7x8xf32>
    %145 = vector.extract_strided_slice %107 {offsets = [7, 0], sizes = [57, 8], strides = [1, 1]} : vector<64x8xf32> to vector<57x8xf32>
    %146 = tpu.concatenate %145, %144 in 0 : vector<57x8xf32>, vector<7x8xf32> -> vector<64x8xf32>
    %147 = arith.mulf %146, %4 : vector<64x8xf32>
    %c184 = arith.constant 184 : index
    %c0_76 = arith.constant 0 : index
    %148 = vector.load %arg2[%c184, %c0_76] : memref<1088x8xf32, #tpu.memory_space<vmem>>, vector<8x8xf32>
    %cst_77 = arith.constant dense<0.000000e+00> : vector<64x8xf32>
    %149 = tpu.matmul %147, %148, %cst_77 {dimension_numbers = #tpu.dot_dimension_numbers<[1], [0], [0], [1], [0, 0, 1, 1], [], []>} : vector<64x8xf32>, vector<8x8xf32>, vector<64x8xf32> -> vector<64x8xf32>
    %150 = arith.addf %143, %149 : vector<64x8xf32>
    %cst_78 = arith.constant 0.000000e+00 : f32
    %151 = vector.broadcast %cst_78 : f32 to vector<8x8xf32>
    %152 = vector.extract_strided_slice %107 {offsets = [8, 0], sizes = [56, 8], strides = [1, 1]} : vector<64x8xf32> to vector<56x8xf32>
    %153 = tpu.concatenate %152, %151 in 0 : vector<56x8xf32>, vector<8x8xf32> -> vector<64x8xf32>
    %c192 = arith.constant 192 : index
    %c0_79 = arith.constant 0 : index
    %154 = vector.load %arg2[%c192, %c0_79] : memref<1088x8xf32, #tpu.memory_space<vmem>>, vector<8x8xf32>
    %cst_80 = arith.constant dense<0.000000e+00> : vector<64x8xf32>
    %155 = tpu.matmul %153, %154, %cst_80 {dimension_numbers = #tpu.dot_dimension_numbers<[1], [0], [0], [1], [0, 0, 1, 1], [], []>} : vector<64x8xf32>, vector<8x8xf32>, vector<64x8xf32> -> vector<64x8xf32>
    %156 = arith.addf %150, %155 : vector<64x8xf32>
    %cst_81 = arith.constant 0.000000e+00 : f32
    %157 = vector.broadcast %cst_81 : f32 to vector<9x8xf32>
    %158 = vector.extract_strided_slice %107 {offsets = [9, 0], sizes = [55, 8], strides = [1, 1]} : vector<64x8xf32> to vector<55x8xf32>
    %159 = tpu.concatenate %158, %157 in 0 : vector<55x8xf32>, vector<9x8xf32> -> vector<64x8xf32>
    %160 = arith.mulf %159, %5 : vector<64x8xf32>
    %c200 = arith.constant 200 : index
    %c0_82 = arith.constant 0 : index
    %161 = vector.load %arg2[%c200, %c0_82] : memref<1088x8xf32, #tpu.memory_space<vmem>>, vector<8x8xf32>
    %cst_83 = arith.constant dense<0.000000e+00> : vector<64x8xf32>
    %162 = tpu.matmul %160, %161, %cst_83 {dimension_numbers = #tpu.dot_dimension_numbers<[1], [0], [0], [1], [0, 0, 1, 1], [], []>} : vector<64x8xf32>, vector<8x8xf32>, vector<64x8xf32> -> vector<64x8xf32>
    %163 = arith.addf %156, %162 : vector<64x8xf32>
    %c5 = arith.constant 5 : index
    %c0_84 = arith.constant 0 : index
    %164 = vector.load %arg4[%c5, %c0_84] : memref<16x32xf32, #tpu.memory_space<vmem>>, vector<1x8xf32>
    %165 = vector.broadcast %164 : vector<1x8xf32> to vector<64x8xf32>
    %166 = arith.addf %163, %165 : vector<64x8xf32>
    %cst_85 = arith.constant 0.000000e+00 : f32
    %167 = vector.broadcast %cst_85 : f32 to vector<64x8xf32>
    %168 = arith.maximumf %166, %167 : vector<64x8xf32>
    %c8_86 = arith.constant 8 : index
    %c0_87 = arith.constant 0 : index
    %169 = vector.load %arg3[%c8_86, %c0_87] : memref<720x32xf32, #tpu.memory_space<vmem>>, vector<8x32xf32>
    %cst_88 = arith.constant dense<0.000000e+00> : vector<64x32xf32>
    %170 = tpu.matmul %168, %169, %cst_88 {dimension_numbers = #tpu.dot_dimension_numbers<[1], [0], [0], [1], [0, 0, 1, 1], [], []>} : vector<64x8xf32>, vector<8x32xf32>, vector<64x32xf32> -> vector<64x32xf32>
    %c9 = arith.constant 9 : index
    %c0_89 = arith.constant 0 : index
    %171 = vector.load %arg4[%c9, %c0_89] : memref<16x32xf32, #tpu.memory_space<vmem>>, vector<1x32xf32>
    %172 = vector.broadcast %171 : vector<1x32xf32> to vector<64x32xf32>
    %173 = arith.addf %170, %172 : vector<64x32xf32>
    %174 = arith.addf %173, %100 : vector<64x32xf32>
    %cst_90 = arith.constant 0.000000e+00 : f32
    %175 = vector.broadcast %cst_90 : f32 to vector<64x32xf32>
    %176 = arith.maximumf %174, %175 : vector<64x32xf32>
    %c0_91 = arith.constant 0 : index
    %c0_92 = arith.constant 0 : index
    %177 = vector.load %arg6[%c0_91, %c0_92] : memref<80x64xbf16, #tpu.memory_space<vmem>>, vector<16x64xbf16>
    %178 = arith.extf %177 : vector<16x64xbf16> to vector<16x64xf32>
    %cst_93 = arith.constant 0.000000e+00 : f32
    %179 = vector.broadcast %cst_93 : f32 to vector<1x32xf32>
    %180 = vector.extract_strided_slice %176 {offsets = [1, 0], sizes = [63, 32], strides = [1, 1]} : vector<64x32xf32> to vector<63x32xf32>
    %181 = tpu.concatenate %180, %179 in 0 : vector<63x32xf32>, vector<1x32xf32> -> vector<64x32xf32>
    %182 = arith.maximumf %176, %181 : vector<64x32xf32>
    %cst_94 = arith.constant 0.000000e+00 : f32
    %183 = vector.broadcast %cst_94 : f32 to vector<8x32xf32>
    %184 = vector.extract_strided_slice %176 {offsets = [8, 0], sizes = [56, 32], strides = [1, 1]} : vector<64x32xf32> to vector<56x32xf32>
    %185 = tpu.concatenate %184, %183 in 0 : vector<56x32xf32>, vector<8x32xf32> -> vector<64x32xf32>
    %cst_95 = arith.constant 0.000000e+00 : f32
    %186 = vector.broadcast %cst_95 : f32 to vector<9x32xf32>
    %187 = vector.extract_strided_slice %176 {offsets = [9, 0], sizes = [55, 32], strides = [1, 1]} : vector<64x32xf32> to vector<55x32xf32>
    %188 = tpu.concatenate %187, %186 in 0 : vector<55x32xf32>, vector<9x32xf32> -> vector<64x32xf32>
    %189 = arith.maximumf %185, %188 : vector<64x32xf32>
    %190 = arith.maximumf %182, %189 : vector<64x32xf32>
    %cst_96 = arith.constant dense<0.000000e+00> : vector<16x32xf32>
    %191 = tpu.matmul %178, %190, %cst_96 {dimension_numbers = #tpu.dot_dimension_numbers<[1], [0], [0], [1], [0, 0, 1, 1], [], []>} : vector<16x64xf32>, vector<64x32xf32>, vector<16x32xf32> -> vector<16x32xf32>
    %c208 = arith.constant 208 : index
    %c0_97 = arith.constant 0 : index
    %192 = vector.load %arg2[%c208, %c0_97] : memref<1088x8xf32, #tpu.memory_space<vmem>>, vector<32x8xf32>
    %cst_98 = arith.constant dense<0.000000e+00> : vector<16x8xf32>
    %193 = tpu.matmul %191, %192, %cst_98 {dimension_numbers = #tpu.dot_dimension_numbers<[1], [0], [0], [1], [0, 0, 1, 1], [], []>} : vector<16x32xf32>, vector<32x8xf32>, vector<16x8xf32> -> vector<16x8xf32>
    %c2 = arith.constant 2 : index
    %c0_99 = arith.constant 0 : index
    %194 = vector.load %arg4[%c2, %c0_99] : memref<16x32xf32, #tpu.memory_space<vmem>>, vector<1x8xf32>
    %195 = vector.broadcast %194 : vector<1x8xf32> to vector<16x8xf32>
    %196 = arith.addf %193, %195 : vector<16x8xf32>
    %cst_100 = arith.constant 0.000000e+00 : f32
    %197 = vector.broadcast %cst_100 : f32 to vector<16x8xf32>
    %198 = arith.maximumf %196, %197 : vector<16x8xf32>
    %cst_101 = arith.constant 0.000000e+00 : f32
    %199 = vector.broadcast %cst_101 : f32 to vector<5x8xf32>
    %200 = vector.extract_strided_slice %198 {offsets = [0, 0], sizes = [11, 8], strides = [1, 1]} : vector<16x8xf32> to vector<11x8xf32>
    %201 = tpu.concatenate %199, %200 in 0 : vector<5x8xf32>, vector<11x8xf32> -> vector<16x8xf32>
    %202 = arith.mulf %201, %6 : vector<16x8xf32>
    %c240 = arith.constant 240 : index
    %c0_102 = arith.constant 0 : index
    %203 = vector.load %arg2[%c240, %c0_102] : memref<1088x8xf32, #tpu.memory_space<vmem>>, vector<8x8xf32>
    %cst_103 = arith.constant dense<0.000000e+00> : vector<16x8xf32>
    %204 = tpu.matmul %202, %203, %cst_103 {dimension_numbers = #tpu.dot_dimension_numbers<[1], [0], [0], [1], [0, 0, 1, 1], [], []>} : vector<16x8xf32>, vector<8x8xf32>, vector<16x8xf32> -> vector<16x8xf32>
    %cst_104 = arith.constant 0.000000e+00 : f32
    %205 = vector.broadcast %cst_104 : f32 to vector<4x8xf32>
    %206 = vector.extract_strided_slice %198 {offsets = [0, 0], sizes = [12, 8], strides = [1, 1]} : vector<16x8xf32> to vector<12x8xf32>
    %207 = tpu.concatenate %205, %206 in 0 : vector<4x8xf32>, vector<12x8xf32> -> vector<16x8xf32>
    %c248 = arith.constant 248 : index
    %c0_105 = arith.constant 0 : index
    %208 = vector.load %arg2[%c248, %c0_105] : memref<1088x8xf32, #tpu.memory_space<vmem>>, vector<8x8xf32>
    %cst_106 = arith.constant dense<0.000000e+00> : vector<16x8xf32>
    %209 = tpu.matmul %207, %208, %cst_106 {dimension_numbers = #tpu.dot_dimension_numbers<[1], [0], [0], [1], [0, 0, 1, 1], [], []>} : vector<16x8xf32>, vector<8x8xf32>, vector<16x8xf32> -> vector<16x8xf32>
    %210 = arith.addf %204, %209 : vector<16x8xf32>
    %cst_107 = arith.constant 0.000000e+00 : f32
    %211 = vector.broadcast %cst_107 : f32 to vector<3x8xf32>
    %212 = vector.extract_strided_slice %198 {offsets = [0, 0], sizes = [13, 8], strides = [1, 1]} : vector<16x8xf32> to vector<13x8xf32>
    %213 = tpu.concatenate %211, %212 in 0 : vector<3x8xf32>, vector<13x8xf32> -> vector<16x8xf32>
    %214 = arith.mulf %213, %7 : vector<16x8xf32>
    %c256 = arith.constant 256 : index
    %c0_108 = arith.constant 0 : index
    %215 = vector.load %arg2[%c256, %c0_108] : memref<1088x8xf32, #tpu.memory_space<vmem>>, vector<8x8xf32>
    %cst_109 = arith.constant dense<0.000000e+00> : vector<16x8xf32>
    %216 = tpu.matmul %214, %215, %cst_109 {dimension_numbers = #tpu.dot_dimension_numbers<[1], [0], [0], [1], [0, 0, 1, 1], [], []>} : vector<16x8xf32>, vector<8x8xf32>, vector<16x8xf32> -> vector<16x8xf32>
    %217 = arith.addf %210, %216 : vector<16x8xf32>
    %cst_110 = arith.constant 0.000000e+00 : f32
    %218 = vector.broadcast %cst_110 : f32 to vector<1x8xf32>
    %219 = vector.extract_strided_slice %198 {offsets = [0, 0], sizes = [15, 8], strides = [1, 1]} : vector<16x8xf32> to vector<15x8xf32>
    %220 = tpu.concatenate %218, %219 in 0 : vector<1x8xf32>, vector<15x8xf32> -> vector<16x8xf32>
    %221 = arith.mulf %220, %6 : vector<16x8xf32>
    %c264 = arith.constant 264 : index
    %c0_111 = arith.constant 0 : index
    %222 = vector.load %arg2[%c264, %c0_111] : memref<1088x8xf32, #tpu.memory_space<vmem>>, vector<8x8xf32>
    %cst_112 = arith.constant dense<0.000000e+00> : vector<16x8xf32>
    %223 = tpu.matmul %221, %222, %cst_112 {dimension_numbers = #tpu.dot_dimension_numbers<[1], [0], [0], [1], [0, 0, 1, 1], [], []>} : vector<16x8xf32>, vector<8x8xf32>, vector<16x8xf32> -> vector<16x8xf32>
    %224 = arith.addf %217, %223 : vector<16x8xf32>
    %c272 = arith.constant 272 : index
    %c0_113 = arith.constant 0 : index
    %225 = vector.load %arg2[%c272, %c0_113] : memref<1088x8xf32, #tpu.memory_space<vmem>>, vector<8x8xf32>
    %cst_114 = arith.constant dense<0.000000e+00> : vector<16x8xf32>
    %226 = tpu.matmul %198, %225, %cst_114 {dimension_numbers = #tpu.dot_dimension_numbers<[1], [0], [0], [1], [0, 0, 1, 1], [], []>} : vector<16x8xf32>, vector<8x8xf32>, vector<16x8xf32> -> vector<16x8xf32>
    %227 = arith.addf %224, %226 : vector<16x8xf32>
    %cst_115 = arith.constant 0.000000e+00 : f32
    %228 = vector.broadcast %cst_115 : f32 to vector<1x8xf32>
    %229 = vector.extract_strided_slice %198 {offsets = [1, 0], sizes = [15, 8], strides = [1, 1]} : vector<16x8xf32> to vector<15x8xf32>
    %230 = tpu.concatenate %229, %228 in 0 : vector<15x8xf32>, vector<1x8xf32> -> vector<16x8xf32>
    %231 = arith.mulf %230, %7 : vector<16x8xf32>
    %c280 = arith.constant 280 : index
    %c0_116 = arith.constant 0 : index
    %232 = vector.load %arg2[%c280, %c0_116] : memref<1088x8xf32, #tpu.memory_space<vmem>>, vector<8x8xf32>
    %cst_117 = arith.constant dense<0.000000e+00> : vector<16x8xf32>
    %233 = tpu.matmul %231, %232, %cst_117 {dimension_numbers = #tpu.dot_dimension_numbers<[1], [0], [0], [1], [0, 0, 1, 1], [], []>} : vector<16x8xf32>, vector<8x8xf32>, vector<16x8xf32> -> vector<16x8xf32>
    %234 = arith.addf %227, %233 : vector<16x8xf32>
    %cst_118 = arith.constant 0.000000e+00 : f32
    %235 = vector.broadcast %cst_118 : f32 to vector<3x8xf32>
    %236 = vector.extract_strided_slice %198 {offsets = [3, 0], sizes = [13, 8], strides = [1, 1]} : vector<16x8xf32> to vector<13x8xf32>
    %237 = tpu.concatenate %236, %235 in 0 : vector<13x8xf32>, vector<3x8xf32> -> vector<16x8xf32>
    %238 = arith.mulf %237, %6 : vector<16x8xf32>
    %c288 = arith.constant 288 : index
    %c0_119 = arith.constant 0 : index
    %239 = vector.load %arg2[%c288, %c0_119] : memref<1088x8xf32, #tpu.memory_space<vmem>>, vector<8x8xf32>
    %cst_120 = arith.constant dense<0.000000e+00> : vector<16x8xf32>
    %240 = tpu.matmul %238, %239, %cst_120 {dimension_numbers = #tpu.dot_dimension_numbers<[1], [0], [0], [1], [0, 0, 1, 1], [], []>} : vector<16x8xf32>, vector<8x8xf32>, vector<16x8xf32> -> vector<16x8xf32>
    %241 = arith.addf %234, %240 : vector<16x8xf32>
    %cst_121 = arith.constant 0.000000e+00 : f32
    %242 = vector.broadcast %cst_121 : f32 to vector<4x8xf32>
    %243 = vector.extract_strided_slice %198 {offsets = [4, 0], sizes = [12, 8], strides = [1, 1]} : vector<16x8xf32> to vector<12x8xf32>
    %244 = tpu.concatenate %243, %242 in 0 : vector<12x8xf32>, vector<4x8xf32> -> vector<16x8xf32>
    %c296 = arith.constant 296 : index
    %c0_122 = arith.constant 0 : index
    %245 = vector.load %arg2[%c296, %c0_122] : memref<1088x8xf32, #tpu.memory_space<vmem>>, vector<8x8xf32>
    %cst_123 = arith.constant dense<0.000000e+00> : vector<16x8xf32>
    %246 = tpu.matmul %244, %245, %cst_123 {dimension_numbers = #tpu.dot_dimension_numbers<[1], [0], [0], [1], [0, 0, 1, 1], [], []>} : vector<16x8xf32>, vector<8x8xf32>, vector<16x8xf32> -> vector<16x8xf32>
    %247 = arith.addf %241, %246 : vector<16x8xf32>
    %cst_124 = arith.constant 0.000000e+00 : f32
    %248 = vector.broadcast %cst_124 : f32 to vector<5x8xf32>
    %249 = vector.extract_strided_slice %198 {offsets = [5, 0], sizes = [11, 8], strides = [1, 1]} : vector<16x8xf32> to vector<11x8xf32>
    %250 = tpu.concatenate %249, %248 in 0 : vector<11x8xf32>, vector<5x8xf32> -> vector<16x8xf32>
    %251 = arith.mulf %250, %7 : vector<16x8xf32>
    %c304 = arith.constant 304 : index
    %c0_125 = arith.constant 0 : index
    %252 = vector.load %arg2[%c304, %c0_125] : memref<1088x8xf32, #tpu.memory_space<vmem>>, vector<8x8xf32>
    %cst_126 = arith.constant dense<0.000000e+00> : vector<16x8xf32>
    %253 = tpu.matmul %251, %252, %cst_126 {dimension_numbers = #tpu.dot_dimension_numbers<[1], [0], [0], [1], [0, 0, 1, 1], [], []>} : vector<16x8xf32>, vector<8x8xf32>, vector<16x8xf32> -> vector<16x8xf32>
    %254 = arith.addf %247, %253 : vector<16x8xf32>
    %c6 = arith.constant 6 : index
    %c0_127 = arith.constant 0 : index
    %255 = vector.load %arg4[%c6, %c0_127] : memref<16x32xf32, #tpu.memory_space<vmem>>, vector<1x8xf32>
    %256 = vector.broadcast %255 : vector<1x8xf32> to vector<16x8xf32>
    %257 = arith.addf %254, %256 : vector<16x8xf32>
    %cst_128 = arith.constant 0.000000e+00 : f32
    %258 = vector.broadcast %cst_128 : f32 to vector<16x8xf32>
    %259 = arith.maximumf %257, %258 : vector<16x8xf32>
    %c16 = arith.constant 16 : index
    %c0_129 = arith.constant 0 : index
    %260 = vector.load %arg3[%c16, %c0_129] : memref<720x32xf32, #tpu.memory_space<vmem>>, vector<8x32xf32>
    %cst_130 = arith.constant dense<0.000000e+00> : vector<16x32xf32>
    %261 = tpu.matmul %259, %260, %cst_130 {dimension_numbers = #tpu.dot_dimension_numbers<[1], [0], [0], [1], [0, 0, 1, 1], [], []>} : vector<16x8xf32>, vector<8x32xf32>, vector<16x32xf32> -> vector<16x32xf32>
    %c10 = arith.constant 10 : index
    %c0_131 = arith.constant 0 : index
    %262 = vector.load %arg4[%c10, %c0_131] : memref<16x32xf32, #tpu.memory_space<vmem>>, vector<1x32xf32>
    %263 = vector.broadcast %262 : vector<1x32xf32> to vector<16x32xf32>
    %264 = arith.addf %261, %263 : vector<16x32xf32>
    %265 = arith.addf %264, %191 : vector<16x32xf32>
    %cst_132 = arith.constant 0.000000e+00 : f32
    %266 = vector.broadcast %cst_132 : f32 to vector<16x32xf32>
    %267 = arith.maximumf %265, %266 : vector<16x32xf32>
    %c16_133 = arith.constant 16 : index
    %c0_134 = arith.constant 0 : index
    %268 = vector.load %arg6[%c16_133, %c0_134] : memref<80x64xbf16, #tpu.memory_space<vmem>>, vector<64x64xbf16>
    %269 = arith.extf %268 : vector<64x64xbf16> to vector<64x64xf32>
    %cst_135 = arith.constant 0.000000e+00 : f32
    %270 = vector.broadcast %cst_135 : f32 to vector<1x32xf32>
    %271 = vector.extract_strided_slice %267 {offsets = [1, 0], sizes = [15, 32], strides = [1, 1]} : vector<16x32xf32> to vector<15x32xf32>
    %272 = tpu.concatenate %271, %270 in 0 : vector<15x32xf32>, vector<1x32xf32> -> vector<16x32xf32>
    %273 = arith.mulf %272, %9 : vector<16x32xf32>
    %cst_136 = arith.constant 0.000000e+00 : f32
    %274 = vector.broadcast %cst_136 : f32 to vector<4x32xf32>
    %275 = vector.extract_strided_slice %267 {offsets = [4, 0], sizes = [12, 32], strides = [1, 1]} : vector<16x32xf32> to vector<12x32xf32>
    %276 = tpu.concatenate %275, %274 in 0 : vector<12x32xf32>, vector<4x32xf32> -> vector<16x32xf32>
    %cst_137 = arith.constant 0.000000e+00 : f32
    %277 = vector.broadcast %cst_137 : f32 to vector<5x32xf32>
    %278 = vector.extract_strided_slice %267 {offsets = [5, 0], sizes = [11, 32], strides = [1, 1]} : vector<16x32xf32> to vector<11x32xf32>
    %279 = tpu.concatenate %278, %277 in 0 : vector<11x32xf32>, vector<5x32xf32> -> vector<16x32xf32>
    %280 = arith.mulf %279, %9 : vector<16x32xf32>
    %c160_138 = arith.constant 160 : index
    %c0_139 = arith.constant 0 : index
    %281 = vector.load %arg3[%c160_138, %c0_139] : memref<720x32xf32, #tpu.memory_space<vmem>>, vector<32x32xf32>
    %cst_140 = arith.constant dense<0.000000e+00> : vector<16x32xf32>
    %282 = tpu.matmul %267, %281, %cst_140 {dimension_numbers = #tpu.dot_dimension_numbers<[1], [0], [0], [1], [0, 0, 1, 1], [], []>} : vector<16x32xf32>, vector<32x32xf32>, vector<16x32xf32> -> vector<16x32xf32>
    %c192_141 = arith.constant 192 : index
    %c0_142 = arith.constant 0 : index
    %283 = vector.load %arg3[%c192_141, %c0_142] : memref<720x32xf32, #tpu.memory_space<vmem>>, vector<32x32xf32>
    %cst_143 = arith.constant dense<0.000000e+00> : vector<16x32xf32>
    %284 = tpu.matmul %267, %283, %cst_143 {dimension_numbers = #tpu.dot_dimension_numbers<[1], [0], [0], [1], [0, 0, 1, 1], [], []>} : vector<16x32xf32>, vector<32x32xf32>, vector<16x32xf32> -> vector<16x32xf32>
    %c128 = arith.constant 128 : index
    %c0_144 = arith.constant 0 : index
    %285 = vector.load %arg3[%c128, %c0_144] : memref<720x32xf32, #tpu.memory_space<vmem>>, vector<32x32xf32>
    %cst_145 = arith.constant dense<0.000000e+00> : vector<16x32xf32>
    %286 = tpu.matmul %273, %285, %cst_145 {dimension_numbers = #tpu.dot_dimension_numbers<[1], [0], [0], [1], [0, 0, 1, 1], [], []>} : vector<16x32xf32>, vector<32x32xf32>, vector<16x32xf32> -> vector<16x32xf32>
    %287 = arith.addf %284, %286 : vector<16x32xf32>
    %c256_146 = arith.constant 256 : index
    %c0_147 = arith.constant 0 : index
    %288 = vector.load %arg3[%c256_146, %c0_147] : memref<720x32xf32, #tpu.memory_space<vmem>>, vector<32x32xf32>
    %cst_148 = arith.constant dense<0.000000e+00> : vector<16x32xf32>
    %289 = tpu.matmul %267, %288, %cst_148 {dimension_numbers = #tpu.dot_dimension_numbers<[1], [0], [0], [1], [0, 0, 1, 1], [], []>} : vector<16x32xf32>, vector<32x32xf32>, vector<16x32xf32> -> vector<16x32xf32>
    %c64_149 = arith.constant 64 : index
    %c0_150 = arith.constant 0 : index
    %290 = vector.load %arg3[%c64_149, %c0_150] : memref<720x32xf32, #tpu.memory_space<vmem>>, vector<32x32xf32>
    %cst_151 = arith.constant dense<0.000000e+00> : vector<16x32xf32>
    %291 = tpu.matmul %276, %290, %cst_151 {dimension_numbers = #tpu.dot_dimension_numbers<[1], [0], [0], [1], [0, 0, 1, 1], [], []>} : vector<16x32xf32>, vector<32x32xf32>, vector<16x32xf32> -> vector<16x32xf32>
    %292 = arith.addf %289, %291 : vector<16x32xf32>
    %c288_152 = arith.constant 288 : index
    %c0_153 = arith.constant 0 : index
    %293 = vector.load %arg3[%c288_152, %c0_153] : memref<720x32xf32, #tpu.memory_space<vmem>>, vector<32x32xf32>
    %cst_154 = arith.constant dense<0.000000e+00> : vector<16x32xf32>
    %294 = tpu.matmul %267, %293, %cst_154 {dimension_numbers = #tpu.dot_dimension_numbers<[1], [0], [0], [1], [0, 0, 1, 1], [], []>} : vector<16x32xf32>, vector<32x32xf32>, vector<16x32xf32> -> vector<16x32xf32>
    %c224 = arith.constant 224 : index
    %c0_155 = arith.constant 0 : index
    %295 = vector.load %arg3[%c224, %c0_155] : memref<720x32xf32, #tpu.memory_space<vmem>>, vector<32x32xf32>
    %cst_156 = arith.constant dense<0.000000e+00> : vector<16x32xf32>
    %296 = tpu.matmul %273, %295, %cst_156 {dimension_numbers = #tpu.dot_dimension_numbers<[1], [0], [0], [1], [0, 0, 1, 1], [], []>} : vector<16x32xf32>, vector<32x32xf32>, vector<16x32xf32> -> vector<16x32xf32>
    %297 = arith.addf %294, %296 : vector<16x32xf32>
    %c96_157 = arith.constant 96 : index
    %c0_158 = arith.constant 0 : index
    %298 = vector.load %arg3[%c96_157, %c0_158] : memref<720x32xf32, #tpu.memory_space<vmem>>, vector<32x32xf32>
    %cst_159 = arith.constant dense<0.000000e+00> : vector<16x32xf32>
    %299 = tpu.matmul %276, %298, %cst_159 {dimension_numbers = #tpu.dot_dimension_numbers<[1], [0], [0], [1], [0, 0, 1, 1], [], []>} : vector<16x32xf32>, vector<32x32xf32>, vector<16x32xf32> -> vector<16x32xf32>
    %300 = arith.addf %297, %299 : vector<16x32xf32>
    %c32_160 = arith.constant 32 : index
    %c0_161 = arith.constant 0 : index
    %301 = vector.load %arg3[%c32_160, %c0_161] : memref<720x32xf32, #tpu.memory_space<vmem>>, vector<32x32xf32>
    %cst_162 = arith.constant dense<0.000000e+00> : vector<16x32xf32>
    %302 = tpu.matmul %280, %301, %cst_162 {dimension_numbers = #tpu.dot_dimension_numbers<[1], [0], [0], [1], [0, 0, 1, 1], [], []>} : vector<16x32xf32>, vector<32x32xf32>, vector<16x32xf32> -> vector<16x32xf32>
    %303 = arith.addf %300, %302 : vector<16x32xf32>
    %304 = tpu.concatenate %282, %287, %292, %303 in 0 : vector<16x32xf32>, vector<16x32xf32>, vector<16x32xf32>, vector<16x32xf32> -> vector<64x32xf32>
    %cst_163 = arith.constant dense<0.000000e+00> : vector<64x32xf32>
    %305 = tpu.matmul %269, %304, %cst_163 {dimension_numbers = #tpu.dot_dimension_numbers<[1], [0], [0], [1], [0, 0, 1, 1], [], []>} : vector<64x64xf32>, vector<64x32xf32>, vector<64x32xf32> -> vector<64x32xf32>
    %c12 = arith.constant 12 : index
    %c0_164 = arith.constant 0 : index
    %306 = vector.load %arg4[%c12, %c0_164] : memref<16x32xf32, #tpu.memory_space<vmem>>, vector<1x32xf32>
    %307 = vector.broadcast %306 : vector<1x32xf32> to vector<64x32xf32>
    %308 = arith.addf %305, %307 : vector<64x32xf32>
    %cst_165 = arith.constant 0.000000e+00 : f32
    %309 = vector.broadcast %cst_165 : f32 to vector<64x32xf32>
    %310 = arith.maximumf %308, %309 : vector<64x32xf32>
    %c312 = arith.constant 312 : index
    %c0_166 = arith.constant 0 : index
    %311 = vector.load %arg2[%c312, %c0_166] : memref<1088x8xf32, #tpu.memory_space<vmem>>, vector<32x8xf32>
    %cst_167 = arith.constant dense<0.000000e+00> : vector<64x8xf32>
    %312 = tpu.matmul %310, %311, %cst_167 {dimension_numbers = #tpu.dot_dimension_numbers<[1], [0], [0], [1], [0, 0, 1, 1], [], []>} : vector<64x32xf32>, vector<32x8xf32>, vector<64x8xf32> -> vector<64x8xf32>
    %c3 = arith.constant 3 : index
    %c0_168 = arith.constant 0 : index
    %313 = vector.load %arg4[%c3, %c0_168] : memref<16x32xf32, #tpu.memory_space<vmem>>, vector<1x8xf32>
    %314 = vector.broadcast %313 : vector<1x8xf32> to vector<64x8xf32>
    %315 = arith.addf %312, %314 : vector<64x8xf32>
    %cst_169 = arith.constant 0.000000e+00 : f32
    %316 = vector.broadcast %cst_169 : f32 to vector<64x8xf32>
    %317 = arith.maximumf %315, %316 : vector<64x8xf32>
    %cst_170 = arith.constant 0.000000e+00 : f32
    %318 = vector.broadcast %cst_170 : f32 to vector<9x8xf32>
    %319 = vector.extract_strided_slice %317 {offsets = [0, 0], sizes = [55, 8], strides = [1, 1]} : vector<64x8xf32> to vector<55x8xf32>
    %320 = tpu.concatenate %318, %319 in 0 : vector<9x8xf32>, vector<55x8xf32> -> vector<64x8xf32>
    %321 = arith.mulf %320, %4 : vector<64x8xf32>
    %c344 = arith.constant 344 : index
    %c0_171 = arith.constant 0 : index
    %322 = vector.load %arg2[%c344, %c0_171] : memref<1088x8xf32, #tpu.memory_space<vmem>>, vector<8x8xf32>
    %cst_172 = arith.constant dense<0.000000e+00> : vector<64x8xf32>
    %323 = tpu.matmul %321, %322, %cst_172 {dimension_numbers = #tpu.dot_dimension_numbers<[1], [0], [0], [1], [0, 0, 1, 1], [], []>} : vector<64x8xf32>, vector<8x8xf32>, vector<64x8xf32> -> vector<64x8xf32>
    %cst_173 = arith.constant 0.000000e+00 : f32
    %324 = vector.broadcast %cst_173 : f32 to vector<8x8xf32>
    %325 = vector.extract_strided_slice %317 {offsets = [0, 0], sizes = [56, 8], strides = [1, 1]} : vector<64x8xf32> to vector<56x8xf32>
    %326 = tpu.concatenate %324, %325 in 0 : vector<8x8xf32>, vector<56x8xf32> -> vector<64x8xf32>
    %c352 = arith.constant 352 : index
    %c0_174 = arith.constant 0 : index
    %327 = vector.load %arg2[%c352, %c0_174] : memref<1088x8xf32, #tpu.memory_space<vmem>>, vector<8x8xf32>
    %cst_175 = arith.constant dense<0.000000e+00> : vector<64x8xf32>
    %328 = tpu.matmul %326, %327, %cst_175 {dimension_numbers = #tpu.dot_dimension_numbers<[1], [0], [0], [1], [0, 0, 1, 1], [], []>} : vector<64x8xf32>, vector<8x8xf32>, vector<64x8xf32> -> vector<64x8xf32>
    %329 = arith.addf %323, %328 : vector<64x8xf32>
    %cst_176 = arith.constant 0.000000e+00 : f32
    %330 = vector.broadcast %cst_176 : f32 to vector<7x8xf32>
    %331 = vector.extract_strided_slice %317 {offsets = [0, 0], sizes = [57, 8], strides = [1, 1]} : vector<64x8xf32> to vector<57x8xf32>
    %332 = tpu.concatenate %330, %331 in 0 : vector<7x8xf32>, vector<57x8xf32> -> vector<64x8xf32>
    %333 = arith.mulf %332, %5 : vector<64x8xf32>
    %c360 = arith.constant 360 : index
    %c0_177 = arith.constant 0 : index
    %334 = vector.load %arg2[%c360, %c0_177] : memref<1088x8xf32, #tpu.memory_space<vmem>>, vector<8x8xf32>
    %cst_178 = arith.constant dense<0.000000e+00> : vector<64x8xf32>
    %335 = tpu.matmul %333, %334, %cst_178 {dimension_numbers = #tpu.dot_dimension_numbers<[1], [0], [0], [1], [0, 0, 1, 1], [], []>} : vector<64x8xf32>, vector<8x8xf32>, vector<64x8xf32> -> vector<64x8xf32>
    %336 = arith.addf %329, %335 : vector<64x8xf32>
    %cst_179 = arith.constant 0.000000e+00 : f32
    %337 = vector.broadcast %cst_179 : f32 to vector<1x8xf32>
    %338 = vector.extract_strided_slice %317 {offsets = [0, 0], sizes = [63, 8], strides = [1, 1]} : vector<64x8xf32> to vector<63x8xf32>
    %339 = tpu.concatenate %337, %338 in 0 : vector<1x8xf32>, vector<63x8xf32> -> vector<64x8xf32>
    %340 = arith.mulf %339, %4 : vector<64x8xf32>
    %c368 = arith.constant 368 : index
    %c0_180 = arith.constant 0 : index
    %341 = vector.load %arg2[%c368, %c0_180] : memref<1088x8xf32, #tpu.memory_space<vmem>>, vector<8x8xf32>
    %cst_181 = arith.constant dense<0.000000e+00> : vector<64x8xf32>
    %342 = tpu.matmul %340, %341, %cst_181 {dimension_numbers = #tpu.dot_dimension_numbers<[1], [0], [0], [1], [0, 0, 1, 1], [], []>} : vector<64x8xf32>, vector<8x8xf32>, vector<64x8xf32> -> vector<64x8xf32>
    %343 = arith.addf %336, %342 : vector<64x8xf32>
    %c376 = arith.constant 376 : index
    %c0_182 = arith.constant 0 : index
    %344 = vector.load %arg2[%c376, %c0_182] : memref<1088x8xf32, #tpu.memory_space<vmem>>, vector<8x8xf32>
    %cst_183 = arith.constant dense<0.000000e+00> : vector<64x8xf32>
    %345 = tpu.matmul %317, %344, %cst_183 {dimension_numbers = #tpu.dot_dimension_numbers<[1], [0], [0], [1], [0, 0, 1, 1], [], []>} : vector<64x8xf32>, vector<8x8xf32>, vector<64x8xf32> -> vector<64x8xf32>
    %346 = arith.addf %343, %345 : vector<64x8xf32>
    %cst_184 = arith.constant 0.000000e+00 : f32
    %347 = vector.broadcast %cst_184 : f32 to vector<1x8xf32>
    %348 = vector.extract_strided_slice %317 {offsets = [1, 0], sizes = [63, 8], strides = [1, 1]} : vector<64x8xf32> to vector<63x8xf32>
    %349 = tpu.concatenate %348, %347 in 0 : vector<63x8xf32>, vector<1x8xf32> -> vector<64x8xf32>
    %350 = arith.mulf %349, %5 : vector<64x8xf32>
    %c384 = arith.constant 384 : index
    %c0_185 = arith.constant 0 : index
    %351 = vector.load %arg2[%c384, %c0_185] : memref<1088x8xf32, #tpu.memory_space<vmem>>, vector<8x8xf32>
    %cst_186 = arith.constant dense<0.000000e+00> : vector<64x8xf32>
    %352 = tpu.matmul %350, %351, %cst_186 {dimension_numbers = #tpu.dot_dimension_numbers<[1], [0], [0], [1], [0, 0, 1, 1], [], []>} : vector<64x8xf32>, vector<8x8xf32>, vector<64x8xf32> -> vector<64x8xf32>
    %353 = arith.addf %346, %352 : vector<64x8xf32>
    %cst_187 = arith.constant 0.000000e+00 : f32
    %354 = vector.broadcast %cst_187 : f32 to vector<7x8xf32>
    %355 = vector.extract_strided_slice %317 {offsets = [7, 0], sizes = [57, 8], strides = [1, 1]} : vector<64x8xf32> to vector<57x8xf32>
    %356 = tpu.concatenate %355, %354 in 0 : vector<57x8xf32>, vector<7x8xf32> -> vector<64x8xf32>
    %357 = arith.mulf %356, %4 : vector<64x8xf32>
    %c392 = arith.constant 392 : index
    %c0_188 = arith.constant 0 : index
    %358 = vector.load %arg2[%c392, %c0_188] : memref<1088x8xf32, #tpu.memory_space<vmem>>, vector<8x8xf32>
    %cst_189 = arith.constant dense<0.000000e+00> : vector<64x8xf32>
    %359 = tpu.matmul %357, %358, %cst_189 {dimension_numbers = #tpu.dot_dimension_numbers<[1], [0], [0], [1], [0, 0, 1, 1], [], []>} : vector<64x8xf32>, vector<8x8xf32>, vector<64x8xf32> -> vector<64x8xf32>
    %360 = arith.addf %353, %359 : vector<64x8xf32>
    %cst_190 = arith.constant 0.000000e+00 : f32
    %361 = vector.broadcast %cst_190 : f32 to vector<8x8xf32>
    %362 = vector.extract_strided_slice %317 {offsets = [8, 0], sizes = [56, 8], strides = [1, 1]} : vector<64x8xf32> to vector<56x8xf32>
    %363 = tpu.concatenate %362, %361 in 0 : vector<56x8xf32>, vector<8x8xf32> -> vector<64x8xf32>
    %c400 = arith.constant 400 : index
    %c0_191 = arith.constant 0 : index
    %364 = vector.load %arg2[%c400, %c0_191] : memref<1088x8xf32, #tpu.memory_space<vmem>>, vector<8x8xf32>
    %cst_192 = arith.constant dense<0.000000e+00> : vector<64x8xf32>
    %365 = tpu.matmul %363, %364, %cst_192 {dimension_numbers = #tpu.dot_dimension_numbers<[1], [0], [0], [1], [0, 0, 1, 1], [], []>} : vector<64x8xf32>, vector<8x8xf32>, vector<64x8xf32> -> vector<64x8xf32>
    %366 = arith.addf %360, %365 : vector<64x8xf32>
    %cst_193 = arith.constant 0.000000e+00 : f32
    %367 = vector.broadcast %cst_193 : f32 to vector<9x8xf32>
    %368 = vector.extract_strided_slice %317 {offsets = [9, 0], sizes = [55, 8], strides = [1, 1]} : vector<64x8xf32> to vector<55x8xf32>
    %369 = tpu.concatenate %368, %367 in 0 : vector<55x8xf32>, vector<9x8xf32> -> vector<64x8xf32>
    %370 = arith.mulf %369, %5 : vector<64x8xf32>
    %c408 = arith.constant 408 : index
    %c0_194 = arith.constant 0 : index
    %371 = vector.load %arg2[%c408, %c0_194] : memref<1088x8xf32, #tpu.memory_space<vmem>>, vector<8x8xf32>
    %cst_195 = arith.constant dense<0.000000e+00> : vector<64x8xf32>
    %372 = tpu.matmul %370, %371, %cst_195 {dimension_numbers = #tpu.dot_dimension_numbers<[1], [0], [0], [1], [0, 0, 1, 1], [], []>} : vector<64x8xf32>, vector<8x8xf32>, vector<64x8xf32> -> vector<64x8xf32>
    %373 = arith.addf %366, %372 : vector<64x8xf32>
    %c7 = arith.constant 7 : index
    %c0_196 = arith.constant 0 : index
    %374 = vector.load %arg4[%c7, %c0_196] : memref<16x32xf32, #tpu.memory_space<vmem>>, vector<1x8xf32>
    %375 = vector.broadcast %374 : vector<1x8xf32> to vector<64x8xf32>
    %376 = arith.addf %373, %375 : vector<64x8xf32>
    %cst_197 = arith.constant 0.000000e+00 : f32
    %377 = vector.broadcast %cst_197 : f32 to vector<64x8xf32>
    %378 = arith.maximumf %376, %377 : vector<64x8xf32>
    %c24 = arith.constant 24 : index
    %c0_198 = arith.constant 0 : index
    %379 = vector.load %arg3[%c24, %c0_198] : memref<720x32xf32, #tpu.memory_space<vmem>>, vector<8x32xf32>
    %cst_199 = arith.constant dense<0.000000e+00> : vector<64x32xf32>
    %380 = tpu.matmul %378, %379, %cst_199 {dimension_numbers = #tpu.dot_dimension_numbers<[1], [0], [0], [1], [0, 0, 1, 1], [], []>} : vector<64x8xf32>, vector<8x32xf32>, vector<64x32xf32> -> vector<64x32xf32>
    %c11 = arith.constant 11 : index
    %c0_200 = arith.constant 0 : index
    %381 = vector.load %arg4[%c11, %c0_200] : memref<16x32xf32, #tpu.memory_space<vmem>>, vector<1x32xf32>
    %382 = vector.broadcast %381 : vector<1x32xf32> to vector<64x32xf32>
    %383 = arith.addf %380, %382 : vector<64x32xf32>
    %384 = arith.addf %383, %310 : vector<64x32xf32>
    %cst_201 = arith.constant 0.000000e+00 : f32
    %385 = vector.broadcast %cst_201 : f32 to vector<64x32xf32>
    %386 = arith.maximumf %384, %385 : vector<64x32xf32>
    %c64_202 = arith.constant 64 : index
    %c0_203 = arith.constant 0 : index
    %387 = vector.load %arg5[%c64_202, %c0_203] : memref<320x256xbf16, #tpu.memory_space<vmem>>, vector<256x256xbf16>
    %388 = arith.extf %387 : vector<256x256xbf16> to vector<256x256xf32>
    %cst_204 = arith.constant 0.000000e+00 : f32
    %389 = vector.broadcast %cst_204 : f32 to vector<1x32xf32>
    %390 = vector.extract_strided_slice %386 {offsets = [1, 0], sizes = [63, 32], strides = [1, 1]} : vector<64x32xf32> to vector<63x32xf32>
    %391 = tpu.concatenate %390, %389 in 0 : vector<63x32xf32>, vector<1x32xf32> -> vector<64x32xf32>
    %392 = arith.mulf %391, %8 : vector<64x32xf32>
    %cst_205 = arith.constant 0.000000e+00 : f32
    %393 = vector.broadcast %cst_205 : f32 to vector<8x32xf32>
    %394 = vector.extract_strided_slice %386 {offsets = [8, 0], sizes = [56, 32], strides = [1, 1]} : vector<64x32xf32> to vector<56x32xf32>
    %395 = tpu.concatenate %394, %393 in 0 : vector<56x32xf32>, vector<8x32xf32> -> vector<64x32xf32>
    %cst_206 = arith.constant 0.000000e+00 : f32
    %396 = vector.broadcast %cst_206 : f32 to vector<9x32xf32>
    %397 = vector.extract_strided_slice %386 {offsets = [9, 0], sizes = [55, 32], strides = [1, 1]} : vector<64x32xf32> to vector<55x32xf32>
    %398 = tpu.concatenate %397, %396 in 0 : vector<55x32xf32>, vector<9x32xf32> -> vector<64x32xf32>
    %399 = arith.mulf %398, %8 : vector<64x32xf32>
    %c448 = arith.constant 448 : index
    %c0_207 = arith.constant 0 : index
    %400 = vector.load %arg3[%c448, %c0_207] : memref<720x32xf32, #tpu.memory_space<vmem>>, vector<32x32xf32>
    %cst_208 = arith.constant dense<0.000000e+00> : vector<64x32xf32>
    %401 = tpu.matmul %386, %400, %cst_208 {dimension_numbers = #tpu.dot_dimension_numbers<[1], [0], [0], [1], [0, 0, 1, 1], [], []>} : vector<64x32xf32>, vector<32x32xf32>, vector<64x32xf32> -> vector<64x32xf32>
    %c480 = arith.constant 480 : index
    %c0_209 = arith.constant 0 : index
    %402 = vector.load %arg3[%c480, %c0_209] : memref<720x32xf32, #tpu.memory_space<vmem>>, vector<32x32xf32>
    %cst_210 = arith.constant dense<0.000000e+00> : vector<64x32xf32>
    %403 = tpu.matmul %386, %402, %cst_210 {dimension_numbers = #tpu.dot_dimension_numbers<[1], [0], [0], [1], [0, 0, 1, 1], [], []>} : vector<64x32xf32>, vector<32x32xf32>, vector<64x32xf32> -> vector<64x32xf32>
    %c416_211 = arith.constant 416 : index
    %c0_212 = arith.constant 0 : index
    %404 = vector.load %arg3[%c416_211, %c0_212] : memref<720x32xf32, #tpu.memory_space<vmem>>, vector<32x32xf32>
    %cst_213 = arith.constant dense<0.000000e+00> : vector<64x32xf32>
    %405 = tpu.matmul %392, %404, %cst_213 {dimension_numbers = #tpu.dot_dimension_numbers<[1], [0], [0], [1], [0, 0, 1, 1], [], []>} : vector<64x32xf32>, vector<32x32xf32>, vector<64x32xf32> -> vector<64x32xf32>
    %406 = arith.addf %403, %405 : vector<64x32xf32>
    %c544 = arith.constant 544 : index
    %c0_214 = arith.constant 0 : index
    %407 = vector.load %arg3[%c544, %c0_214] : memref<720x32xf32, #tpu.memory_space<vmem>>, vector<32x32xf32>
    %cst_215 = arith.constant dense<0.000000e+00> : vector<64x32xf32>
    %408 = tpu.matmul %386, %407, %cst_215 {dimension_numbers = #tpu.dot_dimension_numbers<[1], [0], [0], [1], [0, 0, 1, 1], [], []>} : vector<64x32xf32>, vector<32x32xf32>, vector<64x32xf32> -> vector<64x32xf32>
    %c352_216 = arith.constant 352 : index
    %c0_217 = arith.constant 0 : index
    %409 = vector.load %arg3[%c352_216, %c0_217] : memref<720x32xf32, #tpu.memory_space<vmem>>, vector<32x32xf32>
    %cst_218 = arith.constant dense<0.000000e+00> : vector<64x32xf32>
    %410 = tpu.matmul %395, %409, %cst_218 {dimension_numbers = #tpu.dot_dimension_numbers<[1], [0], [0], [1], [0, 0, 1, 1], [], []>} : vector<64x32xf32>, vector<32x32xf32>, vector<64x32xf32> -> vector<64x32xf32>
    %411 = arith.addf %408, %410 : vector<64x32xf32>
    %c576 = arith.constant 576 : index
    %c0_219 = arith.constant 0 : index
    %412 = vector.load %arg3[%c576, %c0_219] : memref<720x32xf32, #tpu.memory_space<vmem>>, vector<32x32xf32>
    %cst_220 = arith.constant dense<0.000000e+00> : vector<64x32xf32>
    %413 = tpu.matmul %386, %412, %cst_220 {dimension_numbers = #tpu.dot_dimension_numbers<[1], [0], [0], [1], [0, 0, 1, 1], [], []>} : vector<64x32xf32>, vector<32x32xf32>, vector<64x32xf32> -> vector<64x32xf32>
    %c512 = arith.constant 512 : index
    %c0_221 = arith.constant 0 : index
    %414 = vector.load %arg3[%c512, %c0_221] : memref<720x32xf32, #tpu.memory_space<vmem>>, vector<32x32xf32>
    %cst_222 = arith.constant dense<0.000000e+00> : vector<64x32xf32>
    %415 = tpu.matmul %392, %414, %cst_222 {dimension_numbers = #tpu.dot_dimension_numbers<[1], [0], [0], [1], [0, 0, 1, 1], [], []>} : vector<64x32xf32>, vector<32x32xf32>, vector<64x32xf32> -> vector<64x32xf32>
    %416 = arith.addf %413, %415 : vector<64x32xf32>
    %c384_223 = arith.constant 384 : index
    %c0_224 = arith.constant 0 : index
    %417 = vector.load %arg3[%c384_223, %c0_224] : memref<720x32xf32, #tpu.memory_space<vmem>>, vector<32x32xf32>
    %cst_225 = arith.constant dense<0.000000e+00> : vector<64x32xf32>
    %418 = tpu.matmul %395, %417, %cst_225 {dimension_numbers = #tpu.dot_dimension_numbers<[1], [0], [0], [1], [0, 0, 1, 1], [], []>} : vector<64x32xf32>, vector<32x32xf32>, vector<64x32xf32> -> vector<64x32xf32>
    %419 = arith.addf %416, %418 : vector<64x32xf32>
    %c320 = arith.constant 320 : index
    %c0_226 = arith.constant 0 : index
    %420 = vector.load %arg3[%c320, %c0_226] : memref<720x32xf32, #tpu.memory_space<vmem>>, vector<32x32xf32>
    %cst_227 = arith.constant dense<0.000000e+00> : vector<64x32xf32>
    %421 = tpu.matmul %399, %420, %cst_227 {dimension_numbers = #tpu.dot_dimension_numbers<[1], [0], [0], [1], [0, 0, 1, 1], [], []>} : vector<64x32xf32>, vector<32x32xf32>, vector<64x32xf32> -> vector<64x32xf32>
    %422 = arith.addf %419, %421 : vector<64x32xf32>
    %423 = tpu.concatenate %401, %406, %411, %422 in 0 : vector<64x32xf32>, vector<64x32xf32>, vector<64x32xf32>, vector<64x32xf32> -> vector<256x32xf32>
    %cst_228 = arith.constant dense<0.000000e+00> : vector<256x32xf32>
    %424 = tpu.matmul %388, %423, %cst_228 {dimension_numbers = #tpu.dot_dimension_numbers<[1], [0], [0], [1], [0, 0, 1, 1], [], []>} : vector<256x256xf32>, vector<256x32xf32>, vector<256x32xf32> -> vector<256x32xf32>
    %c13 = arith.constant 13 : index
    %c0_229 = arith.constant 0 : index
    %425 = vector.load %arg4[%c13, %c0_229] : memref<16x32xf32, #tpu.memory_space<vmem>>, vector<1x32xf32>
    %426 = vector.broadcast %425 : vector<1x32xf32> to vector<256x32xf32>
    %427 = arith.addf %424, %426 : vector<256x32xf32>
    %cst_230 = arith.constant 0.000000e+00 : f32
    %428 = vector.broadcast %cst_230 : f32 to vector<256x32xf32>
    %429 = arith.maximumf %427, %428 : vector<256x32xf32>
    %cst_231 = arith.constant 1.000000e+00 : f32
    %430 = vector.broadcast %cst_231 : f32 to vector<256x32xf32>
    %431 = arith.addf %430, %85 : vector<256x32xf32>
    %432 = arith.negf %429 : vector<256x32xf32>
    %433 = math.exp %432 : vector<256x32xf32>
    %cst_232 = arith.constant 1.000000e+00 : f32
    %434 = vector.broadcast %cst_232 : f32 to vector<256x32xf32>
    %435 = arith.addf %434, %433 : vector<256x32xf32>
    %436 = arith.divf %434, %435 : vector<256x32xf32>
    %437 = arith.mulf %431, %436 : vector<256x32xf32>
    %c608 = arith.constant 608 : index
    %c0_233 = arith.constant 0 : index
    %438 = vector.load %arg3[%c608, %c0_233] : memref<720x32xf32, #tpu.memory_space<vmem>>, vector<32x32xf32>
    %cst_234 = arith.constant dense<0.000000e+00> : vector<256x32xf32>
    %439 = tpu.matmul %437, %438, %cst_234 {dimension_numbers = #tpu.dot_dimension_numbers<[1], [0], [0], [1], [0, 0, 1, 1], [], []>} : vector<256x32xf32>, vector<32x32xf32>, vector<256x32xf32> -> vector<256x32xf32>
    %c14 = arith.constant 14 : index
    %c0_235 = arith.constant 0 : index
    %440 = vector.load %arg4[%c14, %c0_235] : memref<16x32xf32, #tpu.memory_space<vmem>>, vector<1x32xf32>
    %441 = vector.broadcast %440 : vector<1x32xf32> to vector<256x32xf32>
    %442 = arith.addf %439, %441 : vector<256x32xf32>
    %443 = vector.extract_strided_slice %442 {offsets = [0, 0], sizes = [256, 16], strides = [1, 1]} : vector<256x32xf32> to vector<256x16xf32>
    %c0_236 = arith.constant 0 : index
    %c0_237 = arith.constant 0 : index
    %c0_238 = arith.constant 0 : index
    %444 = vector.load %arg7[%c0_236, %c0_237, %c0_238] : memref<1x256x16xf32, #tpu.memory_space<vmem>>, vector<1x256x16xf32>
    %445 = vector.shape_cast %444 : vector<1x256x16xf32> to vector<256x16xf32>
    %446 = vector.shape_cast %443 : vector<256x16xf32> to vector<1x256x16xf32>
    tpu.vector_store %arg7[%c0_236, %c0_237, %c0_238], %446 {strides = array<i32>} : memref<1x256x16xf32, #tpu.memory_space<vmem>>, vector<1x256x16xf32>,
    return
  }
  func.func @transform_0(%arg0: i32) -> (i32, i32, i32) {
    %c0_i32 = arith.constant 0 : i32
    %c0_i32_0 = arith.constant 0 : i32
    %c0_i32_1 = arith.constant 0 : i32
    return %arg0, %c0_i32, %c0_i32_0 : i32, i32, i32
  }
  func.func @transform_1(%arg0: i32) -> (i32, i32) {
    %c0_i32 = arith.constant 0 : i32
    %c0_i32_0 = arith.constant 0 : i32
    %c0_i32_1 = arith.constant 0 : i32
    return %c0_i32, %c0_i32_0 : i32, i32
  }
  func.func @transform_2(%arg0: i32) -> (i32, i32) {
    %c0_i32 = arith.constant 0 : i32
    %c0_i32_0 = arith.constant 0 : i32
    %c0_i32_1 = arith.constant 0 : i32
    return %c0_i32, %c0_i32_0 : i32, i32
  }
  func.func @transform_3(%arg0: i32) -> (i32, i32) {
    %c0_i32 = arith.constant 0 : i32
    %c0_i32_0 = arith.constant 0 : i32
    %c0_i32_1 = arith.constant 0 : i32
    return %c0_i32, %c0_i32_0 : i32, i32
  }
  func.func @transform_4(%arg0: i32) -> (i32, i32) {
    %c0_i32 = arith.constant 0 : i32
    %c0_i32_0 = arith.constant 0 : i32
    %c0_i32_1 = arith.constant 0 : i32
    return %c0_i32, %c0_i32_0 : i32, i32
  }
  func.func @transform_5(%arg0: i32) -> (i32, i32) {
    %c0_i32 = arith.constant 0 : i32
    %c0_i32_0 = arith.constant 0 : i32
    %c0_i32_1 = arith.constant 0 : i32
    return %c0_i32, %c0_i32_0 : i32, i32
  }
  func.func @transform_6(%arg0: i32) -> (i32, i32, i32) {
    %c0_i32 = arith.constant 0 : i32
    %c0_i32_0 = arith.constant 0 : i32
    %c0_i32_1 = arith.constant 0 : i32
    return %arg0, %c0_i32, %c0_i32_0 : i32, i32, i32
  }
}

</mosaic_0001>

<bundles_post_ra>
// kernel: attention_module_forward.1
= control target key start
LH: loop header
LB: loop body
LE: loop exit
PB: predicated region body
PF: predicated region fallthrough
CT: control target
= control target key end

     0   :  { %s9079_s21 = smov 0   ;;  %s13851_s0 = inlined_call_operand.vmem [shape: f32[2,256,32], index: 0, kind: input, shape index: {}]   ;;  %s13852_s1 = inlined_call_operand.vmem [shape: f32[1088,8], index: 1, kind: input, shape index: {}]   ;;  %s13853_s2 = inlined_call_operand.vmem [shape: f32[720,32], index: 2, kind: input, shape index: {}]   ;;  %s13854_s3 = inlined_call_operand.vmem [shape: f32[16,32], index: 3, kind: input, shape index: {}]   ;;  %s13855_s4 = inlined_call_operand.vmem [shape: bf16[320,256], index: 4, kind: input, shape index: {}]   ;;  %s13856_s5 = inlined_call_operand.vmem [shape: bf16[80,64], index: 5, kind: input, shape index: {}]   ;;  %s13857_s6 = inlined_call_operand.vmem [shape: f32[2,256,16], index: 6, kind: output, shape index: {}]  }
   0x1 LB: > { %s8047_s22 = sadd.s32 4294967295, %s9041_s21   ;;  %p8051_p0 = scmp.ge.s32.totalorder %s9041_s21, 1  ;;  %s9041_s21 = sphi %s9079_s21, %s16_s21  }
   0x2   : > { %p212_p1 = scmp.lt.s32.totalorder %s9041_s21, 3 }
   0x4   : > { %p213_p2 = pnand %p8051_p0, %p212_p1 }
   0x6   : > { %216 = sbr.rel (%p213_p2) target bundleno = 3982 (0xf8e), region = 44 }
   0xb   : > { %v381_v0 = vld [vmem:[%s13852_s1 + $0x18] sm:$0xff]  ;;  %v380_v1 = vld [vmem:[%s13852_s1 + $0x10] sm:$0xff]  ;;  %p242_p3 = scmp.lt.s32.totalorder %s8047_s22, 1  ;;  %v379_v2 = vld [vmem:[%s13852_s1 + $0x8] sm:$0xff]  ;;  %vm384_vm0 = vcmask 261120   ;;  %vm781_vm1 = vcmask 64512  }
   0xc   : > { %493 = vmatpush.msra.mxu0 %v381_v0  ;;  %v378_v3 = vld [vmem:[%s13852_s1] sm:$0xff]  ;;  %v780_v15 = vld [vmem:[%s13852_s1 + $0x28] sm:$0xff]  ;;  %v13858_v19 = vmov 0.0   ;;  %v1294_v25 = vld [vmem:[%s13852_s1 + $0x30] sm:$0xff]  ;;  %vm656_vm2 = vcmask 1040384   ;;  %vm1168_vm3 = vcmask 1046528  }
   0xd   : > { %s14284_s22 = smov (!%p242_p3, %s8047_s22), 1  ;;  %v779_v16 = vld [vmem:[%s13852_s1 + $0x20] sm:$0xff]  ;;  %860 = vmatpush.msra.mxu1 %v780_v15  ;;  %v9151_v21 = vld [vmem:[%s13852_s1 + $0x1a8] sm:$0xff]  ;;  %8788 = vmatpush.msra.mxu3 %v1294_v25  ;;  %v9181_v33 = vld [vmem:[%s13852_s1 + $0x1b0] sm:$0xff]  ;;  %vm4485_vm4 = vcmask 523264   ;;  %vm4554_vm5 = vcmask 1044480  }
   0xe   : > { %494 = vmatpush.msra.mxu0 %v380_v1  ;;  %s8762_s7 = sshll.u32 %s14284_s22, 8  ;;  %v9140_v17 = vld [vmem:[%s13852_s1 + $0x1a0] sm:$0xff]  ;;  %1069 = vmatpush.msra.mxu2 %v779_v16  ;;  %v748_v23 = vmul.f32 0.0, %v9151_v21  ;;  %v9187_v35 = vld [vmem:[%s13852_s1 + $0x2a8] sm:$0xff]  ;;  %v9212_v46 = vld [vmem:[%s13852_s1 + $0x1b8] sm:$0xff]  ;;  %vm4628_vm6 = vcmask 1042432  }
   0xf   : > { %s9107_s10 = scalar_lea.vmem %s13851_s0, %s8762_s7  ;;  %v747_v18 = vmul.f32 0.0, %v9140_v17  ;;  %861 = vmatmul.f32.vlgmr.msra.gmra.mxu1 %v13858_v19  ;;  %v9169_v28 = vld [vmem:[%s13854_s3] ss:$0 sm:$0xff]  ;;  %v9218_v48 = vld [vmem:[%s13852_s1 + $0x2b0] sm:$0xff]  ;;  %v9249_v61 = vld [vmem:[%s13852_s1 + $0x2b8] sm:$0xff]  ;;  %vm4564_vm7 = vcmask 1043456   ;;  %s13589_s29 = scalar_lea.vmem %s13857_s6, %s8762_s7 }
  0x10   : > { %495 = vmatpush.msra.mxu0 %v379_v2  ;;  %v252_v4 = vld [vmem:[%s9107_s10] sm:$0xff]  ;;  %v253_v5 = vld [vmem:[%s9107_s10 + $0x8] sm:$0xff]  ;;  %v254_v6 = vld [vmem:[%s9107_s10 + $0x10] sm:$0xff]  ;;  %1406 = vmatpush.msrb.mxu1 %v1294_v25 }
  0x11   : > { %v255_v7 = vld [vmem:[%s9107_s10 + $0x18] sm:$0xff]  ;;  %v256_v8 = vld [vmem:[%s9107_s10 + $0x20] sm:$0xff]  ;;  %v257_v9 = vld [vmem:[%s9107_s10 + $0x28] sm:$0xff]  ;;  %8118 = vmatmul.msk.f32.vlgmr.msra.gmra.mxu2 %vm781_vm1, %v747_v18 }
  0x12   : > { %496 = vmatpush.msra.mxu0 %v378_v3  ;;  %v258_v10 = vld [vmem:[%s9107_s10 + $0x30] sm:$0xff]  ;;  %v259_v11 = vld [vmem:[%s9107_s10 + $0x38] sm:$0xff]  ;;  %v260_v12 = vld [vmem:[%s9107_s10 + $0x40] sm:$0xff] }
  0x13   : > { %8056 = vmatmul.msk.f32.vlgmr.msra.gmra.mxu0 %vm384_vm0, %v252_v4  ;;  %v261_v13 = vld [vmem:[%s9107_s10 + $0x48] sm:$0xff]  ;;  %v262_v14 = vld [vmem:[%s9107_s10 + $0x50] sm:$0xff]  ;;  %v263_v20 = vld [vmem:[%s9107_s10 + $0x58] sm:$0xff] }
  0x14   : > { %v264_v22 = vld [vmem:[%s9107_s10 + $0x60] sm:$0xff]  ;;  %v265_v24 = vld [vmem:[%s9107_s10 + $0x68] sm:$0xff]  ;;  %v266_v26 = vld [vmem:[%s9107_s10 + $0x70] sm:$0xff] }
  0x15   : > { %v267_v27 = vld [vmem:[%s9107_s10 + $0x78] sm:$0xff]  ;;  %v268_v30 = vld [vmem:[%s9107_s10 + $0x80] sm:$0xff]  ;;  %v269_v42 = vld [vmem:[%s9107_s10 + $0x88] sm:$0xff] }
  0x16   : > { %v1817_v45 = vld [vmem:[%s13852_s1 + $0x40] sm:$0xff]  ;;  %v270_v56 = vld [vmem:[%s9107_s10 + $0x90] sm:$0xff] }
  0x17   : > { %864 = vmatmul.f32.gmra.mxu1 %v13858_v19  ;;  %1837 = vmatpush.msrb.mxu2 %v1817_v45  ;;  %v9243_v59 = vld [vmem:[%s13852_s1 + $0x1c0] sm:$0xff] }
  0x19   : > { %8119 = vmatmul.msk.f32.gmra.mxu2 %vm781_vm1, %v748_v23  ;;  %v272_v23 = vld [vmem:[%s9107_s10 + $0xa0] sm:$0xff] }
  0x1b   : > { %8057 = vmatmul.msk.f32.gmra.mxu0 %vm384_vm0, %v253_v5  ;;  %v271_v5 = vld [vmem:[%s9107_s10 + $0x98] sm:$0xff] }
  0x23   : > { %8058 = vmatmul.msk.f32.gmra.mxu0 %vm384_vm0, %v254_v6 }
  0x2b   : > { %8059 = vmatmul.msk.f32.gmra.mxu0 %vm384_vm0, %v255_v7 }
  0x33   : > { %8060 = vmatmul.msk.f32.gmra.mxu0 %vm384_vm0, %v256_v8 }
  0x3b   : > { %8061 = vmatmul.msk.f32.gmra.mxu0 %vm384_vm0, %v257_v9  ;;  %v9278_v9 = vld [vmem:[%s13852_s1 + $0x1c8] sm:$0xff] }
  0x43   : > { %8062 = vmatmul.msk.f32.gmra.mxu0 %vm384_vm0, %v258_v10 }
  0x4b   : > { %8063 = vmatmul.msk.f32.gmra.mxu0 %vm384_vm0, %v259_v11  ;;  %v9284_v11 = vld [vmem:[%s13852_s1 + $0x2c0] sm:$0xff] }
  0x53   : > { %8064 = vmatmul.msk.f32.gmra.mxu0 %vm384_vm0, %v260_v12 }
  0x5b   : > { %8065 = vmatmul.msk.f32.gmra.mxu0 %vm384_vm0, %v261_v13  ;;  %v316_v13 = vld [vmem:[%s13852_s1 + $0x2a0] sm:$0xff] }
  0x63   : > { %8066 = vmatmul.msk.f32.gmra.mxu0 %vm384_vm0, %v262_v14 }
  0x6b   : > { %8067 = vmatmul.msk.f32.gmra.mxu0 %vm384_vm0, %v263_v20 }
  0x73   : > { %8068 = vmatmul.msk.f32.gmra.mxu0 %vm384_vm0, %v264_v22 }
  0x7b   : > { %8069 = vmatmul.msk.f32.gmra.mxu0 %vm384_vm0, %v265_v24 }
  0x83   : > { %8070 = vmatmul.msk.f32.gmra.mxu0 %vm384_vm0, %v266_v26 }
  0x8b   : > { %8071 = vmatmul.msk.f32.gmra.mxu0 %vm384_vm0, %v267_v27 }
  0x90   : > { %v498_v29 = vpop.f32.mrf.mxu0 }
  0x91   : > { %v499_v31 = vadd.f32 %v9169_v28, %v498_v29 }
  0x93   : > { %v9173_v32 = vmax.f32 %v499_v31, 0.0  ;;  %8072 = vmatmul.msk.f32.gmra.mxu0 %vm384_vm0, %v268_v30  ;;  %v9323_v31 = vld [vmem:[%s13852_s1 + $0x2c8] sm:$0xff] }
  0x95   : > { %8088 = vmatmul.msk.f32.gmra.mxu1 %vm781_vm1, %v9173_v32  ;;  %v657_v34 = vrot.slane %v9173_v32, 7  ;;  %v1169_v36 = vrot.slane %v9173_v32, 1 }
  0x97   : > { %v9191_v37 = vsel %vm656_vm2, 0.0, %v657_v34  ;;  %v1261_v38 = vsel %vm1168_vm3, 0.0, %v1169_v36 }
  0x98   : > { %v501_v39 = vpop.f32.mrf.mxu0  ;;  %v749_v40 = vmul.f32 %v9191_v37, %v9181_v33  ;;  %v1263_v41 = vmul.f32 %v1261_v38, %v9187_v35 }
  0x99   : > { %v502_v43 = vadd.f32 %v9169_v28, %v501_v39 }
  0x9a   : > { %8120 = vmatmul.msk.f32.gmra.mxu2 %vm781_vm1, %v749_v40  ;;  %8151 = vmatmul.msk.f32.vlgmr.msra.gmra.mxu3 %vm781_vm1, %v1263_v41 }
  0x9b   : > { %v9201_v44 = vmax.f32 %v502_v43, 0.0  ;;  %8073 = vmatmul.msk.f32.gmra.mxu0 %vm384_vm0, %v269_v42  ;;  %v273_v42 = vld [vmem:[%s9107_s10 + $0xa8] sm:$0xff] }
  0x9d   : > { %8089 = vmatmul.msk.f32.gmra.mxu1 %vm781_vm1, %v9201_v44  ;;  %v658_v47 = vrot.slane %v9201_v44, 7  ;;  %v1170_v49 = vrot.slane %v9201_v44, 1 }
  0x9f   : > { %v659_v50 = vsel %vm656_vm2, %v657_v34, %v658_v47  ;;  %v9223_v51 = vsel %vm1168_vm3, %v1169_v36, %v1170_v49 }
  0xa0   : > { %v504_v52 = vpop.f32.mrf.mxu0  ;;  %v750_v53 = vmul.f32 %v659_v50, %v9212_v46  ;;  %v9227_v54 = vmul.f32 %v659_v50, %v9151_v21  ;;  %v1264_v55 = vmul.f32 %v9223_v51, %v9218_v48 }
  0xa1   : > { %v505_v57 = vadd.f32 %v9169_v28, %v504_v52 }
  0xa2   : > { %8121 = vmatmul.msk.f32.gmra.mxu2 %vm781_vm1, %v750_v53  ;;  %8152 = vmatmul.msk.f32.gmra.mxu3 %vm781_vm1, %v1264_v55 }
  0xa3   : > { %v9235_v58 = vmax.f32 %v505_v57, 0.0  ;;  %8074 = vmatmul.msk.f32.gmra.mxu0 %vm384_vm0, %v270_v56 }
  0xa5   : > { %8090 = vmatmul.msk.f32.gmra.mxu1 %vm781_vm1, %v9235_v58  ;;  %v660_v60 = vrot.slane %v9235_v58, 7  ;;  %v1172_v62 = vrot.slane %v9235_v58, 1 }
  0xa7   : > { %v9253_v63 = vsel %vm656_vm2, %v658_v47, %v660_v60  ;;  %v1173_v0 = vsel %vm1168_vm3, %v1170_v49, %v1172_v62 }
  0xa8   : > { %v507_v1 = vpop.f32.mrf.mxu0  ;;  %v751_v2 = vmul.f32 %v9253_v63, %v9243_v59  ;;  %v1265_v3 = vmul.f32 %v1173_v0, %v9249_v61  ;;  %v9260_v4 = vmul.f32 %v1173_v0, %v9187_v35  ;;  %v9266_v7 = vmul.f32 %v9253_v63, %v9181_v33 }
  0xa9   : > { %v508_v6 = vadd.f32 %v9169_v28, %v507_v1  ;;  %v274_v1 = vld [vmem:[%s9107_s10 + $0xb0] sm:$0xff] }
  0xaa   : > { %8122 = vmatmul.msk.f32.gmra.mxu2 %vm781_vm1, %v751_v2  ;;  %8153 = vmatmul.msk.f32.gmra.mxu3 %vm781_vm1, %v1265_v3 }
  0xab   : > { %v9270_v8 = vmax.f32 %v508_v6, 0.0  ;;  %8075 = vmatmul.msk.f32.gmra.mxu0 %vm384_vm0, %v271_v5 }
  0xad   : > { %8091 = vmatmul.msk.f32.gmra.mxu1 %vm781_vm1, %v9270_v8  ;;  %v662_v10 = vrot.slane %v9270_v8, 7  ;;  %v1174_v12 = vrot.slane %v9270_v8, 1 }
  0xaf   : > { %v663_v14 = vsel %vm656_vm2, %v660_v60, %v662_v10  ;;  %v1175_v15 = vsel %vm1168_vm3, %v1172_v62, %v1174_v12 }
  0xb0   : > { %v510_v16 = vpop.f32.mrf.mxu0  ;;  %v752_v18 = vmul.f32 %v663_v14, %v9278_v9  ;;  %v1266_v20 = vmul.f32 %v1175_v15, %v9284_v11  ;;  %v9294_v22 = vmul.f32 %v1175_v15, %v316_v13  ;;  %v9298_v24 = vmul.f32 %v663_v14, %v9151_v21  ;;  %v9317_v21 = vld [vmem:[%s13852_s1 + $0x1d0] sm:$0xff] }
  0xb1   : > { %v511_v25 = vadd.f32 %v9169_v28, %v510_v16  ;;  %v9302_v26 = vmul.f32 %v1175_v15, %v9218_v48  ;;  %v9305_v27 = vmul.f32 %v663_v14, %v9212_v46 }
  0xb2   : > { %13922 = vst [vmem:[#allocation2_spill] sm:$0xff] %v9294_v22  ;;  %8123 = vmatmul.msk.f32.gmra.mxu2 %vm781_vm1, %v752_v18  ;;  %8154 = vmatmul.msk.f32.gmra.mxu3 %vm781_vm1, %v1266_v20 }
  0xb3   : > { %v9309_v29 = vmax.f32 %v511_v25, 0.0  ;;  %8076 = vmatmul.msk.f32.gmra.mxu0 %vm384_vm0, %v272_v23  ;;  %v275_v25 = vld [vmem:[%s9107_s10 + $0xb8] sm:$0xff] }
  0xb5   : > { %8092 = vmatmul.msk.f32.gmra.mxu1 %vm781_vm1, %v9309_v29  ;;  %v664_v30 = vrot.slane %v9309_v29, 7  ;;  %v1176_v34 = vrot.slane %v9309_v29, 1 }
  0xb7   : > { %v665_v36 = vsel %vm656_vm2, %v662_v10, %v664_v30  ;;  %v1177_v38 = vsel %vm1168_vm3, %v1174_v12, %v1176_v34 }
  0xb8   : > { %v513_v39 = vpop.f32.mrf.mxu0  ;;  %v753_v40 = vmul.f32 %v665_v36, %v9317_v21  ;;  %v1267_v41 = vmul.f32 %v1177_v38, %v9323_v31  ;;  %v9332_v43 = vmul.f32 %v665_v36, %v9181_v33  ;;  %v9335_v45 = vmul.f32 %v1177_v38, %v9249_v61  ;;  %v9354_v33 = vld [vmem:[%s13852_s1 + $0x1d8] sm:$0xff] }
  0xb9   : > { %v514_v47 = vadd.f32 %v9169_v28, %v513_v39  ;;  %v9339_v49 = vmul.f32 %v665_v36, %v9243_v59  ;;  %v9342_v50 = vmul.f32 %v1177_v38, %v9187_v35  ;;  %v9360_v35 = vld [vmem:[%s13852_s1 + $0x2d0] sm:$0xff] }
  0xba   : > { %8124 = vmatmul.msk.f32.gmra.mxu2 %vm781_vm1, %v753_v40  ;;  %8155 = vmatmul.msk.f32.gmra.mxu3 %vm781_vm1, %v1267_v41 }
  0xbb   : > { %13923 = vst [vmem:[#allocation3_spill] sm:$0xff] %v9342_v50  ;;  %v9346_v52 = vmax.f32 %v514_v47, 0.0  ;;  %8077 = vmatmul.msk.f32.gmra.mxu0 %vm384_vm0, %v273_v42 }
  0xbd   : > { %8093 = vmatmul.msk.f32.gmra.mxu1 %vm781_vm1, %v9346_v52  ;;  %v666_v53 = vrot.slane %v9346_v52, 7  ;;  %v1178_v55 = vrot.slane %v9346_v52, 1 }
  0xbf   : > { %v667_v56 = vsel %vm656_vm2, %v664_v30, %v666_v53  ;;  %v1179_v57 = vsel %vm1168_vm3, %v1176_v34, %v1178_v55 }
  0xc0   : > { %v516_v60 = vpop.f32.mrf.mxu0  ;;  %v754_v62 = vmul.f32 %v667_v56, %v9354_v33  ;;  %v1268_v0 = vmul.f32 %v1179_v57, %v9360_v35  ;;  %v9369_v2 = vmul.f32 %v667_v56, %v9212_v46  ;;  %v9372_v3 = vmul.f32 %v1179_v57, %v9284_v11  ;;  %v9391_v46 = vld [vmem:[%s13852_s1 + $0x1e0] sm:$0xff] }
  0xc1   : > { %v517_v5 = vadd.f32 %v9169_v28, %v516_v60  ;;  %v9376_v6 = vmul.f32 %v667_v56, %v9278_v9  ;;  %v9379_v10 = vmul.f32 %v1179_v57, %v9218_v48  ;;  %v9397_v48 = vld [vmem:[%s13852_s1 + $0x2d8] sm:$0xff]  ;;  %v276_v60 = vld [vmem:[%s9107_s10 + $0xc0] sm:$0xff] }
  0xc2   : > { %8125 = vmatmul.msk.f32.gmra.mxu2 %vm781_vm1, %v754_v62  ;;  %8156 = vmatmul.msk.f32.gmra.mxu3 %vm781_vm1, %v1268_v0 }
  0xc3   : > { %13924 = vst [vmem:[#allocation4_spill] sm:$0xff] %v9379_v10  ;;  %v9383_v12 = vmax.f32 %v517_v5, 0.0  ;;  %8078 = vmatmul.msk.f32.gmra.mxu0 %vm384_vm0, %v274_v1 }
  0xc5   : > { %8094 = vmatmul.msk.f32.gmra.mxu1 %vm781_vm1, %v9383_v12  ;;  %v668_v13 = vrot.slane %v9383_v12, 7  ;;  %v1180_v14 = vrot.slane %v9383_v12, 1 }
  0xc7   : > { %v669_v15 = vsel %vm656_vm2, %v666_v53, %v668_v13  ;;  %v1181_v16 = vsel %vm1168_vm3, %v1178_v55, %v1180_v14 }
  0xc8   : > { %v519_v18 = vpop.f32.mrf.mxu0  ;;  %v755_v20 = vmul.f32 %v669_v15, %v9391_v46  ;;  %v1269_v23 = vmul.f32 %v1181_v16, %v9397_v48  ;;  %v9406_v30 = vmul.f32 %v669_v15, %v9243_v59  ;;  %v9409_v34 = vmul.f32 %v1181_v16, %v9323_v31  ;;  %v9428_v59 = vld [vmem:[%s13852_s1 + $0x1e8] sm:$0xff] }
  0xc9   : > { %v520_v36 = vadd.f32 %v9169_v28, %v519_v18  ;;  %v9413_v38 = vmul.f32 %v669_v15, %v9317_v21  ;;  %v9416_v39 = vmul.f32 %v1181_v16, %v9249_v61  ;;  %v9434_v61 = vld [vmem:[%s13852_s1 + $0x2e0] sm:$0xff] }
  0xca   : > { %8126 = vmatmul.msk.f32.gmra.mxu2 %vm781_vm1, %v755_v20  ;;  %8157 = vmatmul.msk.f32.gmra.mxu3 %vm781_vm1, %v1269_v23 }
  0xcb   : > { %13925 = vst [vmem:[#allocation5_spill] sm:$0xff] %v9416_v39  ;;  %v9420_v40 = vmax.f32 %v520_v36, 0.0  ;;  %8079 = vmatmul.msk.f32.gmra.mxu0 %vm384_vm0, %v275_v25 }
  0xcd   : > { %8095 = vmatmul.msk.f32.gmra.mxu1 %vm781_vm1, %v9420_v40  ;;  %v670_v41 = vrot.slane %v9420_v40, 7  ;;  %v1182_v42 = vrot.slane %v9420_v40, 1 }
  0xcf   : > { %v671_v47 = vsel %vm656_vm2, %v668_v13, %v670_v41  ;;  %v1183_v53 = vsel %vm1168_vm3, %v1180_v14, %v1182_v42 }
  0xd0   : > { %v522_v55 = vpop.f32.mrf.mxu0  ;;  %v756_v56 = vmul.f32 %v671_v47, %v9428_v59  ;;  %v1270_v57 = vmul.f32 %v1183_v53, %v9434_v61  ;;  %v9443_v62 = vmul.f32 %v671_v47, %v9278_v9  ;;  %v9446_v0 = vmul.f32 %v1183_v53, %v9360_v35  ;;  %v9465_v9 = vld [vmem:[%s13852_s1 + $0x1f0] sm:$0xff] }
  0xd1   : > { %v523_v1 = vadd.f32 %v9169_v28, %v522_v55  ;;  %v9450_v5 = vmul.f32 %v671_v47, %v9354_v33  ;;  %v9453_v13 = vmul.f32 %v1183_v53, %v9284_v11  ;;  %v9471_v11 = vld [vmem:[%s13852_s1 + $0x2e8] sm:$0xff] }
  0xd2   : > { %13926 = vst [vmem:[#allocation6_spill] sm:$0xff] %v9446_v0  ;;  %8127 = vmatmul.msk.f32.gmra.mxu2 %vm781_vm1, %v756_v56  ;;  %8158 = vmatmul.msk.f32.gmra.mxu3 %vm781_vm1, %v1270_v57  ;;  %v277_v47 = vld [vmem:[%s9107_s10 + $0xc8] sm:$0xff] }
  0xd3   : > { %13927 = vst [vmem:[#allocation7_spill] sm:$0xff] %v9450_v5  ;;  %v9457_v14 = vmax.f32 %v523_v1, 0.0  ;;  %8080 = vmatmul.msk.f32.gmra.mxu0 %vm384_vm0, %v276_v60 }
  0xd4   : > { %13928 = vst [vmem:[#allocation8_spill] sm:$0xff] %v9453_v13 }
  0xd5   : > { %13929 = vst [vmem:[#allocation9_spill] sm:$0xff] %v9457_v14  ;;  %8096 = vmatmul.msk.f32.gmra.mxu1 %vm781_vm1, %v9457_v14  ;;  %v672_v15 = vrot.slane %v9457_v14, 7  ;;  %v1184_v16 = vrot.slane %v9457_v14, 1 }
  0xd7   : > { %v673_v18 = vsel %vm656_vm2, %v670_v41, %v672_v15  ;;  %v1185_v20 = vsel %vm1168_vm3, %v1182_v42, %v1184_v16 }
  0xd8   : > { %v525_v23 = vpop.f32.mrf.mxu0  ;;  %v757_v25 = vmul.f32 %v673_v18, %v9465_v9  ;;  %v1271_v36 = vmul.f32 %v1185_v20, %v9471_v11  ;;  %v9480_v53 = vmul.f32 %v673_v18, %v9317_v21  ;;  %v9483_v55 = vmul.f32 %v1185_v20, %v9397_v48  ;;  %v9502_v21 = vld [vmem:[%s13852_s1 + $0x1f8] sm:$0xff] }
  0xd9   : > { %v526_v56 = vadd.f32 %v9169_v28, %v525_v23  ;;  %v9487_v57 = vmul.f32 %v673_v18, %v9391_v46  ;;  %v9490_v41 = vmul.f32 %v1185_v20, %v9323_v31  ;;  %v9508_v31 = vld [vmem:[%s13852_s1 + $0x2f0] sm:$0xff] }
  0xda   : > { %13930 = vst [vmem:[#allocation10_spill] sm:$0xff] %v9483_v55  ;;  %8128 = vmatmul.msk.f32.gmra.mxu2 %vm781_vm1, %v757_v25  ;;  %8159 = vmatmul.msk.f32.gmra.mxu3 %vm781_vm1, %v1271_v36 }
  0xdb   : > { %13931 = vst [vmem:[#allocation11_spill] sm:$0xff] %v9487_v57  ;;  %v9494_v42 = vmax.f32 %v526_v56, 0.0  ;;  %8081 = vmatmul.msk.f32.gmra.mxu0 %vm384_vm0, %v277_v47  ;;  %v278_v47 = vld [vmem:[%s9107_s10 + $0xd0] sm:$0xff]  ;;  %v9715_v57 = vpop.f32.mrf.mxu2 }
  0xdc   : > { %13932 = vst [vmem:[#allocation12_spill] sm:$0xff] %v9490_v41 }
  0xdd   : > { %13933 = vst [vmem:[#allocation13_spill] sm:$0xff] %v9494_v42  ;;  %8097 = vmatmul.msk.f32.gmra.mxu1 %vm781_vm1, %v9494_v42  ;;  %v674_v60 = vrot.slane %v9494_v42, 7  ;;  %v1186_v1 = vrot.slane %v9494_v42, 1 }
  0xde   : > { %13957 = vst [vmem:[#allocation37_spill] sm:$0xff] %v9715_v57 }
  0xdf   : > { %v675_v18 = vsel %vm656_vm2, %v672_v15, %v674_v60  ;;  %v1187_v20 = vsel %vm1168_vm3, %v1184_v16, %v1186_v1 }
  0xe0   : > { %v528_v23 = vpop.f32.mrf.mxu0  ;;  %v758_v25 = vmul.f32 %v675_v18, %v9502_v21  ;;  %v1272_v36 = vmul.f32 %v1187_v20, %v9508_v31  ;;  %v9517_v56 = vmul.f32 %v675_v18, %v9354_v33  ;;  %v9520_v19 = vmul.f32 %v1187_v20, %v9434_v61  ;;  %v9539_v33 = vld [vmem:[%s13852_s1 + $0x200] sm:$0xff] }
  0xe1   : > { %v529_v41 = vadd.f32 %v9169_v28, %v528_v23  ;;  %v9524_v13 = vmul.f32 %v675_v18, %v9428_v59  ;;  %v9527_v15 = vmul.f32 %v1187_v20, %v9360_v35  ;;  %v9545_v35 = vld [vmem:[%s13852_s1 + $0x2f8] sm:$0xff] }
  0xe2   : > { %13934 = vst [vmem:[#allocation14_spill] sm:$0xff] %v9520_v19  ;;  %8129 = vmatmul.msk.f32.gmra.mxu2 %vm781_vm1, %v758_v25  ;;  %8160 = vmatmul.msk.f32.gmra.mxu3 %vm781_vm1, %v1272_v36 }
  0xe3   : > { %13935 = vst [vmem:[#allocation15_spill] sm:$0xff] %v9524_v13  ;;  %v9531_v16 = vmax.f32 %v529_v41, 0.0  ;;  %8082 = vmatmul.msk.f32.gmra.mxu0 %vm384_vm0, %v278_v47 }
  0xe4   : > { %13936 = vst [vmem:[#allocation16_spill] sm:$0xff] %v9527_v15  ;;  %v279_v15 = vld [vmem:[%s9107_s10 + $0xd8] sm:$0xff] }
  0xe5   : > { %13937 = vst [vmem:[#allocation17_spill] sm:$0xff] %v9531_v16  ;;  %8098 = vmatmul.msk.f32.gmra.mxu1 %vm781_vm1, %v9531_v16  ;;  %v676_v18 = vrot.slane %v9531_v16, 7  ;;  %v1188_v41 = vrot.slane %v9531_v16, 1 }
  0xe7   : > { %v677_v20 = vsel %vm656_vm2, %v674_v60, %v676_v18  ;;  %v1189_v23 = vsel %vm1168_vm3, %v1186_v1, %v1188_v41 }
  0xe8   : > { %v531_v25 = vpop.f32.mrf.mxu0  ;;  %v759_v36 = vmul.f32 %v677_v20, %v9539_v33  ;;  %v1273_v47 = vmul.f32 %v1189_v23, %v9545_v35  ;;  %v9554_v39 = vmul.f32 %v677_v20, %v9391_v46  ;;  %v9557_v10 = vmul.f32 %v1189_v23, %v9471_v11  ;;  %v9576_v46 = vld [vmem:[%s13852_s1 + $0x208] sm:$0xff] }
  0xe9   : > { %v532_v50 = vadd.f32 %v9169_v28, %v531_v25  ;;  %v9561_v22 = vmul.f32 %v677_v20, %v9465_v9  ;;  %v9564_v60 = vmul.f32 %v1189_v23, %v9397_v48  ;;  %v9582_v48 = vld [vmem:[%s13852_s1 + $0x300] sm:$0xff] }
  0xea   : > { %13938 = vst [vmem:[#allocation18_spill] sm:$0xff] %v9557_v10  ;;  %8130 = vmatmul.msk.f32.gmra.mxu2 %vm781_vm1, %v759_v36  ;;  %8161 = vmatmul.msk.f32.gmra.mxu3 %vm781_vm1, %v1273_v47 }
  0xeb   : > { %13939 = vst [vmem:[#allocation19_spill] sm:$0xff] %v9561_v22  ;;  %v9568_v1 = vmax.f32 %v532_v50, 0.0  ;;  %8083 = vmatmul.msk.f32.gmra.mxu0 %vm384_vm0, %v279_v15 }
  0xec   : > { %13940 = vst [vmem:[#allocation20_spill] sm:$0xff] %v9564_v60  ;;  %v280_v60 = vld [vmem:[%s9107_s10 + $0xe0] sm:$0xff] }
  0xed   : > { %13941 = vst [vmem:[#allocation21_spill] sm:$0xff] %v9568_v1  ;;  %8099 = vmatmul.msk.f32.gmra.mxu1 %vm781_vm1, %v9568_v1  ;;  %v678_v20 = vrot.slane %v9568_v1, 7  ;;  %v1190_v50 = vrot.slane %v9568_v1, 1 }
  0xef   : > { %v679_v23 = vsel %vm656_vm2, %v676_v18, %v678_v20  ;;  %v1191_v15 = vsel %vm1168_vm3, %v1188_v41, %v1190_v50  ;;  %v2280_v18 = vld [vmem:[%s13852_s1 + $0x50] sm:$0xff] }
  0xf0   : > { %v534_v25 = vpop.f32.mrf.mxu0  ;;  %v760_v36 = vmul.f32 %v679_v23, %v9576_v46  ;;  %v1274_v47 = vmul.f32 %v1191_v15, %v9582_v48  ;;  %v9591_v22 = vmul.f32 %v679_v23, %v9428_v59  ;;  %v9594_v10 = vmul.f32 %v1191_v15, %v9508_v31  ;;  %2392 = vmatpush.msrb.mxu0 %v2280_v18 }
  0xf1   : > { %v535_v16 = vadd.f32 %v9169_v28, %v534_v25  ;;  %v9601_v41 = vmul.f32 %v679_v23, %v9502_v21  ;;  %v9604_v1 = vmul.f32 %v1191_v15, %v9434_v61  ;;  %v9616_v23 = vld [vmem:[%s13852_s1 + $0x210] sm:$0xff]  ;;  %v9622_v15 = vld [vmem:[%s13852_s1 + $0x308] sm:$0xff] }
  0xf2   : > { %13942 = vst [vmem:[#allocation22_spill] sm:$0xff] %v9594_v10  ;;  %8131 = vmatmul.msk.f32.gmra.mxu2 %vm781_vm1, %v760_v36  ;;  %8162 = vmatmul.msk.f32.gmra.mxu3 %vm781_vm1, %v1274_v47 }
  0xf3   : > { %13943 = vst [vmem:[#allocation23_spill] sm:$0xff] %v9601_v41  ;;  %v9608_v59 = vmax.f32 %v535_v16, 0.0  ;;  %8084 = vmatmul.msk.f32.gmra.mxu0 %vm384_vm0, %v280_v60 }
  0xf4   : > { %13944 = vst [vmem:[#allocation24_spill] sm:$0xff] %v9604_v1  ;;  %v281_v1 = vld [vmem:[%s9107_s10 + $0xe8] sm:$0xff] }
  0xf5   : > { %13945 = vst [vmem:[#allocation25_spill] sm:$0xff] %v9608_v59  ;;  %8100 = vmatmul.msk.f32.gmra.mxu1 %vm781_vm1, %v9608_v59  ;;  %v680_v61 = vrot.slane %v9608_v59, 7  ;;  %v1192_v16 = vrot.slane %v9608_v59, 1 }
  0xf7   : > { %v681_v60 = vsel %vm656_vm2, %v678_v20, %v680_v61  ;;  %v1193_v25 = vsel %vm1168_vm3, %v1190_v50, %v1192_v16 }
  0xf8   : > { %v537_v36 = vpop.f32.mrf.mxu0  ;;  %v761_v47 = vmul.f32 %v681_v60, %v9616_v23  ;;  %v1275_v18 = vmul.f32 %v1193_v25, %v9622_v15  ;;  %v9631_v41 = vmul.f32 %v681_v60, %v9465_v9  ;;  %v9634_v10 = vmul.f32 %v1193_v25, %v9545_v35  ;;  %v9653_v9 = vld [vmem:[%s13852_s1 + $0x218] sm:$0xff] }
  0xf9   : > { %v538_v13 = vadd.f32 %v9169_v28, %v537_v36  ;;  %v9638_v59 = vmul.f32 %v681_v60, %v9539_v33  ;;  %v9641_v20 = vmul.f32 %v1193_v25, %v9471_v11  ;;  %v9659_v60 = vld [vmem:[%s13852_s1 + $0x310] sm:$0xff]  ;;  %v9662_v25 = vpop.f32.mrf.mxu1 }
  0xfa   : > { %13946 = vst [vmem:[#allocation26_spill] sm:$0xff] %v9634_v10  ;;  %8132 = vmatmul.msk.f32.gmra.mxu2 %vm781_vm1, %v761_v47  ;;  %8163 = vmatmul.msk.f32.gmra.mxu3 %vm781_vm1, %v1275_v18 }
  0xfb   : > { %13947 = vst [vmem:[#allocation27_spill] sm:$0xff] %v9638_v59  ;;  %v9645_v50 = vmax.f32 %v538_v13, 0.0  ;;  %8085 = vmatmul.msk.f32.gmra.mxu0 %vm384_vm0, %v281_v1  ;;  %v282_v59 = vld [vmem:[%s9107_s10 + $0xf0] sm:$0xff] }
  0xfc   : > { %13948 = vst [vmem:[#allocation28_spill] sm:$0xff] %v9641_v20 }
  0xfd   : > { %13949 = vst [vmem:[#allocation29_spill] sm:$0xff] %v9645_v50  ;;  %8101 = vmatmul.msk.f32.gmra.mxu1 %vm781_vm1, %v9645_v50  ;;  %v682_v11 = vrot.slane %v9645_v50, 7  ;;  %v1194_v13 = vrot.slane %v9645_v50, 1 }
  0xfe   : > { %13950 = vst [vmem:[#allocation30_spill] sm:$0xff] %v9662_v25 }
  0xff   : > { %v683_v1 = vsel %vm656_vm2, %v680_v61, %v682_v11  ;;  %v1195_v36 = vsel %vm1168_vm3, %v1192_v16, %v1194_v13 }
 0x100   : > { %v540_v47 = vpop.f32.mrf.mxu0  ;;  %v762_v18 = vmul.f32 %v683_v1, %v9653_v9  ;;  %v1276_v20 = vmul.f32 %v1195_v36, %v9659_v60  ;;  %v9670_v10 = vmul.f32 %v683_v1, %v9502_v21  ;;  %v9673_v19 = vmul.f32 %v1195_v36, %v9582_v48  ;;  %v9692_v21 = vld [vmem:[%s13852_s1 + $0x220] sm:$0xff] }
 0x101   : > { %v541_v50 = vadd.f32 %v9169_v28, %v540_v47  ;;  %v9677_v25 = vmul.f32 %v683_v1, %v9576_v46  ;;  %v9680_v61 = vmul.f32 %v1195_v36, %v9508_v31  ;;  %v9698_v1 = vld [vmem:[%s13852_s1 + $0x318] sm:$0xff]  ;;  %v9703_v47 = vpop.f32.mrf.mxu1 }
 0x102   : > { %13951 = vst [vmem:[#allocation31_spill] sm:$0xff] %v9673_v19  ;;  %8133 = vmatmul.msk.f32.gmra.mxu2 %vm781_vm1, %v762_v18  ;;  %8164 = vmatmul.msk.f32.gmra.mxu3 %vm781_vm1, %v1276_v20 }
 0x103   : > { %13952 = vst [vmem:[#allocation32_spill] sm:$0xff] %v9677_v25  ;;  %v9684_v16 = vmax.f32 %v541_v50, 0.0  ;;  %8086 = vmatmul.msk.f32.gmra.mxu0 %vm384_vm0, %v282_v59  ;;  %v283_v25 = vld [vmem:[%s9107_s10 + $0xf8] sm:$0xff] }
 0x104   : > { %13953 = vst [vmem:[#allocation33_spill] sm:$0xff] %v9680_v61 }
 0x105   : > { %13954 = vst [vmem:[#allocation34_spill] sm:$0xff] %v9684_v16  ;;  %8102 = vmatmul.msk.f32.gmra.mxu1 %vm781_vm1, %v9684_v16  ;;  %v684_v31 = vrot.slane %v9684_v16, 7  ;;  %v1196_v20 = vrot.slane %v9684_v16, 1 }
 0x106   : > { %13955 = vst [vmem:[#allocation35_spill] sm:$0xff] %v9703_v47 }
 0x107   : > { %v685_v50 = vsel %vm656_vm2, %v682_v11, %v684_v31  ;;  %v1197_v59 = vsel %vm1168_vm3, %v1194_v13, %v1196_v20 }
 0x108   : > { %v543_v36 = vpop.f32.mrf.mxu0  ;;  %v763_v18 = vmul.f32 %v685_v50, %v9692_v21  ;;  %v1277_v61 = vmul.f32 %v1197_v59, %v9698_v1  ;;  %v9709_v19 = vmul.f32 %v685_v50, %v9539_v33  ;;  %v9712_v42 = vmul.f32 %v1197_v59, %v9622_v15  ;;  %v9733_v33 = vld [vmem:[%s13852_s1 + $0x228] sm:$0xff] }
 0x109   : > { %v544_v16 = vadd.f32 %v9169_v28, %v543_v36  ;;  %v9718_v11 = vmul.f32 %v685_v50, %v9616_v23  ;;  %v9721_v13 = vmul.f32 %v1197_v59, %v9545_v35  ;;  %v9739_v35 = vld [vmem:[%s13852_s1 + $0x320] sm:$0xff] }
 0x10a   : > { %13956 = vst [vmem:[#allocation36_spill] sm:$0xff] %v9712_v42  ;;  %8134 = vmatmul.msk.f32.gmra.mxu2 %vm781_vm1, %v763_v18  ;;  %8165 = vmatmul.msk.f32.gmra.mxu3 %vm781_vm1, %v1277_v61 }
 0x10b   : > { %13958 = vst [vmem:[#allocation38_spill] sm:$0xff] %v9718_v11  ;;  %v9725_v47 = vmax.f32 %v544_v16, 0.0  ;;  %8087 = vmatmul.msk.f32.gmra.mxu0 %vm384_vm0, %v283_v25  ;;  %v2248_v11 = vmul.f32 %v9253_v63, %v9140_v17  ;;  %v9773_v17 = vld [vmem:[%s13852_s1 + $0x230] sm:$0xff] }
 0x10c   : > { %13959 = vst [vmem:[#allocation39_spill] sm:$0xff] %v9721_v13 }
 0x10d   : > { %13960 = vst [vmem:[#allocation40_spill] sm:$0xff] %v9725_v47  ;;  %8103 = vmatmul.msk.f32.gmra.mxu1 %vm781_vm1, %v9725_v47  ;;  %v686_v50 = vrot.slane %v9725_v47, 7  ;;  %v1198_v61 = vrot.slane %v9725_v47, 1 }
 0x10f   : > { %v687_v16 = vsel %vm656_vm2, %v684_v31, %v686_v50  ;;  %v1199_v25 = vsel %vm1168_vm3, %v1196_v20, %v1198_v61 }
 0x110   : > { %v546_v59 = vpop.f32.mrf.mxu0  ;;  %v764_v36 = vmul.f32 %v687_v16, %v9733_v33  ;;  %v1278_v18 = vmul.f32 %v1199_v25, %v9739_v35  ;;  %v9747_v13 = vmul.f32 %v687_v16, %v9576_v46  ;;  %v9750_v57 = vmul.f32 %v1199_v25, %v9659_v60 }
 0x111   : > { %v547_v47 = vadd.f32 %v9169_v28, %v546_v59  ;;  %v9756_v31 = vmul.f32 %v687_v16, %v9653_v9  ;;  %v9759_v20 = vmul.f32 %v1199_v25, %v9582_v48  ;;  %v9779_v48 = vld [vmem:[%s13852_s1 + $0x328] sm:$0xff] }
 0x112   : > { %13961 = vst [vmem:[#allocation41_spill] sm:$0xff] %v9750_v57  ;;  %v868_v42 = vpop.f32.mrf.mxu1  ;;  %8135 = vmatmul.msk.f32.gmra.mxu2 %vm781_vm1, %v764_v36  ;;  %8166 = vmatmul.msk.f32.gmra.mxu3 %vm781_vm1, %v1278_v18  ;;  %v9766_v57 = vpop.f32.mrf.mxu2 }
 0x113   : > { %13962 = vst [vmem:[#allocation42_spill] sm:$0xff] %v9756_v31  ;;  %v9763_v46 = vmax.f32 %v547_v47, 0.0  ;;  %8278 = vmatmul.msk.f32.vlgmr.msrb.gmra.mxu0 %vm781_vm1, %v2248_v11 }
 0x114   : > { %13963 = vst [vmem:[#allocation43_spill] sm:$0xff] %v9759_v20 }
 0x115   : > { %13964 = vst [vmem:[#allocation44_spill] sm:$0xff] %v9763_v46  ;;  %8104 = vmatmul.msk.f32.gmra.mxu1 %vm781_vm1, %v9763_v46  ;;  %v688_v63 = vrot.slane %v9763_v46, 7  ;;  %v1200_v47 = vrot.slane %v9763_v46, 1 }
 0x116   : > { %13965 = vst [vmem:[#allocation45_spill] sm:$0xff] %v9766_v57 }
 0x117   : > { %v689_v11 = vsel %vm656_vm2, %v686_v50, %v688_v63  ;;  %v1201_v16 = vsel %vm1168_vm3, %v1198_v61, %v1200_v47 }
 0x118   : > { %v549_v25 = vpop.f32.mrf.mxu0  ;;  %v765_v59 = vmul.f32 %v689_v11, %v9773_v17  ;;  %v1279_v36 = vmul.f32 %v1201_v16, %v9779_v48  ;;  %v9787_v18 = vmul.f32 %v689_v11, %v9616_v23  ;;  %v9790_v20 = vmul.f32 %v1201_v16, %v9698_v1 }
 0x119   : > { %v550_v57 = vadd.f32 %v9169_v28, %v549_v25  ;;  %v9794_v31 = vmul.f32 %v689_v11, %v9692_v21  ;;  %v9797_v50 = vmul.f32 %v1201_v16, %v9622_v15  ;;  %v9812_v15 = vld [vmem:[%s13852_s1 + $0x238] sm:$0xff] }
 0x11a   : > { %13966 = vst [vmem:[#allocation46_spill] sm:$0xff] %v9790_v20  ;;  %v871_v61 = vpop.f32.mrf.mxu1  ;;  %8136 = vmatmul.msk.f32.gmra.mxu2 %vm781_vm1, %v765_v59  ;;  %8167 = vmatmul.msk.f32.gmra.mxu3 %vm781_vm1, %v1279_v36 }
 0x11b   : > { %13967 = vst [vmem:[#allocation47_spill] sm:$0xff] %v9794_v31  ;;  %v9801_v46 = vmax.f32 %v550_v57, 0.0  ;;  %8279 = vmatmul.msk.f32.gmra.mxu0 %vm781_vm1, %v9298_v24  ;;  %v9818_v57 = vld [vmem:[%s13852_s1 + $0x330] sm:$0xff] }
 0x11c   : > { %13968 = vst [vmem:[#allocation48_spill] sm:$0xff] %v9797_v50 }
 0x11d   : > { %13969 = vst [vmem:[#allocation49_spill] sm:$0xff] %v9801_v46  ;;  %8105 = vmatmul.msk.f32.gmra.mxu1 %vm781_vm1, %v9801_v46  ;;  %v1077_v23 = vpop.f32.mrf.mxu2  ;;  %v9807_v25 = vpop.f32.mrf.mxu3  ;;  %v690_v11 = vrot.slane %v9801_v46, 7  ;;  %v1202_v24 = vrot.slane %v9801_v46, 1 }
 0x11e   : > { %13970 = vst [vmem:[#allocation50_spill] sm:$0xff] %v9807_v25  ;;  %v1078_v16 = vadd.f32 %v1077_v23, %v868_v42 }
 0x11f   : > { %v691_v59 = vsel %vm656_vm2, %v688_v63, %v690_v11  ;;  %v1203_v36 = vsel %vm1168_vm3, %v1200_v47, %v1202_v24 }
 0x120   : > { %v552_v50 = vpop.f32.mrf.mxu0  ;;  %v766_v25 = vmul.f32 %v691_v59, %v9812_v15  ;;  %v1280_v31 = vmul.f32 %v1203_v36, %v9818_v57  ;;  %v9826_v20 = vmul.f32 %v691_v59, %v9653_v9  ;;  %v9829_v55 = vmul.f32 %v1203_v36, %v9739_v35 }
 0x121   : > { %v553_v14 = vadd.f32 %v9169_v28, %v552_v50  ;;  %v9833_v46 = vmul.f32 %v691_v59, %v9733_v33  ;;  %v9836_v42 = vmul.f32 %v1203_v36, %v9659_v60  ;;  %v9849_v60 = vld [vmem:[%s13852_s1 + $0x240] sm:$0xff] }
 0x122   : > { %13971 = vst [vmem:[#allocation51_spill] sm:$0xff] %v9829_v55  ;;  %v874_v63 = vpop.f32.mrf.mxu1  ;;  %8137 = vmatmul.msk.f32.gmra.mxu2 %vm781_vm1, %v766_v25  ;;  %8168 = vmatmul.msk.f32.gmra.mxu3 %vm781_vm1, %v1280_v31 }
 0x123   : > { %13972 = vst [vmem:[#allocation52_spill] sm:$0xff] %v9833_v46  ;;  %v9840_v47 = vmax.f32 %v553_v14, 0.0  ;;  %8280 = vmatmul.msk.f32.gmra.mxu0 %vm781_vm1, %v9332_v43  ;;  %v9855_v14 = vld [vmem:[%s13852_s1 + $0x338] sm:$0xff] }
 0x124   : > { %13973 = vst [vmem:[#allocation53_spill] sm:$0xff] %v9836_v42 }
 0x125   : > { %13974 = vst [vmem:[#allocation54_spill] sm:$0xff] %v9840_v47  ;;  %8106 = vmatmul.msk.f32.gmra.mxu1 %vm781_vm1, %v9840_v47  ;;  %v1080_v9 = vpop.f32.mrf.mxu2  ;;  %v1414_v50 = vpop.f32.mrf.mxu3  ;;  %v692_v23 = vrot.slane %v9840_v47, 7  ;;  %v1204_v31 = vrot.slane %v9840_v47, 1 }
 0x126   : > { %v1081_v43 = vadd.f32 %v1080_v9, %v871_v61  ;;  %v9858_v25 = vadd.f32 %v1414_v50, %v1078_v16 }
 0x127   : > { %v693_v59 = vsel %vm656_vm2, %v690_v11, %v692_v23  ;;  %v1205_v36 = vsel %vm1168_vm3, %v1202_v24, %v1204_v31 }
 0x128   : > { %13975 = vst [vmem:[#allocation55_spill] sm:$0xff] %v9858_v25  ;;  %v555_v42 = vpop.f32.mrf.mxu0  ;;  %v767_v46 = vmul.f32 %v693_v59, %v9849_v60  ;;  %v1281_v55 = vmul.f32 %v1205_v36, %v9855_v14  ;;  %v9865_v5 = vmul.f32 %v693_v59, %v9692_v21  ;;  %v9868_v0 = vmul.f32 %v1205_v36, %v9779_v48 }
 0x129   : > { %v556_v47 = vadd.f32 %v9169_v28, %v555_v42  ;;  %v9872_v61 = vmul.f32 %v693_v59, %v9773_v17  ;;  %v9875_v11 = vmul.f32 %v1205_v36, %v9698_v1  ;;  %v9888_v1 = vld [vmem:[%s13852_s1 + $0x248] sm:$0xff] }
 0x12a   : > { %13976 = vst [vmem:[#allocation56_spill] sm:$0xff] %v9868_v0  ;;  %v877_v24 = vpop.f32.mrf.mxu1  ;;  %8138 = vmatmul.msk.f32.gmra.mxu2 %vm781_vm1, %v767_v46  ;;  %8169 = vmatmul.msk.f32.gmra.mxu3 %vm781_vm1, %v1281_v55  ;;  %v9894_v55 = vld [vmem:[%s13852_s1 + $0x340] sm:$0xff] }
 0x12b   : > { %13977 = vst [vmem:[#allocation57_spill] sm:$0xff] %v9872_v61  ;;  %v9879_v16 = vmax.f32 %v556_v47, 0.0  ;;  %8281 = vmatmul.msk.f32.gmra.mxu0 %vm781_vm1, %v9369_v2 }
 0x12c   : > { %13978 = vst [vmem:[#allocation58_spill] sm:$0xff] %v9875_v11 }
 0x12d   : > { %13979 = vst [vmem:[#allocation59_spill] sm:$0xff] %v9879_v16  ;;  %8107 = vmatmul.msk.f32.gmra.mxu1 %vm781_vm1, %v9879_v16  ;;  %v1083_v21 = vpop.f32.mrf.mxu2  ;;  %v1417_v42 = vpop.f32.mrf.mxu3  ;;  %v694_v9 = vrot.slane %v9879_v16, 7  ;;  %v1206_v46 = vrot.slane %v9879_v16, 1 }
 0x12e   : > { %v1084_v2 = vadd.f32 %v1083_v21, %v874_v63  ;;  %v9897_v47 = vadd.f32 %v1417_v42, %v1081_v43 }
 0x12f   : > { %v695_v50 = vsel %vm656_vm2, %v692_v23, %v694_v9  ;;  %v1207_v59 = vsel %vm1168_vm3, %v1204_v31, %v1206_v46 }
 0x130   : > { %13980 = vst [vmem:[#allocation60_spill] sm:$0xff] %v9897_v47  ;;  %v558_v36 = vpop.f32.mrf.mxu0  ;;  %v768_v11 = vmul.f32 %v695_v50, %v9888_v1  ;;  %v1282_v61 = vmul.f32 %v1207_v59, %v9894_v55  ;;  %v9904_v25 = vmul.f32 %v695_v50, %v9733_v33  ;;  %v9907_v0 = vmul.f32 %v1207_v59, %v9818_v57 }
 0x131   : > { %v559_v16 = vadd.f32 %v9169_v28, %v558_v36  ;;  %v9911_v63 = vmul.f32 %v695_v50, %v9812_v15  ;;  %v9914_v23 = vmul.f32 %v1207_v59, %v9739_v35  ;;  %v9927_v35 = vld [vmem:[%s13852_s1 + $0x250] sm:$0xff] }
 0x132   : > { %13981 = vst [vmem:[#allocation61_spill] sm:$0xff] %v9907_v0  ;;  %v880_v31 = vpop.f32.mrf.mxu1  ;;  %8139 = vmatmul.msk.f32.gmra.mxu2 %vm781_vm1, %v768_v11  ;;  %8170 = vmatmul.msk.f32.gmra.mxu3 %vm781_vm1, %v1282_v61  ;;  %v9933_v61 = vld [vmem:[%s13852_s1 + $0x348] sm:$0xff] }
 0x133   : > { %13982 = vst [vmem:[#allocation62_spill] sm:$0xff] %v9911_v63  ;;  %v9918_v43 = vmax.f32 %v559_v16, 0.0  ;;  %8282 = vmatmul.msk.f32.gmra.mxu0 %vm781_vm1, %v9406_v30 }
 0x134   : > { %13983 = vst [vmem:[#allocation63_spill] sm:$0xff] %v9914_v23 }
 0x135   : > { %13984 = vst [vmem:[#allocation64_spill] sm:$0xff] %v9918_v43  ;;  %8108 = vmatmul.msk.f32.gmra.mxu1 %vm781_vm1, %v9918_v43  ;;  %v1086_v33 = vpop.f32.mrf.mxu2  ;;  %v1420_v21 = vpop.f32.mrf.mxu3  ;;  %v696_v42 = vrot.slane %v9918_v43, 7  ;;  %v1208_v11 = vrot.slane %v9918_v43, 1 }
 0x136   : > { %v1087_v30 = vadd.f32 %v1086_v33, %v877_v24  ;;  %v9936_v16 = vadd.f32 %v1420_v21, %v1084_v2 }
 0x137   : > { %v697_v50 = vsel %vm656_vm2, %v694_v9, %v696_v42  ;;  %v1209_v59 = vsel %vm1168_vm3, %v1206_v46, %v1208_v11 }
 0x138   : > { %13985 = vst [vmem:[#allocation65_spill] sm:$0xff] %v9936_v16  ;;  %v561_v36 = vpop.f32.mrf.mxu0  ;;  %v769_v23 = vmul.f32 %v697_v50, %v9927_v35  ;;  %v1283_v63 = vmul.f32 %v1209_v59, %v9933_v61  ;;  %v9943_v47 = vmul.f32 %v697_v50, %v9773_v17  ;;  %v9946_v0 = vmul.f32 %v1209_v59, %v9855_v14 }
 0x139   : > { %v562_v43 = vadd.f32 %v9169_v28, %v561_v36  ;;  %v9950_v24 = vmul.f32 %v697_v50, %v9849_v60  ;;  %v9953_v9 = vmul.f32 %v1209_v59, %v9779_v48  ;;  %v9966_v48 = vld [vmem:[%s13852_s1 + $0x258] sm:$0xff] }
 0x13a   : > { %13986 = vst [vmem:[#allocation66_spill] sm:$0xff] %v9946_v0  ;;  %v883_v46 = vpop.f32.mrf.mxu1  ;;  %8140 = vmatmul.msk.f32.gmra.mxu2 %vm781_vm1, %v769_v23  ;;  %8171 = vmatmul.msk.f32.gmra.mxu3 %vm781_vm1, %v1283_v63  ;;  %v9972_v63 = vld [vmem:[%s13852_s1 + $0x350] sm:$0xff] }
 0x13b   : > { %13987 = vst [vmem:[#allocation67_spill] sm:$0xff] %v9950_v24  ;;  %v9957_v2 = vmax.f32 %v562_v43, 0.0  ;;  %8283 = vmatmul.msk.f32.gmra.mxu0 %vm781_vm1, %v9443_v62 }
 0x13c   : > { %13988 = vst [vmem:[#allocation68_spill] sm:$0xff] %v9953_v9 }
 0x13d   : > { %13989 = vst [vmem:[#allocation69_spill] sm:$0xff] %v9957_v2  ;;  %8109 = vmatmul.msk.f32.gmra.mxu1 %vm781_vm1, %v9957_v2  ;;  %v1089_v17 = vpop.f32.mrf.mxu2  ;;  %v1423_v33 = vpop.f32.mrf.mxu3  ;;  %v698_v21 = vrot.slane %v9957_v2, 7  ;;  %v1210_v23 = vrot.slane %v9957_v2, 1 }
 0x13e   : > { %v1090_v62 = vadd.f32 %v1089_v17, %v880_v31  ;;  %v9975_v43 = vadd.f32 %v1423_v33, %v1087_v30 }
 0x13f   : > { %v699_v50 = vsel %vm656_vm2, %v696_v42, %v698_v21  ;;  %v1211_v59 = vsel %vm1168_vm3, %v1208_v11, %v1210_v23 }
 0x140   : > { %13990 = vst [vmem:[#allocation70_spill] sm:$0xff] %v9975_v43  ;;  %v564_v36 = vpop.f32.mrf.mxu0  ;;  %v770_v9 = vmul.f32 %v699_v50, %v9966_v48  ;;  %v1284_v24 = vmul.f32 %v1211_v59, %v9972_v63  ;;  %v9982_v16 = vmul.f32 %v699_v50, %v9812_v15  ;;  %v9985_v0 = vmul.f32 %v1211_v59, %v9894_v55 }
 0x141   : > { %v565_v2 = vadd.f32 %v9169_v28, %v564_v36  ;;  %v9989_v31 = vmul.f32 %v699_v50, %v9888_v1  ;;  %v9992_v42 = vmul.f32 %v1211_v59, %v9818_v57  ;;  %v10005_v57 = vld [vmem:[%s13852_s1 + $0x260] sm:$0xff] }
 0x142   : > { %13991 = vst [vmem:[#allocation71_spill] sm:$0xff] %v9985_v0  ;;  %v886_v11 = vpop.f32.mrf.mxu1  ;;  %8141 = vmatmul.msk.f32.gmra.mxu2 %vm781_vm1, %v770_v9  ;;  %8172 = vmatmul.msk.f32.gmra.mxu3 %vm781_vm1, %v1284_v24  ;;  %v10011_v24 = vld [vmem:[%s13852_s1 + $0x358] sm:$0xff] }
 0x143   : > { %13992 = vst [vmem:[#allocation72_spill] sm:$0xff] %v9989_v31  ;;  %v9996_v30 = vmax.f32 %v565_v2, 0.0  ;;  %8284 = vmatmul.msk.f32.gmra.mxu0 %vm781_vm1, %v9480_v53 }
 0x144   : > { %13993 = vst [vmem:[#allocation73_spill] sm:$0xff] %v9992_v42 }
 0x145   : > { %13994 = vst [vmem:[#allocation74_spill] sm:$0xff] %v9996_v30  ;;  %8110 = vmatmul.msk.f32.gmra.mxu1 %vm781_vm1, %v9996_v30  ;;  %v1092_v15 = vpop.f32.mrf.mxu2  ;;  %v1426_v17 = vpop.f32.mrf.mxu3  ;;  %v700_v33 = vrot.slane %v9996_v30, 7  ;;  %v1212_v9 = vrot.slane %v9996_v30, 1 }
 0x146   : > { %v1093_v53 = vadd.f32 %v1092_v15, %v883_v46  ;;  %v10014_v2 = vadd.f32 %v1426_v17, %v1090_v62 }
 0x147   : > { %v701_v50 = vsel %vm656_vm2, %v698_v21, %v700_v33  ;;  %v1213_v59 = vsel %vm1168_vm3, %v1210_v23, %v1212_v9 }
 0x148   : > { %13995 = vst [vmem:[#allocation75_spill] sm:$0xff] %v10014_v2  ;;  %v567_v36 = vpop.f32.mrf.mxu0  ;;  %v771_v42 = vmul.f32 %v701_v50, %v10005_v57  ;;  %v1285_v31 = vmul.f32 %v1213_v59, %v10011_v24  ;;  %v10021_v43 = vmul.f32 %v701_v50, %v9849_v60  ;;  %v10024_v0 = vmul.f32 %v1213_v59, %v9933_v61 }
 0x149   : > { %v568_v30 = vadd.f32 %v9169_v28, %v567_v36  ;;  %v10028_v46 = vmul.f32 %v701_v50, %v9927_v35  ;;  %v10031_v21 = vmul.f32 %v1213_v59, %v9855_v14  ;;  %v10044_v14 = vld [vmem:[%s13852_s1 + $0x268] sm:$0xff] }
 0x14a   : > { %13996 = vst [vmem:[#allocation76_spill] sm:$0xff] %v10024_v0  ;;  %v889_v23 = vpop.f32.mrf.mxu1  ;;  %8142 = vmatmul.msk.f32.gmra.mxu2 %vm781_vm1, %v771_v42  ;;  %8173 = vmatmul.msk.f32.gmra.mxu3 %vm781_vm1, %v1285_v31  ;;  %v10050_v31 = vld [vmem:[%s13852_s1 + $0x360] sm:$0xff] }
 0x14b   : > { %13997 = vst [vmem:[#allocation77_spill] sm:$0xff] %v10028_v46  ;;  %v10035_v62 = vmax.f32 %v568_v30, 0.0  ;;  %8285 = vmatmul.msk.f32.gmra.mxu0 %vm781_vm1, %v9517_v56 }
 0x14c   : > { %13998 = vst [vmem:[#allocation78_spill] sm:$0xff] %v10031_v21 }
 0x14d   : > { %13999 = vst [vmem:[#allocation79_spill] sm:$0xff] %v10035_v62  ;;  %8111 = vmatmul.msk.f32.gmra.mxu1 %vm781_vm1, %v10035_v62  ;;  %v1095_v60 = vpop.f32.mrf.mxu2  ;;  %v1429_v15 = vpop.f32.mrf.mxu3  ;;  %v702_v17 = vrot.slane %v10035_v62, 7  ;;  %v1214_v42 = vrot.slane %v10035_v62, 1 }
 0x14e   : > { %v1096_v56 = vadd.f32 %v1095_v60, %v886_v11  ;;  %v10053_v30 = vadd.f32 %v1429_v15, %v1093_v53 }
 0x14f   : > { %v703_v50 = vsel %vm656_vm2, %v700_v33, %v702_v17  ;;  %v1215_v59 = vsel %vm1168_vm3, %v1212_v9, %v1214_v42 }
 0x150   : > { %14000 = vst [vmem:[#allocation80_spill] sm:$0xff] %v10053_v30  ;;  %v570_v36 = vpop.f32.mrf.mxu0  ;;  %v772_v21 = vmul.f32 %v703_v50, %v10044_v14  ;;  %v1286_v46 = vmul.f32 %v1215_v59, %v10050_v31  ;;  %v10060_v2 = vmul.f32 %v703_v50, %v9888_v1  ;;  %v10063_v0 = vmul.f32 %v1215_v59, %v9972_v63 }
 0x151   : > { %v571_v62 = vadd.f32 %v9169_v28, %v570_v36  ;;  %v10067_v11 = vmul.f32 %v703_v50, %v9966_v48  ;;  %v10070_v33 = vmul.f32 %v1215_v59, %v9894_v55  ;;  %v10083_v55 = vld [vmem:[%s13852_s1 + $0x270] sm:$0xff] }
 0x152   : > { %14001 = vst [vmem:[#allocation81_spill] sm:$0xff] %v10063_v0  ;;  %v892_v9 = vpop.f32.mrf.mxu1  ;;  %8143 = vmatmul.msk.f32.gmra.mxu2 %vm781_vm1, %v772_v21  ;;  %8174 = vmatmul.msk.f32.gmra.mxu3 %vm781_vm1, %v1286_v46  ;;  %v10089_v46 = vld [vmem:[%s13852_s1 + $0x368] sm:$0xff] }
 0x153   : > { %14002 = vst [vmem:[#allocation82_spill] sm:$0xff] %v10067_v11  ;;  %v10074_v53 = vmax.f32 %v571_v62, 0.0  ;;  %8286 = vmatmul.msk.f32.gmra.mxu0 %vm781_vm1, %v9554_v39 }
 0x154   : > { %14003 = vst [vmem:[#allocation83_spill] sm:$0xff] %v10070_v33 }
 0x155   : > { %14004 = vst [vmem:[#allocation84_spill] sm:$0xff] %v10074_v53  ;;  %8112 = vmatmul.msk.f32.gmra.mxu1 %vm781_vm1, %v10074_v53  ;;  %v1098_v28 = vpop.f32.mrf.mxu2  ;;  %v1432_v1 = vpop.f32.mrf.mxu3  ;;  %v704_v60 = vrot.slane %v10074_v53, 7  ;;  %v1216_v21 = vrot.slane %v10074_v53, 1 }
 0x156   : > { %v1099_v39 = vadd.f32 %v1098_v28, %v889_v23  ;;  %v10092_v62 = vadd.f32 %v1432_v1, %v1096_v56  ;;  %v10107_v23 = vld [vmem:[%s13854_s3] ss:$0 sm:$0xff] }
 0x157   : > { %v705_v15 = vsel %vm656_vm2, %v702_v17, %v704_v60  ;;  %v1217_v50 = vsel %vm1168_vm3, %v1214_v42, %v1216_v21 }
 0x158   : > { %14005 = vst [vmem:[#allocation85_spill] sm:$0xff] %v10092_v62  ;;  %v573_v59 = vpop.f32.mrf.mxu0  ;;  %v773_v36 = vmul.f32 %v705_v15, %v10083_v55  ;;  %v1287_v33 = vmul.f32 %v1217_v50, %v10089_v46  ;;  %v10099_v11 = vmul.f32 %v705_v15, %v9927_v35  ;;  %v10102_v30 = vmul.f32 %v1217_v50, %v10011_v24 }
 0x159   : > { %v574_v17 = vadd.f32 %v10107_v23, %v573_v59  ;;  %v10111_v42 = vmul.f32 %v705_v15, %v10005_v57  ;;  %v10114_v56 = vmul.f32 %v1217_v50, %v9933_v61  ;;  %v10127_v61 = vld [vmem:[%s13852_s1 + $0x278] sm:$0xff] }
 0x15a   : > { %14006 = vst [vmem:[#allocation86_spill] sm:$0xff] %v10102_v30  ;;  %v895_v28 = vpop.f32.mrf.mxu1  ;;  %8144 = vmatmul.msk.f32.gmra.mxu2 %vm781_vm1, %v773_v36  ;;  %8175 = vmatmul.msk.f32.gmra.mxu3 %vm781_vm1, %v1287_v33  ;;  %v10133_v33 = vld [vmem:[%s13852_s1 + $0x370] sm:$0xff] }
 0x15b   : > { %14007 = vst [vmem:[#allocation87_spill] sm:$0xff] %v10111_v42  ;;  %v10118_v35 = vmax.f32 %v574_v17, 0.0  ;;  %8287 = vmatmul.msk.f32.gmra.mxu0 %vm781_vm1, %v9591_v22 }
 0x15c   : > { %14008 = vst [vmem:[#allocation88_spill] sm:$0xff] %v10114_v56 }
 0x15d   : > { %14009 = vst [vmem:[#allocation89_spill] sm:$0xff] %v10118_v35  ;;  %8113 = vmatmul.msk.f32.gmra.mxu1 %vm781_vm1, %v10118_v35  ;;  %v1101_v1 = vpop.f32.mrf.mxu2  ;;  %v1435_v59 = vpop.f32.mrf.mxu3  ;;  %v706_v15 = vrot.slane %v10118_v35, 7  ;;  %v1218_v50 = vrot.slane %v10118_v35, 1 }
 0x15e   : > { %v1102_v22 = vadd.f32 %v1101_v1, %v892_v9  ;;  %v10136_v36 = vadd.f32 %v1435_v59, %v1099_v39 }
 0x15f   : > { %v707_v17 = vsel %vm656_vm2, %v704_v60, %v706_v15  ;;  %v1219_v56 = vsel %vm1168_vm3, %v1216_v21, %v1218_v50 }
 0x160   : > { %14010 = vst [vmem:[#allocation90_spill] sm:$0xff] %v10136_v36  ;;  %v576_v42 = vpop.f32.mrf.mxu0  ;;  %v774_v62 = vmul.f32 %v707_v17, %v10127_v61  ;;  %v1288_v30 = vmul.f32 %v1219_v56, %v10133_v33  ;;  %v10143_v53 = vmul.f32 %v707_v17, %v9966_v48  ;;  %v10146_v0 = vmul.f32 %v1219_v56, %v10050_v31 }
 0x161   : > { %v577_v35 = vadd.f32 %v10107_v23, %v576_v42  ;;  %v10150_v9 = vmul.f32 %v707_v17, %v10044_v14  ;;  %v10153_v60 = vmul.f32 %v1219_v56, %v9972_v63  ;;  %v10166_v63 = vld [vmem:[%s13852_s1 + $0x280] sm:$0xff] }
 0x162   : > { %14011 = vst [vmem:[#allocation91_spill] sm:$0xff] %v10146_v0  ;;  %v898_v21 = vpop.f32.mrf.mxu1  ;;  %8145 = vmatmul.msk.f32.gmra.mxu2 %vm781_vm1, %v774_v62  ;;  %8176 = vmatmul.msk.f32.gmra.mxu3 %vm781_vm1, %v1288_v30  ;;  %v10172_v30 = vld [vmem:[%s13852_s1 + $0x378] sm:$0xff] }
 0x163   : > { %14012 = vst [vmem:[#allocation92_spill] sm:$0xff] %v10150_v9  ;;  %v10157_v39 = vmax.f32 %v577_v35, 0.0  ;;  %8288 = vmatmul.msk.f32.gmra.mxu0 %vm781_vm1, %v9631_v41 }
 0x164   : > { %14013 = vst [vmem:[#allocation93_spill] sm:$0xff] %v10153_v60 }
 0x165   : > { %14014 = vst [vmem:[#allocation94_spill] sm:$0xff] %v10157_v39  ;;  %8114 = vmatmul.msk.f32.gmra.mxu1 %vm781_vm1, %v10157_v39  ;;  %v1104_v48 = vpop.f32.mrf.mxu2  ;;  %v1438_v42 = vpop.f32.mrf.mxu3  ;;  %v708_v56 = vrot.slane %v10157_v39, 7  ;;  %v1220_v62 = vrot.slane %v10157_v39, 1 }
 0x166   : > { %v1105_v41 = vadd.f32 %v1104_v48, %v895_v28  ;;  %v10175_v35 = vadd.f32 %v1438_v42, %v1102_v22 }
 0x167   : > { %v709_v1 = vsel %vm656_vm2, %v706_v15, %v708_v56  ;;  %v1221_v59 = vsel %vm1168_vm3, %v1218_v50, %v1220_v62 }
 0x168   : > { %14015 = vst [vmem:[#allocation95_spill] sm:$0xff] %v10175_v35  ;;  %v579_v17 = vpop.f32.mrf.mxu0  ;;  %v775_v60 = vmul.f32 %v709_v1, %v10166_v63  ;;  %v1289_v9 = vmul.f32 %v1221_v59, %v10172_v30  ;;  %v10182_v36 = vmul.f32 %v709_v1, %v10005_v57  ;;  %v10185_v0 = vmul.f32 %v1221_v59, %v10089_v46  ;;  %v1575_v57 = vld [vmem:[%s13852_s1 + $0x38] sm:$0xff]  ;;  %v2004_v35 = vld [vmem:[%s13852_s1 + $0x48] sm:$0xff] }
 0x169   : > { %v580_v39 = vadd.f32 %v10107_v23, %v579_v17  ;;  %v10189_v28 = vmul.f32 %v709_v1, %v10083_v55  ;;  %v10192_v15 = vmul.f32 %v1221_v59, %v10011_v24  ;;  %1687 = vmatpush.msra.mxu1 %v1575_v57  ;;  %2116 = vmatpush.msrb.mxu3 %v2004_v35 }
 0x16a   : > { %14016 = vst [vmem:[#allocation96_spill] sm:$0xff] %v10185_v0  ;;  %v901_v50 = vpop.f32.mrf.mxu1  ;;  %8146 = vmatmul.msk.f32.gmra.mxu2 %vm781_vm1, %v775_v60  ;;  %8177 = vmatmul.msk.f32.gmra.mxu3 %vm781_vm1, %v1289_v9  ;;  %v10208_v60 = vld [vmem:[%s13852_s1 + $0x288] sm:$0xff] }
 0x16b   : > { %14017 = vst [vmem:[#allocation97_spill] sm:$0xff] %v10189_v28  ;;  %v10196_v22 = vmax.f32 %v580_v39, 0.0  ;;  %8289 = vmatmul.msk.f32.gmra.mxu0 %vm781_vm1, %v9670_v10  ;;  %v10214_v10 = vld [vmem:[%s13852_s1 + $0x380] sm:$0xff] }
 0x16c   : > { %14018 = vst [vmem:[#allocation98_spill] sm:$0xff] %v10192_v15 }
 0x16d   : > { %14019 = vst [vmem:[#allocation99_spill] sm:$0xff] %v10196_v22  ;;  %8115 = vmatmul.msk.f32.gmra.mxu1 %vm781_vm1, %v10196_v22  ;;  %v1107_v24 = vpop.f32.mrf.mxu2  ;;  %v1441_v48 = vpop.f32.mrf.mxu3  ;;  %v710_v9 = vrot.slane %v10196_v22, 7  ;;  %v1222_v39 = vrot.slane %v10196_v22, 1 }
 0x16e   : > { %14020 = vst [vmem:[#allocation100_spill] sm:$0xff] %v10214_v10  ;;  %v1108_v42 = vadd.f32 %v1107_v24, %v898_v21  ;;  %v10217_v1 = vadd.f32 %v1441_v48, %v1105_v41 }
 0x16f   : > { %v711_v59 = vsel %vm656_vm2, %v708_v56, %v710_v9  ;;  %v1223_v17 = vsel %vm1168_vm3, %v1220_v62, %v1222_v39 }
 0x170   : > { %14021 = vst [vmem:[#allocation101_spill] sm:$0xff] %v10217_v1  ;;  %v582_v57 = vpop.f32.mrf.mxu0  ;;  %v776_v15 = vmul.f32 %v711_v59, %v10208_v60  ;;  %v1290_v28 = vmul.f32 %v1223_v17, %v10214_v10  ;;  %v10227_v0 = vmul.f32 %v711_v59, %v10044_v14  ;;  %v10230_v21 = vmul.f32 %v1223_v17, %v10133_v33 }
 0x171   : > { %v583_v41 = vadd.f32 %v10107_v23, %v582_v57  ;;  %v10234_v56 = vmul.f32 %v711_v59, %v10127_v61  ;;  %v10237_v62 = vmul.f32 %v1223_v17, %v10050_v31  ;;  %v10250_v31 = vld [vmem:[%s13852_s1 + $0x290] sm:$0xff] }
 0x172   : > { %14022 = vst [vmem:[#allocation102_spill] sm:$0xff] %v10230_v21  ;;  %v904_v24 = vpop.f32.mrf.mxu1  ;;  %8147 = vmatmul.msk.f32.gmra.mxu2 %vm781_vm1, %v776_v15  ;;  %8178 = vmatmul.msk.f32.gmra.mxu3 %vm781_vm1, %v1290_v28  ;;  %v10256_v28 = vld [vmem:[%s13852_s1 + $0x388] sm:$0xff] }
 0x173   : > { %14023 = vst [vmem:[#allocation103_spill] sm:$0xff] %v10234_v56  ;;  %v10241_v48 = vmax.f32 %v583_v41, 0.0  ;;  %8290 = vmatmul.msk.f32.gmra.mxu0 %vm781_vm1, %v9709_v19 }
 0x174   : > { %14024 = vst [vmem:[#allocation104_spill] sm:$0xff] %v10237_v62 }
 0x175   : > { %14025 = vst [vmem:[#allocation105_spill] sm:$0xff] %v10241_v48  ;;  %8116 = vmatmul.msk.f32.gmra.mxu1 %vm781_vm1, %v10241_v48  ;;  %v1110_v14 = vpop.f32.mrf.mxu2  ;;  %v1444_v35 = vpop.f32.mrf.mxu3  ;;  %v712_v59 = vrot.slane %v10241_v48, 7  ;;  %v1224_v15 = vrot.slane %v10241_v48, 1 }
 0x176   : > { %14026 = vst [vmem:[#allocation106_spill] sm:$0xff] %v10256_v28  ;;  %v1111_v19 = vadd.f32 %v1110_v14, %v901_v50  ;;  %v10259_v17 = vadd.f32 %v1444_v35, %v1108_v42 }
 0x177   : > { %v713_v57 = vsel %vm656_vm2, %v710_v9, %v712_v59  ;;  %v1225_v41 = vsel %vm1168_vm3, %v1222_v39, %v1224_v15 }
 0x178   : > { %v585_v62 = vpop.f32.mrf.mxu0  ;;  %v777_v10 = vmul.f32 %v713_v57, %v10250_v31  ;;  %v1291_v56 = vmul.f32 %v1225_v41, %v10256_v28  ;;  %v10266_v1 = vmul.f32 %v713_v57, %v10083_v55  ;;  %v10269_v21 = vmul.f32 %v1225_v41, %v10172_v30 }
 0x179   : > { %v586_v48 = vadd.f32 %v10107_v23, %v585_v62  ;;  %v10273_v50 = vmul.f32 %v713_v57, %v10166_v63  ;;  %v10276_v9 = vmul.f32 %v1225_v41, %v10089_v46  ;;  %v10289_v46 = vld [vmem:[%s13852_s1 + $0x298] sm:$0xff] }
 0x17a   : > { %v907_v39 = vpop.f32.mrf.mxu1  ;;  %8148 = vmatmul.msk.f32.gmra.mxu2 %vm781_vm1, %v777_v10  ;;  %8179 = vmatmul.msk.f32.gmra.mxu3 %vm781_vm1, %v1291_v56  ;;  %v10295_v10 = vld [vmem:[%s13852_s1 + $0x390] sm:$0xff] }
 0x17b   : > { %14027 = vst [vmem:[#allocation107_spill] sm:$0xff] %v10273_v50  ;;  %v10280_v42 = vmax.f32 %v586_v48, 0.0  ;;  %8291 = vmatmul.msk.f32.gmra.mxu0 %vm781_vm1, %v9747_v13 }
 0x17c   : > { %14028 = vst [vmem:[#allocation108_spill] sm:$0xff] %v10276_v9 }
 0x17d   : > { %8117 = vmatmul.msk.f32.gmra.mxu1 %vm781_vm1, %v10280_v42  ;;  %v1113_v55 = vpop.f32.mrf.mxu2  ;;  %v1447_v62 = vpop.f32.mrf.mxu3  ;;  %v714_v14 = vrot.slane %v10280_v42, 7  ;;  %14029 = vst [vmem:[#allocation109_spill] sm:$0xff] %v10295_v10  ;;  %v1226_v56 = vrot.slane %v10280_v42, 1 }
 0x17e   : > { %v1114_v13 = vadd.f32 %v1113_v55, %v904_v24  ;;  %v10298_v48 = vadd.f32 %v1447_v62, %v1111_v19  ;;  %v8946_v24 = vld [vmem:[%s13852_s1 + $0x2a0] sm:$0xff] }
 0x17f   : > { %v10301_v35 = vsel %vm656_vm2, %v712_v59, %v714_v14  ;;  %v10304_v57 = vsel %vm1168_vm3, %v1224_v15, %v1226_v56  ;;  %v1262_v59 = vmul.f32 0.0, %v8946_v24 }
 0x180   : > { %14030 = vst [vmem:[#allocation110_spill] sm:$0xff] %v10301_v35  ;;  %v588_v41 = vpop.f32.mrf.mxu0  ;;  %v778_v9 = vmul.f32 %v10301_v35, %v10289_v46  ;;  %v1292_v28 = vmul.f32 %v10304_v57, %v10295_v10  ;;  %v10312_v50 = vmul.f32 %v10301_v35, %v10127_v61  ;;  %v10320_v15 = vmul.f32 %v10304_v57, %v10133_v33  ;;  %v10334_v33 = vld [vmem:[%s13852_s1 + $0x398] sm:$0xff] }
 0x181   : > { %v589_v19 = vadd.f32 %v10107_v23, %v588_v41 }
 0x182   : > { %14031 = vst [vmem:[#allocation111_spill] sm:$0xff] %v10320_v15  ;;  %v910_v55 = vpop.f32.mrf.mxu1  ;;  %8149 = vmatmul.msk.f32.gmra.mxu2 %vm781_vm1, %v778_v9  ;;  %8180 = vmatmul.msk.f32.gmra.mxu3 %vm781_vm1, %v1292_v28 }
 0x183   : > { %v10324_v62 = vmax.f32 %v589_v19, 0.0  ;;  %8292 = vmatmul.msk.f32.gmra.mxu0 %vm781_vm1, %v9787_v18 }
 0x185   : > { %v13904_v61 = vrot.slane %v10324_v62, 1  ;;  %v13905_v10 = vrot.slane %v10324_v62, 7  ;;  %v1116_v35 = vpop.f32.mrf.mxu2  ;;  %8150 = vmatmul.msk.f32.vlgmr.msrb.gmra.mxu1 %vm781_vm1, %v1262_v59  ;;  %v1450_v41 = vpop.f32.mrf.mxu3 }
 0x186   : > { %v1117_v9 = vadd.f32 %v1116_v35, %v907_v39  ;;  %v10336_v28 = vadd.f32 %v1450_v41, %v1114_v13 }
 0x187   : > { %v10341_v18 = vsel %vm1168_vm3, %v1226_v56, %v13904_v61  ;;  %v10346_v19 = vsel %vm656_vm2, %v714_v14, %v13905_v10  ;;  %v8947_v14 = vld [vmem:[%s13852_s1 + $0x1a0] sm:$0xff] }
 0x188   : > { %v1293_v59 = vmul.f32 %v10341_v18, %v10334_v33  ;;  %v10352_v15 = vmul.f32 %v10346_v19, %v10166_v63  ;;  %v10356_v39 = vmul.f32 %v10341_v18, %v10172_v30  ;;  %v1543_v56 = vmul.f32 %v8947_v14, %v9191_v37 }
 0x18a   : > { %14032 = vst [vmem:[#allocation112_spill] sm:$0xff] %v10356_v39  ;;  %v913_v13 = vpop.f32.mrf.mxu1  ;;  %8181 = vmatmul.msk.f32.gmra.mxu3 %vm781_vm1, %v1293_v59  ;;  %8214 = vmatmul.msk.f32.vlgmr.msrb.gmra.mxu2 %vm781_vm1, %v9173_v32  ;;  %v1972_v59 = vmul.f32 %v8946_v24, %v9223_v51 }
 0x18b   : > { %8293 = vmatmul.msk.f32.gmra.mxu0 %vm781_vm1, %v9826_v20 }
 0x18d   : > { %v1119_v63 = vpop.f32.mrf.mxu2  ;;  %v1453_v35 = vpop.f32.mrf.mxu3  ;;  %8182 = vmatmul.msk.f32.vlgmr.msra.gmra.mxu1 %vm781_vm1, %v1543_v56 }
 0x18e   : > { %v1120_v30 = vadd.f32 %v1119_v63, %v910_v55  ;;  %v10368_v41 = vadd.f32 %v1453_v35, %v1117_v9 }
 0x192   : > { %v916_v61 = vpop.f32.mrf.mxu1  ;;  %8215 = vmatmul.msk.f32.gmra.mxu2 %vm781_vm1, %v9201_v44  ;;  %8246 = vmatmul.msk.f32.vlgmr.msrb.gmra.mxu3 %vm781_vm1, %v1972_v59  ;;  %v2700_v44 = vld [vmem:[%s13852_s1 + $0x60] sm:$0xff] }
 0x193   : > { %8294 = vmatmul.msk.f32.gmra.mxu0 %vm781_vm1, %v9865_v5  ;;  %2812 = vmatpush.msra.mxu2 %v2700_v44 }
 0x195   : > { %v1122_v32 = vpop.f32.mrf.mxu2  ;;  %v1456_v37 = vpop.f32.mrf.mxu3  ;;  %8183 = vmatmul.msk.f32.gmra.mxu1 %vm781_vm1, %v9227_v54 }
 0x196   : > { %v1123_v20 = vadd.f32 %v1122_v32, %v913_v13  ;;  %v10378_v55 = vadd.f32 %v1456_v37, %v1120_v30  ;;  %v10433_v32 = vpop.f32.mrf.mxu0 }
 0x19a   : > { %v919_v9 = vpop.f32.mrf.mxu1  ;;  %8216 = vmatmul.msk.f32.gmra.mxu2 %vm781_vm1, %v9235_v58  ;;  %8247 = vmatmul.msk.f32.gmra.mxu3 %vm781_vm1, %v9260_v4 }
 0x19b   : > { %8295 = vmatmul.msk.f32.gmra.mxu0 %vm781_vm1, %v9904_v25 }
 0x19d   : > { %v1125_v51 = vpop.f32.mrf.mxu2  ;;  %v1459_v54 = vpop.f32.mrf.mxu3  ;;  %8184 = vmatmul.msk.f32.gmra.mxu1 %vm781_vm1, %v9266_v7 }
 0x19e   : > { %v1126_v5 = vadd.f32 %v1125_v51, %v916_v61  ;;  %v10391_v24 = vadd.f32 %v1459_v54, %v1123_v20  ;;  %v14033_v20 = vld [vmem:[#allocation6_spill] sm:$0xff]  ;;  %v10445_v51 = vpop.f32.mrf.mxu0 }
 0x19f   : > { %14035 = vst [vmem:[#allocation6_spill] sm:$0xff] %v10445_v51  ;;  %v14072_v51 = vld [vmem:[#allocation50_spill] sm:$0xff] }
 0x1a2   : > { %v922_v13 = vpop.f32.mrf.mxu1  ;;  %8217 = vmatmul.msk.f32.gmra.mxu2 %vm781_vm1, %v9270_v8  ;;  %8248 = vmatmul.msk.f32.gmra.mxu3 %vm781_vm1, %v9302_v26 }
 0x1a3   : > { %8296 = vmatmul.msk.f32.gmra.mxu0 %vm781_vm1, %v9943_v47 }
 0x1a5   : > { %v1128_v4 = vpop.f32.mrf.mxu2  ;;  %v1462_v25 = vpop.f32.mrf.mxu3  ;;  %8185 = vmatmul.msk.f32.gmra.mxu1 %vm781_vm1, %v9305_v27 }
 0x1a6   : > { %v1129_v14 = vadd.f32 %v1128_v4, %v919_v9  ;;  %v10401_v7 = vadd.f32 %v1462_v25, %v1126_v5  ;;  %v14034_v9 = vld [vmem:[#allocation7_spill] sm:$0xff]  ;;  %v14036_v5 = vld [vmem:[#allocation9_spill] sm:$0xff] }
 0x1a7   : > { %v14038_v25 = vld [vmem:[#allocation11_spill] sm:$0xff] }
 0x1aa   : > { %v925_v61 = vpop.f32.mrf.mxu1  ;;  %8218 = vmatmul.msk.f32.gmra.mxu2 %vm781_vm1, %v9309_v29  ;;  %8249 = vmatmul.msk.f32.gmra.mxu3 %vm781_vm1, %v9335_v45 }
 0x1ab   : > { %8297 = vmatmul.msk.f32.gmra.mxu0 %vm781_vm1, %v9982_v16 }
 0x1ad   : > { %v1131_v26 = vpop.f32.mrf.mxu2  ;;  %v1465_v47 = vpop.f32.mrf.mxu3  ;;  %8186 = vmatmul.msk.f32.gmra.mxu1 %vm781_vm1, %v9339_v49 }
 0x1ae   : > { %v1132_v56 = vadd.f32 %v1131_v26, %v922_v13  ;;  %v10411_v27 = vadd.f32 %v1465_v47, %v1129_v14  ;;  %v14037_v13 = vld [vmem:[#allocation10_spill] sm:$0xff]  ;;  %v14039_v47 = vld [vmem:[#allocation13_spill] sm:$0xff] }
 0x1b2   : > { %v928_v63 = vpop.f32.mrf.mxu1  ;;  %8219 = vmatmul.msk.f32.gmra.mxu2 %vm781_vm1, %v9346_v52  ;;  %8250 = vmatmul.msk.f32.gmra.mxu3 %vm781_vm1, %v9372_v3 }
 0x1b3   : > { %8298 = vmatmul.msk.f32.gmra.mxu0 %vm781_vm1, %v10021_v43 }
 0x1b5   : > { %v1134_v45 = vpop.f32.mrf.mxu2  ;;  %v1468_v16 = vpop.f32.mrf.mxu3  ;;  %8187 = vmatmul.msk.f32.gmra.mxu1 %vm781_vm1, %v9376_v6 }
 0x1b6   : > { %v1135_v35 = vadd.f32 %v1134_v45, %v925_v61  ;;  %v10421_v49 = vadd.f32 %v1468_v16, %v1132_v56  ;;  %v14040_v56 = vld [vmem:[#allocation14_spill] sm:$0xff]  ;;  %v14042_v16 = vld [vmem:[#allocation15_spill] sm:$0xff] }
 0x1ba   : > { %v931_v30 = vpop.f32.mrf.mxu1  ;;  %8220 = vmatmul.msk.f32.gmra.mxu2 %vm781_vm1, %v9383_v12  ;;  %8251 = vmatmul.msk.f32.gmra.mxu3 %vm781_vm1, %v9409_v34 }
 0x1bb   : > { %8299 = vmatmul.msk.f32.gmra.mxu0 %vm781_vm1, %v10060_v2 }
 0x1bd   : > { %v1137_v3 = vpop.f32.mrf.mxu2  ;;  %v1471_v43 = vpop.f32.mrf.mxu3  ;;  %8188 = vmatmul.msk.f32.gmra.mxu1 %vm781_vm1, %v9413_v38 }
 0x1be   : > { %v1138_v59 = vadd.f32 %v1137_v3, %v928_v63  ;;  %v10431_v6 = vadd.f32 %v1471_v43, %v1135_v35  ;;  %v10463_v63 = vpop.f32.mrf.mxu0  ;;  %v14043_v43 = vld [vmem:[#allocation17_spill] sm:$0xff] }
 0x1bf   : > { %14041 = vst [vmem:[#allocation7_spill] sm:$0xff] %v10463_v63 }
 0x1c2   : > { %v934_v37 = vpop.f32.mrf.mxu1  ;;  %8221 = vmatmul.msk.f32.gmra.mxu2 %vm781_vm1, %v9420_v40  ;;  %8252 = vmatmul.msk.f32.gmra.mxu3 %vm781_vm1, %v14033_v20  ;;  %v14045_v20 = vld [vmem:[#allocation19_spill] sm:$0xff] }
 0x1c3   : > { %8300 = vmatmul.msk.f32.gmra.mxu0 %vm781_vm1, %v10099_v11 }
 0x1c5   : > { %v1140_v34 = vpop.f32.mrf.mxu2  ;;  %v1474_v2 = vpop.f32.mrf.mxu3  ;;  %8189 = vmatmul.msk.f32.gmra.mxu1 %vm781_vm1, %v14034_v9 }
 0x1c6   : > { %v1141_v38 = vadd.f32 %v1140_v34, %v931_v30  ;;  %v10443_v44 = vadd.f32 %v1474_v2, %v1138_v59  ;;  %v14044_v59 = vld [vmem:[#allocation18_spill] sm:$0xff]  ;;  %v10479_v9 = vpop.f32.mrf.mxu0 }
 0x1c7   : > { %14046 = vst [vmem:[#allocation9_spill] sm:$0xff] %v10479_v9 }
 0x1ca   : > { %v937_v54 = vpop.f32.mrf.mxu1  ;;  %8222 = vmatmul.msk.f32.gmra.mxu2 %vm781_vm1, %v14036_v5  ;;  %8253 = vmatmul.msk.f32.gmra.mxu3 %vm781_vm1, %v14037_v13  ;;  %v14048_v13 = vld [vmem:[#allocation22_spill] sm:$0xff] }
 0x1cb   : > { %8301 = vmatmul.msk.f32.gmra.mxu0 %vm781_vm1, %v10143_v53 }
 0x1cd   : > { %v1143_v11 = vpop.f32.mrf.mxu2  ;;  %v1477_v4 = vpop.f32.mrf.mxu3  ;;  %8190 = vmatmul.msk.f32.gmra.mxu1 %vm781_vm1, %v14038_v25 }
 0x1ce   : > { %v1144_v14 = vadd.f32 %v1143_v11, %v934_v37  ;;  %v10455_v61 = vadd.f32 %v1477_v4, %v1141_v38  ;;  %v14049_v4 = vld [vmem:[#allocation23_spill] sm:$0xff] }
 0x1d2   : > { %v940_v26 = vpop.f32.mrf.mxu1  ;;  %8223 = vmatmul.msk.f32.gmra.mxu2 %vm781_vm1, %v14039_v47  ;;  %8254 = vmatmul.msk.f32.gmra.mxu3 %vm781_vm1, %v14040_v56 }
 0x1d3   : > { %8302 = vmatmul.msk.f32.gmra.mxu0 %vm781_vm1, %v10182_v36 }
 0x1d5   : > { %v1146_v53 = vpop.f32.mrf.mxu2  ;;  %v1480_v45 = vpop.f32.mrf.mxu3  ;;  %8191 = vmatmul.msk.f32.gmra.mxu1 %vm781_vm1, %v14042_v16 }
 0x1d6   : > { %v1147_v35 = vadd.f32 %v1146_v53, %v937_v54  ;;  %v10467_v30 = vadd.f32 %v1480_v45, %v1144_v14  ;;  %v14047_v54 = vld [vmem:[#allocation21_spill] sm:$0xff]  ;;  %v14052_v45 = vld [vmem:[#allocation26_spill] sm:$0xff] }
 0x1d7   : > { %v14051_v53 = vld [vmem:[#allocation25_spill] sm:$0xff] }
 0x1da   : > { %v943_v3 = vpop.f32.mrf.mxu1  ;;  %8224 = vmatmul.msk.f32.gmra.mxu2 %vm781_vm1, %v14043_v43  ;;  %8255 = vmatmul.msk.f32.gmra.mxu3 %vm781_vm1, %v14044_v59 }
 0x1db   : > { %8303 = vmatmul.msk.f32.gmra.mxu0 %vm781_vm1, %v10227_v0 }
 0x1dd   : > { %v1149_v36 = vpop.f32.mrf.mxu2  ;;  %v1483_v37 = vpop.f32.mrf.mxu3  ;;  %8192 = vmatmul.msk.f32.gmra.mxu1 %vm781_vm1, %v14045_v20  ;;  %v14055_v20 = vld [vmem:[#allocation31_spill] sm:$0xff] }
 0x1de   : > { %v1150_v34 = vadd.f32 %v1149_v36, %v940_v26  ;;  %v10477_v2 = vadd.f32 %v1483_v37, %v1147_v35  ;;  %v10491_v26 = vpop.f32.mrf.mxu0  ;;  %v14053_v35 = vld [vmem:[#allocation27_spill] sm:$0xff]  ;;  %v14054_v37 = vld [vmem:[#allocation29_spill] sm:$0xff] }
 0x1df   : > { %14050 = vst [vmem:[#allocation10_spill] sm:$0xff] %v10491_v26 }
 0x1e2   : > { %v946_v38 = vpop.f32.mrf.mxu1  ;;  %8225 = vmatmul.msk.f32.gmra.mxu2 %vm781_vm1, %v14047_v54  ;;  %8256 = vmatmul.msk.f32.gmra.mxu3 %vm781_vm1, %v14048_v13 }
 0x1e3   : > { %8304 = vmatmul.msk.f32.gmra.mxu0 %vm781_vm1, %v10266_v1 }
 0x1e5   : > { %v1152_v0 = vpop.f32.mrf.mxu2  ;;  %v1486_v11 = vpop.f32.mrf.mxu3  ;;  %8193 = vmatmul.msk.f32.gmra.mxu1 %vm781_vm1, %v14049_v4 }
 0x1e6   : > { %v1153_v25 = vadd.f32 %v1152_v0, %v943_v3  ;;  %v10489_v14 = vadd.f32 %v1486_v11, %v1150_v34  ;;  %v10507_v34 = vpop.f32.mrf.mxu0  ;;  %v14057_v0 = vld [vmem:[#allocation32_spill] sm:$0xff] }
 0x1e7   : > { %14056 = vst [vmem:[#allocation11_spill] sm:$0xff] %v10507_v34 }
 0x1ea   : > { %v949_v56 = vpop.f32.mrf.mxu1  ;;  %8226 = vmatmul.msk.f32.gmra.mxu2 %vm781_vm1, %v14051_v53  ;;  %8257 = vmatmul.msk.f32.gmra.mxu3 %vm781_vm1, %v14052_v45  ;;  %v14059_v45 = vld [vmem:[#allocation36_spill] sm:$0xff] }
 0x1eb   : > { %8305 = vmatmul.msk.f32.gmra.mxu0 %vm781_vm1, %v10312_v50 }
 0x1ed   : > { %v1155_v1 = vpop.f32.mrf.mxu2  ;;  %v1489_v16 = vpop.f32.mrf.mxu3  ;;  %8194 = vmatmul.msk.f32.gmra.mxu1 %vm781_vm1, %v14053_v35  ;;  %v14060_v35 = vld [vmem:[#allocation38_spill] sm:$0xff] }
 0x1ee   : > { %v1156_v3 = vadd.f32 %v1155_v1, %v946_v38  ;;  %v10501_v59 = vadd.f32 %v1489_v16, %v1153_v25  ;;  %v14058_v25 = vld [vmem:[#allocation34_spill] sm:$0xff] }
 0x1f2   : > { %v952_v36 = vpop.f32.mrf.mxu1  ;;  %8227 = vmatmul.msk.f32.gmra.mxu2 %vm781_vm1, %v14054_v37  ;;  %8258 = vmatmul.msk.f32.gmra.mxu3 %vm781_vm1, %v14055_v20 }
 0x1f3   : > { %8306 = vmatmul.msk.f32.gmra.mxu0 %vm781_vm1, %v10352_v15 }
 0x1f5   : > { %v1158_v50 = vpop.f32.mrf.mxu2  ;;  %v1492_v13 = vpop.f32.mrf.mxu3  ;;  %8195 = vmatmul.msk.f32.gmra.mxu1 %vm781_vm1, %v14057_v0  ;;  %v14061_v0 = vld [vmem:[#allocation40_spill] sm:$0xff] }
 0x1f6   : > { %v1159_v38 = vadd.f32 %v1158_v50, %v949_v56  ;;  %v10513_v11 = vadd.f32 %v1492_v13, %v1156_v3  ;;  %v14062_v56 = vld [vmem:[#allocation41_spill] sm:$0xff]  ;;  %v14063_v13 = vld [vmem:[#allocation42_spill] sm:$0xff] }
 0x1fa   : > { %v955_v4 = vpop.f32.mrf.mxu1  ;;  %8228 = vmatmul.msk.f32.gmra.mxu2 %vm781_vm1, %v14058_v25  ;;  %8259 = vmatmul.msk.f32.gmra.mxu3 %vm781_vm1, %v14059_v45 }
 0x1fd   : > { %v1161_v1 = vpop.f32.mrf.mxu2  ;;  %v1495_v16 = vpop.f32.mrf.mxu3  ;;  %8196 = vmatmul.msk.f32.gmra.mxu1 %vm781_vm1, %v14060_v35  ;;  %v14065_v35 = vld [vmem:[#allocation44_spill] sm:$0xff] }
 0x1fe   : > { %v1162_v15 = vadd.f32 %v1161_v1, %v952_v36  ;;  %v10521_v20 = vadd.f32 %v1495_v16, %v1159_v38  ;;  %v14066_v36 = vld [vmem:[#allocation46_spill] sm:$0xff]  ;;  %v14068_v1 = vld [vmem:[#allocation37_spill] sm:$0xff] }
 0x1ff   : > { %v14067_v38 = vld [vmem:[#allocation30_spill] sm:$0xff] }
 0x200   : > { %v1072_v16 = vadd.f32 %v14068_v1, %v14067_v38 }
 0x202   : > { %v1408_v10 = vpop.f32.mrf.mxu1  ;;  %8229 = vmatmul.msk.f32.gmra.mxu2 %vm781_vm1, %v14061_v0  ;;  %8260 = vmatmul.msk.f32.gmra.mxu3 %vm781_vm1, %v14062_v56  ;;  %v14069_v56 = vld [vmem:[#allocation47_spill] sm:$0xff]  ;;  %v14073_v0 = vld [vmem:[#allocation49_spill] sm:$0xff] }
 0x203   : > { %v1504_v63 = vadd.f32 %v1408_v10, %v1072_v16 }
 0x205   : > { %v1164_v3 = vpop.f32.mrf.mxu2  ;;  %v1498_v50 = vpop.f32.mrf.mxu3  ;;  %8197 = vmatmul.msk.f32.gmra.mxu1 %vm781_vm1, %v14063_v13 }
 0x206   : > { %v1165_v45 = vadd.f32 %v1164_v3, %v955_v4  ;;  %v10529_v39 = vadd.f32 %v1498_v50, %v1162_v15  ;;  %v14070_v4 = vld [vmem:[#allocation35_spill] sm:$0xff]  ;;  %v14071_v15 = vld [vmem:[#allocation45_spill] sm:$0xff] }
 0x207   : > { %v1075_v3 = vadd.f32 %v14071_v15, %v14070_v4  ;;  %v14078_v4 = vld [vmem:[#allocation55_spill] sm:$0xff] }
 0x208   : > { %14064 = vst [vmem:[#allocation13_spill] sm:$0xff] %v10529_v39 }
 0x20a   : > { %v1689_v34 = vpop.f32.mrf.mxu1  ;;  %8230 = vmatmul.msk.f32.gmra.mxu2 %vm781_vm1, %v14065_v35  ;;  %8261 = vmatmul.msk.f32.gmra.mxu3 %vm781_vm1, %v14066_v36  ;;  %v1505_v35 = vadd.f32 %v14072_v51, %v1075_v3  ;;  %v14074_v36 = vld [vmem:[#allocation51_spill] sm:$0xff]  ;;  %v14077_v51 = vld [vmem:[#allocation56_spill] sm:$0xff]  ;;  %v14079_v3 = vld [vmem:[#allocation57_spill] sm:$0xff] }
 0x20b   : > { %v1785_v50 = vadd.f32 %v1689_v34, %v1504_v63  ;;  %v14076_v34 = vld [vmem:[#allocation54_spill] sm:$0xff] }
 0x20d   : > { %v1501_v26 = vpop.f32.mrf.mxu3  ;;  %8198 = vmatmul.msk.f32.gmra.mxu1 %vm781_vm1, %v14069_v56  ;;  %v1839_v9 = vpop.f32.mrf.mxu2  ;;  %v14075_v56 = vld [vmem:[#allocation52_spill] sm:$0xff] }
 0x20e   : > { %v10539_v13 = vadd.f32 %v1501_v26, %v1165_v45  ;;  %v1935_v1 = vadd.f32 %v1839_v9, %v1785_v50 }
 0x212   : > { %v1692_v39 = vpop.f32.mrf.mxu1  ;;  %8231 = vmatmul.msk.f32.gmra.mxu2 %vm781_vm1, %v14073_v0  ;;  %8262 = vmatmul.msk.f32.gmra.mxu3 %vm781_vm1, %v14074_v36 }
 0x213   : > { %v1786_v38 = vadd.f32 %v1692_v39, %v1505_v35 }
 0x215   : > { %8199 = vmatmul.msk.f32.gmra.mxu1 %vm781_vm1, %v14075_v56  ;;  %v1842_v10 = vpop.f32.mrf.mxu2  ;;  %v2118_v26 = vpop.f32.mrf.mxu3  ;;  %v14083_v56 = vld [vmem:[#allocation60_spill] sm:$0xff] }
 0x216   : > { %v1936_v45 = vadd.f32 %v1842_v10, %v1786_v38  ;;  %v10550_v16 = vadd.f32 %v2118_v26, %v1935_v1  ;;  %v14081_v38 = vld [vmem:[#allocation59_spill] sm:$0xff]  ;;  %v14082_v1 = vld [vmem:[#allocation61_spill] sm:$0xff]  ;;  %v14084_v26 = vld [vmem:[#allocation62_spill] sm:$0xff] }
 0x21a   : > { %v1695_v63 = vpop.f32.mrf.mxu1  ;;  %8232 = vmatmul.msk.f32.gmra.mxu2 %vm781_vm1, %v14076_v34  ;;  %8263 = vmatmul.msk.f32.gmra.mxu3 %vm781_vm1, %v14077_v51 }
 0x21b   : > { %v1787_v15 = vadd.f32 %v1695_v63, %v14078_v4 }
 0x21d   : > { %8200 = vmatmul.msk.f32.gmra.mxu1 %vm781_vm1, %v14079_v3  ;;  %v1845_v39 = vpop.f32.mrf.mxu2  ;;  %v2121_v9 = vpop.f32.mrf.mxu3 }
 0x21e   : > { %v1937_v35 = vadd.f32 %v1845_v39, %v1787_v15  ;;  %v10559_v50 = vadd.f32 %v2121_v9, %v1936_v45  ;;  %v14086_v45 = vld [vmem:[#allocation64_spill] sm:$0xff]  ;;  %v14087_v39 = vld [vmem:[#allocation66_spill] sm:$0xff]  ;;  %v14088_v9 = vld [vmem:[#allocation65_spill] sm:$0xff] }
 0x220   : > { %14080 = vst [vmem:[#allocation14_spill] sm:$0xff] %v10559_v50 }
 0x222   : > { %v1698_v36 = vpop.f32.mrf.mxu1  ;;  %8233 = vmatmul.msk.f32.gmra.mxu2 %vm781_vm1, %v14081_v38  ;;  %8264 = vmatmul.msk.f32.gmra.mxu3 %vm781_vm1, %v14082_v1  ;;  %v14089_v1 = vld [vmem:[#allocation67_spill] sm:$0xff] }
 0x223   : > { %v1788_v10 = vadd.f32 %v1698_v36, %v14083_v56 }
 0x225   : > { %8201 = vmatmul.msk.f32.gmra.mxu1 %vm781_vm1, %v14084_v26  ;;  %v1848_v63 = vpop.f32.mrf.mxu2  ;;  %v2124_v51 = vpop.f32.mrf.mxu3 }
 0x226   : > { %v1938_v4 = vadd.f32 %v1848_v63, %v1788_v10  ;;  %v10568_v3 = vadd.f32 %v2124_v51, %v1937_v35  ;;  %v14091_v35 = vld [vmem:[#allocation69_spill] sm:$0xff]  ;;  %v14092_v63 = vld [vmem:[#allocation71_spill] sm:$0xff]  ;;  %v14093_v51 = vld [vmem:[#allocation70_spill] sm:$0xff] }
 0x228   : > { %14085 = vst [vmem:[#allocation15_spill] sm:$0xff] %v10568_v3 }
 0x22a   : > { %v1701_v15 = vpop.f32.mrf.mxu1  ;;  %8234 = vmatmul.msk.f32.gmra.mxu2 %vm781_vm1, %v14086_v45  ;;  %8265 = vmatmul.msk.f32.gmra.mxu3 %vm781_vm1, %v14087_v39  ;;  %v14094_v39 = vld [vmem:[#allocation72_spill] sm:$0xff] }
 0x22b   : > { %v1789_v38 = vadd.f32 %v1701_v15, %v14088_v9 }
 0x22d   : > { %8202 = vmatmul.msk.f32.gmra.mxu1 %vm781_vm1, %v14089_v1  ;;  %v1851_v36 = vpop.f32.mrf.mxu2  ;;  %v2127_v56 = vpop.f32.mrf.mxu3 }
 0x22e   : > { %v1939_v26 = vadd.f32 %v1851_v36, %v1789_v38  ;;  %v10577_v50 = vadd.f32 %v2127_v56, %v1938_v4  ;;  %v14096_v4 = vld [vmem:[#allocation74_spill] sm:$0xff]  ;;  %v14097_v36 = vld [vmem:[#allocation76_spill] sm:$0xff]  ;;  %v14098_v56 = vld [vmem:[#allocation75_spill] sm:$0xff] }
 0x230   : > { %14090 = vst [vmem:[#allocation17_spill] sm:$0xff] %v10577_v50 }
 0x232   : > { %v1704_v10 = vpop.f32.mrf.mxu1  ;;  %8235 = vmatmul.msk.f32.gmra.mxu2 %vm781_vm1, %v14091_v35  ;;  %8266 = vmatmul.msk.f32.gmra.mxu3 %vm781_vm1, %v14092_v63  ;;  %v14099_v63 = vld [vmem:[#allocation77_spill] sm:$0xff] }
 0x233   : > { %v1790_v45 = vadd.f32 %v1704_v10, %v14093_v51 }
 0x235   : > { %8203 = vmatmul.msk.f32.gmra.mxu1 %vm781_vm1, %v14094_v39  ;;  %v1854_v15 = vpop.f32.mrf.mxu2  ;;  %v2130_v9 = vpop.f32.mrf.mxu3 }
 0x236   : > { %v1940_v1 = vadd.f32 %v1854_v15, %v1790_v45  ;;  %v10586_v3 = vadd.f32 %v2130_v9, %v1939_v26  ;;  %v14101_v26 = vld [vmem:[#allocation79_spill] sm:$0xff]  ;;  %v14102_v15 = vld [vmem:[#allocation81_spill] sm:$0xff]  ;;  %v14103_v9 = vld [vmem:[#allocation80_spill] sm:$0xff] }
 0x238   : > { %14095 = vst [vmem:[#allocation18_spill] sm:$0xff] %v10586_v3 }
 0x23a   : > { %v1707_v38 = vpop.f32.mrf.mxu1  ;;  %8236 = vmatmul.msk.f32.gmra.mxu2 %vm781_vm1, %v14096_v4  ;;  %8267 = vmatmul.msk.f32.gmra.mxu3 %vm781_vm1, %v14097_v36  ;;  %v14104_v36 = vld [vmem:[#allocation82_spill] sm:$0xff] }
 0x23b   : > { %v1791_v35 = vadd.f32 %v1707_v38, %v14098_v56 }
 0x23d   : > { %8204 = vmatmul.msk.f32.gmra.mxu1 %vm781_vm1, %v14099_v63  ;;  %v1857_v10 = vpop.f32.mrf.mxu2  ;;  %v2133_v51 = vpop.f32.mrf.mxu3 }
 0x23e   : > { %v1941_v39 = vadd.f32 %v1857_v10, %v1791_v35  ;;  %v10595_v50 = vadd.f32 %v2133_v51, %v1940_v1  ;;  %v14105_v1 = vld [vmem:[#allocation84_spill] sm:$0xff]  ;;  %v14106_v10 = vld [vmem:[#allocation86_spill] sm:$0xff]  ;;  %v14107_v51 = vld [vmem:[#allocation85_spill] sm:$0xff] }
 0x240   : > { %14100 = vst [vmem:[#allocation19_spill] sm:$0xff] %v10595_v50 }
 0x242   : > { %v1710_v45 = vpop.f32.mrf.mxu1  ;;  %8237 = vmatmul.msk.f32.gmra.mxu2 %vm781_vm1, %v14101_v26  ;;  %8268 = vmatmul.msk.f32.gmra.mxu3 %vm781_vm1, %v14102_v15  ;;  %v14108_v15 = vld [vmem:[#allocation87_spill] sm:$0xff] }
 0x243   : > { %v1792_v4 = vadd.f32 %v1710_v45, %v14103_v9 }
 0x245   : > { %8205 = vmatmul.msk.f32.gmra.mxu1 %vm781_vm1, %v14104_v36  ;;  %v1860_v38 = vpop.f32.mrf.mxu2  ;;  %v2136_v56 = vpop.f32.mrf.mxu3 }
 0x246   : > { %v1942_v63 = vadd.f32 %v1860_v38, %v1792_v4  ;;  %v10604_v3 = vadd.f32 %v2136_v56, %v1941_v39  ;;  %v592_v4 = vadd.f32 %v10107_v23, %v10433_v32  ;;  %v14110_v38 = vld [vmem:[#allocation89_spill] sm:$0xff]  ;;  %v14111_v56 = vld [vmem:[#allocation91_spill] sm:$0xff]  ;;  %v14115_v32 = vld [vmem:[#allocation94_spill] sm:$0xff] }
 0x24a   : > { %v1713_v35 = vpop.f32.mrf.mxu1  ;;  %8238 = vmatmul.msk.f32.gmra.mxu2 %vm781_vm1, %v14105_v1  ;;  %8269 = vmatmul.msk.f32.gmra.mxu3 %vm781_vm1, %v14106_v10 }
 0x24b   : > { %v1793_v26 = vadd.f32 %v1713_v35, %v14107_v51  ;;  %v14112_v35 = vld [vmem:[#allocation90_spill] sm:$0xff]  ;;  %v10624_v51 = vmax.f32 %v592_v4, 0.0  ;;  %v2522_v4 = vld [vmem:[%s13852_s1 + $0x58] sm:$0xff] }
 0x24c   : > { %2538 = vmatpush.msrb.mxu1 %v2522_v4  ;;  %v14122_v4 = vld [vmem:[#allocation101_spill] sm:$0xff] }
 0x24d   : > { %8206 = vmatmul.msk.f32.gmra.mxu1 %vm781_vm1, %v14108_v15  ;;  %v1863_v45 = vpop.f32.mrf.mxu2  ;;  %v2139_v9 = vpop.f32.mrf.mxu3  ;;  %v14113_v15 = vld [vmem:[#allocation92_spill] sm:$0xff] }
 0x24e   : > { %v10613_v36 = vadd.f32 %v1863_v45, %v1793_v26  ;;  %v10615_v50 = vadd.f32 %v2139_v9, %v1942_v63  ;;  %v1539_v45 = vrot.slane %v10624_v51, 7  ;;  %v14116_v9 = vld [vmem:[#allocation96_spill] sm:$0xff] }
 0x250   : > { %14109 = vst [vmem:[#allocation21_spill] sm:$0xff] %v10613_v36  ;;  %v14124_v36 = vld [vmem:[#allocation105_spill] sm:$0xff] }
 0x252   : > { %v1716_v39 = vpop.f32.mrf.mxu1  ;;  %8239 = vmatmul.msk.f32.gmra.mxu2 %vm781_vm1, %v14110_v38  ;;  %8270 = vmatmul.msk.f32.gmra.mxu3 %vm781_vm1, %v14111_v56  ;;  %v14117_v56 = vld [vmem:[#allocation95_spill] sm:$0xff] }
 0x253   : > { %v1794_v10 = vadd.f32 %v1716_v39, %v14112_v35  ;;  %v14118_v39 = vld [vmem:[#allocation97_spill] sm:$0xff] }
 0x255   : > { %8207 = vmatmul.msk.f32.gmra.mxu1 %vm781_vm1, %v14113_v15  ;;  %v1866_v26 = vpop.f32.mrf.mxu2 }
 0x256   : > { %v10628_v63 = vadd.f32 %v1866_v26, %v1794_v10  ;;  %v14119_v10 = vrot.slane %v10324_v62, 7  ;;  %v10644_v26 = vpop.f32.mrf.mxu0 }
 0x258   : > { %14114 = vst [vmem:[#allocation22_spill] sm:$0xff] %v10628_v63  ;;  %v1540_v15 = vsel %vm656_vm2, %v14119_v10, %v1539_v45  ;;  %v14123_v63 = vld [vmem:[#allocation103_spill] sm:$0xff] }
 0x25a   : > { %v1719_v23 = vpop.f32.mrf.mxu1  ;;  %8240 = vmatmul.msk.f32.gmra.mxu2 %vm781_vm1, %v14115_v32  ;;  %8271 = vmatmul.msk.f32.gmra.mxu3 %vm781_vm1, %v14116_v9  ;;  %v2277_v9 = vmul.f32 %v1540_v15, %v10208_v60 }
 0x25b   : > { %v1795_v38 = vadd.f32 %v1719_v23, %v14117_v56  ;;  %v14121_v56 = vld [vmem:[#allocation102_spill] sm:$0xff] }
 0x25c   : > { %8307 = vmatmul.msk.f32.gmra.mxu0 %vm781_vm1, %v2277_v9 }
 0x25d   : > { %8208 = vmatmul.msk.f32.gmra.mxu1 %vm781_vm1, %v14118_v39  ;;  %v1869_v35 = vpop.f32.mrf.mxu2 }
 0x25e   : > { %v10646_v32 = vadd.f32 %v1869_v35, %v1795_v38  ;;  %v2247_v38 = vsel %vm656_vm2, %v1539_v45, 0.0  ;;  %v10661_v9 = vpop.f32.mrf.mxu0 }
 0x260   : > { %14120 = vst [vmem:[#allocation23_spill] sm:$0xff] %v10646_v32  ;;  %v2278_v32 = vmul.f32 %v2247_v38, %v10250_v31 }
 0x262   : > { %v1722_v23 = vpop.f32.mrf.mxu1  ;;  %8241 = vmatmul.msk.f32.gmra.mxu2 %vm781_vm1, %v10196_v22  ;;  %8272 = vmatmul.msk.f32.gmra.mxu3 %vm781_vm1, %v14121_v56 }
 0x263   : > { %v1796_v39 = vadd.f32 %v1722_v23, %v14122_v4  ;;  %v14125_v23 = vld [vmem:[#allocation107_spill] sm:$0xff]  ;;  %v14126_v4 = vld [vmem:[#allocation100_spill] sm:$0xff] }
 0x264   : > { %8308 = vmatmul.msk.f32.gmra.mxu0 %vm781_vm1, %v2278_v32  ;;  %v2279_v32 = vmul.f32 0.0, %v10289_v46 }
 0x265   : > { %8209 = vmatmul.msk.f32.gmra.mxu1 %vm781_vm1, %v14123_v63  ;;  %v1872_v10 = vpop.f32.mrf.mxu2 }
 0x266   : > { %v10658_v35 = vadd.f32 %v1872_v10, %v1796_v39  ;;  %v2000_v39 = vmul.f32 %v10304_v57, %v14126_v4  ;;  %v1967_v4 = vrot.slane %v10624_v51, 1 }
 0x26a   : > { %v1725_v22 = vpop.f32.mrf.mxu1  ;;  %8242 = vmatmul.msk.f32.gmra.mxu2 %vm781_vm1, %v14124_v36  ;;  %8273 = vmatmul.msk.f32.gmra.mxu3 %vm781_vm1, %v10269_v21  ;;  %v10679_v21 = vpop.f32.mrf.mxu0 }
 0x26b   : > { %v1797_v63 = vadd.f32 %v1725_v22, %v10259_v17  ;;  %v14127_v17 = vld [vmem:[#allocation110_spill] sm:$0xff] }
 0x26c   : > { %v1572_v38 = vmul.f32 %v14127_v17, %v10208_v60  ;;  %8309 = vmatmul.msk.f32.gmra.mxu0 %vm781_vm1, %v2279_v32  ;;  %v14130_v17 = vld [vmem:[#allocation109_spill] sm:$0xff] }
 0x26d   : > { %8210 = vmatmul.msk.f32.gmra.mxu1 %vm781_vm1, %v14125_v23  ;;  %v1875_v45 = vpop.f32.mrf.mxu2  ;;  %v14128_v23 = vld [vmem:[#allocation106_spill] sm:$0xff] }
 0x26e   : > { %v10671_v56 = vadd.f32 %v1875_v45, %v1797_v63  ;;  %v2001_v45 = vmul.f32 %v10341_v18, %v14128_v23  ;;  %v10714_v23 = vsel %vm1168_vm3, %v1967_v4, 0.0 }
 0x272   : > { %v1728_v10 = vpop.f32.mrf.mxu1  ;;  %8243 = vmatmul.msk.f32.gmra.mxu2 %vm781_vm1, %v10280_v42  ;;  %8274 = vmatmul.msk.f32.gmra.mxu3 %vm781_vm1, %v2000_v39 }
 0x273   : > { %v1798_v22 = vadd.f32 %v1728_v10, %v10298_v48  ;;  %v1573_v48 = vmul.f32 %v10346_v19, %v10250_v31  ;;  %v14129_v10 = vrot.slane %v10324_v62, 1 }
 0x275   : > { %8211 = vmatmul.msk.f32.gmra.mxu1 %vm781_vm1, %v1572_v38  ;;  %v1878_v57 = vpop.f32.mrf.mxu2  ;;  %v10701_v18 = vsel %vm1168_vm3, %v14129_v10, %v1967_v4 }
 0x276   : > { %v10686_v63 = vadd.f32 %v1878_v57, %v1798_v22  ;;  %v2002_v38 = vmul.f32 %v10701_v18, %v14130_v17 }
 0x27a   : > { %v1731_v39 = vpop.f32.mrf.mxu1  ;;  %8244 = vmatmul.msk.f32.gmra.mxu2 %vm781_vm1, %v10324_v62  ;;  %8275 = vmatmul.msk.f32.gmra.mxu3 %vm781_vm1, %v2001_v45 }
 0x27b   : > { %v1799_v60 = vadd.f32 %v1731_v39, %v10336_v28  ;;  %v1574_v28 = vmul.f32 %v1540_v15, %v10289_v46  ;;  %v2003_v39 = vmul.f32 %v10714_v23, %v10334_v33  ;;  %v8948_v33 = vld [vmem:[%s9107_s10 + $0xf8] sm:$0xff] }
 0x27c   : > { %v3369_v10 = vrot.slane %v8948_v33, 1 }
 0x27d   : > { %8212 = vmatmul.msk.f32.gmra.mxu1 %vm781_vm1, %v1573_v48  ;;  %v1881_v32 = vpop.f32.mrf.mxu2  ;;  %v14131_v48 = vld [vmem:[#allocation2_spill] sm:$0xff] }
 0x27e   : > { %v10703_v22 = vadd.f32 %v1881_v32, %v1799_v60  ;;  %v14133_v32 = vld [vmem:[#allocation3_spill] sm:$0xff] }
 0x282   : > { %v1734_v57 = vpop.f32.mrf.mxu1  ;;  %8245 = vmatmul.msk.f32.gmra.mxu2 %vm781_vm1, %v10624_v51  ;;  %8276 = vmatmul.msk.f32.gmra.mxu3 %vm781_vm1, %v2002_v38 }
 0x283   : > { %v1800_v31 = vadd.f32 %v1734_v57, %v10368_v41 }
 0x285   : > { %8213 = vmatmul.msk.f32.gmra.mxu1 %vm781_vm1, %v1574_v28  ;;  %v1884_v19 = vpop.f32.mrf.mxu2 }
 0x286   : > { %v10716_v45 = vadd.f32 %v1884_v19, %v1800_v31  ;;  %v8951_v19 = vld [vmem:[%s9107_s10 + $0x88] sm:$0xff] }
 0x28a   : > { %v1737_v60 = vpop.f32.mrf.mxu1  ;;  %8277 = vmatmul.msk.f32.gmra.mxu3 %vm781_vm1, %v2003_v39  ;;  %8340 = vmatmul.msk.f32.vlgmr.msra.gmra.mxu2 %vm781_vm1, %v14131_v48  ;;  %v3341_v39 = vrot.slane %v8951_v19, 1 }
 0x28b   : > { %v1801_v46 = vadd.f32 %v1737_v60, %v10378_v55  ;;  %v8949_v55 = vld [vmem:[%s9107_s10 + $0x78] sm:$0xff]  ;;  %v10740_v60 = vld [vmem:[%s9107_s10 + $0x90] sm:$0xff] }
 0x28c   : > { %v3337_v57 = vrot.slane %v8949_v55, 1  ;;  %v13907_v48 = vrot.slane %v10740_v60, 1 }
 0x28d   : > { %v1887_v41 = vpop.f32.mrf.mxu2  ;;  %8310 = vmatmul.msk.f32.vlgmr.msrb.gmra.mxu1 %vm781_vm1, %v9235_v58  ;;  %v8950_v58 = vld [vmem:[%s9107_s10 + $0x80] sm:$0xff] }
 0x28e   : > { %v10726_v15 = vadd.f32 %v1887_v41, %v1801_v46  ;;  %v3339_v28 = vrot.slane %v8950_v58, 1  ;;  %v3403_v46 = vsel %vm1168_vm3, %v3369_v10, 0.0 }
 0x28f   : > { %v10744_v41 = vmax.f32 %v8948_v33, %v3403_v46 }
 0x290   : > { %14132 = vst [vmem:[#allocation25_spill] sm:$0xff] %v10726_v15 }
 0x292   : > { %v1740_v4 = vpop.f32.mrf.mxu1  ;;  %8341 = vmatmul.msk.f32.gmra.mxu2 %vm781_vm1, %v14133_v32  ;;  %v3340_v32 = vsel %vm1168_vm3, %v3337_v57, %v3339_v28 }
 0x293   : > { %v1802_v17 = vadd.f32 %v1740_v4, %v10391_v24  ;;  %v14135_v4 = vld [vmem:[#allocation4_spill] sm:$0xff] }
 0x295   : > { %v1890_v38 = vpop.f32.mrf.mxu2  ;;  %8311 = vmatmul.msk.f32.gmra.mxu1 %vm781_vm1, %v9270_v8 }
 0x296   : > { %v10735_v31 = vadd.f32 %v1890_v38, %v1802_v17  ;;  %v3344_v17 = vsel %vm1168_vm3, %v3341_v39, %v13907_v48  ;;  %v3419_v38 = vmax.f32 %v8949_v55, %v3340_v32 }
 0x298   : > { %14134 = vst [vmem:[#allocation26_spill] sm:$0xff] %v10735_v31  ;;  %v10753_v31 = vmax.f32 %v8951_v19, %v3344_v17 }
 0x29a   : > { %v1743_v24 = vpop.f32.mrf.mxu1  ;;  %8342 = vmatmul.msk.f32.gmra.mxu2 %vm781_vm1, %v14135_v4  ;;  %v3451_v46 = vmax.f32 %v3419_v38, %v10753_v31  ;;  %v14137_v4 = vld [vmem:[#allocation5_spill] sm:$0xff] }
 0x29b   : > { %v1803_v8 = vadd.f32 %v1743_v24, %v10401_v7  ;;  %v3467_v7 = vmax.f32 %v10744_v41, 0.0 }
 0x29c   : > { %3468 = vmatpush.msrb.mxu2 %v3451_v46 }
 0x29d   : > { %v1893_v15 = vpop.f32.mrf.mxu2  ;;  %8312 = vmatmul.msk.f32.gmra.mxu1 %vm781_vm1, %v9309_v29  ;;  %3509 = vmatpush.msra.mxu0 %v3467_v7  ;;  %v8953_v29 = vld [vmem:[%s9107_s10 + $0x70] sm:$0xff] }
 0x29e   : > { %v10757_v33 = vadd.f32 %v1893_v15, %v1803_v8  ;;  %v3335_v15 = vrot.slane %v8953_v29, 1  ;;  %v8954_v8 = vld [vmem:[%s9107_s10 + $0xf0] sm:$0xff] }
 0x29f   : > { %v3367_v17 = vrot.slane %v8954_v8, 1 }
 0x2a0   : > { %14136 = vst [vmem:[#allocation27_spill] sm:$0xff] %v10757_v33  ;;  %v14138_v33 = vld [vmem:[#allocation8_spill] sm:$0xff]  ;;  %v3338_v7 = vsel %vm1168_vm3, %v3335_v15, %v3337_v57 }
 0x2a2   : > { %v1746_v24 = vpop.f32.mrf.mxu1  ;;  %8343 = vmatmul.msk.f32.gmra.mxu2 %vm781_vm1, %v14137_v4 }
 0x2a3   : > { %v1804_v55 = vadd.f32 %v1746_v24, %v10411_v27  ;;  %v3342_v27 = vsel %vm1168_vm3, %v3339_v28, %v3341_v39  ;;  %v3418_v24 = vmax.f32 %v8953_v29, %v3338_v7  ;;  %v14139_v28 = vld [vmem:[#allocation12_spill] sm:$0xff]  ;;  %v8955_v29 = vld [vmem:[%s9107_s10 + $0x68] sm:$0xff] }
 0x2a4   : > { %v10775_v4 = vmax.f32 %v8950_v58, %v3342_v27  ;;  %v8956_v7 = vld [vmem:[%s9107_s10 + $0xe8] sm:$0xff]  ;;  %v14140_v27 = vld [vmem:[#allocation16_spill] sm:$0xff] }
 0x2a5   : > { %v1896_v19 = vpop.f32.mrf.mxu2  ;;  %8313 = vmatmul.msk.f32.gmra.mxu1 %vm781_vm1, %v9346_v52 }
 0x2a6   : > { %v10766_v32 = vadd.f32 %v1896_v19, %v1804_v55  ;;  %v3450_v19 = vmax.f32 %v3418_v24, %v10775_v4 }
 0x2a8   : > { %3469 = vmatpush.msrb.mxu2 %v3450_v19 }
 0x2aa   : > { %v1749_v48 = vpop.f32.mrf.mxu1  ;;  %8344 = vmatmul.msk.f32.gmra.mxu2 %vm781_vm1, %v14138_v33  ;;  %v3370_v33 = vsel %vm1168_vm3, %v3367_v17, %v3369_v10  ;;  %v3365_v10 = vrot.slane %v8956_v7, 1 }
 0x2ab   : > { %v1805_v46 = vadd.f32 %v1749_v48, %v10421_v49  ;;  %v3434_v49 = vmax.f32 %v8954_v8, %v3370_v33 }
 0x2ad   : > { %v1899_v52 = vpop.f32.mrf.mxu2  ;;  %8314 = vmatmul.msk.f32.gmra.mxu1 %vm781_vm1, %v9383_v12  ;;  %v3466_v57 = vmax.f32 %v3434_v49, 0.0 }
 0x2ae   : > { %v10779_v55 = vadd.f32 %v1899_v52, %v1805_v46  ;;  %v3333_v46 = vrot.slane %v8955_v29, 1 }
 0x2af   : > { %3510 = vmatpush.msra.mxu0 %v3466_v57 }
 0x2b0   : > { %v3336_v19 = vsel %vm1168_vm3, %v3333_v46, %v3335_v15 }
 0x2b2   : > { %v1752_v48 = vpop.f32.mrf.mxu1  ;;  %8345 = vmatmul.msk.f32.gmra.mxu2 %vm781_vm1, %v14139_v28 }
 0x2b3   : > { %v1806_v58 = vadd.f32 %v1752_v48, %v10431_v6  ;;  %v3417_v6 = vmax.f32 %v8955_v29, %v3336_v19  ;;  %v3368_v48 = vsel %vm1168_vm3, %v3365_v10, %v3367_v17  ;;  %v8958_v17 = vld [vmem:[%s9107_s10 + $0xe0] sm:$0xff] }
 0x2b4   : > { %v3433_v28 = vmax.f32 %v8956_v7, %v3368_v48  ;;  %v3363_v7 = vrot.slane %v8958_v17, 1 }
 0x2b5   : > { %v1902_v39 = vpop.f32.mrf.mxu2  ;;  %8315 = vmatmul.msk.f32.gmra.mxu1 %vm781_vm1, %v9420_v40  ;;  %v3449_v57 = vmax.f32 %v3417_v6, %v3419_v38  ;;  %v8957_v38 = vld [vmem:[%s9107_s10 + $0x60] sm:$0xff] }
 0x2b6   : > { %v10788_v12 = vadd.f32 %v1902_v39, %v1806_v58  ;;  %v3465_v58 = vmax.f32 %v3433_v28, %v10744_v41  ;;  %v3366_v48 = vsel %vm1168_vm3, %v3363_v7, %v3365_v10 }
 0x2b7   : > { %3470 = vmatpush.msrb.mxu2 %v3449_v57 }
 0x2b8   : > { %3511 = vmatpush.msra.mxu0 %v3465_v58  ;;  %v10820_v58 = vmax.f32 %v8958_v17, %v3366_v48 }
 0x2ba   : > { %v1755_v8 = vpop.f32.mrf.mxu1  ;;  %8346 = vmatmul.msk.f32.gmra.mxu2 %vm781_vm1, %v14140_v27 }
 0x2bb   : > { %v1807_v52 = vadd.f32 %v1755_v8, %v10443_v44  ;;  %v14141_v44 = vld [vmem:[#allocation20_spill] sm:$0xff]  ;;  %v3331_v8 = vrot.slane %v8957_v38, 1 }
 0x2bd   : > { %v1905_v33 = vpop.f32.mrf.mxu2  ;;  %8316 = vmatmul.msk.f32.gmra.mxu1 %vm781_vm1, %v14036_v5  ;;  %v3334_v19 = vsel %vm1168_vm3, %v3331_v8, %v3333_v46 }
 0x2be   : > { %v10798_v40 = vadd.f32 %v1905_v33, %v1807_v52  ;;  %v14142_v52 = vld [vmem:[#allocation24_spill] sm:$0xff] }
 0x2c2   : > { %v1758_v39 = vpop.f32.mrf.mxu1  ;;  %8347 = vmatmul.msk.f32.gmra.mxu2 %vm781_vm1, %v14141_v44  ;;  %v14143_v44 = vld [vmem:[#allocation28_spill] sm:$0xff] }
 0x2c3   : > { %v1808_v15 = vadd.f32 %v1758_v39, %v10455_v61  ;;  %v3416_v61 = vmax.f32 %v8957_v38, %v3334_v19  ;;  %v3464_v39 = vmax.f32 %v10820_v58, %v3434_v49  ;;  %v8960_v38 = vld [vmem:[%s9107_s10 + $0xd8] sm:$0xff] }
 0x2c4   : > { %v3361_v17 = vrot.slane %v8960_v38, 1 }
 0x2c5   : > { %v1908_v29 = vpop.f32.mrf.mxu2  ;;  %8317 = vmatmul.msk.f32.gmra.mxu1 %vm781_vm1, %v14039_v47  ;;  %v3448_v57 = vmax.f32 %v3416_v61, %v3418_v24  ;;  %3512 = vmatpush.msra.mxu0 %v3464_v39  ;;  %v8959_v24 = vld [vmem:[%s9107_s10 + $0x58] sm:$0xff] }
 0x2c6   : > { %v10807_v5 = vadd.f32 %v1908_v29, %v1808_v15  ;;  %v3329_v10 = vrot.slane %v8959_v24, 1  ;;  %v10831_v29 = vpop.f32.mrf.mxu3 }
 0x2c7   : > { %3471 = vmatpush.msrb.mxu2 %v3448_v57  ;;  %v3364_v57 = vsel %vm1168_vm3, %v3361_v17, %v3363_v7  ;;  %v8961_v7 = vld [vmem:[%s9107_s10 + $0x50] sm:$0xff] }
 0x2c8   : > { %v10843_v48 = vmax.f32 %v8960_v38, %v3364_v57 }
 0x2ca   : > { %v1761_v27 = vpop.f32.mrf.mxu1  ;;  %8348 = vmatmul.msk.f32.gmra.mxu2 %vm781_vm1, %v14142_v52  ;;  %v3463_v39 = vmax.f32 %v10843_v48, %v3433_v28 }
 0x2cb   : > { %v1809_v41 = vadd.f32 %v1761_v27, %v10467_v30  ;;  %v14144_v27 = vld [vmem:[#allocation33_spill] sm:$0xff] }
 0x2cc   : > { %3513 = vmatpush.msra.mxu0 %v3463_v39  ;;  %v14149_v39 = vld [vmem:[#allocation48_spill] sm:$0xff] }
 0x2cd   : > { %v1911_v33 = vpop.f32.mrf.mxu2  ;;  %8318 = vmatmul.msk.f32.gmra.mxu1 %vm781_vm1, %v14043_v43 }
 0x2ce   : > { %v10817_v47 = vadd.f32 %v1911_v33, %v1809_v41 }
 0x2d2   : > { %v1764_v30 = vpop.f32.mrf.mxu1  ;;  %8349 = vmatmul.msk.f32.gmra.mxu2 %vm781_vm1, %v14143_v44 }
 0x2d3   : > { %v1810_v46 = vadd.f32 %v1764_v30, %v10477_v2  ;;  %v3332_v2 = vsel %vm1168_vm3, %v3329_v10, %v3331_v8  ;;  %v10846_v30 = vpop.f32.mrf.mxu3  ;;  %v14145_v8 = vld [vmem:[#allocation39_spill] sm:$0xff] }
 0x2d4   : > { %v3415_v41 = vmax.f32 %v8959_v24, %v3332_v2  ;;  %v14147_v24 = vld [vmem:[#allocation43_spill] sm:$0xff] }
 0x2d5   : > { %v1914_v15 = vpop.f32.mrf.mxu2  ;;  %8319 = vmatmul.msk.f32.gmra.mxu1 %vm781_vm1, %v14047_v54 }
 0x2d6   : > { %v10828_v43 = vadd.f32 %v1914_v15, %v1810_v46  ;;  %v3447_v33 = vmax.f32 %v3415_v41, %v3417_v6  ;;  %v3327_v46 = vrot.slane %v8961_v7, 1 }
 0x2d8   : > { %3472 = vmatpush.msrb.mxu2 %v3447_v33  ;;  %v3330_v38 = vsel %vm1168_vm3, %v3327_v46, %v3329_v10 }
 0x2da   : > { %v1767_v49 = vpop.f32.mrf.mxu1  ;;  %8350 = vmatmul.msk.f32.gmra.mxu2 %vm781_vm1, %v14144_v27  ;;  %v3414_v27 = vmax.f32 %v8961_v7, %v3330_v38 }
 0x2db   : > { %v1811_v52 = vadd.f32 %v1767_v49, %v10489_v14  ;;  %v10863_v49 = vpop.f32.mrf.mxu3 }
 0x2dc   : > { %v3446_v33 = vmax.f32 %v3414_v27, %v3416_v61 }
 0x2dd   : > { %v1917_v19 = vpop.f32.mrf.mxu2  ;;  %8320 = vmatmul.msk.f32.gmra.mxu1 %vm781_vm1, %v14051_v53  ;;  %v3008_v53 = vld [vmem:[%s13853_s2] sm:$0xff] }
 0x2de   : > { %v10840_v54 = vadd.f32 %v1917_v19, %v1811_v52  ;;  %3122 = vmatpush.msra.mxu3 %v3008_v53  ;;  %3473 = vmatpush.msrb.mxu2 %v3446_v33 }
 0x2e2   : > { %v1770_v14 = vpop.f32.mrf.mxu1  ;;  %8351 = vmatmul.msk.f32.gmra.mxu2 %vm781_vm1, %v14145_v8 }
 0x2e3   : > { %v1812_v44 = vadd.f32 %v1770_v14, %v10501_v59  ;;  %v10880_v61 = vpop.f32.mrf.mxu3 }
 0x2e5   : > { %v1920_v6 = vpop.f32.mrf.mxu2  ;;  %8321 = vmatmul.msk.f32.gmra.mxu1 %vm781_vm1, %v14054_v37  ;;  %v8962_v37 = vld [vmem:[%s9107_s10 + $0xd0] sm:$0xff] }
 0x2e6   : > { %v10856_v28 = vadd.f32 %v1920_v6, %v1812_v44  ;;  %v3359_v2 = vrot.slane %v8962_v37, 1  ;;  %v8963_v6 = vld [vmem:[%s9107_s10 + $0x48] sm:$0xff] }
 0x2e7   : > { %v3325_v7 = vrot.slane %v8963_v6, 1 }
 0x2e8   : > { %14146 = vst [vmem:[#allocation29_spill] sm:$0xff] %v10856_v28 }
 0x2ea   : > { %v1773_v15 = vpop.f32.mrf.mxu1  ;;  %8352 = vmatmul.msk.f32.gmra.mxu2 %vm781_vm1, %v14147_v24 }
 0x2eb   : > { %v1813_v59 = vadd.f32 %v1773_v15, %v10513_v11  ;;  %v3362_v11 = vsel %vm1168_vm3, %v3359_v2, %v3361_v17  ;;  %v14152_v15 = vld [vmem:[#allocation53_spill] sm:$0xff] }
 0x2ec   : > { %v10874_v14 = vmax.f32 %v8962_v37, %v3362_v11  ;;  %v14154_v37 = vld [vmem:[#allocation44_spill] sm:$0xff]  ;;  %v10897_v11 = vpop.f32.mrf.mxu3 }
 0x2ed   : > { %v1923_v52 = vpop.f32.mrf.mxu2  ;;  %8322 = vmatmul.msk.f32.gmra.mxu1 %vm781_vm1, %v14058_v25  ;;  %v14150_v25 = vld [vmem:[#allocation40_spill] sm:$0xff] }
 0x2ee   : > { %v10868_v19 = vadd.f32 %v1923_v52, %v1813_v59  ;;  %v3462_v44 = vmax.f32 %v10874_v14, %v10820_v58  ;;  %v3328_v59 = vsel %vm1168_vm3, %v3325_v7, %v3327_v46  ;;  %v8964_v58 = vld [vmem:[%s9107_s10 + $0xc8] sm:$0xff] }
 0x2ef   : > { %v10889_v38 = vmax.f32 %v8963_v6, %v3328_v59  ;;  %v3357_v33 = vrot.slane %v8964_v58, 1 }
 0x2f0   : > { %14148 = vst [vmem:[#allocation31_spill] sm:$0xff] %v10868_v19  ;;  %3514 = vmatpush.msra.mxu0 %v3462_v44 }
 0x2f1   : > { %v3360_v46 = vsel %vm1168_vm3, %v3357_v33, %v3359_v2 }
 0x2f2   : > { %v1776_v57 = vpop.f32.mrf.mxu1  ;;  %8353 = vmatmul.msk.f32.gmra.mxu2 %vm781_vm1, %v14149_v39  ;;  %v3445_v39 = vmax.f32 %v10889_v38, %v3415_v41  ;;  %v10903_v44 = vmax.f32 %v8964_v58, %v3360_v46 }
 0x2f3   : > { %v1814_v10 = vadd.f32 %v1776_v57, %v10521_v20  ;;  %v14153_v20 = vld [vmem:[#allocation13_spill] sm:$0xff] }
 0x2f4   : > { %3474 = vmatpush.msrb.mxu2 %v3445_v39  ;;  %v3461_v41 = vmax.f32 %v10903_v44, %v10843_v48  ;;  %v10914_v59 = vpop.f32.mrf.mxu3  ;;  %v10922_v48 = vld [vmem:[%s13854_s3 + $0x4] ss:$0 sm:$0xff] }
 0x2f5   : > { %v1926_v8 = vpop.f32.mrf.mxu2  ;;  %8323 = vmatmul.msk.f32.gmra.mxu1 %vm781_vm1, %v14150_v25  ;;  %v8966_v39 = vld [vmem:[%s9107_s10 + $0xc0] sm:$0xff] }
 0x2f6   : > { %v10882_v53 = vadd.f32 %v1926_v8, %v1814_v10  ;;  %v14156_v8 = vld [vmem:[#allocation58_spill] sm:$0xff]  ;;  %3515 = vmatpush.msra.mxu0 %v3461_v41 }
 0x2f8   : > { %14151 = vst [vmem:[#allocation32_spill] sm:$0xff] %v10882_v53 }
 0x2fa   : > { %v1779_v17 = vpop.f32.mrf.mxu1  ;;  %8354 = vmatmul.msk.f32.gmra.mxu2 %vm781_vm1, %v14152_v15  ;;  %v8965_v15 = vld [vmem:[%s9107_s10 + $0x40] sm:$0xff] }
 0x2fb   : > { %v1815_v24 = vadd.f32 %v1779_v17, %v14153_v20  ;;  %v3323_v20 = vrot.slane %v8965_v15, 1 }
 0x2fd   : > { %v1929_v52 = vpop.f32.mrf.mxu2  ;;  %8324 = vmatmul.msk.f32.gmra.mxu1 %vm781_vm1, %v14154_v37 }
 0x2fe   : > { %v10894_v57 = vadd.f32 %v1929_v52, %v1815_v24  ;;  %v14158_v24 = vld [vmem:[#allocation6_spill] sm:$0xff]  ;;  %v14159_v52 = vld [vmem:[#allocation63_spill] sm:$0xff] }
 0x2ff   : > { %v2490_v2 = vadd.f32 %v14158_v24, %v10550_v16 }
 0x300   : > { %14155 = vst [vmem:[#allocation34_spill] sm:$0xff] %v10894_v57 }
 0x302   : > { %v1782_v10 = vpop.f32.mrf.mxu1  ;;  %8355 = vmatmul.msk.f32.gmra.mxu2 %vm781_vm1, %v14156_v8 }
 0x303   : > { %v1816_v25 = vadd.f32 %v1782_v10, %v10539_v13  ;;  %v3355_v10 = vrot.slane %v8966_v39, 1 }
 0x305   : > { %v1932_v6 = vpop.f32.mrf.mxu2  ;;  %8325 = vmatmul.msk.f32.gmra.mxu1 %vm781_vm1, %v14073_v0  ;;  %v3326_v0 = vsel %vm1168_vm3, %v3323_v20, %v3325_v7  ;;  %v14160_v7 = vld [vmem:[#allocation14_spill] sm:$0xff] }
 0x306   : > { %v10909_v17 = vadd.f32 %v1932_v6, %v1816_v25  ;;  %v10924_v58 = vmax.f32 %v8965_v15, %v3326_v0  ;;  %v14161_v6 = vld [vmem:[#allocation7_spill] sm:$0xff]  ;;  %v14162_v15 = vld [vmem:[#allocation68_spill] sm:$0xff] }
 0x307   : > { %v2491_v41 = vadd.f32 %v14161_v6, %v14160_v7  ;;  %v14163_v0 = vld [vmem:[#allocation59_spill] sm:$0xff]  ;;  %v14165_v6 = vld [vmem:[#allocation9_spill] sm:$0xff] }
 0x308   : > { %14157 = vst [vmem:[#allocation36_spill] sm:$0xff] %v10909_v17  ;;  %v3444_v46 = vmax.f32 %v10924_v58, %v3414_v27  ;;  %v10940_v27 = vpop.f32.mrf.mxu3  ;;  %v14170_v17 = vld [vmem:[#allocation78_spill] sm:$0xff] }
 0x30a   : > { %v2540_v13 = vpop.f32.mrf.mxu1  ;;  %8356 = vmatmul.msk.f32.gmra.mxu2 %vm781_vm1, %v14159_v52 }
 0x30b   : > { %v2636_v37 = vadd.f32 %v2540_v13, %v2490_v2  ;;  %3475 = vmatpush.msrb.mxu2 %v3444_v46  ;;  %v10936_v13 = vpop.f32.mrf.mxu0 }
 0x30d   : > { %8326 = vmatmul.msk.f32.gmra.mxu1 %vm781_vm1, %v14076_v34  ;;  %v2814_v16 = vpop.f32.mrf.mxu2  ;;  %v3358_v34 = vsel %vm1168_vm3, %v3355_v10, %v3357_v33 }
 0x30e   : > { %v2910_v8 = vadd.f32 %v2814_v16, %v2636_v37  ;;  %v10938_v37 = vmax.f32 %v8966_v39, %v3358_v34  ;;  %v14164_v39 = vld [vmem:[#allocation15_spill] sm:$0xff] }
 0x310   : > { %v2944_v25 = vadd.f32 %v10922_v48, %v2910_v8  ;;  %v3460_v8 = vmax.f32 %v10938_v37, %v10874_v14 }
 0x312   : > { %v2976_v24 = vmax.f32 %v2944_v25, 0.0  ;;  %v2543_v2 = vpop.f32.mrf.mxu1  ;;  %8357 = vmatmul.msk.f32.gmra.mxu2 %vm781_vm1, %v14162_v15  ;;  %v8967_v25 = vld [vmem:[%s9107_s10 + $0x38] sm:$0xff]  ;;  %3516 = vmatpush.msra.mxu0 %v3460_v8 }
 0x313   : > { %v2637_v52 = vadd.f32 %v2543_v2, %v2491_v41  ;;  %v3321_v33 = vrot.slane %v8967_v25, 1  ;;  %v2492_v41 = vadd.f32 %v14165_v6, %v14164_v39 }
 0x314   : > { %8372 = vmatmul.msk.f32.vlgmr.msra.gmra.mxu3 %vm781_vm1, %v2976_v24  ;;  %v14166_v24 = vld [vmem:[#allocation73_spill] sm:$0xff] }
 0x315   : > { %8327 = vmatmul.msk.f32.gmra.mxu1 %vm781_vm1, %v14163_v0  ;;  %v2817_v16 = vpop.f32.mrf.mxu2  ;;  %v3324_v0 = vsel %vm1168_vm3, %v3321_v33, %v3323_v20 }
 0x316   : > { %v2911_v46 = vadd.f32 %v2817_v16, %v2637_v52  ;;  %v10955_v14 = vmax.f32 %v8967_v25, %v3324_v0  ;;  %v10957_v52 = vpop.f32.mrf.mxu0  ;;  %v14167_v16 = vld [vmem:[#allocation64_spill] sm:$0xff]  ;;  %v14168_v25 = vld [vmem:[#allocation17_spill] sm:$0xff] }
 0x318   : > { %v2945_v7 = vadd.f32 %v10922_v48, %v2911_v46  ;;  %v8968_v46 = vld [vmem:[%s9107_s10 + $0xb8] sm:$0xff] }
 0x319   : > { %v3353_v39 = vrot.slane %v8968_v46, 1 }
 0x31a   : > { %v2977_v2 = vmax.f32 %v2945_v7, 0.0  ;;  %v2546_v15 = vpop.f32.mrf.mxu1  ;;  %8358 = vmatmul.msk.f32.gmra.mxu2 %vm781_vm1, %v14166_v24  ;;  %v10962_v7 = vpop.f32.mrf.mxu3 }
 0x31b   : > { %v2638_v34 = vadd.f32 %v2546_v15, %v2492_v41  ;;  %v3443_v41 = vmax.f32 %v10955_v14, %v10889_v38 }
 0x31c   : > { %8373 = vmatmul.msk.f32.gmra.mxu3 %vm781_vm1, %v2977_v2  ;;  %v14169_v2 = vld [vmem:[#allocation10_spill] sm:$0xff] }
 0x31d   : > { %8328 = vmatmul.msk.f32.gmra.mxu1 %vm781_vm1, %v14167_v16  ;;  %v2820_v8 = vpop.f32.mrf.mxu2  ;;  %3476 = vmatpush.msrb.mxu2 %v3443_v41  ;;  %v2493_v15 = vadd.f32 %v14169_v2, %v14168_v25  ;;  %v3356_v16 = vsel %vm1168_vm3, %v3353_v39, %v3355_v10  ;;  %v8969_v41 = vld [vmem:[%s9107_s10 + $0x30] sm:$0xff]  ;;  %v14173_v2 = vld [vmem:[#allocation11_spill] sm:$0xff] }
 0x31e   : > { %v2912_v6 = vadd.f32 %v2820_v8, %v2638_v34  ;;  %v10972_v53 = vmax.f32 %v8968_v46, %v3356_v16  ;;  %v14171_v34 = vld [vmem:[#allocation69_spill] sm:$0xff]  ;;  %v10980_v25 = vpop.f32.mrf.mxu0  ;;  %v14172_v46 = vld [vmem:[#allocation18_spill] sm:$0xff]  ;;  %v14174_v16 = vld [vmem:[#allocation83_spill] sm:$0xff] }
 0x320   : > { %v2946_v20 = vadd.f32 %v10922_v48, %v2912_v6  ;;  %v3459_v8 = vmax.f32 %v10972_v53, %v10903_v44 }
 0x322   : > { %v2978_v24 = vmax.f32 %v2946_v20, 0.0  ;;  %v2549_v0 = vpop.f32.mrf.mxu1  ;;  %8359 = vmatmul.msk.f32.gmra.mxu2 %vm781_vm1, %v14170_v17  ;;  %v3319_v20 = vrot.slane %v8969_v41, 1  ;;  %3517 = vmatpush.msra.mxu0 %v3459_v8  ;;  %v10982_v17 = vpop.f32.mrf.mxu3 }
 0x323   : > { %v2639_v57 = vadd.f32 %v2549_v0, %v2493_v15  ;;  %v2494_v15 = vadd.f32 %v14173_v2, %v14172_v46 }
 0x324   : > { %8374 = vmatmul.msk.f32.gmra.mxu3 %vm781_vm1, %v2978_v24 }
 0x325   : > { %8329 = vmatmul.msk.f32.gmra.mxu1 %vm781_vm1, %v14171_v34  ;;  %v2823_v38 = vpop.f32.mrf.mxu2 }
 0x326   : > { %v2913_v6 = vadd.f32 %v2823_v38, %v2639_v57  ;;  %v3322_v57 = vsel %vm1168_vm3, %v3319_v20, %v3321_v33  ;;  %v14175_v38 = vld [vmem:[#allocation74_spill] sm:$0xff]  ;;  %v10999_v2 = vpop.f32.mrf.mxu0  ;;  %v14176_v33 = vld [vmem:[#allocation19_spill] sm:$0xff] }
 0x327   : > { %v10991_v34 = vmax.f32 %v8969_v41, %v3322_v57  ;;  %v2495_v41 = vadd.f32 %v10644_v26, %v14176_v33 }
 0x328   : > { %v2947_v10 = vadd.f32 %v10922_v48, %v2913_v6  ;;  %v8970_v6 = vld [vmem:[%s9107_s10 + $0xb0] sm:$0xff] }
 0x329   : > { %v3351_v19 = vrot.slane %v8970_v6, 1 }
 0x32a   : > { %v2979_v24 = vmax.f32 %v2947_v10, 0.0  ;;  %v2552_v0 = vpop.f32.mrf.mxu1  ;;  %8360 = vmatmul.msk.f32.gmra.mxu2 %vm781_vm1, %v14174_v16  ;;  %v3442_v10 = vmax.f32 %v10991_v34, %v10924_v58  ;;  %v14177_v16 = vld [vmem:[#allocation88_spill] sm:$0xff] }
 0x32b   : > { %v2640_v44 = vadd.f32 %v2552_v0, %v2494_v15  ;;  %v11003_v15 = vpop.f32.mrf.mxu3 }
 0x32c   : > { %8375 = vmatmul.msk.f32.gmra.mxu3 %vm781_vm1, %v2979_v24  ;;  %3477 = vmatpush.msrb.mxu2 %v3442_v10  ;;  %v8971_v10 = vld [vmem:[%s9107_s10 + $0x28] sm:$0xff] }
 0x32d   : > { %8330 = vmatmul.msk.f32.gmra.mxu1 %vm781_vm1, %v14175_v38  ;;  %v2826_v8 = vpop.f32.mrf.mxu2 }
 0x32e   : > { %v2914_v28 = vadd.f32 %v2826_v8, %v2640_v44  ;;  %v3354_v44 = vsel %vm1168_vm3, %v3351_v19, %v3353_v39  ;;  %v2496_v39 = vadd.f32 %v10661_v9, %v10604_v3  ;;  %v8972_v9 = vld [vmem:[%s9107_s10 + $0xa8] sm:$0xff] }
 0x32f   : > { %v11008_v58 = vmax.f32 %v8970_v6, %v3354_v44 }
 0x330   : > { %v2948_v46 = vadd.f32 %v10922_v48, %v2914_v28  ;;  %v14178_v28 = vld [vmem:[#allocation79_spill] sm:$0xff] }
 0x331   : > { %v3458_v26 = vmax.f32 %v11008_v58, %v10938_v37 }
 0x332   : > { %v2980_v24 = vmax.f32 %v2948_v46, 0.0  ;;  %v2555_v0 = vpop.f32.mrf.mxu1  ;;  %8361 = vmatmul.msk.f32.gmra.mxu2 %vm781_vm1, %v14177_v16  ;;  %v3317_v46 = vrot.slane %v8971_v10, 1 }
 0x333   : > { %v2641_v57 = vadd.f32 %v2555_v0, %v2495_v41  ;;  %3518 = vmatpush.msra.mxu0 %v3458_v26  ;;  %v11021_v0 = vpop.f32.mrf.mxu0  ;;  %v11024_v44 = vpop.f32.mrf.mxu3 }
 0x334   : > { %8376 = vmatmul.msk.f32.gmra.mxu3 %vm781_vm1, %v2980_v24  ;;  %v14179_v24 = vld [vmem:[#allocation93_spill] sm:$0xff]  ;;  %v3320_v37 = vsel %vm1168_vm3, %v3317_v46, %v3319_v20  ;;  %v2497_v20 = vadd.f32 %v10679_v21, %v10615_v50 }
 0x335   : > { %8331 = vmatmul.msk.f32.gmra.mxu1 %vm781_vm1, %v14178_v28  ;;  %v2829_v38 = vpop.f32.mrf.mxu2  ;;  %v3349_v28 = vrot.slane %v8972_v9, 1 }
 0x336   : > { %v2915_v8 = vadd.f32 %v2829_v38, %v2641_v57  ;;  %v11027_v57 = vmax.f32 %v8971_v10, %v3320_v37  ;;  %v14182_v37 = vld [vmem:[#allocation89_spill] sm:$0xff] }
 0x338   : > { %v2949_v33 = vadd.f32 %v10922_v48, %v2915_v8  ;;  %v3441_v26 = vmax.f32 %v11027_v57, %v10955_v14 }
 0x33a   : > { %v2981_v6 = vmax.f32 %v2949_v33, 0.0  ;;  %v2558_v41 = vpop.f32.mrf.mxu1  ;;  %8362 = vmatmul.msk.f32.gmra.mxu2 %vm781_vm1, %v14179_v24  ;;  %v14181_v24 = vld [vmem:[#allocation21_spill] sm:$0xff] }
 0x33b   : > { %v2642_v16 = vadd.f32 %v2558_v41, %v2496_v39  ;;  %3478 = vmatpush.msrb.mxu2 %v3441_v26  ;;  %v14180_v39 = vld [vmem:[#allocation98_spill] sm:$0xff]  ;;  %v11043_v14 = vpop.f32.mrf.mxu0 }
 0x33c   : > { %8377 = vmatmul.msk.f32.gmra.mxu3 %vm781_vm1, %v2981_v6 }
 0x33d   : > { %8332 = vmatmul.msk.f32.gmra.mxu1 %vm781_vm1, %v14105_v1  ;;  %v2832_v3 = vpop.f32.mrf.mxu2  ;;  %v3352_v1 = vsel %vm1168_vm3, %v3349_v28, %v3351_v19 }
 0x33e   : > { %v2916_v38 = vadd.f32 %v2832_v3, %v2642_v16  ;;  %v11040_v41 = vmax.f32 %v8972_v9, %v3352_v1  ;;  %v2222_v16 = vadd.f32 %v10831_v29, %v14181_v24  ;;  %v11051_v3 = vpop.f32.mrf.mxu3  ;;  %v8973_v9 = vld [vmem:[%s9107_s10 + $0x20] sm:$0xff] }
 0x33f   : > { %v14184_v1 = vld [vmem:[#allocation22_spill] sm:$0xff] }
 0x340   : > { %v2950_v8 = vadd.f32 %v10922_v48, %v2916_v38  ;;  %v3457_v21 = vmax.f32 %v11040_v41, %v10972_v53  ;;  %v3315_v38 = vrot.slane %v8973_v9, 1  ;;  %v14185_v24 = vld [vmem:[#allocation94_spill] sm:$0xff] }
 0x342   : > { %v2982_v33 = vmax.f32 %v2950_v8, 0.0  ;;  %v2561_v10 = vpop.f32.mrf.mxu1  ;;  %8363 = vmatmul.msk.f32.gmra.mxu2 %vm781_vm1, %v14180_v39  ;;  %3519 = vmatpush.msra.mxu0 %v3457_v21  ;;  %v2498_v8 = vadd.f32 %v10936_v13, %v2222_v16  ;;  %v3318_v39 = vsel %vm1168_vm3, %v3315_v38, %v3317_v46  ;;  %v8974_v13 = vld [vmem:[%s9107_s10 + $0xa0] sm:$0xff] }
 0x343   : > { %v2643_v6 = vadd.f32 %v2561_v10, %v2497_v20  ;;  %v11060_v53 = vmax.f32 %v8973_v9, %v3318_v39  ;;  %v3347_v16 = vrot.slane %v8974_v13, 1 }
 0x344   : > { %8378 = vmatmul.msk.f32.gmra.mxu3 %vm781_vm1, %v2982_v33  ;;  %v14183_v33 = vld [vmem:[#allocation104_spill] sm:$0xff] }
 0x345   : > { %8333 = vmatmul.msk.f32.gmra.mxu1 %vm781_vm1, %v14182_v37  ;;  %v2835_v50 = vpop.f32.mrf.mxu2  ;;  %v3440_v21 = vmax.f32 %v11060_v53, %v10991_v34  ;;  %v14187_v34 = vld [vmem:[#allocation23_spill] sm:$0xff] }
 0x346   : > { %v2917_v19 = vadd.f32 %v2835_v50, %v2643_v6  ;;  %v2223_v6 = vadd.f32 %v10846_v30, %v14184_v1  ;;  %v11071_v46 = vpop.f32.mrf.mxu3  ;;  %v2224_v39 = vadd.f32 %v10863_v49, %v14187_v34  ;;  %v14188_v1 = vld [vmem:[#allocation99_spill] sm:$0xff] }
 0x347   : > { %3479 = vmatpush.msrb.mxu2 %v3440_v21 }
 0x348   : > { %v2951_v26 = vadd.f32 %v10922_v48, %v2917_v19  ;;  %v11069_v19 = vpop.f32.mrf.mxu0  ;;  %v2499_v30 = vadd.f32 %v10957_v52, %v2223_v6  ;;  %v2500_v21 = vadd.f32 %v10980_v25, %v2224_v39  ;;  %v2225_v25 = vadd.f32 %v10880_v61, %v10658_v35  ;;  %v8977_v39 = vld [vmem:[%s9107_s10 + $0x98] sm:$0xff] }
 0x34a   : > { %v2983_v20 = vmax.f32 %v2951_v26, 0.0  ;;  %v2564_v29 = vpop.f32.mrf.mxu1  ;;  %8364 = vmatmul.msk.f32.gmra.mxu2 %vm781_vm1, %v14183_v33 }
 0x34b   : > { %v2644_v10 = vadd.f32 %v2564_v29, %v2498_v8  ;;  %v3350_v29 = vsel %vm1168_vm3, %v3347_v16, %v3349_v28 }
 0x34c   : > { %8379 = vmatmul.msk.f32.gmra.mxu3 %vm781_vm1, %v2983_v20  ;;  %v14186_v20 = vld [vmem:[#allocation108_spill] sm:$0xff] }
 0x34d   : > { %8334 = vmatmul.msk.f32.gmra.mxu1 %vm781_vm1, %v14185_v24  ;;  %v2838_v37 = vpop.f32.mrf.mxu2 }
 0x34e   : > { %v2918_v50 = vadd.f32 %v2838_v37, %v2644_v10  ;;  %v11078_v10 = vmax.f32 %v8974_v13, %v3350_v29  ;;  %v8975_v37 = vld [vmem:[%s9107_s10 + $0x18] sm:$0xff]  ;;  %v11092_v49 = vpop.f32.mrf.mxu3  ;;  %v8976_v29 = vld [vmem:[%s9107_s10 + $0x10] sm:$0xff] }
 0x350   : > { %v2952_v9 = vadd.f32 %v10922_v48, %v2918_v50  ;;  %v3456_v52 = vmax.f32 %v11078_v10, %v11008_v58  ;;  %v3313_v50 = vrot.slane %v8975_v37, 1  ;;  %v11089_v13 = vpop.f32.mrf.mxu0 }
 0x352   : > { %v2984_v26 = vmax.f32 %v2952_v9, 0.0  ;;  %v2567_v8 = vpop.f32.mrf.mxu1  ;;  %8365 = vmatmul.msk.f32.gmra.mxu2 %vm781_vm1, %v14186_v20  ;;  %3520 = vmatpush.msra.mxu0 %v3456_v52 }
 0x353   : > { %v2645_v33 = vadd.f32 %v2567_v8, %v2499_v30  ;;  %v3316_v8 = vsel %vm1168_vm3, %v3313_v50, %v3315_v38 }
 0x354   : > { %8380 = vmatmul.msk.f32.gmra.mxu3 %vm781_vm1, %v2984_v26  ;;  %v14189_v26 = vld [vmem:[#allocation111_spill] sm:$0xff]  ;;  %v3407_v20 = vmax.f32 %v8975_v37, %v3316_v8  ;;  %v8979_v37 = vld [vmem:[%s9107_s10] sm:$0xff] }
 0x355   : > { %8335 = vmatmul.msk.f32.gmra.mxu1 %vm781_vm1, %v14188_v1  ;;  %v2841_v24 = vpop.f32.mrf.mxu2  ;;  %v3345_v1 = vrot.slane %v8977_v39, 1 }
 0x356   : > { %v2919_v6 = vadd.f32 %v2841_v24, %v2645_v33  ;;  %v3311_v33 = vrot.slane %v8976_v29, 1  ;;  %v3439_v52 = vmax.f32 %v3407_v20, %v11027_v57 }
 0x358   : > { %v2953_v28 = vadd.f32 %v10922_v48, %v2919_v6  ;;  %v8978_v6 = vld [vmem:[%s9107_s10 + $0x8] sm:$0xff]  ;;  %3480 = vmatpush.msrb.mxu2 %v3439_v52  ;;  %v3314_v35 = vsel %vm1168_vm3, %v3311_v33, %v3313_v50  ;;  %v11113_v57 = vpop.f32.mrf.mxu0  ;;  %v11116_v52 = vpop.f32.mrf.mxu3 }
 0x359   : > { %v3309_v38 = vrot.slane %v8978_v6, 1 }
 0x35a   : > { %v2985_v9 = vmax.f32 %v2953_v28, 0.0  ;;  %v2570_v30 = vpop.f32.mrf.mxu1  ;;  %8366 = vmatmul.msk.f32.gmra.mxu2 %vm781_vm1, %v14189_v26  ;;  %v3348_v26 = vsel %vm1168_vm3, %v3345_v1, %v3347_v16 }
 0x35b   : > { %v2646_v58 = vadd.f32 %v2570_v30, %v2500_v21  ;;  %v3308_v21 = vrot.slane %v8979_v37, 1 }
 0x35c   : > { %8381 = vmatmul.msk.f32.gmra.mxu3 %vm781_vm1, %v2985_v9  ;;  %v2501_v9 = vadd.f32 %v10999_v2, %v2225_v25  ;;  %v2226_v25 = vadd.f32 %v10897_v11, %v10671_v56 }
 0x35d   : > { %8336 = vmatmul.msk.f32.gmra.mxu1 %vm781_vm1, %v14124_v36  ;;  %v2844_v34 = vpop.f32.mrf.mxu2  ;;  %v14190_v36 = vld [vmem:[#allocation112_spill] sm:$0xff] }
 0x35e   : > { %v2920_v24 = vadd.f32 %v2844_v34, %v2646_v58  ;;  %v3406_v58 = vmax.f32 %v8976_v29, %v3314_v35  ;;  %v3423_v34 = vmax.f32 %v8977_v39, %v3348_v26  ;;  %v3310_v39 = vsel %vm1168_vm3, %v3308_v21, %v3309_v38 }
 0x35f   : > { %v14191_v35 = vrot.slane %v10740_v60, 1 }
 0x360   : > { %v2954_v28 = vadd.f32 %v10922_v48, %v2920_v24  ;;  %v3312_v24 = vsel %vm1168_vm3, %v3309_v38, %v3311_v33  ;;  %v3438_v2 = vmax.f32 %v3406_v58, %v11060_v53  ;;  %v3455_v29 = vmax.f32 %v3423_v34, %v11040_v41 }
 0x361   : > { %v3405_v50 = vmax.f32 %v8978_v6, %v3312_v24  ;;  %v3346_v53 = vsel %vm1168_vm3, %v14191_v35, %v3345_v1  ;;  %v14192_v35 = vmov 0.0  }
 0x362   : > { %v2986_v61 = vmax.f32 %v2954_v28, 0.0  ;;  %v2573_v30 = vpop.f32.mrf.mxu1  ;;  %8367 = vmatmul.msk.f32.gmra.mxu2 %vm781_vm1, %v14190_v36  ;;  %3521 = vmatpush.msra.mxu0 %v3455_v29  ;;  %v3422_v41 = vmax.f32 %v10740_v60, %v3346_v53  ;;  %v2227_v60 = vadd.f32 %v10914_v59, %v10686_v63 }
 0x363   : > { %v2647_v8 = vadd.f32 %v2573_v30, %v2501_v9  ;;  %3481 = vmatpush.msrb.mxu2 %v3438_v2  ;;  %v3437_v33 = vmax.f32 %v3405_v50, %v3407_v20  ;;  %v3404_v9 = vmax.f32 %v8979_v37, %v3310_v39  ;;  %v2502_v20 = vadd.f32 %v11021_v0, %v2226_v25  ;;  %v11146_v30 = vpop.f32.mrf.mxu3  ;;  %v3285_v25 = vld [vmem:[%s13855_s4 + $0x8] sm:$0xff] }
 0x364   : > { %8382 = vmatmul.msk.f32.gmra.mxu3 %vm781_vm1, %v2986_v61  ;;  %v3454_v1 = vmax.f32 %v3422_v41, %v11078_v10  ;;  %v3453_v61 = vmax.f32 %v10753_v31, %v3423_v34  ;;  %v11151_v10 = vld [vmem:[%s13855_s4] sm:$0xff]  ;;  %v3452_v31 = vmax.f32 %v10775_v4, %v3422_v41  ;;  %v2503_v59 = vadd.f32 %v11043_v14, %v2227_v60 }
 0x365   : > { %8337 = vmatmul.msk.f32.gmra.mxu1 %vm781_vm1, %v10280_v42  ;;  %v2847_v16 = vpop.f32.mrf.mxu2  ;;  %v8980_v42 = vld [vmem:[%s13852_s1 + $0x380] sm:$0xff]  ;;  %3482 = vmatpush.msrb.mxu2 %v3437_v33  ;;  %v3436_v11 = vmax.f32 %v3404_v9, %v3406_v58  ;;  %v3293_v26 = vunpack.c.h.bf16 %v11151_v10  ;;  %v2228_v4 = vadd.f32 %v10940_v27, %v10703_v22  ;;  %v3295_v29 = vunpack.c.h.bf16 %v3285_v25 }
 0x366   : > { %v2921_v28 = vadd.f32 %v2847_v16, %v2647_v8  ;;  %v2696_v56 = vmul.f32 %v8980_v42, %v10701_v18  ;;  %3522 = vmatpush.msra.mxu0 %v3454_v1  ;;  %v11140_v18 = vpop.f32.mrf.mxu0  ;;  %v2229_v9 = vadd.f32 %v10962_v7, %v10716_v45  ;;  %v8983_v42 = vld [vmem:[%s13852_s1 + $0x398] sm:$0xff] }
 0x367   : > { %3483 = vmatpush.msrb.mxu2 %v3436_v11 }
 0x368   : > { %v2955_v6 = vadd.f32 %v10922_v48, %v2921_v28  ;;  %3523 = vmatpush.msra.mxu0 %v3453_v61  ;;  %v2505_v45 = vadd.f32 %v11089_v13, %v2229_v9  ;;  %v3287_v13 = vld [vmem:[%s13855_s4 + $0x18] sm:$0xff] }
 0x36a   : > { %v2987_v38 = vmax.f32 %v2955_v6, 0.0  ;;  %v2576_v37 = vpop.f32.mrf.mxu1  ;;  %8368 = vmatmul.msk.f32.gmra.mxu2 %vm781_vm1, %v2696_v56  ;;  %3524 = vmatpush.msra.mxu0 %v3452_v31  ;;  %v3286_v56 = vld [vmem:[%s13855_s4 + $0x10] sm:$0xff]  ;;  %v3299_v31 = vunpack.c.h.bf16 %v3287_v13 }
 0x36b   : > { %v2648_v21 = vadd.f32 %v2576_v37, %v2502_v20  ;;  %3525 = vmatmul.f32.vlgmr.msra.gmra.mxu0 %v3293_v26  ;;  %v11175_v39 = vpop.f32.mrf.mxu3  ;;  %v3297_v11 = vunpack.c.h.bf16 %v3286_v56 }
 0x36c   : > { %8383 = vmatmul.msk.f32.gmra.mxu3 %vm781_vm1, %v2987_v38 }
 0x36d   : > { %8338 = vmatmul.msk.f32.gmra.mxu1 %vm781_vm1, %v10324_v62  ;;  %v2850_v0 = vpop.f32.mrf.mxu2  ;;  %v8981_v62 = vld [vmem:[%s13852_s1 + $0x388] sm:$0xff] }
 0x36e   : > { %v2922_v36 = vadd.f32 %v2850_v0, %v2648_v21  ;;  %v2697_v63 = vmul.f32 %v8981_v62, %v10714_v23  ;;  %v8982_v23 = vld [vmem:[%s13852_s1 + $0x390] sm:$0xff]  ;;  %v11173_v16 = vpop.f32.mrf.mxu0  ;;  %v14193_v21 = vld [vmem:[#allocation25_spill] sm:$0xff] }
 0x36f   : > { %v2698_v14 = vmul.f32 0.0, %v8982_v23  ;;  %v2230_v61 = vadd.f32 %v10982_v17, %v14193_v21 }
 0x370   : > { %v2956_v58 = vadd.f32 %v10922_v48, %v2922_v36  ;;  %v3292_v36 = vunpack.c.l.bf16 %v11151_v10  ;;  %v14194_v10 = vld [vmem:[#allocation26_spill] sm:$0xff] }
 0x372   : > { %v2988_v8 = vmax.f32 %v2956_v58, 0.0  ;;  %v2579_v34 = vpop.f32.mrf.mxu1  ;;  %8369 = vmatmul.msk.f32.gmra.mxu2 %vm781_vm1, %v2697_v63  ;;  %v2506_v58 = vadd.f32 %v11113_v57, %v2230_v61  ;;  %v3288_v57 = vld [vmem:[%s13855_s4 + $0x20] sm:$0xff] }
 0x373   : > { %v2649_v24 = vadd.f32 %v2579_v34, %v2503_v59  ;;  %3528 = vmatmul.f32.gmra.mxu0 %v3295_v29  ;;  %v11194_v7 = vpop.f32.mrf.mxu3  ;;  %v2231_v34 = vadd.f32 %v11003_v15, %v14194_v10 }
 0x374   : > { %8384 = vmatmul.msk.f32.gmra.mxu3 %vm781_vm1, %v2988_v8 }
 0x375   : > { %8339 = vmatmul.msk.f32.gmra.mxu1 %vm781_vm1, %v10624_v51  ;;  %v2853_v2 = vpop.f32.mrf.mxu2  ;;  %v2504_v51 = vadd.f32 %v11069_v19, %v2228_v4  ;;  %v2699_v19 = vmul.f32 0.0, %v8983_v42 }
 0x376   : > { %v2923_v50 = vadd.f32 %v2853_v2, %v2649_v24  ;;  %v11191_v20 = vpop.f32.mrf.mxu0  ;;  %v3294_v2 = vunpack.c.l.bf16 %v3285_v25 }
 0x378   : > { %v2957_v22 = vadd.f32 %v10922_v48, %v2923_v50  ;;  %v3301_v50 = vunpack.c.h.bf16 %v3288_v57 }
 0x37a   : > { %v2989_v27 = vmax.f32 %v2957_v22, 0.0  ;;  %v2582_v28 = vpop.f32.mrf.mxu1  ;;  %8370 = vmatmul.msk.f32.gmra.mxu2 %vm781_vm1, %v2698_v14  ;;  %v2507_v14 = vadd.f32 %v11140_v18, %v2231_v34  ;;  %v3289_v18 = vld [vmem:[%s13855_s4 + $0x28] sm:$0xff] }
 0x37b   : > { %v2650_v33 = vadd.f32 %v2582_v28, %v2504_v51  ;;  %3531 = vmatmul.f32.gmra.mxu0 %v3297_v11  ;;  %v11207_v8 = vpop.f32.mrf.mxu3 }
 0x37c   : > { %8385 = vmatmul.msk.f32.gmra.mxu3 %vm781_vm1, %v2989_v27  ;;  %v14195_v27 = vld [vmem:[#allocation27_spill] sm:$0xff] }
 0x37d   : > { %2629 = vmatmul.f32.gmra.mxu1 %v14192_v35  ;;  %v2856_v53 = vpop.f32.mrf.mxu2  ;;  %v2232_v25 = vadd.f32 %v11024_v44, %v14195_v27  ;;  %v2233_v44 = vadd.f32 %v11051_v3, %v10766_v32  ;;  %v2234_v3 = vadd.f32 %v11071_v46, %v10779_v55  ;;  %v2235_v55 = vadd.f32 %v11092_v49, %v10788_v12 }
 0x37e   : > { %v2924_v6 = vadd.f32 %v2856_v53, %v2650_v33  ;;  %v2454_v17 = vpop.f32.mrf.mxu0  ;;  %v3296_v53 = vunpack.c.l.bf16 %v3286_v56 }
 0x37f   : > { %v2510_v10 = vadd.f32 %v2454_v17, %v2234_v3  ;;  %v2239_v3 = vadd.f32 %v11194_v7, %v10828_v43 }
 0x380   : > { %v2958_v41 = vadd.f32 %v10922_v48, %v2924_v6  ;;  %v3303_v6 = vunpack.c.h.bf16 %v3289_v18 }
 0x382   : > { %v2990_v38 = vmax.f32 %v2958_v41, 0.0  ;;  %v2585_v37 = vpop.f32.mrf.mxu1  ;;  %8371 = vmatmul.msk.f32.gmra.mxu2 %vm781_vm1, %v2699_v19  ;;  %v2508_v19 = vadd.f32 %v11173_v16, %v2232_v25  ;;  %v2236_v25 = vadd.f32 %v11116_v52, %v10798_v40 }
 0x383   : > { %v2651_v1 = vadd.f32 %v2585_v37, %v2505_v45  ;;  %3534 = vmatmul.f32.gmra.mxu0 %v3299_v31  ;;  %v11220_v33 = vpop.f32.mrf.mxu3  ;;  %v3298_v37 = vunpack.c.l.bf16 %v3287_v13 }
 0x384   : > { %8386 = vmatmul.msk.f32.gmra.mxu3 %vm781_vm1, %v2990_v38 }
 0x385   : > { %2632 = vmatmul.f32.gmra.mxu1 %v14192_v35  ;;  %v2859_v60 = vpop.f32.mrf.mxu2 }
 0x386   : > { %v2925_v0 = vadd.f32 %v2859_v60, %v2651_v1  ;;  %v2457_v15 = vpop.f32.mrf.mxu0  ;;  %v3290_v1 = vld [vmem:[%s13855_s4 + $0x30] sm:$0xff] }
 0x387   : > { %v3305_v61 = vunpack.c.h.bf16 %v3290_v1  ;;  %v3304_v49 = vunpack.c.l.bf16 %v3290_v1  ;;  %v2238_v1 = vadd.f32 %v11175_v39, %v10817_v47 }
 0x388   : > { %v2959_v26 = vadd.f32 %v10922_v48, %v2925_v0  ;;  %v2509_v0 = vadd.f32 %v11191_v20, %v2233_v44 }
 0x38a   : > { %v2991_v62 = vmax.f32 %v2959_v26, 0.0  ;;  %v2588_v63 = vpop.f32.mrf.mxu1  ;;  %3484 = vmatmul.f32.vlgmr.msrb.gmra.mxu2 %v3292_v36 }
 0x38b   : > { %v2652_v59 = vadd.f32 %v2588_v63, %v2506_v58  ;;  %3537 = vmatmul.f32.gmra.mxu0 %v3301_v50  ;;  %v11233_v16 = vpop.f32.mrf.mxu3  ;;  %v3300_v58 = vunpack.c.l.bf16 %v3288_v57  ;;  %v3302_v50 = vunpack.c.l.bf16 %v3289_v18 }
 0x38c   : > { %8387 = vmatmul.msk.f32.gmra.mxu3 %vm781_vm1, %v2991_v62  ;;  %v3291_v62 = vld [vmem:[%s13855_s4 + $0x38] sm:$0xff] }
 0x38d   : > { %v2862_v24 = vpop.f32.mrf.mxu2  ;;  %v3307_v63 = vunpack.c.h.bf16 %v3291_v62  ;;  %v3306_v52 = vunpack.c.l.bf16 %v3291_v62 }
 0x38e   : > { %v2926_v4 = vadd.f32 %v2862_v24, %v2652_v59  ;;  %v2460_v21 = vpop.f32.mrf.mxu0 }
 0x390   : > { %v2960_v23 = vadd.f32 %v10922_v48, %v2926_v4 }
 0x392   : > { %v2992_v29 = vmax.f32 %v2960_v23, 0.0  ;;  %v2591_v22 = vpop.f32.mrf.mxu1  ;;  %3487 = vmatmul.f32.gmra.mxu2 %v3294_v2 }
 0x393   : > { %v2653_v51 = vadd.f32 %v2591_v22, %v2507_v14  ;;  %3540 = vmatmul.f32.gmra.mxu0 %v3303_v6  ;;  %v11244_v34 = vpop.f32.mrf.mxu3  ;;  %v2511_v14 = vadd.f32 %v2457_v15, %v2235_v55 }
 0x394   : > { %8388 = vmatmul.msk.f32.gmra.mxu3 %vm781_vm1, %v2992_v29 }
 0x395   : > { %v2865_v28 = vpop.f32.mrf.mxu2 }
 0x396   : > { %v2927_v9 = vadd.f32 %v2865_v28, %v2653_v51  ;;  %v2463_v59 = vpop.f32.mrf.mxu0 }
 0x398   : > { %v2961_v42 = vadd.f32 %v10922_v48, %v2927_v9 }
 0x39a   : > { %v2993_v11 = vmax.f32 %v2961_v42, 0.0  ;;  %v2594_v41 = vpop.f32.mrf.mxu1  ;;  %3490 = vmatmul.f32.gmra.mxu2 %v3296_v53  ;;  %v2512_v53 = vadd.f32 %v2460_v21, %v2236_v25 }
 0x39b   : > { %v2654_v45 = vadd.f32 %v2594_v41, %v2508_v19  ;;  %3543 = vmatmul.f32.gmra.mxu0 %v3305_v61  ;;  %v11250_v27 = vpop.f32.mrf.mxu3  ;;  %v2237_v19 = vadd.f32 %v11146_v30, %v10807_v5 }
 0x39c   : > { %8389 = vmatmul.msk.f32.gmra.mxu3 %vm781_vm1, %v2993_v11 }
 0x39d   : > { %v2868_v56 = vpop.f32.mrf.mxu2  ;;  %v2513_v44 = vadd.f32 %v2463_v59, %v2237_v19 }
 0x39e   : > { %v2928_v38 = vadd.f32 %v2868_v56, %v2654_v45  ;;  %v2466_v22 = vpop.f32.mrf.mxu0 }
 0x3a0   : > { %v2962_v60 = vadd.f32 %v10922_v48, %v2928_v38 }
 0x3a2   : > { %v2994_v36 = vmax.f32 %v2962_v60, 0.0  ;;  %v2597_v31 = vpop.f32.mrf.mxu1  ;;  %3493 = vmatmul.f32.gmra.mxu2 %v3298_v37 }
 0x3a3   : > { %v2655_v32 = vadd.f32 %v2597_v31, %v2509_v0  ;;  %3546 = vmatmul.f32.gmra.mxu0 %v3307_v63  ;;  %v11259_v41 = vpop.f32.mrf.mxu3  ;;  %v2514_v0 = vadd.f32 %v2466_v22, %v2238_v1 }
 0x3a4   : > { %8390 = vmatmul.msk.f32.gmra.mxu3 %vm781_vm1, %v2994_v36 }
 0x3a5   : > { %v2871_v13 = vpop.f32.mrf.mxu2 }
 0x3a6   : > { %v2929_v26 = vadd.f32 %v2871_v13, %v2655_v32  ;;  %v2469_v42 = vpop.f32.mrf.mxu0 }
 0x3a7   : > { %v2515_v62 = vadd.f32 %v2469_v42, %v2239_v3 }
 0x3a8   : > { %v2963_v20 = vadd.f32 %v10922_v48, %v2929_v26 }
 0x3aa   : > { %v2995_v24 = vmax.f32 %v2963_v20, 0.0  ;;  %v2600_v4 = vpop.f32.mrf.mxu1  ;;  %3496 = vmatmul.f32.gmra.mxu2 %v3300_v58 }
 0x3ab   : > { %v2656_v2 = vadd.f32 %v2600_v4, %v2510_v10  ;;  %v11265_v61 = vpop.f32.mrf.mxu3  ;;  %v2240_v10 = vadd.f32 %v11207_v8, %v10840_v54 }
 0x3ac   : > { %8391 = vmatmul.msk.f32.gmra.mxu3 %vm781_vm1, %v2995_v24  ;;  %14196 = vst [vmem:[#allocation38_spill] sm:$0xff] %v11265_v61 }
 0x3ad   : > { %v2874_v46 = vpop.f32.mrf.mxu2 }
 0x3ae   : > { %v2930_v57 = vadd.f32 %v2874_v46, %v2656_v2  ;;  %v2472_v30 = vpop.f32.mrf.mxu0 }
 0x3af   : > { %v2516_v7 = vadd.f32 %v2472_v30, %v2240_v10 }
 0x3b0   : > { %v2964_v23 = vadd.f32 %v10922_v48, %v2930_v57 }
 0x3b2   : > { %v2996_v29 = vmax.f32 %v2964_v23, 0.0  ;;  %v2603_v17 = vpop.f32.mrf.mxu1  ;;  %3499 = vmatmul.f32.gmra.mxu2 %v3302_v50  ;;  %v14199_v23 = vld [vmem:[#allocation29_spill] sm:$0xff] }
 0x3b3   : > { %v2657_v51 = vadd.f32 %v2603_v17, %v2511_v14  ;;  %v11271_v58 = vpop.f32.mrf.mxu3  ;;  %v2241_v14 = vadd.f32 %v11220_v33, %v14199_v23  ;;  %v3553_v33 = vld [vmem:[%s13852_s1 + $0x80] sm:$0xff] }
 0x3b4   : > { %8392 = vmatmul.msk.f32.gmra.mxu3 %vm781_vm1, %v2996_v29  ;;  %14197 = vst [vmem:[#allocation41_spill] sm:$0xff] %v11271_v58  ;;  %3592 = vmatpush.msrb.mxu0 %v3553_v33 }
 0x3b5   : > { %v2877_v28 = vpop.f32.mrf.mxu2 }
 0x3b6   : > { %v2931_v12 = vadd.f32 %v2877_v28, %v2657_v51  ;;  %v2475_v39 = vpop.f32.mrf.mxu0 }
 0x3b7   : > { %v2517_v8 = vadd.f32 %v2475_v39, %v2241_v14 }
 0x3b8   : > { %v2965_v9 = vadd.f32 %v10922_v48, %v2931_v12 }
 0x3ba   : > { %v2997_v18 = vmax.f32 %v2965_v9, 0.0  ;;  %v2606_v15 = vpop.f32.mrf.mxu1  ;;  %3502 = vmatmul.f32.gmra.mxu2 %v3304_v49  ;;  %v14201_v49 = vld [vmem:[#allocation31_spill] sm:$0xff] }
 0x3bb   : > { %v2658_v6 = vadd.f32 %v2606_v15, %v2512_v53  ;;  %v11278_v2 = vpop.f32.mrf.mxu3  ;;  %v2242_v9 = vadd.f32 %v11233_v16, %v14201_v49  ;;  %v3905_v15 = vld [vmem:[%s13852_s1 + $0xa0] sm:$0xff]  ;;  %v3552_v16 = vld [vmem:[%s13852_s1 + $0x78] sm:$0xff] }
 0x3bc   : > { %8393 = vmatmul.msk.f32.gmra.mxu3 %vm781_vm1, %v2997_v18  ;;  %14198 = vst [vmem:[#allocation42_spill] sm:$0xff] %v11278_v2  ;;  %3593 = vmatpush.msrb.mxu0 %v3552_v16 }
 0x3bd   : > { %v2880_v11 = vpop.f32.mrf.mxu2  ;;  %3945 = vmatpush.msrb.mxu3 %v3905_v15  ;;  %v4041_v15 = vld [vmem:[%s13852_s1 + $0xb0] sm:$0xff] }
 0x3be   : > { %v2932_v40 = vadd.f32 %v2880_v11, %v2658_v6  ;;  %v2478_v57 = vpop.f32.mrf.mxu0  ;;  %4081 = vmatpush.msra.mxu1 %v4041_v15 }
 0x3bf   : > { %v2518_v42 = vadd.f32 %v2478_v57, %v2242_v9 }
 0x3c0   : > { %v2966_v45 = vadd.f32 %v10922_v48, %v2932_v40 }
 0x3c2   : > { %v2998_v56 = vmax.f32 %v2966_v45, 0.0  ;;  %v2609_v38 = vpop.f32.mrf.mxu1  ;;  %3505 = vmatmul.f32.gmra.mxu2 %v3306_v52  ;;  %v14202_v52 = vld [vmem:[#allocation32_spill] sm:$0xff] }
 0x3c3   : > { %v2659_v37 = vadd.f32 %v2609_v38, %v2513_v44  ;;  %v11284_v12 = vpop.f32.mrf.mxu3  ;;  %v2243_v45 = vadd.f32 %v11244_v34, %v14202_v52  ;;  %v3551_v38 = vld [vmem:[%s13852_s1 + $0x70] sm:$0xff] }
 0x3c4   : > { %8394 = vmatmul.msk.f32.gmra.mxu3 %vm781_vm1, %v2998_v56  ;;  %14200 = vst [vmem:[#allocation46_spill] sm:$0xff] %v11284_v12  ;;  %3594 = vmatpush.msrb.mxu0 %v3551_v38 }
 0x3c5   : > { %v2883_v21 = vpop.f32.mrf.mxu2 }
 0x3c6   : > { %v2933_v5 = vadd.f32 %v2883_v21, %v2659_v37  ;;  %v2481_v25 = vpop.f32.mrf.mxu0  ;;  %v3550_v21 = vld [vmem:[%s13852_s1 + $0x68] sm:$0xff] }
 0x3c7   : > { %3595 = vmatpush.msrb.mxu0 %v3550_v21  ;;  %v2519_v30 = vadd.f32 %v2481_v25, %v2243_v45 }
 0x3c8   : > { %v2967_v60 = vadd.f32 %v10922_v48, %v2933_v5 }
 0x3ca   : > { %v2999_v36 = vmax.f32 %v2967_v60, 0.0  ;;  %v2612_v31 = vpop.f32.mrf.mxu1 }
 0x3cb   : > { %v2660_v32 = vadd.f32 %v2612_v31, %v2514_v0  ;;  %v11305_v37 = vpop.f32.mrf.mxu3 }
 0x3cc   : > { %8395 = vmatmul.msk.f32.gmra.mxu3 %vm781_vm1, %v2999_v36  ;;  %14203 = vst [vmem:[#allocation30_spill] sm:$0xff] %v11305_v37  ;;  %v14204_v36 = vld [vmem:[#allocation34_spill] sm:$0xff] }
 0x3cd   : > { %v2886_v13 = vpop.f32.mrf.mxu2  ;;  %v2244_v31 = vadd.f32 %v11250_v27, %v14204_v36 }
 0x3ce   : > { %v2934_v26 = vadd.f32 %v2886_v13, %v2660_v32  ;;  %v2484_v44 = vpop.f32.mrf.mxu0 }
 0x3cf   : > { %v2520_v39 = vadd.f32 %v2484_v44, %v2244_v31 }
 0x3d0   : > { %v2968_v47 = vadd.f32 %v10922_v48, %v2934_v26 }
 0x3d2   : > { %v3000_v63 = vmax.f32 %v2968_v47, 0.0  ;;  %v2615_v20 = vpop.f32.mrf.mxu1 }
 0x3d3   : > { %v2661_v59 = vadd.f32 %v2615_v20, %v2515_v62  ;;  %v11314_v26 = vpop.f32.mrf.mxu3 }
 0x3d4   : > { %8396 = vmatmul.msk.f32.gmra.mxu3 %vm781_vm1, %v3000_v63  ;;  %14205 = vst [vmem:[#allocation37_spill] sm:$0xff] %v11314_v26 }
 0x3d5   : > { %v2889_v24 = vpop.f32.mrf.mxu2 }
 0x3d6   : > { %v2935_v4 = vadd.f32 %v2889_v24, %v2661_v59  ;;  %v2487_v32 = vpop.f32.mrf.mxu0  ;;  %v14206_v59 = vld [vmem:[#allocation36_spill] sm:$0xff] }
 0x3d7   : > { %v2245_v10 = vadd.f32 %v11259_v41, %v14206_v59  ;;  %v11410_v59 = vld [vmem:[%s13852_s1 + $0x3a8] sm:$0xff] }
 0x3d8   : > { %v2969_v43 = vadd.f32 %v10922_v48, %v2935_v4 }
 0x3da   : > { %v3001_v55 = vmax.f32 %v2969_v43, 0.0  ;;  %v2618_v46 = vpop.f32.mrf.mxu1 }
 0x3db   : > { %v2662_v50 = vadd.f32 %v2618_v46, %v2516_v7  ;;  %v2521_v7 = vadd.f32 %v2487_v32, %v2245_v10 }
 0x3dc   : > { %8397 = vmatmul.msk.f32.gmra.mxu3 %vm781_vm1, %v3001_v55  ;;  %v11321_v55 = vpop.f32.mrf.mxu3 }
 0x3dd   : > { %v2892_v29 = vpop.f32.mrf.mxu2  ;;  %14207 = vst [vmem:[#allocation47_spill] sm:$0xff] %v11321_v55 }
 0x3de   : > { %v2936_v17 = vadd.f32 %v2892_v29, %v2662_v50 }
 0x3e0   : > { %v2970_v54 = vadd.f32 %v10922_v48, %v2936_v17 }
 0x3e2   : > { %v3002_v22 = vmax.f32 %v2970_v54, 0.0  ;;  %v2621_v51 = vpop.f32.mrf.mxu1 }
 0x3e3   : > { %v2663_v28 = vadd.f32 %v2621_v51, %v2517_v8 }
 0x3e4   : > { %8398 = vmatmul.msk.f32.gmra.mxu3 %vm781_vm1, %v3002_v22  ;;  %v11325_v41 = vpop.f32.mrf.mxu3 }
 0x3e5   : > { %v2895_v53 = vpop.f32.mrf.mxu2  ;;  %14208 = vst [vmem:[#allocation35_spill] sm:$0xff] %v11325_v41 }
 0x3e6   : > { %v2937_v18 = vadd.f32 %v2895_v53, %v2663_v28 }
 0x3e8   : > { %v2971_v6 = vadd.f32 %v10922_v48, %v2937_v18  ;;  %v3526_v4 = vpop.f32.mrf.mxu0 }
 0x3ea   : > { %v3003_v19 = vmax.f32 %v2971_v6, 0.0  ;;  %v2624_v11 = vpop.f32.mrf.mxu1 }
 0x3eb   : > { %v2664_v40 = vadd.f32 %v2624_v11, %v2518_v42 }
 0x3ec   : > { %8399 = vmatmul.msk.f32.gmra.mxu3 %vm781_vm1, %v3003_v19 }
 0x3ed   : > { %v2898_v56 = vpop.f32.mrf.mxu2 }
 0x3ee   : > { %v2938_v1 = vadd.f32 %v2898_v56, %v2664_v40 }
 0x3f0   : > { %v2972_v5 = vadd.f32 %v10922_v48, %v2938_v1  ;;  %v3529_v29 = vpop.f32.mrf.mxu0  ;;  %v11361_v1 = vpop.f32.mrf.mxu3 }
 0x3f1   : > { %14209 = vst [vmem:[#allocation45_spill] sm:$0xff] %v11361_v1 }
 0x3f2   : > { %v3004_v60 = vmax.f32 %v2972_v5, 0.0  ;;  %v2627_v34 = vpop.f32.mrf.mxu1 }
 0x3f3   : > { %v2665_v0 = vadd.f32 %v2627_v34, %v2519_v30  ;;  %v3666_v34 = vld [vmem:[%s13852_s1 + $0x90] sm:$0xff] }
 0x3f4   : > { %8400 = vmatmul.msk.f32.gmra.mxu3 %vm781_vm1, %v3004_v60  ;;  %v3665_v60 = vld [vmem:[%s13852_s1 + $0x88] sm:$0xff]  ;;  %3696 = vmatpush.msra.mxu0 %v3666_v34 }
 0x3f5   : > { %v2901_v3 = vpop.f32.mrf.mxu2  ;;  %3761 = vmatpush.msra.mxu2 %v3665_v60 }
 0x3f6   : > { %v2939_v13 = vadd.f32 %v2901_v3, %v2665_v0  ;;  %v11381_v0 = vld [vmem:[%s13852_s1 + $0x3a0] sm:$0xff] }
 0x3f7   : > { %v11384_v36 = vmul.f32 0.0, %v11381_v0 }
 0x3f8   : > { %v2973_v47 = vadd.f32 %v10922_v48, %v2939_v13  ;;  %v3532_v51 = vpop.f32.mrf.mxu0  ;;  %v11365_v21 = vpop.f32.mrf.mxu3  ;;  %v11397_v13 = vld [vmem:[%s13854_s3 + $0x1] ss:$0 sm:$0xff] }
 0x3f9   : > { %14210 = vst [vmem:[#allocation50_spill] sm:$0xff] %v11365_v21  ;;  %8419 = vmatmul.msk.f32.vlgmr.msra.gmra.mxu2 %vm781_vm1, %v11384_v36 }
 0x3fa   : > { %v3005_v62 = vmax.f32 %v2973_v47, 0.0  ;;  %v2630_v63 = vpop.f32.mrf.mxu1  ;;  %14213 = vst [vmem:[#allocation52_spill] sm:$0xff] %v11384_v36 }
 0x3fb   : > { %v2666_v20 = vadd.f32 %v2630_v63, %v2520_v39 }
 0x3fc   : > { %8401 = vmatmul.msk.f32.gmra.mxu3 %vm781_vm1, %v3005_v62 }
 0x3fd   : > { %v2904_v24 = vpop.f32.mrf.mxu2 }
 0x3fe   : > { %v2940_v43 = vadd.f32 %v2904_v24, %v2666_v20 }
 0x400   : > { %v2974_v27 = vadd.f32 %v10922_v48, %v2940_v43  ;;  %v3535_v49 = vpop.f32.mrf.mxu0  ;;  %v11367_v5 = vpop.f32.mrf.mxu3 }
 0x401   : > { %14211 = vst [vmem:[#allocation49_spill] sm:$0xff] %v11367_v5 }
 0x402   : > { %v3006_v46 = vmax.f32 %v2974_v27, 0.0  ;;  %v2633_v57 = vpop.f32.mrf.mxu1 }
 0x403   : > { %v2667_v50 = vadd.f32 %v2633_v57, %v2521_v7 }
 0x404   : > { %8402 = vmatmul.msk.f32.gmra.mxu3 %vm781_vm1, %v3006_v46 }
 0x405   : > { %v2907_v23 = vpop.f32.mrf.mxu2 }
 0x406   : > { %v2941_v14 = vadd.f32 %v2907_v23, %v2667_v50  ;;  %v11429_v23 = vld [vmem:[%s13852_s1 + $0x3b0] sm:$0xff] }
 0x408   : > { %v2975_v17 = vadd.f32 %v10922_v48, %v2941_v14  ;;  %v3538_v18 = vpop.f32.mrf.mxu0  ;;  %v11369_v30 = vpop.f32.mrf.mxu3 }
 0x409   : > { %14212 = vst [vmem:[#allocation51_spill] sm:$0xff] %v11369_v30 }
 0x40a   : > { %v3007_v54 = vmax.f32 %v2975_v17, 0.0 }
 0x40c   : > { %8403 = vmatmul.msk.f32.gmra.mxu3 %vm781_vm1, %v3007_v54 }
 0x40d   : > { %v3485_v8 = vpop.f32.mrf.mxu2 }
 0x40e   : > { %v11328_v22 = vadd.f32 %v3526_v4, %v3485_v8 }
 0x410   : > { %8404 = vmatmul.msk.f32.vlgmr.msrb.gmra.mxu0 %vm384_vm0, %v11328_v22  ;;  %v3541_v19 = vpop.f32.mrf.mxu0  ;;  %v11386_v31 = vpop.f32.mrf.mxu3 }
 0x411   : > { %14214 = vst [vmem:[#allocation54_spill] sm:$0xff] %v11386_v31 }
 0x415   : > { %v3488_v25 = vpop.f32.mrf.mxu2 }
 0x416   : > { %v11332_v28 = vadd.f32 %v3529_v29, %v3488_v25  ;;  %v11435_v29 = vld [vmem:[%s13852_s1 + $0x3e0] sm:$0xff] }
 0x418   : > { %8405 = vmatmul.msk.f32.gmra.mxu0 %vm384_vm0, %v11332_v28  ;;  %v3544_v16 = vpop.f32.mrf.mxu0  ;;  %v11390_v32 = vpop.f32.mrf.mxu3 }
 0x419   : > { %14215 = vst [vmem:[#allocation56_spill] sm:$0xff] %v11390_v32 }
 0x41d   : > { %v3491_v48 = vpop.f32.mrf.mxu2 }
 0x41e   : > { %v11336_v9 = vadd.f32 %v3532_v51, %v3491_v48 }
 0x420   : > { %8406 = vmatmul.msk.f32.gmra.mxu0 %vm384_vm0, %v11336_v9  ;;  %v3547_v44 = vpop.f32.mrf.mxu0  ;;  %v11392_v3 = vpop.f32.mrf.mxu3 }
 0x421   : > { %14216 = vst [vmem:[#allocation55_spill] sm:$0xff] %v11392_v3 }
 0x425   : > { %v3494_v53 = vpop.f32.mrf.mxu2 }
 0x426   : > { %v11340_v33 = vadd.f32 %v3535_v49, %v3494_v53 }
 0x428   : > { %8407 = vmatmul.msk.f32.gmra.mxu0 %vm384_vm0, %v11340_v33  ;;  %v11399_v39 = vpop.f32.mrf.mxu3 }
 0x429   : > { %14217 = vst [vmem:[#allocation57_spill] sm:$0xff] %v11399_v39  ;;  %v11607_v39 = vld [vmem:[%s13852_s1 + $0x3d8] sm:$0xff] }
 0x42d   : > { %v3497_v6 = vpop.f32.mrf.mxu2 }
 0x42e   : > { %v11347_v42 = vadd.f32 %v3538_v18, %v3497_v6  ;;  %v3820_v18 = vld [vmem:[%s13852_s1 + $0x98] sm:$0xff] }
 0x42f   : > { %3860 = vmatpush.msrb.mxu2 %v3820_v18  ;;  %v11467_v6 = vld [vmem:[%s13852_s1 + $0x3b8] sm:$0xff] }
 0x430   : > { %8408 = vmatmul.msk.f32.gmra.mxu0 %vm384_vm0, %v11347_v42  ;;  %v11418_v7 = vpop.f32.mrf.mxu3 }
 0x431   : > { %14218 = vst [vmem:[#allocation61_spill] sm:$0xff] %v11418_v7 }
 0x435   : > { %v3500_v11 = vpop.f32.mrf.mxu2 }
 0x436   : > { %v11351_v40 = vadd.f32 %v3541_v19, %v3500_v11 }
 0x438   : > { %8409 = vmatmul.msk.f32.gmra.mxu0 %vm384_vm0, %v11351_v40  ;;  %v11460_v15 = vpop.f32.mrf.mxu3 }
 0x439   : > { %14219 = vst [vmem:[#allocation60_spill] sm:$0xff] %v11460_v15 }
 0x43d   : > { %v3503_v52 = vpop.f32.mrf.mxu2 }
 0x43e   : > { %v11355_v45 = vadd.f32 %v3544_v16, %v3503_v52  ;;  %v11477_v52 = vld [vmem:[%s13852_s1 + $0x3e8] sm:$0xff] }
 0x440   : > { %8410 = vmatmul.msk.f32.gmra.mxu0 %vm384_vm0, %v11355_v45 }
 0x445   : > { %v3506_v56 = vpop.f32.mrf.mxu2 }
 0x446   : > { %v11359_v38 = vadd.f32 %v3547_v44, %v3506_v56 }
 0x448   : > { %8411 = vmatmul.msk.f32.gmra.mxu0 %vm384_vm0, %v11359_v38 }
 0x450   : > { %3697 = vmatmul.f32.vlgmr.msra.gmra.mxu0 %v14192_v35 }
 0x48d   : > { %v3597_v47 = vpop.f32.mrf.mxu0 }
 0x48e   : > { %v3598_v62 = vadd.f32 %v11397_v13, %v3597_v47 }
 0x490   : > { %v11402_v63 = vmax.f32 %v3598_v62, 0.0 }
 0x492   : > { %v3636_v20 = vrot.slane %v11402_v63, 7  ;;  %8412 = vmatmul.msk.f32.gmra.mxu0 %vm781_vm1, %v11402_v63  ;;  %v13908_v57 = vrot.slane %v11402_v63, 1  ;;  %v14224_v5 = vrot.slane %v11402_v63, 1 }
 0x494   : > { %v3656_v10 = vsel %vm656_vm2, 0.0, %v3636_v20  ;;  %v3811_v21 = vsel %vm1168_vm3, 0.0, %v14224_v5 }
 0x495   : > { %v3600_v24 = vpop.f32.mrf.mxu0  ;;  %v3658_v4 = vmul.f32 %v3656_v10, %v11410_v59  ;;  %v3897_v43 = vmul.f32 %v3656_v10, %v11381_v0  ;;  %v3979_v10 = vld [vmem:[%s13852_s1 + $0xa8] sm:$0xff]  ;;  %v3812_v5 = vmul.f32 %v3811_v21, %v11435_v29 }
 0x496   : > { %v3601_v27 = vadd.f32 %v11397_v13, %v3600_v24  ;;  %v11502_v24 = vld [vmem:[%s13852_s1 + $0x3c0] sm:$0xff]  ;;  %3997 = vmatpush.msrb.mxu0 %v3979_v10 }
 0x497   : > { %8420 = vmatmul.msk.f32.gmra.mxu2 %vm781_vm1, %v3658_v4  ;;  %8435 = vmatmul.msk.f32.vlgmr.msrb.gmra.mxu3 %vm781_vm1, %v3897_v43 }
 0x498   : > { %v11420_v46 = vmax.f32 %v3601_v27, 0.0  ;;  %v11506_v27 = vpop.f32.mrf.mxu3 }
 0x499   : > { %14220 = vst [vmem:[#allocation62_spill] sm:$0xff] %v11506_v27 }
 0x49a   : > { %v3789_v50 = vrot.slane %v11420_v46, 1  ;;  %8413 = vmatmul.msk.f32.gmra.mxu0 %vm781_vm1, %v11420_v46  ;;  %v3637_v14 = vrot.slane %v11420_v46, 7 }
 0x49c   : > { %v11438_v17 = vsel %vm656_vm2, %v3636_v20, %v3637_v14  ;;  %v11443_v54 = vsel %vm1168_vm3, %v13908_v57, %v3789_v50 }
 0x49d   : > { %v3603_v8 = vpop.f32.mrf.mxu0  ;;  %v3659_v51 = vmul.f32 %v11438_v17, %v11429_v23  ;;  %v3898_v25 = vmul.f32 %v11438_v17, %v11410_v59  ;;  %v4033_v49 = vmul.f32 %v11443_v54, %v11435_v29  ;;  %v3813_v21 = vmul.f32 %v11443_v54, %v11477_v52  ;;  %v4125_v54 = vld [vmem:[%s13852_s1 + $0xb8] sm:$0xff] }
 0x49e   : > { %v3604_v48 = vadd.f32 %v11397_v13, %v3603_v8  ;;  %4165 = vmatpush.msra.mxu2 %v4125_v54 }
 0x49f   : > { %8421 = vmatmul.msk.f32.gmra.mxu2 %vm781_vm1, %v3659_v51  ;;  %8436 = vmatmul.msk.f32.gmra.mxu3 %vm781_vm1, %v3898_v25 }
 0x4a0   : > { %v11454_v53 = vmax.f32 %v3604_v48, 0.0  ;;  %8451 = vmatmul.msk.f32.vlgmr.msra.gmra.mxu1 %vm781_vm1, %v4033_v49 }
 0x4a2   : > { %8414 = vmatmul.msk.f32.gmra.mxu0 %vm781_vm1, %v11454_v53  ;;  %v3639_v19 = vrot.slane %v11454_v53, 7  ;;  %v3791_v11 = vrot.slane %v11454_v53, 1 }
 0x4a4   : > { %v11472_v16 = vsel %vm656_vm2, %v3637_v14, %v3639_v19  ;;  %v11480_v44 = vsel %vm1168_vm3, %v3789_v50, %v3791_v11  ;;  %v11514_v14 = vld [vmem:[%s13852_s1 + $0x3f0] sm:$0xff] }
 0x4a5   : > { %v3606_v56 = vpop.f32.mrf.mxu0  ;;  %v3660_v60 = vmul.f32 %v11472_v16, %v11467_v6  ;;  %v3899_v34 = vmul.f32 %v11472_v16, %v11429_v23  ;;  %v4034_v47 = vmul.f32 %v11480_v44, %v11477_v52 }
 0x4a6   : > { %v3607_v62 = vadd.f32 %v11397_v13, %v3606_v56 }
 0x4a7   : > { %8422 = vmatmul.msk.f32.gmra.mxu2 %vm781_vm1, %v3660_v60  ;;  %8437 = vmatmul.msk.f32.gmra.mxu3 %vm781_vm1, %v3899_v34  ;;  %v4199_v34 = vld [vmem:[%s13852_s1 + $0xc0] sm:$0xff] }
 0x4a8   : > { %v11491_v20 = vmax.f32 %v3607_v62, 0.0  ;;  %8452 = vmatmul.msk.f32.gmra.mxu1 %vm781_vm1, %v4034_v47  ;;  %4215 = vmatpush.msra.mxu3 %v4199_v34  ;;  %v11549_v62 = vld [vmem:[%s13852_s1 + $0x3f8] sm:$0xff]  ;;  %v11573_v34 = vld [vmem:[%s13852_s1 + $0x3d0] sm:$0xff] }
 0x4aa   : > { %8415 = vmatmul.msk.f32.gmra.mxu0 %vm781_vm1, %v11491_v20  ;;  %v3641_v4 = vrot.slane %v11491_v20, 7  ;;  %v3793_v43 = vrot.slane %v11491_v20, 1 }
 0x4ac   : > { %v11509_v50 = vsel %vm656_vm2, %v3639_v19, %v3641_v4  ;;  %v11517_v8 = vsel %vm1168_vm3, %v3791_v11, %v3793_v43  ;;  %v11536_v11 = vld [vmem:[%s13852_s1 + $0x3c8] sm:$0xff] }
 0x4ad   : > { %v3609_v51 = vpop.f32.mrf.mxu0  ;;  %v3661_v25 = vmul.f32 %v11509_v50, %v11502_v24  ;;  %v3900_v49 = vmul.f32 %v11509_v50, %v11467_v6  ;;  %v4035_v48 = vmul.f32 %v11517_v8, %v11514_v14 }
 0x4ae   : > { %v3610_v18 = vadd.f32 %v11397_v13, %v3609_v51 }
 0x4af   : > { %8423 = vmatmul.msk.f32.gmra.mxu2 %vm781_vm1, %v3661_v25  ;;  %8438 = vmatmul.msk.f32.gmra.mxu3 %vm781_vm1, %v3900_v49 }
 0x4b0   : > { %v11528_v19 = vmax.f32 %v3610_v18, 0.0  ;;  %8453 = vmatmul.msk.f32.gmra.mxu1 %vm781_vm1, %v4035_v48 }
 0x4b2   : > { %8416 = vmatmul.msk.f32.gmra.mxu0 %vm781_vm1, %v11528_v19  ;;  %v3643_v56 = vrot.slane %v11528_v19, 7  ;;  %v3795_v60 = vrot.slane %v11528_v19, 1 }
 0x4b4   : > { %v11544_v47 = vsel %vm656_vm2, %v3641_v4, %v3643_v56  ;;  %v11552_v10 = vsel %vm1168_vm3, %v3793_v43, %v3795_v60  ;;  %v11560_v4 = vpop.f32.mrf.mxu3 }
 0x4b5   : > { %v3612_v51 = vpop.f32.mrf.mxu0  ;;  %v3662_v25 = vmul.f32 %v11544_v47, %v11536_v11  ;;  %v3901_v49 = vmul.f32 %v11544_v47, %v11502_v24  ;;  %v4036_v48 = vmul.f32 %v11552_v10, %v11549_v62  ;;  %14221 = vst [vmem:[#allocation66_spill] sm:$0xff] %v11560_v4 }
 0x4b6   : > { %v3613_v18 = vadd.f32 %v11397_v13, %v3612_v51 }
 0x4b7   : > { %8424 = vmatmul.msk.f32.gmra.mxu2 %vm781_vm1, %v3662_v25  ;;  %8439 = vmatmul.msk.f32.gmra.mxu3 %vm781_vm1, %v3901_v49  ;;  %v11583_v49 = vld [vmem:[%s13852_s1 + $0x400] sm:$0xff] }
 0x4b8   : > { %v11565_v43 = vmax.f32 %v3613_v18, 0.0  ;;  %8454 = vmatmul.msk.f32.gmra.mxu1 %vm781_vm1, %v4036_v48 }
 0x4ba   : > { %8417 = vmatmul.msk.f32.gmra.mxu0 %vm781_vm1, %v11565_v43  ;;  %v3645_v57 = vrot.slane %v11565_v43, 7  ;;  %v3797_v51 = vrot.slane %v11565_v43, 1 }
 0x4bc   : > { %v11578_v25 = vsel %vm656_vm2, %v3643_v56, %v3645_v57  ;;  %v11586_v48 = vsel %vm1168_vm3, %v3795_v60, %v3797_v51  ;;  %v11597_v7 = vpop.f32.mrf.mxu3 }
 0x4bd   : > { %v3615_v18 = vpop.f32.mrf.mxu0  ;;  %v3663_v4 = vmul.f32 %v11578_v25, %v11573_v34  ;;  %v3902_v27 = vmul.f32 %v11578_v25, %v11536_v11  ;;  %v4037_v15 = vmul.f32 %v11586_v48, %v11583_v49  ;;  %14222 = vst [vmem:[#allocation65_spill] sm:$0xff] %v11597_v7 }
 0x4be   : > { %v3616_v56 = vadd.f32 %v11397_v13, %v3615_v18 }
 0x4bf   : > { %8425 = vmatmul.msk.f32.gmra.mxu2 %vm781_vm1, %v3663_v4  ;;  %8440 = vmatmul.msk.f32.gmra.mxu3 %vm781_vm1, %v3902_v27 }
 0x4c0   : > { %v11599_v60 = vmax.f32 %v3616_v56, 0.0  ;;  %8455 = vmatmul.msk.f32.gmra.mxu1 %vm781_vm1, %v4037_v15  ;;  %v11617_v56 = vld [vmem:[%s13852_s1 + $0x408] sm:$0xff] }
 0x4c2   : > { %8418 = vmatmul.msk.f32.gmra.mxu0 %vm781_vm1, %v11599_v60  ;;  %v3647_v18 = vrot.slane %v11599_v60, 7  ;;  %v3799_v4 = vrot.slane %v11599_v60, 1 }
 0x4c4   : > { %v11612_v27 = vsel %vm656_vm2, %v3645_v57, %v3647_v18  ;;  %v11620_v15 = vsel %vm1168_vm3, %v3797_v51, %v3799_v4  ;;  %v11634_v51 = vpop.f32.mrf.mxu3 }
 0x4c5   : > { %v3618_v7 = vpop.f32.mrf.mxu0  ;;  %v3664_v3 = vmul.f32 %v11612_v27, %v11607_v39  ;;  %v3903_v32 = vmul.f32 %v11612_v27, %v11573_v34  ;;  %v4038_v31 = vmul.f32 %v11620_v15, %v11617_v56  ;;  %14223 = vst [vmem:[#allocation67_spill] sm:$0xff] %v11634_v51 }
 0x4c6   : > { %v3619_v57 = vadd.f32 %v11397_v13, %v3618_v7 }
 0x4c7   : > { %8426 = vmatmul.msk.f32.gmra.mxu2 %vm781_vm1, %v3664_v3  ;;  %8441 = vmatmul.msk.f32.gmra.mxu3 %vm781_vm1, %v3903_v32 }
 0x4c8   : > { %v11631_v30 = vmax.f32 %v3619_v57, 0.0  ;;  %8456 = vmatmul.msk.f32.gmra.mxu1 %vm781_vm1, %v4038_v31  ;;  %v11651_v31 = vld [vmem:[%s13852_s1 + $0x410] sm:$0xff]  ;;  %v11692_v57 = vld [vmem:[%s13852_s1 + $0x418] sm:$0xff] }
 0x4ca   : > { %v3801_v1 = vrot.slane %v11631_v30, 1  ;;  %v3894_v41 = vrot.slane %v11631_v30, 7  ;;  %8443 = vmatmul.msk.f32.vlgmr.msrb.gmra.mxu0 %vm781_vm1, %v11402_v63 }
 0x4cc   : > { %v11646_v32 = vsel %vm656_vm2, %v3647_v18, %v3894_v41  ;;  %v11654_v3 = vsel %vm1168_vm3, %v3799_v4, %v3801_v1  ;;  %v11666_v7 = vpop.f32.mrf.mxu3  ;;  %v3814_v18 = vmul.f32 %v11480_v44, %v11514_v14 }
 0x4cd   : > { %v3904_v13 = vmul.f32 %v11646_v32, %v11607_v39  ;;  %v4039_v63 = vmul.f32 %v11654_v3, %v11651_v31  ;;  %14225 = vst [vmem:[#allocation71_spill] sm:$0xff] %v11666_v7  ;;  %v11735_v54 = vpop.f32.mrf.mxu0 }
 0x4cf   : > { %8427 = vmatmul.msk.f32.vlgmr.msrb.gmra.mxu2 %vm781_vm1, %v3812_v5  ;;  %8442 = vmatmul.msk.f32.gmra.mxu3 %vm781_vm1, %v3904_v13  ;;  %v11695_v5 = vsel %vm1168_vm3, %v3801_v1, 0.0  ;;  %v4257_v13 = vld [vmem:[%s13852_s1 + $0xc8] sm:$0xff]  ;;  %v3816_v1 = vmul.f32 %v11552_v10, %v11583_v49 }
 0x4d0   : > { %8457 = vmatmul.msk.f32.gmra.mxu1 %vm781_vm1, %v4039_v63  ;;  %4297 = vmatpush.msra.mxu0 %v4257_v13 }
 0x4d2   : > { %8444 = vmatmul.msk.f32.gmra.mxu0 %vm781_vm1, %v11420_v46 }
 0x4d4   : > { %v11677_v4 = vpop.f32.mrf.mxu3 }
 0x4d5   : > { %14226 = vst [vmem:[#allocation70_spill] sm:$0xff] %v11677_v4 }
 0x4d7   : > { %8428 = vmatmul.msk.f32.gmra.mxu2 %vm781_vm1, %v3813_v21  ;;  %8467 = vmatmul.msk.f32.vlgmr.msra.gmra.mxu3 %vm781_vm1, %v11420_v46  ;;  %v3815_v46 = vmul.f32 %v11517_v8, %v11549_v62  ;;  %v3817_v21 = vmul.f32 %v11586_v48, %v11617_v56 }
 0x4da   : > { %8445 = vmatmul.msk.f32.gmra.mxu0 %vm781_vm1, %v11454_v53 }
 0x4dc   : > { %v11705_v63 = vpop.f32.mrf.mxu3 }
 0x4dd   : > { %14227 = vst [vmem:[#allocation72_spill] sm:$0xff] %v11705_v63 }
 0x4df   : > { %8429 = vmatmul.msk.f32.gmra.mxu2 %vm781_vm1, %v3814_v18  ;;  %8468 = vmatmul.msk.f32.gmra.mxu3 %vm781_vm1, %v11454_v53  ;;  %v4040_v53 = vmul.f32 %v11695_v5, %v11692_v57 }
 0x4e1   : > { %8458 = vmatmul.msk.f32.gmra.mxu1 %vm781_vm1, %v4040_v53  ;;  %v4249_v53 = vmul.f32 %v11480_v44, %v11435_v29  ;;  %v4118_v29 = vmul.f32 %v11472_v16, %v11410_v59  ;;  %v4252_v59 = vmul.f32 %v11586_v48, %v11549_v62  ;;  %v4121_v62 = vmul.f32 %v11578_v25, %v11502_v24 }
 0x4e2   : > { %8446 = vmatmul.msk.f32.gmra.mxu0 %vm781_vm1, %v11491_v20  ;;  %v4255_v24 = vmul.f32 %v11695_v5, %v11651_v31 }
 0x4e7   : > { %8430 = vmatmul.msk.f32.gmra.mxu2 %vm781_vm1, %v3815_v46  ;;  %8469 = vmatmul.msk.f32.gmra.mxu3 %vm781_vm1, %v11491_v20  ;;  %v11715_v20 = vpop.f32.mrf.mxu3 }
 0x4e8   : > { %14228 = vst [vmem:[#allocation76_spill] sm:$0xff] %v11715_v20 }
 0x4ea   : > { %8447 = vmatmul.msk.f32.gmra.mxu0 %vm781_vm1, %v11528_v19 }
 0x4ef   : > { %8431 = vmatmul.msk.f32.gmra.mxu2 %vm781_vm1, %v3816_v1  ;;  %8470 = vmatmul.msk.f32.gmra.mxu3 %vm781_vm1, %v11528_v19  ;;  %v11726_v18 = vpop.f32.mrf.mxu3  ;;  %v3818_v19 = vmul.f32 %v11620_v15, %v11651_v31  ;;  %v4116_v31 = vsel %vm656_vm2, %v3894_v41, 0.0 }
 0x4f0   : > { %14229 = vst [vmem:[#allocation75_spill] sm:$0xff] %v11726_v18  ;;  %v4124_v5 = vmul.f32 %v4116_v31, %v11607_v39 }
 0x4f2   : > { %8448 = vmatmul.msk.f32.gmra.mxu0 %vm781_vm1, %v11565_v43 }
 0x4f7   : > { %8432 = vmatmul.msk.f32.gmra.mxu2 %vm781_vm1, %v3817_v21  ;;  %8471 = vmatmul.msk.f32.gmra.mxu3 %vm781_vm1, %v11565_v43  ;;  %v3819_v43 = vmul.f32 %v11654_v3, %v11692_v57  ;;  %v11739_v46 = vpop.f32.mrf.mxu3  ;;  %v11755_v21 = vpop.f32.mrf.mxu2 }
 0x4f8   : > { %14230 = vst [vmem:[#allocation77_spill] sm:$0xff] %v11739_v46  ;;  %v3764_v18 = vadd.f32 %v11755_v21, %v11735_v54 }
 0x4fa   : > { %8449 = vmatmul.msk.f32.gmra.mxu0 %vm781_vm1, %v11599_v60 }
 0x4ff   : > { %8433 = vmatmul.msk.f32.gmra.mxu2 %vm781_vm1, %v3818_v19  ;;  %8472 = vmatmul.msk.f32.gmra.mxu3 %vm781_vm1, %v11599_v60  ;;  %v4117_v60 = vmul.f32 %v11438_v17, %v11381_v0  ;;  %v11753_v1 = vpop.f32.mrf.mxu3  ;;  %v4250_v19 = vmul.f32 %v11517_v8, %v11477_v52  ;;  %v4251_v0 = vmul.f32 %v11552_v10, %v11514_v14 }
 0x500   : > { %14231 = vst [vmem:[#allocation81_spill] sm:$0xff] %v11753_v1  ;;  %v4119_v52 = vmul.f32 %v11509_v50, %v11429_v23  ;;  %v4120_v10 = vmul.f32 %v11544_v47, %v11467_v6  ;;  %v4253_v23 = vmul.f32 %v11620_v15, %v11583_v49  ;;  %v4254_v6 = vmul.f32 %v11654_v3, %v11617_v56 }
 0x501   : > { %v4122_v49 = vmul.f32 %v11612_v27, %v11536_v11  ;;  %v4123_v56 = vmul.f32 %v11646_v32, %v11573_v34  ;;  %v11819_v3 = vmul.f32 0.0, %v11692_v57 }
 0x502   : > { %8450 = vmatmul.msk.f32.gmra.mxu0 %vm781_vm1, %v11631_v30 }
 0x503   : > { %14235 = vst [vmem:[#allocation86_spill] sm:$0xff] %v11819_v3 }
 0x507   : > { %8434 = vmatmul.msk.f32.gmra.mxu2 %vm781_vm1, %v3819_v43  ;;  %8473 = vmatmul.msk.f32.gmra.mxu3 %vm781_vm1, %v11631_v30  ;;  %v11767_v17 = vpop.f32.mrf.mxu3 }
 0x508   : > { %14232 = vst [vmem:[#allocation80_spill] sm:$0xff] %v11767_v17 }
 0x50a   : > { %8474 = vmatmul.msk.f32.vlgmr.msra.gmra.mxu0 %vm781_vm1, %v4249_v53 }
 0x50f   : > { %v11749_v13 = vpop.f32.mrf.mxu0  ;;  %8459 = vmatmul.msk.f32.vlgmr.msra.gmra.mxu2 %vm781_vm1, %v4117_v60  ;;  %4237 = vmatmul.f32.gmra.mxu3 %v14192_v35  ;;  %v11782_v14 = vpop.f32.mrf.mxu3 }
 0x510   : > { %14233 = vst [vmem:[#allocation82_spill] sm:$0xff] %v11782_v14 }
 0x512   : > { %8475 = vmatmul.msk.f32.gmra.mxu0 %vm781_vm1, %v4250_v19 }
 0x517   : > { %v11762_v44 = vpop.f32.mrf.mxu0  ;;  %8460 = vmatmul.msk.f32.gmra.mxu2 %vm781_vm1, %v4118_v29  ;;  %v11796_v48 = vpop.f32.mrf.mxu3 }
 0x518   : > { %14234 = vst [vmem:[#allocation84_spill] sm:$0xff] %v11796_v48 }
 0x51a   : > { %v11769_v43 = vpop.f32.mrf.mxu2  ;;  %8476 = vmatmul.msk.f32.gmra.mxu0 %vm781_vm1, %v4251_v0 }
 0x51b   : > { %v3767_v55 = vadd.f32 %v11769_v43, %v11749_v13 }
 0x51d   : > { %v4083_v20 = vpop.f32.mrf.mxu1 }
 0x51f   : > { %v11774_v8 = vpop.f32.mrf.mxu0  ;;  %8461 = vmatmul.msk.f32.gmra.mxu2 %vm781_vm1, %v4119_v52  ;;  %v3947_v15 = vpop.f32.mrf.mxu3 }
 0x522   : > { %v11779_v16 = vpop.f32.mrf.mxu2  ;;  %8477 = vmatmul.msk.f32.gmra.mxu0 %vm781_vm1, %v4252_v59 }
 0x523   : > { %v3770_v54 = vadd.f32 %v11779_v16, %v11762_v44 }
 0x525   : > { %v4086_v12 = vpop.f32.mrf.mxu1 }
 0x527   : > { %v11786_v53 = vpop.f32.mrf.mxu0  ;;  %8462 = vmatmul.msk.f32.gmra.mxu2 %vm781_vm1, %v4120_v10  ;;  %v3950_v11 = vpop.f32.mrf.mxu3 }
 0x52a   : > { %v11791_v50 = vpop.f32.mrf.mxu2  ;;  %8478 = vmatmul.msk.f32.gmra.mxu0 %vm781_vm1, %v4253_v23 }
 0x52b   : > { %v3773_v44 = vadd.f32 %v11791_v50, %v11774_v8 }
 0x52f   : > { %v11798_v60 = vpop.f32.mrf.mxu0  ;;  %8463 = vmatmul.msk.f32.gmra.mxu2 %vm781_vm1, %v4121_v62  ;;  %v3953_v32 = vpop.f32.mrf.mxu3 }
 0x532   : > { %v11803_v47 = vpop.f32.mrf.mxu2  ;;  %8479 = vmatmul.msk.f32.gmra.mxu0 %vm781_vm1, %v4254_v6 }
 0x537   : > { %v11808_v19 = vpop.f32.mrf.mxu0  ;;  %8464 = vmatmul.msk.f32.gmra.mxu2 %vm781_vm1, %v4122_v49  ;;  %v3956_v59 = vpop.f32.mrf.mxu3 }
 0x53a   : > { %v11813_v25 = vpop.f32.mrf.mxu2  ;;  %8480 = vmatmul.msk.f32.gmra.mxu0 %vm781_vm1, %v4255_v24  ;;  %v4349_v24 = vld [vmem:[%s13853_s2 + $0x8] sm:$0xff] }
 0x53b   : > { %4391 = vmatpush.msrb.mxu1 %v4349_v24 }
 0x53f   : > { %v11821_v29 = vpop.f32.mrf.mxu0  ;;  %8465 = vmatmul.msk.f32.gmra.mxu2 %vm781_vm1, %v4123_v56  ;;  %v11835_v62 = vpop.f32.mrf.mxu3 }
 0x542   : > { %v11824_v27 = vpop.f32.mrf.mxu2  ;;  %8481 = vmatmul.msk.f32.gmra.mxu0 %vm781_vm1, %v11819_v3 }
 0x547   : > { %v3999_v34 = vpop.f32.mrf.mxu0  ;;  %8466 = vmatmul.msk.f32.gmra.mxu2 %vm781_vm1, %v4124_v5  ;;  %v11841_v49 = vpop.f32.mrf.mxu3 }
 0x54a   : > { %v11833_v57 = vpop.f32.mrf.mxu2 }
 0x54f   : > { %v4002_v0 = vpop.f32.mrf.mxu0  ;;  %v11848_v31 = vpop.f32.mrf.mxu3 }
 0x552   : > { %v3862_v52 = vpop.f32.mrf.mxu2 }
 0x553   : > { %v3886_v24 = vadd.f32 %v3862_v52, %v3764_v18 }
 0x555   : > { %v3971_v7 = vadd.f32 %v3947_v15, %v3886_v24  ;;  %v11871_v15 = vld [vmem:[%s13854_s3 + $0x5] ss:$0 sm:$0xff]  ;;  %v3776_v24 = vadd.f32 %v11803_v47, %v11786_v53  ;;  %v3779_v53 = vadd.f32 %v11813_v25, %v11798_v60  ;;  %v3782_v60 = vadd.f32 %v11824_v27, %v11808_v19 }
 0x556   : > { %v3785_v19 = vadd.f32 %v11833_v57, %v11821_v29 }
 0x557   : > { %v4005_v10 = vpop.f32.mrf.mxu0  ;;  %v11854_v17 = vpop.f32.mrf.mxu3  ;;  %v4023_v37 = vadd.f32 %v3999_v34, %v3971_v7 }
 0x558   : > { %v4089_v7 = vpop.f32.mrf.mxu1 }
 0x559   : > { %v4107_v61 = vadd.f32 %v4083_v20, %v4023_v37 }
 0x55a   : > { %v3865_v23 = vpop.f32.mrf.mxu2 }
 0x55b   : > { %v3887_v26 = vadd.f32 %v3865_v23, %v3767_v55 }
 0x55d   : > { %v3972_v58 = vadd.f32 %v3950_v11, %v3887_v26 }
 0x55f   : > { %v11837_v30 = vpop.f32.mrf.mxu0  ;;  %v4217_v63 = vpop.f32.mrf.mxu3  ;;  %v4024_v13 = vadd.f32 %v4002_v0, %v3972_v58 }
 0x561   : > { %v4108_v37 = vadd.f32 %v4086_v12, %v4024_v13 }
 0x562   : > { %v3868_v41 = vpop.f32.mrf.mxu2 }
 0x563   : > { %v3888_v21 = vadd.f32 %v3868_v41, %v3770_v54  ;;  %v4092_v41 = vpop.f32.mrf.mxu1 }
 0x565   : > { %v3973_v43 = vadd.f32 %v3953_v32, %v3888_v21 }
 0x567   : > { %v11839_v6 = vpop.f32.mrf.mxu0  ;;  %v4220_v2 = vpop.f32.mrf.mxu3  ;;  %v4025_v23 = vadd.f32 %v4005_v10, %v3973_v43 }
 0x569   : > { %v4109_v0 = vadd.f32 %v4089_v7, %v4025_v23 }
 0x56a   : > { %v3871_v39 = vpop.f32.mrf.mxu2 }
 0x56b   : > { %v3889_v16 = vadd.f32 %v3871_v39, %v3773_v44  ;;  %v4095_v7 = vpop.f32.mrf.mxu1 }
 0x56f   : > { %v11846_v56 = vpop.f32.mrf.mxu0  ;;  %v4223_v20 = vpop.f32.mrf.mxu3 }
 0x572   : > { %v3874_v5 = vpop.f32.mrf.mxu2 }
 0x577   : > { %v11850_v48 = vpop.f32.mrf.mxu0  ;;  %v4226_v50 = vpop.f32.mrf.mxu3 }
 0x57a   : > { %v11852_v14 = vpop.f32.mrf.mxu2 }
 0x57f   : > { %v11856_v1 = vpop.f32.mrf.mxu0 }
 0x582   : > { %v11858_v46 = vpop.f32.mrf.mxu2 }
 0x587   : > { %v4299_v4 = vpop.f32.mrf.mxu0 }
 0x58a   : > { %v11862_v51 = vpop.f32.mrf.mxu2 }
 0x58f   : > { %v4302_v3 = vpop.f32.mrf.mxu0 }
 0x592   : > { %v4167_v36 = vpop.f32.mrf.mxu2 }
 0x593   : > { %v4191_v18 = vadd.f32 %v4167_v36, %v4107_v61 }
 0x595   : > { %v4241_v52 = vadd.f32 %v4217_v63, %v4191_v18  ;;  %v3890_v18 = vadd.f32 %v3874_v5, %v3776_v24  ;;  %v3891_v5 = vadd.f32 %v11852_v14, %v3779_v53  ;;  %v3892_v14 = vadd.f32 %v11858_v46, %v3782_v60 }
 0x597   : > { %v4323_v55 = vadd.f32 %v4299_v4, %v4241_v52  ;;  %v4305_v63 = vpop.f32.mrf.mxu0  ;;  %v3974_v4 = vadd.f32 %v3956_v59, %v3889_v16  ;;  %v3975_v59 = vadd.f32 %v11835_v62, %v3890_v18  ;;  %v4098_v16 = vpop.f32.mrf.mxu1 }
 0x599   : > { %v4333_v26 = vadd.f32 %v11871_v15, %v4323_v55 }
 0x59a   : > { %v4170_v11 = vpop.f32.mrf.mxu2 }
 0x59b   : > { %v4341_v61 = vmax.f32 %v4333_v26, 0.0  ;;  %v4192_v36 = vadd.f32 %v4170_v11, %v4108_v37  ;;  %v4229_v26 = vpop.f32.mrf.mxu3 }
 0x59d   : > { %v4242_v34 = vadd.f32 %v4220_v2, %v4192_v36  ;;  %8482 = vmatmul.msk.f32.vlgmr.msrb.gmra.mxu1 %vm781_vm1, %v4341_v61  ;;  %v4026_v2 = vadd.f32 %v11837_v30, %v3974_v4  ;;  %v4027_v30 = vadd.f32 %v11839_v6, %v3975_v59 }
 0x59f   : > { %v4324_v58 = vadd.f32 %v4302_v3, %v4242_v34  ;;  %v4308_v10 = vpop.f32.mrf.mxu0  ;;  %v4110_v52 = vadd.f32 %v4092_v41, %v4026_v2  ;;  %v4111_v44 = vadd.f32 %v4095_v7, %v4027_v30  ;;  %v3893_v41 = vadd.f32 %v11862_v51, %v3785_v19 }
 0x5a1   : > { %v4334_v32 = vadd.f32 %v11871_v15, %v4324_v58 }
 0x5a2   : > { %v4173_v12 = vpop.f32.mrf.mxu2 }
 0x5a3   : > { %v4193_v54 = vadd.f32 %v4173_v12, %v4109_v0  ;;  %v4342_v8 = vmax.f32 %v4334_v32, 0.0  ;;  %v4232_v23 = vpop.f32.mrf.mxu3 }
 0x5a5   : > { %v4243_v21 = vadd.f32 %v4223_v20, %v4193_v54  ;;  %8483 = vmatmul.msk.f32.gmra.mxu1 %vm781_vm1, %v4342_v8  ;;  %v3976_v20 = vadd.f32 %v11841_v49, %v3891_v5  ;;  %v3977_v49 = vadd.f32 %v11848_v31, %v3892_v14  ;;  %v4101_v54 = vpop.f32.mrf.mxu1  ;;  %v3978_v31 = vadd.f32 %v11854_v17, %v3893_v41 }
 0x5a7   : > { %v4325_v3 = vadd.f32 %v4305_v63, %v4243_v21  ;;  %v4311_v62 = vpop.f32.mrf.mxu0  ;;  %v4028_v6 = vadd.f32 %v11846_v56, %v3976_v20  ;;  %v4029_v56 = vadd.f32 %v11850_v48, %v3977_v49  ;;  %v4030_v51 = vadd.f32 %v11856_v1, %v3978_v31 }
 0x5a9   : > { %v4335_v39 = vadd.f32 %v11871_v15, %v4325_v3  ;;  %v4112_v4 = vadd.f32 %v4098_v16, %v4028_v6 }
 0x5aa   : > { %v4176_v13 = vpop.f32.mrf.mxu2 }
 0x5ab   : > { %v4194_v47 = vadd.f32 %v4176_v13, %v4110_v52  ;;  %v4343_v55 = vmax.f32 %v4335_v39, 0.0  ;;  %v4235_v18 = vpop.f32.mrf.mxu3 }
 0x5ad   : > { %v4244_v43 = vadd.f32 %v4226_v50, %v4194_v47  ;;  %8484 = vmatmul.msk.f32.gmra.mxu1 %vm781_vm1, %v4343_v55  ;;  %v4113_v50 = vadd.f32 %v4101_v54, %v4029_v56  ;;  %v4104_v59 = vpop.f32.mrf.mxu1 }
 0x5ae   : > { %v4114_v39 = vadd.f32 %v4104_v59, %v4030_v51 }
 0x5af   : > { %v4326_v37 = vadd.f32 %v4308_v10, %v4244_v43  ;;  %v4314_v32 = vpop.f32.mrf.mxu0 }
 0x5b1   : > { %v4336_v11 = vadd.f32 %v11871_v15, %v4326_v37 }
 0x5b2   : > { %v4179_v61 = vpop.f32.mrf.mxu2 }
 0x5b3   : > { %v4195_v25 = vadd.f32 %v4179_v61, %v4111_v44  ;;  %v4344_v36 = vmax.f32 %v4336_v11, 0.0  ;;  %v4238_v17 = vpop.f32.mrf.mxu3  ;;  %v8807_v44 = vld [vmem:[%s13854_s3 + $0x9] ss:$0 sm:$0xff] }
 0x5b5   : > { %v4245_v63 = vadd.f32 %v4229_v26, %v4195_v25  ;;  %8485 = vmatmul.msk.f32.gmra.mxu1 %vm781_vm1, %v4344_v36 }
 0x5b7   : > { %v4327_v34 = vadd.f32 %v4311_v62, %v4245_v63  ;;  %v4317_v57 = vpop.f32.mrf.mxu0 }
 0x5b9   : > { %v4337_v58 = vadd.f32 %v11871_v15, %v4327_v34 }
 0x5ba   : > { %v4182_v0 = vpop.f32.mrf.mxu2 }
 0x5bb   : > { %v4196_v27 = vadd.f32 %v4182_v0, %v4112_v4  ;;  %v4345_v46 = vmax.f32 %v4337_v58, 0.0 }
 0x5bd   : > { %v4246_v12 = vadd.f32 %v4232_v23, %v4196_v27  ;;  %8486 = vmatmul.msk.f32.gmra.mxu1 %vm781_vm1, %v4345_v46 }
 0x5bf   : > { %v4328_v24 = vadd.f32 %v4314_v32, %v4246_v12  ;;  %v4320_v47 = vpop.f32.mrf.mxu0 }
 0x5c1   : > { %v4338_v8 = vadd.f32 %v11871_v15, %v4328_v24 }
 0x5c2   : > { %v4185_v21 = vpop.f32.mrf.mxu2 }
 0x5c3   : > { %v4197_v2 = vadd.f32 %v4185_v21, %v4113_v50  ;;  %v4346_v29 = vmax.f32 %v4338_v8, 0.0 }
 0x5c5   : > { %v4247_v10 = vadd.f32 %v4235_v18, %v4197_v2  ;;  %8487 = vmatmul.msk.f32.gmra.mxu1 %vm781_vm1, %v4346_v29 }
 0x5c7   : > { %v4329_v3 = vadd.f32 %v4317_v57, %v4247_v10 }
 0x5c9   : > { %v4339_v48 = vadd.f32 %v11871_v15, %v4329_v3 }
 0x5ca   : > { %v4188_v52 = vpop.f32.mrf.mxu2 }
 0x5cb   : > { %v4198_v13 = vadd.f32 %v4188_v52, %v4114_v39  ;;  %v4347_v53 = vmax.f32 %v4339_v48, 0.0 }
 0x5cd   : > { %v4248_v55 = vadd.f32 %v4238_v17, %v4198_v13  ;;  %8488 = vmatmul.msk.f32.gmra.mxu1 %vm781_vm1, %v4347_v53 }
 0x5cf   : > { %v4330_v7 = vadd.f32 %v4320_v47, %v4248_v55 }
 0x5d1   : > { %v4340_v5 = vadd.f32 %v11871_v15, %v4330_v7 }
 0x5d3   : > { %v4348_v43 = vmax.f32 %v4340_v5, 0.0 }
 0x5d5   : > { %8489 = vmatmul.msk.f32.gmra.mxu1 %vm781_vm1, %v4348_v43 }
 0x61a   : > { %v4393_v1 = vpop.f32.mrf.mxu1 }
 0x61b   : > { %v4394_v19 = vadd.f32 %v8807_v44, %v4393_v1 }
 0x622   : > { %v4396_v30 = vpop.f32.mrf.mxu1 }
 0x623   : > { %v4397_v58 = vadd.f32 %v8807_v44, %v4396_v30 }
 0x625   : > { %v4418_v41 = vadd.f32 %v4397_v58, %v11332_v28 }
 0x627   : > { %v4426_v29 = vmax.f32 %v4418_v41, 0.0  ;;  %v4783_v41 = vld [vmem:[%s13852_s1 + $0x120] sm:$0xff] }
 0x62a   : > { %v4399_v26 = vpop.f32.mrf.mxu1 }
 0x62b   : > { %v4400_v16 = vadd.f32 %v8807_v44, %v4399_v26  ;;  %v8765_v26 = vld [vmem:[%s13856_s5] sm:$0xff]  }
 0x632   : > { %v4402_v37 = vpop.f32.mrf.mxu1 }
 0x633   : > { %v4403_v14 = vadd.f32 %v8807_v44, %v4402_v37 }
 0x635   : > { %v4420_v4 = vadd.f32 %v4403_v14, %v11340_v33  ;;  %v4516_v33 = vld [vmem:[%s13852_s1 + $0xd8] sm:$0xff]  ;;  %v4637_v14 = vld [vmem:[%s13852_s1 + $0x100] sm:$0xff] }
 0x637   : > { %v4428_v12 = vmax.f32 %v4420_v4, 0.0 }
 0x639   : > { %v4450_v57 = vrot.slane %v4428_v12, 1 }
 0x63a   : > { %v4405_v62 = vpop.f32.mrf.mxu1 }
 0x63b   : > { %v4406_v25 = vadd.f32 %v8807_v44, %v4405_v62 }
 0x63d   : > { %v4421_v34 = vadd.f32 %v4406_v25, %v11347_v42  ;;  %v4419_v42 = vadd.f32 %v4400_v16, %v11336_v9  ;;  %v4417_v9 = vadd.f32 %v4394_v19, %v11328_v22  ;;  %v4446_v22 = vrot.slane %v4426_v29, 1  ;;  %v4747_v16 = vld [vmem:[%s13852_s1 + $0x118] sm:$0xff] }
 0x63f   : > { %v4429_v27 = vmax.f32 %v4421_v34, 0.0  ;;  %v4427_v50 = vmax.f32 %v4419_v42, 0.0  ;;  %v4425_v3 = vmax.f32 %v4417_v9, 0.0  ;;  %v8808_v34 = vld [vmem:[%s13854_s3 + $0x2] ss:$0 sm:$0xff] }
 0x641   : > { %v4452_v18 = vrot.slane %v4429_v27, 1  ;;  %v4448_v59 = vrot.slane %v4427_v50, 1  ;;  %v4445_v47 = vrot.slane %v4425_v3, 1 }
 0x642   : > { %v4408_v20 = vpop.f32.mrf.mxu1 }
 0x643   : > { %v4409_v60 = vadd.f32 %v8807_v44, %v4408_v20  ;;  %v4453_v48 = vsel %vm1168_vm3, %v4450_v57, %v4452_v18  ;;  %v4451_v17 = vsel %vm1168_vm3, %v4448_v59, %v4450_v57  ;;  %v4449_v55 = vsel %vm1168_vm3, %v4446_v22, %v4448_v59 }
 0x644   : > { %v4472_v53 = vmax.f32 %v4428_v12, %v4453_v48  ;;  %v4471_v5 = vmax.f32 %v4427_v50, %v4451_v17  ;;  %v4447_v43 = vsel %vm1168_vm3, %v4445_v47, %v4446_v22  ;;  %v4470_v30 = vmax.f32 %v4426_v29, %v4449_v55  ;;  %v367_v50 = vld [vmem:[%s13852_s1 + $0x438] sm:$0xff] }
 0x645   : > { %v4422_v63 = vadd.f32 %v4409_v60, %v11351_v40  ;;  %v4517_v40 = vld [vmem:[%s13852_s1 + $0xe0] sm:$0xff]  ;;  %v4469_v62 = vmax.f32 %v4425_v3, %v4447_v43  ;;  %v8766_v20 = vunpack.c.l.bf16 %v8765_v26  ;;  %v4563_v60 = vld [vmem:[%s13852_s1 + $0xf0] sm:$0xff] }
 0x646   : > { %v4479_v1 = vmax.f32 %v4471_v5, %v4472_v53  ;;  %v4478_v37 = vmax.f32 %v4470_v30, %v4471_v5  ;;  %4620 = vmatpush.msrb.mxu2 %v4563_v60 }
 0x647   : > { %v4430_v32 = vmax.f32 %v4422_v63, 0.0  ;;  %v4677_v63 = vld [vmem:[%s13852_s1 + $0x108] sm:$0xff] }
 0x649   : > { %v4454_v56 = vrot.slane %v4430_v32, 1 }
 0x64a   : > { %v4411_v11 = vpop.f32.mrf.mxu1 }
 0x64b   : > { %v4412_v61 = vadd.f32 %v8807_v44, %v4411_v11  ;;  %v4455_v28 = vsel %vm1168_vm3, %v4452_v18, %v4454_v56  ;;  %v4477_v11 = vmax.f32 %v4469_v62, %v4470_v30 }
 0x64c   : > { %v4473_v52 = vmax.f32 %v4429_v27, %v4455_v28 }
 0x64d   : > { %v4423_v36 = vadd.f32 %v4412_v61, %v11355_v45  ;;  %v4518_v45 = vld [vmem:[%s13852_s1 + $0xe8] sm:$0xff]  ;;  %v4515_v61 = vld [vmem:[%s13852_s1 + $0xd0] sm:$0xff] }
 0x64e   : > { %4539 = vmatpush.msrb.mxu3 %v4518_v45  ;;  %v4480_v7 = vmax.f32 %v4472_v53, %v4473_v52  ;;  %v366_v45 = vld [vmem:[%s13852_s1 + $0x430] sm:$0xff] }
 0x64f   : > { %v4431_v23 = vmax.f32 %v4423_v36, 0.0 }
 0x650   : > { %4540 = vmatpush.msrb.mxu3 %v4517_v40 }
 0x651   : > { %v4456_v46 = vrot.slane %v4431_v23, 1 }
 0x652   : > { %v4414_v15 = vpop.f32.mrf.mxu1  ;;  %4541 = vmatpush.msrb.mxu3 %v4516_v33 }
 0x653   : > { %v4415_v6 = vadd.f32 %v8807_v44, %v4414_v15  ;;  %v4457_v21 = vsel %vm1168_vm3, %v4454_v56, %v4456_v46  ;;  %v8767_v44 = vunpack.c.h.bf16 %v8765_v26  ;;  %v4570_v15 = vld [vmem:[%s13852_s1 + $0xf8] sm:$0xff]  ;;  %v4817_v56 = vld [vmem:[%s13852_s1 + $0x128] sm:$0xff] }
 0x654   : > { %v4474_v51 = vmax.f32 %v4430_v32, %v4457_v21  ;;  %4542 = vmatpush.msrb.mxu3 %v4515_v61 }
 0x655   : > { %v4424_v49 = vadd.f32 %v4415_v6, %v11359_v38  ;;  %v4709_v6 = vld [vmem:[%s13852_s1 + $0x110] sm:$0xff] }
 0x656   : > { %v4481_v13 = vmax.f32 %v4473_v52, %v4474_v51  ;;  %4659 = vmatpush.msra.mxu3 %v4637_v14  ;;  %4729 = vmatpush.msra.mxu2 %v4709_v6 }
 0x657   : > { %v4432_v0 = vmax.f32 %v4424_v49, 0.0 }
 0x659   : > { %v4458_v38 = vrot.slane %v4432_v0, 1 }
 0x65b   : > { %v4468_v24 = vsel %vm1168_vm3, %v4458_v38, 0.0  ;;  %v4459_v54 = vsel %vm1168_vm3, %v4456_v46, %v4458_v38 }
 0x65c   : > { %v4476_v31 = vmax.f32 %v4432_v0, %v4468_v24  ;;  %v4475_v8 = vmax.f32 %v4431_v23, %v4459_v54  ;;  %v364_v0 = vld [vmem:[%s13852_s1 + $0x420] sm:$0xff]  ;;  %v4850_v24 = vld [vmem:[%s13852_s1 + $0x130] sm:$0xff] }
 0x65e   : > { %v4484_v2 = vmax.f32 %v4476_v31, 0.0  ;;  %v4483_v10 = vmax.f32 %v4475_v8, %v4476_v31  ;;  %v4482_v39 = vmax.f32 %v4474_v51, %v4475_v8  ;;  %v365_v8 = vld [vmem:[%s13852_s1 + $0x428] sm:$0xff] }
 0x660   : > { %4500 = vmatpush.msrb.mxu0 %v4484_v2 }
 0x662   : > { %4501 = vmatpush.msrb.mxu0 %v4483_v10 }
 0x664   : > { %4502 = vmatpush.msrb.mxu0 %v4482_v39 }
 0x666   : > { %4503 = vmatpush.msrb.mxu0 %v4481_v13 }
 0x668   : > { %4504 = vmatpush.msrb.mxu0 %v4480_v7 }
 0x66a   : > { %4505 = vmatpush.msrb.mxu0 %v4479_v1 }
 0x66c   : > { %4506 = vmatpush.msrb.mxu0 %v4478_v37 }
 0x66e   : > { %4507 = vmatpush.msrb.mxu0 %v4477_v11 }
 0x66f   : > { %8490 = vmatmul.msk.f32.vlgmr.msrb.gmra.mxu0 %vm4485_vm4, %v8766_v20 }
 0x670   : > { %4591 = vmatpush.msra.mxu0 %v4570_v15  ;;  %v4888_v15 = vld [vmem:[%s13853_s2 + $0x10] sm:$0xff] }
 0x672   : > { %4699 = vmatpush.msrb.mxu0 %v4677_v63 }
 0x677   : > { %8491 = vmatmul.msk.f32.gmra.mxu0 %vm4485_vm4, %v8767_v44 }
 0x6ec   : > { %v11950_v25 = vpop.f32.mrf.mxu0 }
 0x6ed   : > { %8492 = vmatmul.msk.f32.vlgmr.msrb.gmra.mxu3 %vm384_vm0, %v11950_v25 }
 0x6ee   : > { %4769 = vmatpush.msrb.mxu3 %v4747_v16 }
 0x6f4   : > { %v11954_v36 = vpop.f32.mrf.mxu0 }
 0x6f5   : > { %8493 = vmatmul.msk.f32.gmra.mxu3 %vm384_vm0, %v11954_v36 }
 0x770   : > { %v4544_v23 = vpop.f32.mrf.mxu3 }
 0x771   : > { %v4545_v49 = vadd.f32 %v8808_v34, %v4544_v23 }
 0x773   : > { %v4550_v58 = vmax.f32 %v4545_v49, 0.0 }
 0x775   : > { %v4555_v4 = vrot.slane %v4550_v58, 3  ;;  %v4629_v32 = vrot.slane %v4550_v58, 5  ;;  %v4565_v40 = vrot.slane %v4550_v58, 4  ;;  %v4669_v57 = vrot.slane %v4550_v58, 7 }
 0x776   : > { %v4739_v3 = vrot.slane %v4550_v58, 1 }
 0x777   : > { %v4560_v19 = vsel %vm4554_vm5, 0.0, %v4555_v4  ;;  %v4634_v42 = vsel %vm4628_vm6, 0.0, %v4629_v32  ;;  %v4569_v46 = vsel %vm4564_vm7, 0.0, %v4565_v40  ;;  %v4674_v59 = vsel %vm656_vm2, 0.0, %v4669_v57 }
 0x778   : > { %v4547_v27 = vpop.f32.mrf.mxu3  ;;  %v4561_v38 = vmul.f32 %v4560_v19, %v364_v0  ;;  %v4635_v33 = vmul.f32 %v4634_v42, %v366_v45  ;;  %8494 = vmatmul.msk.f32.vlgmr.msra.gmra.mxu0 %vm781_vm1, %v4569_v46  ;;  %v4675_v39 = vmul.f32 %v4674_v59, %v364_v0  ;;  %v4995_v59 = vld [vmem:[%s13853_s2 + $0xc8] sm:$0xff] }
 0x779   : > { %v4548_v12 = vadd.f32 %v8808_v34, %v4547_v27  ;;  %4805 = vmatpush.msra.mxu0 %v4783_v41  ;;  %v4966_v34 = vld [vmem:[%s13853_s2 + $0xb8] sm:$0xff] }
 0x77a   : > { %8496 = vmatmul.msk.f32.vlgmr.msrb.gmra.mxu2 %vm781_vm1, %v4561_v38  ;;  %8498 = vmatmul.msk.f32.vlgmr.msra.gmra.mxu3 %vm781_vm1, %v4635_v33 }
 0x77b   : > { %v4551_v54 = vmax.f32 %v4548_v12, 0.0  ;;  %4836 = vmatpush.msrb.mxu2 %v4817_v56  ;;  %4872 = vmatpush.msra.mxu3 %v4850_v24  ;;  %v8809_v12 = vld [vmem:[%s13854_s3 + $0x6] ss:$0 sm:$0xff] }
 0x77c   : > { %4983 = vmatpush.msra.mxu1 %v4966_v34 }
 0x77d   : > { %v4566_v31 = vrot.slane %v4551_v54, 4  ;;  %v4556_v9 = vrot.slane %v4551_v54, 3  ;;  %v4630_v18 = vrot.slane %v4551_v54, 5  ;;  %v4740_v51 = vrot.slane %v4551_v54, 1 }
 0x77e   : > { %v4670_v22 = vrot.slane %v4551_v54, 7 }
 0x77f   : > { %v4567_v21 = vsel %vm4564_vm7, %v4565_v40, %v4566_v31  ;;  %v4557_v2 = vsel %vm4554_vm5, %v4555_v4, %v4556_v9  ;;  %v4631_v29 = vsel %vm4628_vm6, %v4629_v32, %v4630_v18  ;;  %v4741_v48 = vsel %vm1168_vm3, %v4739_v3, %v4740_v51  ;;  %v4964_v3 = vld [vmem:[%s13853_s2 + $0xa8] sm:$0xff] }
 0x780   : > { %v4562_v28 = vmul.f32 %v4557_v2, %v365_v8  ;;  %v4636_v10 = vmul.f32 %v4631_v29, %v367_v50  ;;  %8495 = vmatmul.msk.f32.gmra.mxu0 %vm781_vm1, %v4567_v21  ;;  %v4745_v52 = vmul.f32 %v4741_v48, %v366_v45  ;;  %v4671_v17 = vsel %vm656_vm2, %v4669_v57, %v4670_v22  ;;  %v4963_v48 = vld [vmem:[%s13853_s2 + $0xa0] sm:$0xff]  ;;  %v5001_v22 = vld [vmem:[%s13853_s2 + $0x98] sm:$0xff] }
 0x781   : > { %v4744_v13 = vsel %vm1168_vm3, %v4740_v51, 0.0  ;;  %v4676_v53 = vmul.f32 %v4671_v17, %v365_v8  ;;  %v4781_v55 = vmul.f32 %v4557_v2, %v364_v0  ;;  %v4848_v7 = vmul.f32 %v4631_v29, %v366_v45  ;;  %v4996_v51 = vld [vmem:[%s13853_s2 + $0xd0] sm:$0xff] }
 0x782   : > { %8497 = vmatmul.msk.f32.gmra.mxu2 %vm781_vm1, %v4562_v28  ;;  %8499 = vmatmul.msk.f32.gmra.mxu3 %vm781_vm1, %v4636_v10  ;;  %v4746_v47 = vmul.f32 %v4744_v13, %v367_v50  ;;  %v4780_v5 = vsel %vm4554_vm5, %v4556_v9, 0.0  ;;  %v4847_v43 = vsel %vm4628_vm6, %v4630_v18, 0.0  ;;  %v4816_v26 = vsel %vm4564_vm7, %v4566_v31, 0.0  ;;  %v4997_v28 = vld [vmem:[%s13853_s2 + $0xd8] sm:$0xff]  ;;  %v4965_v10 = vld [vmem:[%s13853_s2 + $0xb0] sm:$0xff] }
 0x783   : > { %v4782_v1 = vmul.f32 %v4780_v5, %v365_v8  ;;  %v4849_v30 = vmul.f32 %v4847_v43, %v367_v50  ;;  %4984 = vmatpush.msra.mxu1 %v4965_v10  ;;  %v5060_v17 = vld [vmem:[%s13853_s2 + $0x50] sm:$0xff]  ;;  %v5058_v5 = vld [vmem:[%s13853_s2 + $0x40] sm:$0xff] }
 0x784   : > { %v5000_v13 = vld [vmem:[%s13853_s2 + $0x90] sm:$0xff] }
 0x785   : > { %4985 = vmatpush.msra.mxu1 %v4964_v3  ;;  %v5056_v43 = vld [vmem:[%s13853_s2 + $0x110] sm:$0xff] }
 0x787   : > { %4986 = vmatpush.msra.mxu1 %v4963_v48 }
 0x788   : > { %8500 = vmatmul.msk.f32.vlgmr.msrb.gmra.mxu0 %vm781_vm1, %v4675_v39  ;;  %v4994_v39 = vld [vmem:[%s13853_s2 + $0xc0] sm:$0xff] }
 0x789   : > { %4912 = vmatpush.msrb.mxu0 %v4888_v15  ;;  %v5119_v15 = vld [vmem:[%s13853_s2 + $0xf0] sm:$0xff] }
 0x78a   : > { %8502 = vmatmul.msk.f32.vlgmr.msra.gmra.mxu2 %vm781_vm1, %v4550_v58  ;;  %8504 = vmatmul.msk.f32.vlgmr.msrb.gmra.mxu3 %vm781_vm1, %v4745_v52  ;;  %v5061_v52 = vld [vmem:[%s13853_s2 + $0x58] sm:$0xff] }
 0x78b   : > { %5043 = vmatpush.msrb.mxu3 %v4997_v28  ;;  %5020 = vmatpush.msra.mxu2 %v5001_v22 }
 0x78d   : > { %5044 = vmatpush.msrb.mxu3 %v4996_v51  ;;  %5021 = vmatpush.msra.mxu2 %v5000_v13 }
 0x78f   : > { %5045 = vmatpush.msrb.mxu3 %v4995_v59 }
 0x790   : > { %8501 = vmatmul.msk.f32.gmra.mxu0 %vm781_vm1, %v4676_v53  ;;  %v5059_v53 = vld [vmem:[%s13853_s2 + $0x48] sm:$0xff] }
 0x791   : > { %5046 = vmatpush.msrb.mxu3 %v4994_v39 }
 0x792   : > { %8503 = vmatmul.msk.f32.gmra.mxu2 %vm781_vm1, %v4551_v54  ;;  %8505 = vmatmul.msk.f32.gmra.mxu3 %vm781_vm1, %v4746_v47  ;;  %v5057_v47 = vld [vmem:[%s13853_s2 + $0x118] sm:$0xff] }
 0x793   : > { %5102 = vmatpush.msrb.mxu1 %v5057_v47 }
 0x795   : > { %5103 = vmatpush.msrb.mxu1 %v5056_v43 }
 0x798   : > { %8506 = vmatmul.msk.f32.vlgmr.msra.gmra.mxu0 %vm781_vm1, %v4781_v55  ;;  %v5116_v55 = vld [vmem:[%s13853_s2 + $0x138] sm:$0xff] }
 0x799   : > { %5079 = vmatpush.msra.mxu0 %v5061_v52 }
 0x79a   : > { %8508 = vmatmul.msk.f32.vlgmr.msrb.gmra.mxu2 %vm781_vm1, %v4567_v21  ;;  %8510 = vmatmul.msk.f32.vlgmr.msra.gmra.mxu3 %vm781_vm1, %v4848_v7  ;;  %v4999_v7 = vld [vmem:[%s13853_s2 + $0x88] sm:$0xff] }
 0x79b   : > { %5080 = vmatpush.msra.mxu0 %v5060_v17  ;;  %5156 = vmatpush.msra.mxu3 %v5116_v55 }
 0x79c   : > { %5022 = vmatpush.msra.mxu2 %v4999_v7 }
 0x79d   : > { %5081 = vmatpush.msra.mxu0 %v5059_v53 }
 0x79f   : > { %5082 = vmatpush.msra.mxu0 %v5058_v5 }
 0x7a0   : > { %8507 = vmatmul.msk.f32.gmra.mxu0 %vm781_vm1, %v4782_v1  ;;  %v5115_v1 = vld [vmem:[%s13853_s2 + $0x130] sm:$0xff] }
 0x7a1   : > { %5157 = vmatpush.msra.mxu3 %v5115_v1 }
 0x7a2   : > { %8509 = vmatmul.msk.f32.gmra.mxu2 %vm781_vm1, %v4816_v26  ;;  %8511 = vmatmul.msk.f32.gmra.mxu3 %vm781_vm1, %v4849_v30  ;;  %v4998_v30 = vld [vmem:[%s13853_s2 + $0x80] sm:$0xff]  ;;  %v5055_v26 = vld [vmem:[%s13853_s2 + $0x108] sm:$0xff] }
 0x7a3   : > { %5023 = vmatpush.msra.mxu2 %v4998_v30  ;;  %5104 = vmatpush.msrb.mxu1 %v5055_v26 }
 0x7f5   : > { %v4593_v37 = vpop.f32.mrf.mxu0 }
 0x7fd   : > { %v4622_v62 = vpop.f32.mrf.mxu2  ;;  %v4661_v20 = vpop.f32.mrf.mxu3 }
 0x7fe   : > { %v4596_v11 = vpop.f32.mrf.mxu0  ;;  %v4623_v6 = vadd.f32 %v4622_v62, %v4593_v37  ;;  %v5114_v37 = vld [vmem:[%s13853_s2 + $0x128] sm:$0xff]  ;;  %v5054_v62 = vld [vmem:[%s13853_s2 + $0x100] sm:$0xff] }
 0x7ff   : > { %5158 = vmatpush.msra.mxu3 %v5114_v37  ;;  %5105 = vmatpush.msrb.mxu1 %v5054_v62 }
 0x800   : > { %v4667_v23 = vadd.f32 %v4661_v20, %v4623_v6  ;;  %v5113_v20 = vld [vmem:[%s13853_s2 + $0x120] sm:$0xff]  ;;  %v5118_v6 = vld [vmem:[%s13853_s2 + $0xe8] sm:$0xff] }
 0x801   : > { %5159 = vmatpush.msra.mxu3 %v5113_v20 }
 0x805   : > { %v4625_v44 = vpop.f32.mrf.mxu2  ;;  %v4664_v61 = vpop.f32.mrf.mxu3 }
 0x806   : > { %v4701_v60 = vpop.f32.mrf.mxu0  ;;  %v4626_v32 = vadd.f32 %v4625_v44, %v4596_v11  ;;  %v5170_v11 = vld [vmem:[%s13853_s2 + $0x78] sm:$0xff] }
 0x807   : > { %v4707_v49 = vadd.f32 %v4701_v60, %v4667_v23  ;;  %v5120_v44 = vld [vmem:[%s13853_s2 + $0xf8] sm:$0xff]  ;;  %v8810_v60 = vld [vmem:[%s13854_s3 + $0xa] ss:$0 sm:$0xff]  ;;  %v5117_v23 = vld [vmem:[%s13853_s2 + $0xe0] sm:$0xff] }
 0x808   : > { %v4668_v40 = vadd.f32 %v4664_v61, %v4626_v32  ;;  %v5169_v61 = vld [vmem:[%s13853_s2 + $0x70] sm:$0xff]  ;;  %5133 = vmatpush.msrb.mxu2 %v5120_v44 }
 0x809   : > { %v5198_v32 = vld [vmem:[%s13853_s2 + $0x30] sm:$0xff] }
 0x80a   : > { %5134 = vmatpush.msrb.mxu2 %v5119_v15  ;;  %v8784_v15 = vld [vmem:[%s13856_s5 + $0x8] sm:$0xff]  }
 0x80c   : > { %5135 = vmatpush.msrb.mxu2 %v5118_v6  ;;  %v8785_v6 = vld [vmem:[%s13856_s5 + $0x10] sm:$0xff]  }
 0x80d   : > { %v4731_v14 = vpop.f32.mrf.mxu2  ;;  %v4771_v63 = vpop.f32.mrf.mxu3 }
 0x80e   : > { %v4704_v16 = vpop.f32.mrf.mxu0  ;;  %v4737_v0 = vadd.f32 %v4731_v14, %v4707_v49  ;;  %v5168_v14 = vld [vmem:[%s13853_s2 + $0x68] sm:$0xff]  ;;  %5136 = vmatpush.msrb.mxu2 %v5117_v23  ;;  %v5309_v23 = vld [vmem:[%s13852_s1 + $0x150] sm:$0xff] }
 0x80f   : > { %v4708_v42 = vadd.f32 %v4704_v16, %v4668_v40  ;;  %v5167_v16 = vld [vmem:[%s13853_s2 + $0x60] sm:$0xff] }
 0x810   : > { %v4777_v19 = vadd.f32 %v4771_v63, %v4737_v0 }
 0x815   : > { %v4734_v58 = vpop.f32.mrf.mxu2  ;;  %v4774_v4 = vpop.f32.mrf.mxu3 }
 0x816   : > { %v4807_v45 = vpop.f32.mrf.mxu0  ;;  %v4738_v33 = vadd.f32 %v4734_v58, %v4708_v42 }
 0x817   : > { %v4813_v27 = vadd.f32 %v4807_v45, %v4777_v19  ;;  %v5196_v19 = vld [vmem:[%s13853_s2 + $0x20] sm:$0xff] }
 0x818   : > { %v4778_v54 = vadd.f32 %v4774_v4, %v4738_v33  ;;  %v5199_v4 = vld [vmem:[%s13853_s2 + $0x38] sm:$0xff] }
 0x81d   : > { %v4838_v46 = vpop.f32.mrf.mxu2  ;;  %v4874_v38 = vpop.f32.mrf.mxu3 }
 0x81e   : > { %v4844_v41 = vadd.f32 %v4838_v46, %v4813_v27  ;;  %v4810_v24 = vpop.f32.mrf.mxu0 }
 0x81f   : > { %v4814_v8 = vadd.f32 %v4810_v24, %v4778_v54  ;;  %v377_v24 = vld [vmem:[%s13853_s2 + $0x2c8] sm:$0xff] }
 0x820   : > { %v4880_v56 = vadd.f32 %v4874_v38, %v4844_v41  ;;  %v376_v38 = vld [vmem:[%s13853_s2 + $0x2c0] sm:$0xff] }
 0x822   : > { %v4884_v31 = vadd.f32 %v8809_v12, %v4880_v56 }
 0x824   : > { %v4886_v9 = vmax.f32 %v4884_v31, 0.0 }
 0x825   : > { %v4841_v50 = vpop.f32.mrf.mxu2  ;;  %v4877_v21 = vpop.f32.mrf.mxu3 }
 0x826   : > { %v4845_v18 = vadd.f32 %v4841_v50, %v4814_v8  ;;  %8512 = vmatmul.msk.f32.vlgmr.msrb.gmra.mxu0 %vm781_vm1, %v4886_v9 }
 0x827   : > { %5183 = vmatpush.msrb.mxu0 %v5170_v11 }
 0x828   : > { %v4881_v2 = vadd.f32 %v4877_v21, %v4845_v18 }
 0x829   : > { %5184 = vmatpush.msrb.mxu0 %v5169_v61 }
 0x82a   : > { %v4885_v29 = vadd.f32 %v8809_v12, %v4881_v2 }
 0x82b   : > { %5185 = vmatpush.msrb.mxu0 %v5168_v14  ;;  %v8770_v14 = vunpack.c.l.bf16 %v8784_v15 }
 0x82c   : > { %v4887_v57 = vmax.f32 %v4885_v29, 0.0 }
 0x82d   : > { %5186 = vmatpush.msrb.mxu0 %v5167_v16  ;;  %v8774_v16 = vunpack.c.l.bf16 %v8785_v6 }
 0x82e   : > { %8513 = vmatmul.msk.f32.gmra.mxu0 %vm781_vm1, %v4887_v57 }
 0x8a3   : > { %v4914_v63 = vpop.f32.mrf.mxu0 }
 0x8a4   : > { %v4915_v34 = vadd.f32 %v8810_v60, %v4914_v63  ;;  %v8771_v63 = vunpack.c.h.bf16 %v8784_v15 }
 0x8a6   : > { %v4920_v49 = vadd.f32 %v4915_v34, %v11950_v25  ;;  %v5197_v25 = vld [vmem:[%s13853_s2 + $0x28] sm:$0xff]  ;;  %v8775_v34 = vunpack.c.h.bf16 %v8785_v6 }
 0x8a8   : > { %v4922_v58 = vmax.f32 %v4920_v49, 0.0  ;;  %v8786_v49 = vld [vmem:[%s13856_s5 + $0x18] sm:$0xff]  }
 0x8aa   : > { %8514 = vmatmul.msk.f32.vlgmr.msra.gmra.mxu1 %vm384_vm0, %v4922_v58  ;;  %8518 = vmatmul.msk.f32.vlgmr.msrb.gmra.mxu3 %vm384_vm0, %v4922_v58  ;;  %v4950_v27 = vrot.slane %v4922_v58, 4  ;;  %v4942_v33 = vrot.slane %v4922_v58, 1  ;;  %v4955_v50 = vrot.slane %v4922_v58, 5 }
 0x8ab   : > { %v4917_v0 = vpop.f32.mrf.mxu0  ;;  %5218 = vmatpush.msra.mxu1 %v5199_v4  ;;  %5348 = vmatpush.msrb.mxu3 %v5309_v23  ;;  %v8779_v4 = vunpack.c.h.bf16 %v8786_v49  ;;  %v12331_v23 = vld [vmem:[%s13852_s1 + $0x3b0] sm:$0xff] }
 0x8ac   : > { %v4918_v45 = vadd.f32 %v8810_v60, %v4917_v0 }
 0x8ad   : > { %5219 = vmatpush.msra.mxu1 %v5198_v32  ;;  %v8787_v32 = vld [vmem:[%s13856_s5 + $0x20] sm:$0xff]  }
 0x8ae   : > { %v4921_v40 = vadd.f32 %v4918_v45, %v11954_v36  ;;  %v8782_v0 = vunpack.c.l.bf16 %v8787_v32  ;;  %v8783_v45 = vunpack.c.h.bf16 %v8787_v32 }
 0x8af   : > { %5220 = vmatpush.msra.mxu1 %v5197_v25  ;;  %v5308_v25 = vld [vmem:[%s13852_s1 + $0x148] sm:$0xff] }
 0x8b0   : > { %v4923_v42 = vmax.f32 %v4921_v40, 0.0  ;;  %v5307_v40 = vld [vmem:[%s13852_s1 + $0x140] sm:$0xff]  ;;  %5349 = vmatpush.msrb.mxu3 %v5308_v25 }
 0x8b1   : > { %5221 = vmatpush.msra.mxu1 %v5196_v19  ;;  %v5306_v19 = vld [vmem:[%s13852_s1 + $0x138] sm:$0xff] }
 0x8b2   : > { %8515 = vmatmul.msk.f32.gmra.mxu1 %vm384_vm0, %v4923_v42  ;;  %8519 = vmatmul.msk.f32.gmra.mxu3 %vm384_vm0, %v4923_v42  ;;  %v4951_v46 = vrot.slane %v4923_v42, 4  ;;  %v4943_v41 = vrot.slane %v4923_v42, 1  ;;  %v4956_v9 = vrot.slane %v4923_v42, 5 }
 0x8b3   : > { %5350 = vmatpush.msrb.mxu3 %v5307_v40 }
 0x8b4   : > { %v4952_v36 = vsel %vm4564_vm7, %v4950_v27, %v4951_v46  ;;  %v4944_v12 = vsel %vm1168_vm3, %v4942_v33, %v4943_v41  ;;  %v4947_v54 = vsel %vm1168_vm3, %v4943_v41, 0.0  ;;  %v4954_v31 = vsel %vm4564_vm7, %v4951_v46, 0.0 }
 0x8b5   : > { %8520 = vmatmul.msk.f32.vlgmr.msra.gmra.mxu0 %vm384_vm0, %v4952_v36  ;;  %v4948_v56 = vmul.f32 %v4944_v12, %v376_v38  ;;  %v4949_v8 = vmul.f32 %v4947_v54, %v377_v24  ;;  %v4957_v18 = vsel %vm4628_vm6, %v4955_v50, %v4956_v9  ;;  %v4960_v2 = vsel %vm4628_vm6, %v4956_v9, 0.0  ;;  %5351 = vmatpush.msrb.mxu3 %v5306_v19  ;;  %v5421_v9 = vld [vmem:[%s13852_s1 + $0x160] sm:$0xff] }
 0x8b6   : > { %v4961_v21 = vmul.f32 %v4957_v18, %v376_v38  ;;  %v4962_v29 = vmul.f32 %v4960_v2, %v377_v24  ;;  %5451 = vmatpush.msra.mxu0 %v5421_v9 }
 0x8b7   : > { %8516 = vmatmul.msk.f32.vlgmr.msra.gmra.mxu2 %vm384_vm0, %v4948_v56 }
 0x8ba   : > { %8522 = vmatmul.msk.f32.vlgmr.msrb.gmra.mxu1 %vm384_vm0, %v4922_v58  ;;  %8526 = vmatmul.msk.f32.vlgmr.msra.gmra.mxu3 %vm384_vm0, %v4922_v58  ;;  %v8778_v58 = vunpack.c.l.bf16 %v8786_v49 }
 0x8bd   : > { %8521 = vmatmul.msk.f32.gmra.mxu0 %vm384_vm0, %v4954_v31 }
 0x8bf   : > { %8517 = vmatmul.msk.f32.gmra.mxu2 %vm384_vm0, %v4949_v8 }
 0x8c2   : > { %8523 = vmatmul.msk.f32.gmra.mxu1 %vm384_vm0, %v4923_v42  ;;  %8527 = vmatmul.msk.f32.gmra.mxu3 %vm384_vm0, %v4923_v42  ;;  %v8811_v42 = vld [vmem:[%s13854_s3 + $0xc] ss:$0 sm:$0xff] }
 0x8c5   : > { %8528 = vmatmul.msk.f32.vlgmr.msrb.gmra.mxu0 %vm384_vm0, %v4952_v36 }
 0x8c7   : > { %8524 = vmatmul.msk.f32.vlgmr.msrb.gmra.mxu2 %vm384_vm0, %v4948_v56 }
 0x8ca   : > { %8530 = vmatmul.msk.f32.vlgmr.msra.gmra.mxu1 %vm384_vm0, %v4961_v21 }
 0x8cd   : > { %8529 = vmatmul.msk.f32.gmra.mxu0 %vm384_vm0, %v4954_v31 }
 0x8cf   : > { %8525 = vmatmul.msk.f32.gmra.mxu2 %vm384_vm0, %v4949_v8 }
 0x8d2   : > { %8531 = vmatmul.msk.f32.gmra.mxu1 %vm384_vm0, %v4962_v29 }
 0x8d5   : > { %5452 = vmatmul.f32.vlgmr.msra.gmra.mxu0 %v14192_v35 }
 0x927   : > { %v4988_v57 = vpop.f32.mrf.mxu1 }
 0x92d   : > { %v5048_v10 = vpop.f32.mrf.mxu3 }
 0x92f   : > { %v4991_v28 = vpop.f32.mrf.mxu1 }
 0x932   : > { %v5084_v51 = vpop.f32.mrf.mxu0 }
 0x935   : > { %v5051_v48 = vpop.f32.mrf.mxu3 }
 0x937   : > { %v5107_v3 = vpop.f32.mrf.mxu1 }
 0x938   : > { %v5108_v44 = vadd.f32 %v5107_v3, %v5084_v51 }
 0x93a   : > { %v5025_v59 = vpop.f32.mrf.mxu2  ;;  %v5087_v39 = vpop.f32.mrf.mxu0 }
 0x93b   : > { %v5049_v60 = vadd.f32 %v5048_v10, %v5025_v59 }
 0x93d   : > { %v5161_v17 = vpop.f32.mrf.mxu3 }
 0x93f   : > { %v5110_v52 = vpop.f32.mrf.mxu1 }
 0x940   : > { %v5111_v11 = vadd.f32 %v5110_v52, %v5087_v39  ;;  %v5420_v39 = vld [vmem:[%s13852_s1 + $0x158] sm:$0xff]  ;;  %v14238_v52 = vld [vmem:[#allocation52_spill] sm:$0xff] }
 0x941   : > { %5513 = vmatpush.msrb.mxu1 %v5420_v39 }
 0x942   : > { %v5028_v22 = vpop.f32.mrf.mxu2  ;;  %v5188_v13 = vpop.f32.mrf.mxu0  ;;  %8555 = vmatmul.msk.f32.vlgmr.msrb.gmra.mxu1 %vm781_vm1, %v14238_v52  ;;  %v5793_v52 = vld [vmem:[%s13852_s1 + $0x180] sm:$0xff] }
 0x943   : > { %v5052_v61 = vadd.f32 %v5051_v48, %v5028_v22  ;;  %v5572_v22 = vld [vmem:[%s13852_s1 + $0x168] sm:$0xff]  ;;  %5833 = vmatpush.msra.mxu1 %v5793_v52 }
 0x945   : > { %v5164_v7 = vpop.f32.mrf.mxu3 }
 0x947   : > { %v5223_v47 = vpop.f32.mrf.mxu1 }
 0x94a   : > { %v5138_v53 = vpop.f32.mrf.mxu2  ;;  %v5191_v1 = vpop.f32.mrf.mxu0 }
 0x94b   : > { %v5162_v55 = vadd.f32 %v5161_v17, %v5138_v53  ;;  %v5657_v17 = vld [vmem:[%s13852_s1 + $0x170] sm:$0xff] }
 0x94c   : > { %5697 = vmatpush.msra.mxu3 %v5657_v17 }
 0x94d   : > { %v5194_v30 = vadd.f32 %v5188_v13, %v5162_v55  ;;  %v12280_v13 = vld [vmem:[%s13854_s3 + $0x3] ss:$0 sm:$0xff] }
 0x94f   : > { %v5226_v37 = vpop.f32.mrf.mxu1  ;;  %v5229_v20 = vadd.f32 %v5223_v47, %v5194_v30  ;;  %v12294_v30 = vld [vmem:[%s13852_s1 + $0x3e0] sm:$0xff] }
 0x952   : > { %v5141_v5 = vpop.f32.mrf.mxu2 }
 0x953   : > { %v5165_v43 = vadd.f32 %v5164_v7, %v5141_v5 }
 0x955   : > { %v5195_v26 = vadd.f32 %v5191_v1, %v5165_v43 }
 0x957   : > { %v5230_v62 = vadd.f32 %v5226_v37, %v5195_v26 }
 0x959   : > { %5265 = vmatpush.msra.mxu2 %v5230_v62  ;;  %v12300_v62 = vld [vmem:[%s13852_s1 + $0x3a8] sm:$0xff] }
 0x95b   : > { %5266 = vmatpush.msra.mxu2 %v5229_v20 }
 0x95d   : > { %5267 = vmatpush.msra.mxu2 %v5111_v11  ;;  %v12306_v11 = vld [vmem:[%s13852_s1 + $0x3a0] sm:$0xff] }
 0x95f   : > { %5268 = vmatpush.msra.mxu2 %v5108_v44 }
 0x961   : > { %5269 = vmatpush.msra.mxu2 %v5052_v61 }
 0x963   : > { %5270 = vmatpush.msra.mxu2 %v5049_v60 }
 0x965   : > { %5271 = vmatpush.msra.mxu2 %v4991_v28 }
 0x967   : > { %5272 = vmatpush.msra.mxu2 %v4988_v57 }
 0x968   : > { %8532 = vmatmul.msk.f32.vlgmr.msra.gmra.mxu2 %vm4485_vm4, %v8770_v14 }
 0x969   : > { %5612 = vmatpush.msrb.mxu2 %v5572_v22 }
 0x970   : > { %8533 = vmatmul.msk.f32.gmra.mxu2 %vm4485_vm4, %v8771_v63  ;;  %v5731_v63 = vld [vmem:[%s13852_s1 + $0x178] sm:$0xff] }
 0x971   : > { %5749 = vmatpush.msrb.mxu0 %v5731_v63 }
 0x978   : > { %8534 = vmatmul.msk.f32.gmra.mxu2 %vm4485_vm4, %v8774_v16 }
 0x980   : > { %8535 = vmatmul.msk.f32.gmra.mxu2 %vm4485_vm4, %v8775_v34 }
 0x988   : > { %8536 = vmatmul.msk.f32.gmra.mxu2 %vm4485_vm4, %v8778_v58  ;;  %v12338_v58 = vld [vmem:[%s13852_s1 + $0x3e8] sm:$0xff] }
 0x990   : > { %8537 = vmatmul.msk.f32.gmra.mxu2 %vm4485_vm4, %v8779_v4 }
 0x998   : > { %8538 = vmatmul.msk.f32.gmra.mxu2 %vm4485_vm4, %v8782_v0 }
 0x9a0   : > { %8539 = vmatmul.msk.f32.gmra.mxu2 %vm4485_vm4, %v8783_v45 }
 0x9eb   : > { %v5274_v27 = vpop.f32.mrf.mxu2 }
 0x9ec   : > { %v12214_v46 = vadd.f32 %v8811_v42, %v5274_v27 }
 0x9ee   : > { %v13918_v38 = vmax.f32 %v12214_v46, 0.0 }
 0x9f0   : > { %8540 = vmatmul.msk.f32.vlgmr.msrb.gmra.mxu3 %vm384_vm0, %v13918_v38 }
 0x9f3   : > { %v5277_v33 = vpop.f32.mrf.mxu2 }
 0x9f4   : > { %v12220_v41 = vadd.f32 %v8811_v42, %v5277_v33  ;;  %v12363_v33 = vld [vmem:[%s13852_s1 + $0x3b8] sm:$0xff] }
 0x9f6   : > { %v13917_v36 = vmax.f32 %v12220_v41, 0.0 }
 0x9f8   : > { %8541 = vmatmul.msk.f32.gmra.mxu3 %vm384_vm0, %v13917_v36 }
 0x9fb   : > { %v5280_v12 = vpop.f32.mrf.mxu2 }
 0x9fc   : > { %v12226_v56 = vadd.f32 %v8811_v42, %v5280_v12 }
 0x9fe   : > { %v13916_v24 = vmax.f32 %v12226_v56, 0.0 }
 0xa00   : > { %8542 = vmatmul.msk.f32.gmra.mxu3 %vm384_vm0, %v13916_v24 }
 0xa03   : > { %v5283_v54 = vpop.f32.mrf.mxu2 }
 0xa04   : > { %v12232_v31 = vadd.f32 %v8811_v42, %v5283_v54  ;;  %v12370_v54 = vld [vmem:[%s13852_s1 + $0x3f0] sm:$0xff] }
 0xa06   : > { %v13915_v8 = vmax.f32 %v12232_v31, 0.0 }
 0xa08   : > { %8543 = vmatmul.msk.f32.gmra.mxu3 %vm384_vm0, %v13915_v8 }
 0xa0b   : > { %v5286_v50 = vpop.f32.mrf.mxu2 }
 0xa0c   : > { %v12242_v18 = vadd.f32 %v8811_v42, %v5286_v50 }
 0xa0e   : > { %v13914_v21 = vmax.f32 %v12242_v18, 0.0 }
 0xa10   : > { %8544 = vmatmul.msk.f32.gmra.mxu3 %vm384_vm0, %v13914_v21 }
 0xa13   : > { %v5289_v2 = vpop.f32.mrf.mxu2 }
 0xa14   : > { %v12248_v29 = vadd.f32 %v8811_v42, %v5289_v2 }
 0xa16   : > { %v13913_v57 = vmax.f32 %v12248_v29, 0.0 }
 0xa18   : > { %8545 = vmatmul.msk.f32.gmra.mxu3 %vm384_vm0, %v13913_v57 }
 0xa1b   : > { %v5292_v28 = vpop.f32.mrf.mxu2 }
 0xa1c   : > { %v12254_v10 = vadd.f32 %v8811_v42, %v5292_v28 }
 0xa1e   : > { %14236 = vst [vmem:[#allocation85_spill] sm:$0xff] %v12254_v10  ;;  %v13912_v51 = vmax.f32 %v12254_v10, 0.0 }
 0xa20   : > { %8546 = vmatmul.msk.f32.gmra.mxu3 %vm384_vm0, %v13912_v51 }
 0xa23   : > { %v5295_v3 = vpop.f32.mrf.mxu2 }
 0xa24   : > { %v12260_v59 = vadd.f32 %v8811_v42, %v5295_v3 }
 0xa26   : > { %14237 = vst [vmem:[#allocation87_spill] sm:$0xff] %v12260_v59  ;;  %v13911_v48 = vmax.f32 %v12260_v59, 0.0 }
 0xa28   : > { %8547 = vmatmul.msk.f32.gmra.mxu3 %vm384_vm0, %v13911_v48 }
 0xa73   : > { %v5353_v53 = vpop.f32.mrf.mxu3 }
 0xa74   : > { %v5354_v47 = vadd.f32 %v12280_v13, %v5353_v53 }
 0xa76   : > { %v12283_v55 = vmax.f32 %v5354_v47, 0.0  ;;  %v12398_v47 = vld [vmem:[%s13852_s1 + $0x3c0] sm:$0xff] }
 0xa78   : > { %v5392_v7 = vrot.slane %v12283_v55, 7  ;;  %v5540_v5 = vrot.slane %v12283_v55, 1  ;;  %8548 = vmatmul.msk.f32.gmra.mxu0 %vm781_vm1, %v12283_v55 }
 0xa7a   : > { %v5563_v43 = vsel %vm1168_vm3, 0.0, %v5540_v5  ;;  %v5412_v1 = vsel %vm656_vm2, 0.0, %v5392_v7 }
 0xa7b   : > { %v5564_v26 = vmul.f32 %v12294_v30, %v5563_v43  ;;  %v5356_v37 = vpop.f32.mrf.mxu3  ;;  %v5413_v20 = vmul.f32 %v12300_v62, %v5412_v1  ;;  %v5649_v44 = vmul.f32 %v12306_v11, %v5412_v1 }
 0xa7c   : > { %v5357_v61 = vadd.f32 %v12280_v13, %v5356_v37 }
 0xa7d   : > { %8556 = vmatmul.msk.f32.gmra.mxu1 %vm781_vm1, %v5413_v20  ;;  %8563 = vmatmul.msk.f32.vlgmr.msrb.gmra.mxu2 %vm781_vm1, %v5564_v26 }
 0xa7e   : > { %v12312_v60 = vmax.f32 %v5357_v61, 0.0  ;;  %8571 = vmatmul.msk.f32.vlgmr.msra.gmra.mxu3 %vm781_vm1, %v5649_v44  ;;  %v5877_v61 = vld [vmem:[%s13852_s1 + $0x188] sm:$0xff] }
 0xa7f   : > { %5917 = vmatpush.msra.mxu2 %v5877_v61 }
 0xa80   : > { %8549 = vmatmul.msk.f32.gmra.mxu0 %vm781_vm1, %v12312_v60  ;;  %v5393_v15 = vrot.slane %v12312_v60, 7  ;;  %v5541_v14 = vrot.slane %v12312_v60, 1 }
 0xa82   : > { %v12323_v6 = vsel %vm656_vm2, %v5392_v7, %v5393_v15  ;;  %v12326_v16 = vsel %vm1168_vm3, %v5540_v5, %v5541_v14  ;;  %v12405_v5 = vld [vmem:[%s13852_s1 + $0x3f8] sm:$0xff] }
 0xa83   : > { %v5359_v34 = vpop.f32.mrf.mxu3  ;;  %v5414_v49 = vmul.f32 %v12331_v23, %v12323_v6  ;;  %v5565_v4 = vmul.f32 %v12338_v58, %v12326_v16  ;;  %v5650_v0 = vmul.f32 %v12300_v62, %v12323_v6 }
 0xa84   : > { %v5360_v32 = vadd.f32 %v12280_v13, %v5359_v34 }
 0xa85   : > { %8557 = vmatmul.msk.f32.gmra.mxu1 %vm781_vm1, %v5414_v49  ;;  %8564 = vmatmul.msk.f32.gmra.mxu2 %vm781_vm1, %v5565_v4  ;;  %v12436_v49 = vld [vmem:[%s13852_s1 + $0x3c8] sm:$0xff] }
 0xa86   : > { %v12347_v45 = vmax.f32 %v5360_v32, 0.0  ;;  %8572 = vmatmul.msk.f32.gmra.mxu3 %vm781_vm1, %v5650_v0  ;;  %v12443_v32 = vld [vmem:[%s13852_s1 + $0x400] sm:$0xff] }
 0xa88   : > { %8550 = vmatmul.msk.f32.gmra.mxu0 %vm781_vm1, %v12347_v45  ;;  %v5395_v25 = vrot.slane %v12347_v45, 7  ;;  %v5543_v40 = vrot.slane %v12347_v45, 1 }
 0xa8a   : > { %v12355_v19 = vsel %vm656_vm2, %v5393_v15, %v5395_v25  ;;  %v12358_v42 = vsel %vm1168_vm3, %v5541_v14, %v5543_v40  ;;  %v5951_v15 = vld [vmem:[%s13852_s1 + $0x190] sm:$0xff] }
 0xa8b   : > { %v5362_v27 = vpop.f32.mrf.mxu3  ;;  %v5415_v12 = vmul.f32 %v12363_v33, %v12355_v19  ;;  %v5566_v9 = vmul.f32 %v12370_v54, %v12358_v42  ;;  %v5651_v50 = vmul.f32 %v12331_v23, %v12355_v19  ;;  %5967 = vmatpush.msrb.mxu3 %v5951_v15 }
 0xa8c   : > { %v5363_v2 = vadd.f32 %v12280_v13, %v5362_v27 }
 0xa8d   : > { %8558 = vmatmul.msk.f32.gmra.mxu1 %vm781_vm1, %v5415_v12  ;;  %8565 = vmatmul.msk.f32.gmra.mxu2 %vm781_vm1, %v5566_v9 }
 0xa8e   : > { %v12379_v28 = vmax.f32 %v5363_v2, 0.0  ;;  %8573 = vmatmul.msk.f32.gmra.mxu3 %vm781_vm1, %v5651_v50 }
 0xa90   : > { %8551 = vmatmul.msk.f32.gmra.mxu0 %vm781_vm1, %v12379_v28  ;;  %v5397_v3 = vrot.slane %v12379_v28, 7  ;;  %v5545_v39 = vrot.slane %v12379_v28, 1 }
 0xa92   : > { %v12390_v22 = vsel %vm656_vm2, %v5395_v25, %v5397_v3  ;;  %v12393_v17 = vsel %vm1168_vm3, %v5543_v40, %v5545_v39 }
 0xa93   : > { %v5365_v53 = vpop.f32.mrf.mxu3  ;;  %v5416_v7 = vmul.f32 %v12398_v47, %v12390_v22  ;;  %v5567_v43 = vmul.f32 %v12405_v5, %v12393_v17  ;;  %v5652_v1 = vmul.f32 %v12363_v33, %v12390_v22 }
 0xa94   : > { %v5366_v26 = vadd.f32 %v12280_v13, %v5365_v53  ;;  %v12475_v53 = vld [vmem:[%s13852_s1 + $0x408] sm:$0xff] }
 0xa95   : > { %8559 = vmatmul.msk.f32.gmra.mxu1 %vm781_vm1, %v5416_v7  ;;  %8566 = vmatmul.msk.f32.gmra.mxu2 %vm781_vm1, %v5567_v43 }
 0xa96   : > { %v12414_v37 = vmax.f32 %v5366_v26, 0.0  ;;  %8574 = vmatmul.msk.f32.gmra.mxu3 %vm781_vm1, %v5652_v1 }
 0xa98   : > { %8552 = vmatmul.msk.f32.gmra.mxu0 %vm781_vm1, %v12414_v37  ;;  %v5399_v20 = vrot.slane %v12414_v37, 7  ;;  %v5547_v44 = vrot.slane %v12414_v37, 1 }
 0xa9a   : > { %v12428_v14 = vsel %vm656_vm2, %v5397_v3, %v5399_v20  ;;  %v12431_v63 = vsel %vm1168_vm3, %v5545_v39, %v5547_v44  ;;  %v12468_v39 = vld [vmem:[%s13852_s1 + $0x3d0] sm:$0xff] }
 0xa9b   : > { %v5368_v34 = vpop.f32.mrf.mxu3  ;;  %v5417_v4 = vmul.f32 %v12436_v49, %v12428_v14  ;;  %v5568_v0 = vmul.f32 %v12443_v32, %v12431_v63  ;;  %v5653_v25 = vmul.f32 %v12398_v47, %v12428_v14 }
 0xa9c   : > { %v5369_v40 = vadd.f32 %v12280_v13, %v5368_v34 }
 0xa9d   : > { %8560 = vmatmul.msk.f32.gmra.mxu1 %vm781_vm1, %v5417_v4  ;;  %8567 = vmatmul.msk.f32.gmra.mxu2 %vm781_vm1, %v5568_v0  ;;  %v12498_v4 = vld [vmem:[%s13852_s1 + $0x3d8] sm:$0xff] }
 0xa9e   : > { %v12452_v27 = vmax.f32 %v5369_v40, 0.0  ;;  %8575 = vmatmul.msk.f32.gmra.mxu3 %vm781_vm1, %v5653_v25  ;;  %v12504_v25 = vld [vmem:[%s13852_s1 + $0x410] sm:$0xff] }
 0xaa0   : > { %8553 = vmatmul.msk.f32.gmra.mxu0 %vm781_vm1, %v12452_v27  ;;  %v5401_v12 = vrot.slane %v12452_v27, 7  ;;  %v5549_v9 = vrot.slane %v12452_v27, 1 }
 0xaa2   : > { %v12460_v50 = vsel %vm656_vm2, %v5399_v20, %v5401_v12  ;;  %v12463_v2 = vsel %vm1168_vm3, %v5547_v44, %v5549_v9 }
 0xaa3   : > { %v5371_v3 = vpop.f32.mrf.mxu3  ;;  %v5418_v52 = vmul.f32 %v12468_v39, %v12460_v50  ;;  %v5569_v7 = vmul.f32 %v12475_v53, %v12463_v2  ;;  %v5654_v43 = vmul.f32 %v12436_v49, %v12460_v50 }
 0xaa4   : > { %v5372_v1 = vadd.f32 %v12280_v13, %v5371_v3 }
 0xaa5   : > { %8561 = vmatmul.msk.f32.gmra.mxu1 %vm781_vm1, %v5418_v52  ;;  %8568 = vmatmul.msk.f32.gmra.mxu2 %vm781_vm1, %v5569_v7 }
 0xaa6   : > { %v12484_v26 = vmax.f32 %v5372_v1, 0.0  ;;  %8576 = vmatmul.msk.f32.gmra.mxu3 %vm781_vm1, %v5654_v43  ;;  %v5785_v1 = vmul.f32 %v12294_v30, %v12326_v16  ;;  %v5786_v16 = vmul.f32 %v12338_v58, %v12358_v42 }
 0xaa8   : > { %8554 = vmatmul.msk.f32.gmra.mxu0 %vm781_vm1, %v12484_v26  ;;  %v5403_v20 = vrot.slane %v12484_v26, 7  ;;  %v5551_v44 = vrot.slane %v12484_v26, 1 }
 0xaaa   : > { %v5404_v61 = vsel %vm656_vm2, %v5401_v12, %v5403_v20  ;;  %v12493_v15 = vsel %vm1168_vm3, %v5549_v9, %v5551_v44 }
 0xaab   : > { %v5374_v34 = vpop.f32.mrf.mxu3  ;;  %v5419_v0 = vmul.f32 %v12498_v4, %v5404_v61  ;;  %v5570_v40 = vmul.f32 %v12504_v25, %v12493_v15  ;;  %v5655_v12 = vmul.f32 %v12468_v39, %v5404_v61 }
 0xaac   : > { %v5375_v9 = vadd.f32 %v12280_v13, %v5374_v34  ;;  %v8999_v34 = vld [vmem:[%s13852_s1 + $0x418] sm:$0xff] }
 0xaad   : > { %8562 = vmatmul.msk.f32.gmra.mxu1 %vm781_vm1, %v5419_v0  ;;  %8569 = vmatmul.msk.f32.gmra.mxu2 %vm781_vm1, %v5570_v40 }
 0xaae   : > { %v12512_v3 = vmax.f32 %v5375_v9, 0.0  ;;  %8577 = vmatmul.msk.f32.gmra.mxu3 %vm781_vm1, %v5655_v12  ;;  %v5515_v12 = vpop.f32.mrf.mxu1 }
 0xab0   : > { %v5553_v52 = vrot.slane %v12512_v3, 1  ;;  %v5646_v7 = vrot.slane %v12512_v3, 7  ;;  %8579 = vmatmul.msk.f32.vlgmr.msrb.gmra.mxu0 %vm781_vm1, %v12283_v55  ;;  %v5869_v55 = vmul.f32 %v12306_v11, %v12323_v6  ;;  %v5787_v11 = vmul.f32 %v12370_v54, %v12393_v17 }
 0xab1   : > { %v5870_v6 = vmul.f32 %v12300_v62, %v12355_v19  ;;  %v5789_v62 = vmul.f32 %v12443_v32, %v12463_v2  ;;  %v5873_v19 = vmul.f32 %v12398_v47, %v12460_v50  ;;  %v12598_v47 = vpop.f32.mrf.mxu0 }
 0xab2   : > { %v12520_v43 = vsel %vm1168_vm3, %v5551_v44, %v5553_v52  ;;  %v5647_v13 = vsel %vm656_vm2, %v5403_v20, %v5646_v7  ;;  %v6008_v20 = vld [vmem:[%s13852_s1 + $0x198] sm:$0xff]  ;;  %v5871_v44 = vmul.f32 %v12331_v23, %v12390_v22  ;;  %v5790_v23 = vmul.f32 %v12475_v53, %v12493_v15 }
 0xab3   : > { %v5571_v0 = vmul.f32 %v8999_v34, %v12520_v43  ;;  %v5656_v40 = vmul.f32 %v12498_v4, %v5647_v13  ;;  %6045 = vmatpush.msra.mxu0 %v6008_v20  ;;  %v5784_v22 = vsel %vm1168_vm3, %v5553_v52, 0.0 }
 0xab5   : > { %8570 = vmatmul.msk.f32.gmra.mxu2 %vm781_vm1, %v5571_v0  ;;  %8587 = vmatmul.msk.f32.vlgmr.msra.gmra.mxu1 %vm781_vm1, %v5785_v1 }
 0xab6   : > { %8578 = vmatmul.msk.f32.gmra.mxu3 %vm781_vm1, %v5656_v40 }
 0xab8   : > { %8580 = vmatmul.msk.f32.gmra.mxu0 %vm781_vm1, %v12312_v60 }
 0xabd   : > { %8588 = vmatmul.msk.f32.gmra.mxu1 %vm781_vm1, %v5786_v16  ;;  %8595 = vmatmul.msk.f32.vlgmr.msra.gmra.mxu2 %vm781_vm1, %v5869_v55  ;;  %v14239_v55 = vld [vmem:[#allocation86_spill] sm:$0xff] }
 0xabe   : > { %8603 = vmatmul.msk.f32.vlgmr.msrb.gmra.mxu3 %vm781_vm1, %v12312_v60  ;;  %v5788_v60 = vmul.f32 %v12405_v5, %v12431_v63 }
 0xac0   : > { %8581 = vmatmul.msk.f32.gmra.mxu0 %vm781_vm1, %v12347_v45 }
 0xac5   : > { %8589 = vmatmul.msk.f32.gmra.mxu1 %vm781_vm1, %v5787_v11  ;;  %8596 = vmatmul.msk.f32.gmra.mxu2 %vm781_vm1, %v5870_v6 }
 0xac6   : > { %8604 = vmatmul.msk.f32.gmra.mxu3 %vm781_vm1, %v12347_v45  ;;  %v5872_v45 = vmul.f32 %v12363_v33, %v12428_v14  ;;  %v5791_v33 = vmul.f32 %v12504_v25, %v12520_v43  ;;  %v5875_v14 = vmul.f32 %v12468_v39, %v5647_v13  ;;  %v6002_v39 = vmul.f32 %v12338_v58, %v12393_v17 }
 0xac7   : > { %v6005_v17 = vmul.f32 %v12443_v32, %v12493_v15 }
 0xac8   : > { %8582 = vmatmul.msk.f32.gmra.mxu0 %vm781_vm1, %v12379_v28 }
 0xacd   : > { %8590 = vmatmul.msk.f32.gmra.mxu1 %vm781_vm1, %v5788_v60  ;;  %8597 = vmatmul.msk.f32.gmra.mxu2 %vm781_vm1, %v5871_v44 }
 0xace   : > { %8605 = vmatmul.msk.f32.gmra.mxu3 %vm781_vm1, %v12379_v28  ;;  %v5874_v28 = vmul.f32 %v12436_v49, %v5404_v61  ;;  %v6001_v49 = vmul.f32 %v12294_v30, %v12358_v42  ;;  %v6003_v42 = vmul.f32 %v12370_v54, %v12431_v63 }
 0xad0   : > { %8583 = vmatmul.msk.f32.gmra.mxu0 %vm781_vm1, %v12414_v37 }
 0xad5   : > { %8591 = vmatmul.msk.f32.gmra.mxu1 %vm781_vm1, %v5789_v62  ;;  %8598 = vmatmul.msk.f32.gmra.mxu2 %vm781_vm1, %v5872_v45 }
 0xad6   : > { %8606 = vmatmul.msk.f32.gmra.mxu3 %vm781_vm1, %v12414_v37  ;;  %v5792_v37 = vmul.f32 %v8999_v34, %v5784_v22  ;;  %v6007_v34 = vmul.f32 %v12504_v25, %v5784_v22 }
 0xad8   : > { %8584 = vmatmul.msk.f32.gmra.mxu0 %vm781_vm1, %v12452_v27 }
 0xadd   : > { %8592 = vmatmul.msk.f32.gmra.mxu1 %vm781_vm1, %v5790_v23  ;;  %8599 = vmatmul.msk.f32.gmra.mxu2 %vm781_vm1, %v5873_v19 }
 0xade   : > { %8607 = vmatmul.msk.f32.gmra.mxu3 %vm781_vm1, %v12452_v27  ;;  %v5868_v27 = vsel %vm656_vm2, %v5646_v7, 0.0  ;;  %v6006_v7 = vmul.f32 %v12475_v53, %v12520_v43 }
 0xadf   : > { %v5876_v50 = vmul.f32 %v12498_v4, %v5868_v27  ;;  %v6004_v4 = vmul.f32 %v12405_v5, %v12463_v2 }
 0xae0   : > { %8585 = vmatmul.msk.f32.gmra.mxu0 %vm781_vm1, %v12484_v26 }
 0xae5   : > { %8593 = vmatmul.msk.f32.gmra.mxu1 %vm781_vm1, %v5791_v33  ;;  %8600 = vmatmul.msk.f32.gmra.mxu2 %vm781_vm1, %v5874_v28  ;;  %v6097_v33 = vld [vmem:[%s13853_s2 + $0x18] sm:$0xff] }
 0xae6   : > { %8608 = vmatmul.msk.f32.gmra.mxu3 %vm781_vm1, %v12484_v26  ;;  %6139 = vmatpush.msrb.mxu1 %v6097_v33 }
 0xae8   : > { %8586 = vmatmul.msk.f32.gmra.mxu0 %vm781_vm1, %v12512_v3 }
 0xaed   : > { %8594 = vmatmul.msk.f32.gmra.mxu1 %vm781_vm1, %v5792_v37  ;;  %8601 = vmatmul.msk.f32.gmra.mxu2 %vm781_vm1, %v5875_v14 }
 0xaee   : > { %8609 = vmatmul.msk.f32.gmra.mxu3 %vm781_vm1, %v12512_v3 }
 0xaf0   : > { %8610 = vmatmul.msk.f32.vlgmr.msra.gmra.mxu0 %vm781_vm1, %v6001_v49 }
 0xaf5   : > { %v12610_v26 = vpop.f32.mrf.mxu0  ;;  %8602 = vmatmul.msk.f32.gmra.mxu2 %vm781_vm1, %v5876_v50 }
 0xaf6   : > { %5989 = vmatmul.f32.gmra.mxu3 %v14192_v35 }
 0xaf8   : > { %8611 = vmatmul.msk.f32.gmra.mxu0 %vm781_vm1, %v6002_v39 }
 0xafa   : > { %v5518_v52 = vpop.f32.mrf.mxu1 }
 0xafb   : > { %v5519_v48 = vadd.f32 %v5518_v52, %v12610_v26 }
 0xafd   : > { %v12617_v30 = vpop.f32.mrf.mxu0 }
 0xb00   : > { %8612 = vmatmul.msk.f32.gmra.mxu0 %vm781_vm1, %v6003_v42  ;;  %v5614_v9 = vpop.f32.mrf.mxu2  ;;  %v5516_v42 = vadd.f32 %v5515_v12, %v12598_v47 }
 0xb01   : > { %v5699_v3 = vpop.f32.mrf.mxu3 }
 0xb02   : > { %v5521_v2 = vpop.f32.mrf.mxu1 }
 0xb03   : > { %v5522_v47 = vadd.f32 %v5521_v2, %v12617_v30 }
 0xb05   : > { %v12622_v61 = vpop.f32.mrf.mxu0 }
 0xb08   : > { %8613 = vmatmul.msk.f32.gmra.mxu0 %vm781_vm1, %v6004_v4  ;;  %v5617_v54 = vpop.f32.mrf.mxu2 }
 0xb09   : > { %v5702_v5 = vpop.f32.mrf.mxu3  ;;  %v5639_v21 = vadd.f32 %v5617_v54, %v5519_v48 }
 0xb0a   : > { %v5524_v15 = vpop.f32.mrf.mxu1 }
 0xb0b   : > { %v5724_v35 = vadd.f32 %v5702_v5, %v5639_v21  ;;  %v5525_v30 = vadd.f32 %v5524_v15, %v12622_v61 }
 0xb0d   : > { %v12627_v58 = vpop.f32.mrf.mxu0 }
 0xb10   : > { %8614 = vmatmul.msk.f32.gmra.mxu0 %vm781_vm1, %v6005_v17  ;;  %v5620_v13 = vpop.f32.mrf.mxu2 }
 0xb11   : > { %v5705_v32 = vpop.f32.mrf.mxu3 }
 0xb12   : > { %v12649_v43 = vpop.f32.mrf.mxu1 }
 0xb13   : > { %v5528_v61 = vadd.f32 %v12649_v43, %v12627_v58 }
 0xb15   : > { %v12632_v63 = vpop.f32.mrf.mxu0 }
 0xb18   : > { %8615 = vmatmul.msk.f32.gmra.mxu0 %vm781_vm1, %v6006_v7  ;;  %v12641_v0 = vpop.f32.mrf.mxu2  ;;  %v5638_v7 = vadd.f32 %v5614_v9, %v5516_v42  ;;  %v12690_v9 = vld [vmem:[%s13854_s3 + $0x7] ss:$0 sm:$0xff] }
 0xb19   : > { %v12647_v53 = vpop.f32.mrf.mxu3 }
 0xb1a   : > { %v12655_v6 = vpop.f32.mrf.mxu1  ;;  %v5723_v33 = vadd.f32 %v5699_v3, %v5638_v7  ;;  %v5640_v3 = vadd.f32 %v5620_v13, %v5522_v47 }
 0xb1b   : > { %v5531_v58 = vadd.f32 %v12655_v6, %v12632_v63 }
 0xb1c   : > { %v5725_v54 = vadd.f32 %v5705_v32, %v5640_v3 }
 0xb1d   : > { %v12637_v1 = vpop.f32.mrf.mxu0 }
 0xb20   : > { %8616 = vmatmul.msk.f32.gmra.mxu0 %vm781_vm1, %v6007_v34  ;;  %v12651_v20 = vpop.f32.mrf.mxu2 }
 0xb21   : > { %v12653_v11 = vpop.f32.mrf.mxu3 }
 0xb22   : > { %v12661_v45 = vpop.f32.mrf.mxu1 }
 0xb23   : > { %v5534_v63 = vadd.f32 %v12661_v45, %v12637_v1 }
 0xb25   : > { %v12643_v40 = vpop.f32.mrf.mxu0 }
 0xb28   : > { %8617 = vmatmul.msk.f32.gmra.mxu0 %vm781_vm1, %v14239_v55  ;;  %v12657_v60 = vpop.f32.mrf.mxu2 }
 0xb29   : > { %v12659_v62 = vpop.f32.mrf.mxu3 }
 0xb2a   : > { %v12670_v22 = vpop.f32.mrf.mxu1 }
 0xb2d   : > { %v5751_v16 = vpop.f32.mrf.mxu0 }
 0xb2e   : > { %v5775_v51 = vadd.f32 %v5751_v16, %v5723_v33 }
 0xb30   : > { %v12663_v23 = vpop.f32.mrf.mxu2 }
 0xb31   : > { %v12668_v28 = vpop.f32.mrf.mxu3 }
 0xb32   : > { %v5835_v27 = vpop.f32.mrf.mxu1 }
 0xb33   : > { %v5859_v8 = vadd.f32 %v5835_v27, %v5775_v51  ;;  %v5641_v27 = vadd.f32 %v12641_v0, %v5525_v30  ;;  %v5642_v0 = vadd.f32 %v12651_v20, %v5528_v61  ;;  %v5643_v20 = vadd.f32 %v12657_v60, %v5531_v58  ;;  %v6328_v60 = vld [vmem:[%s13853_s2 + $0x1d8] sm:$0xff] }
 0xb34   : > { %6357 = vmatpush.msrb.mxu2 %v6328_v60  ;;  %v5644_v30 = vadd.f32 %v12663_v23, %v5534_v63  ;;  %v6389_v58 = vld [vmem:[%s13853_s2 + $0x1f8] sm:$0xff]  ;;  %v12782_v63 = vld [vmem:[%s13854_s3 + $0xb] ss:$0 sm:$0xff]  ;;  %v14240_v60 = vmax.f32 %v12214_v46, 0.0  ;;  %v368_v46 = vld [vmem:[%s13853_s2 + $0x280] sm:$0xff] }
 0xb35   : > { %v5754_v25 = vpop.f32.mrf.mxu0  ;;  %6471 = vmatpush.msrb.mxu0 %v6389_v58  ;;  %v6592_v58 = vld [vmem:[%s13853_s2 + $0x240] sm:$0xff] }
 0xb36   : > { %v5776_v12 = vadd.f32 %v5754_v25, %v5724_v35  ;;  %v5729_v45 = vadd.f32 %v12668_v28, %v5644_v30 }
 0xb38   : > { %v12672_v37 = vpop.f32.mrf.mxu2 }
 0xb39   : > { %v12676_v49 = vpop.f32.mrf.mxu3 }
 0xb3a   : > { %v5838_v34 = vpop.f32.mrf.mxu1 }
 0xb3b   : > { %v5860_v52 = vadd.f32 %v5838_v34, %v5776_v12 }
 0xb3d   : > { %v5757_v44 = vpop.f32.mrf.mxu0 }
 0xb3e   : > { %v5777_v35 = vadd.f32 %v5757_v44, %v5725_v54  ;;  %v5728_v54 = vadd.f32 %v12659_v62, %v5643_v20  ;;  %v6386_v20 = vld [vmem:[%s13853_s2 + $0x1e0] sm:$0xff] }
 0xb40   : > { %v5919_v39 = vpop.f32.mrf.mxu2 }
 0xb41   : > { %v5969_v4 = vpop.f32.mrf.mxu3  ;;  %v5943_v36 = vadd.f32 %v5919_v39, %v5859_v8 }
 0xb42   : > { %v5841_v38 = vpop.f32.mrf.mxu1 }
 0xb43   : > { %v5993_v10 = vadd.f32 %v5969_v4, %v5943_v36  ;;  %v5861_v13 = vadd.f32 %v5841_v38, %v5777_v35  ;;  %v5726_v4 = vadd.f32 %v12647_v53, %v5641_v27  ;;  %v5727_v53 = vadd.f32 %v12653_v11, %v5642_v0 }
 0xb45   : > { %v5760_v19 = vpop.f32.mrf.mxu0 }
 0xb46   : > { %v5778_v15 = vadd.f32 %v5760_v19, %v5726_v4 }
 0xb48   : > { %v5922_v55 = vpop.f32.mrf.mxu2 }
 0xb49   : > { %v5972_v24 = vpop.f32.mrf.mxu3  ;;  %v5944_v48 = vadd.f32 %v5922_v55, %v5860_v52 }
 0xb4a   : > { %v5844_v5 = vpop.f32.mrf.mxu1 }
 0xb4b   : > { %v5994_v36 = vadd.f32 %v5972_v24, %v5944_v48  ;;  %v5862_v38 = vadd.f32 %v5844_v5, %v5778_v15 }
 0xb4d   : > { %v12674_v14 = vpop.f32.mrf.mxu0 }
 0xb4e   : > { %v5779_v43 = vadd.f32 %v12674_v14, %v5727_v53 }
 0xb50   : > { %v5925_v59 = vpop.f32.mrf.mxu2 }
 0xb51   : > { %v5975_v8 = vpop.f32.mrf.mxu3 }
 0xb52   : > { %v5847_v44 = vpop.f32.mrf.mxu1 }
 0xb53   : > { %v5863_v52 = vadd.f32 %v5847_v44, %v5779_v43  ;;  %v6327_v43 = vld [vmem:[%s13853_s2 + $0x1d0] sm:$0xff] }
 0xb54   : > { %6358 = vmatpush.msrb.mxu2 %v6327_v43  ;;  %v371_v43 = vld [vmem:[%s13853_s2 + $0x298] sm:$0xff] }
 0xb55   : > { %v12678_v50 = vpop.f32.mrf.mxu0 }
 0xb56   : > { %v5780_v6 = vadd.f32 %v12678_v50, %v5728_v54  ;;  %v6391_v54 = vld [vmem:[%s13853_s2 + $0x1a8] sm:$0xff] }
 0xb58   : > { %v5928_v2 = vpop.f32.mrf.mxu2 }
 0xb59   : > { %v5978_v7 = vpop.f32.mrf.mxu3  ;;  %v5946_v33 = vadd.f32 %v5928_v2, %v5862_v38 }
 0xb5a   : > { %v5850_v48 = vpop.f32.mrf.mxu1 }
 0xb5b   : > { %v5996_v19 = vadd.f32 %v5978_v7, %v5946_v33  ;;  %v5864_v35 = vadd.f32 %v5850_v48, %v5780_v6  ;;  %v6505_v48 = vld [vmem:[%s13853_s2 + $0x168] sm:$0xff] }
 0xb5d   : > { %v12681_v17 = vpop.f32.mrf.mxu0 }
 0xb62   : > { %v5853_v1 = vpop.f32.mrf.mxu1 }
 0xb65   : > { %v12684_v57 = vpop.f32.mrf.mxu0 }
 0xb6a   : > { %v5856_v44 = vpop.f32.mrf.mxu1 }
 0xb6d   : > { %v6047_v26 = vpop.f32.mrf.mxu0 }
 0xb6e   : > { %v6071_v16 = vadd.f32 %v6047_v26, %v5993_v10  ;;  %v5945_v10 = vadd.f32 %v5925_v59, %v5861_v13  ;;  %v5931_v59 = vpop.f32.mrf.mxu2  ;;  %v5981_v26 = vpop.f32.mrf.mxu3  ;;  %v5537_v13 = vadd.f32 %v12670_v22, %v12643_v40 }
 0xb70   : > { %v6081_v51 = vadd.f32 %v12690_v9, %v6071_v16  ;;  %v5995_v24 = vadd.f32 %v5975_v8, %v5945_v10 }
 0xb72   : > { %v6089_v21 = vmax.f32 %v6081_v51, 0.0  ;;  %v5947_v51 = vadd.f32 %v5931_v59, %v5863_v52  ;;  %v6507_v52 = vld [vmem:[%s13853_s2 + $0x178] sm:$0xff] }
 0xb73   : > { %6522 = vmatpush.msra.mxu1 %v6507_v52 }
 0xb74   : > { %8618 = vmatmul.msk.f32.vlgmr.msrb.gmra.mxu1 %vm781_vm1, %v6089_v21  ;;  %v5997_v14 = vadd.f32 %v5981_v26, %v5947_v51  ;;  %v6387_v26 = vld [vmem:[%s13853_s2 + $0x1e8] sm:$0xff]  ;;  %v6393_v51 = vld [vmem:[%s13853_s2 + $0x1b8] sm:$0xff] }
 0xb75   : > { %v6050_v25 = vpop.f32.mrf.mxu0  ;;  %6430 = vmatpush.msra.mxu3 %v6393_v51  ;;  %v14245_v51 = vmax.f32 %v12248_v29, 0.0  ;;  %v6682_v29 = vld [vmem:[%s13853_s2 + $0x180] sm:$0xff] }
 0xb76   : > { %v6072_v39 = vadd.f32 %v6050_v25, %v5994_v36  ;;  %v5934_v11 = vpop.f32.mrf.mxu2  ;;  %v5984_v62 = vpop.f32.mrf.mxu3 }
 0xb77   : > { %v5948_v2 = vadd.f32 %v5934_v11, %v5864_v35  ;;  %v6392_v11 = vld [vmem:[%s13853_s2 + $0x1b0] sm:$0xff] }
 0xb78   : > { %v6082_v42 = vadd.f32 %v12690_v9, %v6072_v39  ;;  %v5781_v39 = vadd.f32 %v12681_v17, %v5729_v45  ;;  %6431 = vmatpush.msra.mxu3 %v6392_v11  ;;  %v6683_v11 = vld [vmem:[%s13853_s2 + $0x188] sm:$0xff] }
 0xb79   : > { %v5998_v10 = vadd.f32 %v5984_v62, %v5948_v2  ;;  %v14241_v62 = vmax.f32 %v12220_v41, 0.0 }
 0xb7a   : > { %v6090_v32 = vmax.f32 %v6082_v42, 0.0  ;;  %v5645_v42 = vadd.f32 %v12672_v37, %v5537_v13  ;;  %v5865_v4 = vadd.f32 %v5853_v1, %v5781_v39  ;;  %6432 = vmatpush.msra.mxu3 %v6391_v54  ;;  %v14242_v39 = vmax.f32 %v12226_v56, 0.0  ;;  %v6599_v54 = vld [vmem:[%s13853_s2 + $0x218] sm:$0xff] }
 0xb7c   : > { %8619 = vmatmul.msk.f32.gmra.mxu1 %vm781_vm1, %v6090_v32  ;;  %v5730_v28 = vadd.f32 %v12676_v49, %v5645_v42  ;;  %v369_v42 = vld [vmem:[%s13853_s2 + $0x288] sm:$0xff] }
 0xb7d   : > { %v6053_v34 = vpop.f32.mrf.mxu0 }
 0xb7e   : > { %v6073_v55 = vadd.f32 %v6053_v34, %v5995_v24  ;;  %v5937_v27 = vpop.f32.mrf.mxu2  ;;  %v5987_v15 = vpop.f32.mrf.mxu3  ;;  %v5782_v40 = vadd.f32 %v12684_v57, %v5730_v28  ;;  %v14243_v28 = vmax.f32 %v12232_v31, 0.0  ;;  %v370_v31 = vld [vmem:[%s13853_s2 + $0x290] sm:$0xff] }
 0xb7f   : > { %v5949_v7 = vadd.f32 %v5937_v27, %v5865_v4 }
 0xb80   : > { %v6083_v47 = vadd.f32 %v12690_v9, %v6073_v55  ;;  %v5866_v0 = vadd.f32 %v5856_v44, %v5782_v40  ;;  %v6503_v40 = vld [vmem:[%s13853_s2 + $0x238] sm:$0xff] }
 0xb81   : > { %v5999_v22 = vadd.f32 %v5987_v15, %v5949_v7 }
 0xb82   : > { %v6091_v12 = vmax.f32 %v6083_v47, 0.0 }
 0xb84   : > { %8620 = vmatmul.msk.f32.gmra.mxu1 %vm781_vm1, %v6091_v12 }
 0xb85   : > { %v6056_v3 = vpop.f32.mrf.mxu0 }
 0xb86   : > { %v6074_v16 = vadd.f32 %v6056_v3, %v5996_v19  ;;  %v5940_v17 = vpop.f32.mrf.mxu2  ;;  %v5990_v59 = vpop.f32.mrf.mxu3  ;;  %v6388_v19 = vld [vmem:[%s13853_s2 + $0x1f0] sm:$0xff]  ;;  %v6325_v3 = vld [vmem:[%s13853_s2 + $0x1c0] sm:$0xff] }
 0xb87   : > { %v5950_v37 = vadd.f32 %v5940_v17, %v5866_v0  ;;  %6472 = vmatpush.msrb.mxu0 %v6388_v19  ;;  %v6502_v0 = vld [vmem:[%s13853_s2 + $0x230] sm:$0xff] }
 0xb88   : > { %v6084_v8 = vadd.f32 %v12690_v9, %v6074_v16  ;;  %v6506_v16 = vld [vmem:[%s13853_s2 + $0x170] sm:$0xff] }
 0xb89   : > { %v6000_v47 = vadd.f32 %v5990_v59, %v5950_v37  ;;  %6473 = vmatpush.msrb.mxu0 %v6387_v26  ;;  %6523 = vmatpush.msra.mxu1 %v6506_v16  ;;  %v6685_v26 = vld [vmem:[%s13853_s2 + $0x198] sm:$0xff] }
 0xb8a   : > { %v6092_v21 = vmax.f32 %v6084_v8, 0.0  ;;  %v6504_v8 = vld [vmem:[%s13853_s2 + $0x160] sm:$0xff] }
 0xb8b   : > { %6474 = vmatpush.msrb.mxu0 %v6386_v20  ;;  %6524 = vmatpush.msra.mxu1 %v6505_v48 }
 0xb8c   : > { %8621 = vmatmul.msk.f32.gmra.mxu1 %vm781_vm1, %v6092_v21  ;;  %v6390_v21 = vld [vmem:[%s13853_s2 + $0x1a0] sm:$0xff] }
 0xb8d   : > { %v6059_v5 = vpop.f32.mrf.mxu0  ;;  %6525 = vmatpush.msra.mxu1 %v6504_v8  ;;  %6433 = vmatpush.msra.mxu3 %v6390_v21 }
 0xb8e   : > { %v6075_v36 = vadd.f32 %v6059_v5, %v5997_v14 }
 0xb8f   : > { %6698 = vmatpush.msrb.mxu1 %v6685_v26  ;;  %8789 = vmatpush.msrb.mxu3 %v6599_v54 }
 0xb90   : > { %v6085_v25 = vadd.f32 %v12690_v9, %v6075_v36 }
 0xb92   : > { %v6093_v50 = vmax.f32 %v6085_v25, 0.0 }
 0xb94   : > { %8622 = vmatmul.msk.f32.gmra.mxu1 %vm781_vm1, %v6093_v50 }
 0xb95   : > { %v6062_v23 = vpop.f32.mrf.mxu0 }
 0xb96   : > { %v6076_v32 = vadd.f32 %v6062_v23, %v5998_v10 }
 0xb98   : > { %v6086_v61 = vadd.f32 %v12690_v9, %v6076_v32 }
 0xb9a   : > { %v6094_v24 = vmax.f32 %v6086_v61, 0.0 }
 0xb9c   : > { %8623 = vmatmul.msk.f32.gmra.mxu1 %vm781_vm1, %v6094_v24 }
 0xb9d   : > { %v6065_v34 = vpop.f32.mrf.mxu0 }
 0xb9e   : > { %v6077_v38 = vadd.f32 %v6065_v34, %v5999_v22  ;;  %v6595_v34 = vld [vmem:[%s13853_s2 + $0x258] sm:$0xff] }
 0xb9f   : > { %6653 = vmatpush.msra.mxu0 %v6595_v34 }
 0xba0   : > { %v6087_v55 = vadd.f32 %v12690_v9, %v6077_v38  ;;  %v6594_v38 = vld [vmem:[%s13853_s2 + $0x250] sm:$0xff] }
 0xba1   : > { %6654 = vmatpush.msra.mxu0 %v6594_v38 }
 0xba2   : > { %v6095_v33 = vmax.f32 %v6087_v55, 0.0 }
 0xba4   : > { %8624 = vmatmul.msk.f32.gmra.mxu1 %vm781_vm1, %v6095_v33 }
 0xba5   : > { %v6068_v49 = vpop.f32.mrf.mxu0 }
 0xba6   : > { %v6078_v53 = vadd.f32 %v6068_v49, %v6000_v47  ;;  %v14244_v47 = vmax.f32 %v12242_v18, 0.0  ;;  %v6500_v18 = vld [vmem:[%s13853_s2 + $0x220] sm:$0xff] }
 0xba8   : > { %v6088_v12 = vadd.f32 %v12690_v9, %v6078_v53  ;;  %v6326_v9 = vld [vmem:[%s13853_s2 + $0x1c8] sm:$0xff] }
 0xba9   : > { %6359 = vmatpush.msrb.mxu2 %v6326_v9  ;;  %v6501_v53 = vld [vmem:[%s13853_s2 + $0x228] sm:$0xff] }
 0xbaa   : > { %v6096_v57 = vmax.f32 %v6088_v12, 0.0  ;;  %v6593_v12 = vld [vmem:[%s13853_s2 + $0x248] sm:$0xff] }
 0xbab   : > { %6360 = vmatpush.msrb.mxu2 %v6325_v3  ;;  %6655 = vmatpush.msra.mxu0 %v6593_v12  ;;  %v6684_v3 = vld [vmem:[%s13853_s2 + $0x190] sm:$0xff] }
 0xbac   : > { %8625 = vmatmul.msk.f32.gmra.mxu1 %vm781_vm1, %v6096_v57 }
 0xbad   : > { %6563 = vmatpush.msra.mxu2 %v6503_v40  ;;  %6656 = vmatpush.msra.mxu0 %v6592_v58 }
 0xbae   : > { %6699 = vmatpush.msrb.mxu1 %v6684_v3 }
 0xbaf   : > { %6564 = vmatpush.msra.mxu2 %v6502_v0 }
 0xbb0   : > { %6700 = vmatpush.msrb.mxu1 %v6683_v11 }
 0xbb1   : > { %6565 = vmatpush.msra.mxu2 %v6501_v53 }
 0xbb2   : > { %6701 = vmatpush.msrb.mxu1 %v6682_v29 }
 0xbb3   : > { %6566 = vmatpush.msra.mxu2 %v6500_v18 }
 0xbf1   : > { %v6141_v6 = vpop.f32.mrf.mxu1 }
 0xbf2   : > { %v6142_v14 = vadd.f32 %v12782_v63, %v6141_v6  ;;  %v372_v6 = vld [vmem:[%s13853_s2 + $0x2a0] sm:$0xff] }
 0xbf4   : > { %v6165_v5 = vadd.f32 %v6142_v14, %v14240_v60  ;;  %v6598_v60 = vld [vmem:[%s13853_s2 + $0x210] sm:$0xff] }
 0xbf5   : > { %8790 = vmatpush.msrb.mxu3 %v6598_v60 }
 0xbf6   : > { %v12787_v30 = vmax.f32 %v6165_v5, 0.0 }
 0xbf8   : > { %8626 = vmatmul.msk.f32.vlgmr.msrb.gmra.mxu2 %vm384_vm0, %v12787_v30  ;;  %8642 = vmatmul.msk.f32.vlgmr.msrb.gmra.mxu0 %vm384_vm0, %v12787_v30  ;;  %v6285_v1 = vrot.slane %v12787_v30, 1 }
 0xbf9   : > { %v6144_v35 = vpop.f32.mrf.mxu1  ;;  %6612 = vmatpush.msrb.mxu2 %v6599_v54 }
 0xbfa   : > { %v6145_v36 = vadd.f32 %v12782_v63, %v6144_v35  ;;  %v6597_v35 = vld [vmem:[%s13853_s2 + $0x208] sm:$0xff] }
 0xbfb   : > { %6613 = vmatpush.msrb.mxu2 %v6598_v60  ;;  %8791 = vmatpush.msrb.mxu3 %v6597_v35 }
 0xbfc   : > { %v6166_v2 = vadd.f32 %v6145_v36, %v14241_v62 }
 0xbfd   : > { %6614 = vmatpush.msrb.mxu2 %v6597_v35 }
 0xbfe   : > { %v12796_v25 = vmax.f32 %v6166_v2, 0.0 }
 0xc00   : > { %8627 = vmatmul.msk.f32.gmra.mxu2 %vm384_vm0, %v12796_v25  ;;  %8643 = vmatmul.msk.f32.gmra.mxu0 %vm384_vm0, %v12796_v25  ;;  %v6286_v45 = vrot.slane %v12796_v25, 1 }
 0xc01   : > { %8650 = vmatmul.msk.f32.vlgmr.msra.gmra.mxu1 %vm384_vm0, %v12796_v25  ;;  %v6147_v41 = vpop.f32.mrf.mxu1 }
 0xc02   : > { %v6148_v50 = vadd.f32 %v12782_v63, %v6147_v41  ;;  %v6287_v27 = vsel %vm1168_vm3, %v6285_v1, %v6286_v45  ;;  %v6596_v1 = vld [vmem:[%s13853_s2 + $0x200] sm:$0xff] }
 0xc03   : > { %v12811_v13 = vmul.f32 %v6287_v27, %v368_v46  ;;  %8792 = vmatpush.msrb.mxu3 %v6596_v1  ;;  %6615 = vmatpush.msrb.mxu2 %v6596_v1 }
 0xc04   : > { %v6167_v10 = vadd.f32 %v6148_v50, %v14242_v39  ;;  %v373_v39 = vld [vmem:[%s13853_s2 + $0x2a8] sm:$0xff] }
 0xc05   : > { %8634 = vmatmul.msk.f32.vlgmr.msra.gmra.mxu3 %vm384_vm0, %v12811_v13 }
 0xc06   : > { %v12817_v23 = vmax.f32 %v6167_v10, 0.0 }
 0xc08   : > { %8628 = vmatmul.msk.f32.gmra.mxu2 %vm384_vm0, %v12817_v23  ;;  %8644 = vmatmul.msk.f32.gmra.mxu0 %vm384_vm0, %v12817_v23  ;;  %v6288_v4 = vrot.slane %v12817_v23, 1 }
 0xc09   : > { %8651 = vmatmul.msk.f32.gmra.mxu1 %vm384_vm0, %v12817_v23  ;;  %v6150_v56 = vpop.f32.mrf.mxu1 }
 0xc0a   : > { %v6151_v32 = vadd.f32 %v12782_v63, %v6150_v56  ;;  %v6289_v7 = vsel %vm1168_vm3, %v6286_v45, %v6288_v4  ;;  %v14246_v45 = vld [vmem:[#allocation85_spill] sm:$0xff] }
 0xc0b   : > { %v12831_v61 = vmul.f32 %v6289_v7, %v369_v42  ;;  %v12833_v15 = vmul.f32 %v6289_v7, %v368_v46  ;;  %v14247_v41 = vmax.f32 %v14246_v45, 0.0 }
 0xc0c   : > { %v6168_v24 = vadd.f32 %v6151_v32, %v14243_v28  ;;  %v14248_v28 = vld [vmem:[#allocation87_spill] sm:$0xff] }
 0xc0d   : > { %8635 = vmatmul.msk.f32.gmra.mxu3 %vm384_vm0, %v12831_v61 }
 0xc0e   : > { %v12839_v44 = vmax.f32 %v6168_v24, 0.0  ;;  %v14249_v24 = vmax.f32 %v14248_v28, 0.0 }
 0xc10   : > { %8629 = vmatmul.msk.f32.gmra.mxu2 %vm384_vm0, %v12839_v44  ;;  %8645 = vmatmul.msk.f32.gmra.mxu0 %vm384_vm0, %v12839_v44  ;;  %v6290_v22 = vrot.slane %v12839_v44, 1 }
 0xc11   : > { %8652 = vmatmul.msk.f32.gmra.mxu1 %vm384_vm0, %v12839_v44  ;;  %v6153_v17 = vpop.f32.mrf.mxu1 }
 0xc12   : > { %v6154_v37 = vadd.f32 %v12782_v63, %v6153_v17  ;;  %v6291_v55 = vsel %vm1168_vm3, %v6288_v4, %v6290_v22 }
 0xc13   : > { %v12865_v59 = vmul.f32 %v6291_v55, %v370_v31  ;;  %v12867_v33 = vmul.f32 %v6291_v55, %v369_v42  ;;  %v12983_v55 = vld [vmem:[%s13853_s2 + $0x2b8] sm:$0xff] }
 0xc14   : > { %v6169_v49 = vadd.f32 %v6154_v37, %v14244_v47  ;;  %v14250_v47 = vmov 0.0   ;;  %v6324_v45 = vmul.f32 0.0, %v12983_v55 }
 0xc15   : > { %8636 = vmatmul.msk.f32.gmra.mxu3 %vm384_vm0, %v12865_v59 }
 0xc16   : > { %v12879_v57 = vmax.f32 %v6169_v49, 0.0 }
 0xc18   : > { %8630 = vmatmul.msk.f32.gmra.mxu2 %vm384_vm0, %v12879_v57  ;;  %8646 = vmatmul.msk.f32.gmra.mxu0 %vm384_vm0, %v12879_v57  ;;  %v6292_v19 = vrot.slane %v12879_v57, 1 }
 0xc19   : > { %8653 = vmatmul.msk.f32.gmra.mxu1 %vm384_vm0, %v12879_v57  ;;  %v6156_v9 = vpop.f32.mrf.mxu1 }
 0xc1a   : > { %v6157_v20 = vadd.f32 %v12782_v63, %v6156_v9  ;;  %v6293_v52 = vsel %vm1168_vm3, %v6290_v22, %v6292_v19  ;;  %v374_v22 = vld [vmem:[%s13853_s2 + $0x2b0] sm:$0xff] }
 0xc1b   : > { %v12905_v16 = vmul.f32 %v6293_v52, %v371_v43  ;;  %v12907_v48 = vmul.f32 %v6293_v52, %v370_v31 }
 0xc1c   : > { %v6170_v8 = vadd.f32 %v6157_v20, %v14245_v51 }
 0xc1d   : > { %8637 = vmatmul.msk.f32.gmra.mxu3 %vm384_vm0, %v12905_v16 }
 0xc1e   : > { %v12919_v21 = vmax.f32 %v6170_v8, 0.0 }
 0xc20   : > { %8631 = vmatmul.msk.f32.gmra.mxu2 %vm384_vm0, %v12919_v21  ;;  %8647 = vmatmul.msk.f32.gmra.mxu0 %vm384_vm0, %v12919_v21  ;;  %v6294_v14 = vrot.slane %v12919_v21, 1 }
 0xc21   : > { %8654 = vmatmul.msk.f32.gmra.mxu1 %vm384_vm0, %v12919_v21  ;;  %v6159_v5 = vpop.f32.mrf.mxu1 }
 0xc22   : > { %v6160_v36 = vadd.f32 %v12782_v63, %v6159_v5  ;;  %v6295_v62 = vsel %vm1168_vm3, %v6292_v19, %v6294_v14 }
 0xc23   : > { %v6313_v2 = vmul.f32 %v6295_v62, %v372_v6  ;;  %v12945_v46 = vmul.f32 %v6295_v62, %v371_v43 }
 0xc24   : > { %v6171_v50 = vadd.f32 %v6160_v36, %v14247_v41 }
 0xc25   : > { %8638 = vmatmul.msk.f32.gmra.mxu3 %vm384_vm0, %v6313_v2 }
 0xc26   : > { %v6179_v27 = vmax.f32 %v6171_v50, 0.0 }
 0xc28   : > { %8632 = vmatmul.msk.f32.gmra.mxu2 %vm384_vm0, %v6179_v27  ;;  %8648 = vmatmul.msk.f32.gmra.mxu0 %vm384_vm0, %v6179_v27  ;;  %v6296_v10 = vrot.slane %v6179_v27, 1 }
 0xc29   : > { %8655 = vmatmul.msk.f32.gmra.mxu1 %vm384_vm0, %v6179_v27  ;;  %v6162_v42 = vpop.f32.mrf.mxu1 }
 0xc2a   : > { %v6163_v4 = vadd.f32 %v12782_v63, %v6162_v42  ;;  %v6297_v56 = vsel %vm1168_vm3, %v6294_v14, %v6296_v10 }
 0xc2b   : > { %v6314_v32 = vmul.f32 %v6297_v56, %v373_v39  ;;  %v12958_v7 = vmul.f32 %v6297_v56, %v372_v6 }
 0xc2c   : > { %v6172_v40 = vadd.f32 %v6163_v4, %v14249_v24 }
 0xc2d   : > { %8639 = vmatmul.msk.f32.gmra.mxu3 %vm384_vm0, %v6314_v32 }
 0xc2e   : > { %v6180_v31 = vmax.f32 %v6172_v40, 0.0 }
 0xc30   : > { %8633 = vmatmul.msk.f32.gmra.mxu2 %vm384_vm0, %v6180_v31  ;;  %8649 = vmatmul.msk.f32.gmra.mxu0 %vm384_vm0, %v6180_v31  ;;  %v6298_v63 = vrot.slane %v6180_v31, 1 }
 0xc31   : > { %8656 = vmatmul.msk.f32.gmra.mxu1 %vm384_vm0, %v6180_v31 }
 0xc32   : > { %v6299_v17 = vsel %vm1168_vm3, %v6296_v10, %v6298_v63  ;;  %v6308_v34 = vsel %vm1168_vm3, %v6298_v63, 0.0 }
 0xc33   : > { %v6315_v0 = vmul.f32 %v6299_v17, %v374_v22  ;;  %v12971_v38 = vmul.f32 %v6299_v17, %v373_v39  ;;  %v12973_v37 = vmul.f32 %v6308_v34, %v374_v22  ;;  %v6316_v49 = vmul.f32 %v6308_v34, %v12983_v55 }
 0xc35   : > { %8640 = vmatmul.msk.f32.gmra.mxu3 %vm384_vm0, %v6315_v0 }
 0xc38   : > { %8657 = vmatmul.msk.f32.vlgmr.msra.gmra.mxu2 %vm384_vm0, %v12787_v30  ;;  %8673 = vmatmul.msk.f32.vlgmr.msra.gmra.mxu0 %vm384_vm0, %v12787_v30  ;;  %v6738_v30 = vld [vmem:[%s13853_s2 + $0x158] sm:$0xff] }
 0xc39   : > { %6547 = vmatmul.f32.gmra.mxu1 %v14250_v47  ;;  %6775 = vmatpush.msra.mxu2 %v6738_v30 }
 0xc3d   : > { %8641 = vmatmul.msk.f32.gmra.mxu3 %vm384_vm0, %v6316_v49 }
 0xc40   : > { %8658 = vmatmul.msk.f32.gmra.mxu2 %vm384_vm0, %v12796_v25  ;;  %8674 = vmatmul.msk.f32.gmra.mxu0 %vm384_vm0, %v12796_v25 }
 0xc41   : > { %8681 = vmatmul.msk.f32.vlgmr.msrb.gmra.mxu1 %vm384_vm0, %v12796_v25  ;;  %v6737_v25 = vld [vmem:[%s13853_s2 + $0x150] sm:$0xff] }
 0xc42   : > { %6776 = vmatpush.msra.mxu2 %v6737_v25 }
 0xc45   : > { %8669 = vmatmul.msk.f32.vlgmr.msrb.gmra.mxu3 %vm384_vm0, %v6313_v2 }
 0xc48   : > { %8659 = vmatmul.msk.f32.gmra.mxu2 %vm384_vm0, %v12817_v23  ;;  %8675 = vmatmul.msk.f32.gmra.mxu0 %vm384_vm0, %v12817_v23 }
 0xc49   : > { %8682 = vmatmul.msk.f32.gmra.mxu1 %vm384_vm0, %v12817_v23  ;;  %v6736_v23 = vld [vmem:[%s13853_s2 + $0x148] sm:$0xff] }
 0xc4a   : > { %6777 = vmatpush.msra.mxu2 %v6736_v23 }
 0xc4d   : > { %8670 = vmatmul.msk.f32.gmra.mxu3 %vm384_vm0, %v6314_v32 }
 0xc50   : > { %8660 = vmatmul.msk.f32.gmra.mxu2 %vm384_vm0, %v12839_v44  ;;  %8676 = vmatmul.msk.f32.gmra.mxu0 %vm384_vm0, %v12839_v44 }
 0xc51   : > { %8683 = vmatmul.msk.f32.gmra.mxu1 %vm384_vm0, %v12839_v44  ;;  %v6735_v44 = vld [vmem:[%s13853_s2 + $0x140] sm:$0xff] }
 0xc52   : > { %6778 = vmatpush.msra.mxu2 %v6735_v44 }
 0xc55   : > { %8671 = vmatmul.msk.f32.gmra.mxu3 %vm384_vm0, %v6315_v0 }
 0xc58   : > { %8661 = vmatmul.msk.f32.gmra.mxu2 %vm384_vm0, %v12879_v57  ;;  %8677 = vmatmul.msk.f32.gmra.mxu0 %vm384_vm0, %v12879_v57 }
 0xc59   : > { %8684 = vmatmul.msk.f32.gmra.mxu1 %vm384_vm0, %v12879_v57 }
 0xc5d   : > { %8672 = vmatmul.msk.f32.gmra.mxu3 %vm384_vm0, %v6316_v49 }
 0xc60   : > { %8662 = vmatmul.msk.f32.gmra.mxu2 %vm384_vm0, %v12919_v21  ;;  %8678 = vmatmul.msk.f32.gmra.mxu0 %vm384_vm0, %v12919_v21 }
 0xc61   : > { %8685 = vmatmul.msk.f32.gmra.mxu1 %vm384_vm0, %v12919_v21 }
 0xc68   : > { %8663 = vmatmul.msk.f32.gmra.mxu2 %vm384_vm0, %v6179_v27  ;;  %8679 = vmatmul.msk.f32.gmra.mxu0 %vm384_vm0, %v6179_v27 }
 0xc69   : > { %8686 = vmatmul.msk.f32.gmra.mxu1 %vm384_vm0, %v6179_v27 }
 0xc70   : > { %8664 = vmatmul.msk.f32.gmra.mxu2 %vm384_vm0, %v6180_v31  ;;  %8680 = vmatmul.msk.f32.gmra.mxu0 %vm384_vm0, %v6180_v31 }
 0xc71   : > { %8687 = vmatmul.msk.f32.gmra.mxu1 %vm384_vm0, %v6180_v31 }
 0xc75   : > { %v6476_v53 = vpop.f32.mrf.mxu0 }
 0xc78   : > { %8665 = vmatmul.msk.f32.vlgmr.msrb.gmra.mxu2 %vm384_vm0, %v12811_v13 }
 0xc79   : > { %6723 = vmatmul.f32.gmra.mxu1 %v14250_v47 }
 0xc7b   : > { %v13043_v12 = vpop.f32.mrf.mxu2 }
 0xc7d   : > { %v6479_v18 = vpop.f32.mrf.mxu0 }
 0xc7e   : > { %v13063_v29 = vpop.f32.mrf.mxu1 }
 0xc80   : > { %8666 = vmatmul.msk.f32.gmra.mxu2 %vm384_vm0, %v12831_v61 }
 0xc83   : > { %v13047_v57 = vpop.f32.mrf.mxu2 }
 0xc85   : > { %v6482_v19 = vpop.f32.mrf.mxu0 }
 0xc86   : > { %v13069_v60 = vpop.f32.mrf.mxu1 }
 0xc88   : > { %v6435_v58 = vpop.f32.mrf.mxu3  ;;  %8667 = vmatmul.msk.f32.gmra.mxu2 %vm384_vm0, %v12865_v59 }
 0xc89   : > { %v6477_v27 = vadd.f32 %v6476_v53, %v6435_v58 }
 0xc8b   : > { %v6368_v43 = vpop.f32.mrf.mxu2 }
 0xc8d   : > { %v6485_v26 = vpop.f32.mrf.mxu0 }
 0xc8e   : > { %v13078_v41 = vpop.f32.mrf.mxu1 }
 0xc90   : > { %v6438_v9 = vpop.f32.mrf.mxu3  ;;  %8668 = vmatmul.msk.f32.gmra.mxu2 %vm384_vm0, %v12905_v16 }
 0xc91   : > { %v6480_v50 = vadd.f32 %v6479_v18, %v6438_v9 }
 0xc93   : > { %v6371_v13 = vpop.f32.mrf.mxu2 }
 0xc95   : > { %v6488_v52 = vpop.f32.mrf.mxu0 }
 0xc96   : > { %v13083_v10 = vpop.f32.mrf.mxu1 }
 0xc98   : > { %v6441_v3 = vpop.f32.mrf.mxu3  ;;  %8688 = vmatmul.msk.f32.vlgmr.msra.gmra.mxu2 %vm384_vm0, %v12833_v15 }
 0xc99   : > { %v6483_v1 = vadd.f32 %v6482_v19, %v6441_v3 }
 0xc9b   : > { %v6374_v61 = vpop.f32.mrf.mxu2 }
 0xc9d   : > { %v6491_v11 = vpop.f32.mrf.mxu0 }
 0xc9e   : > { %v13088_v4 = vpop.f32.mrf.mxu1 }
 0xca0   : > { %v6444_v20 = vpop.f32.mrf.mxu3  ;;  %8689 = vmatmul.msk.f32.gmra.mxu2 %vm384_vm0, %v12867_v33 }
 0xca1   : > { %v6486_v2 = vadd.f32 %v6485_v26, %v6444_v20 }
 0xca3   : > { %v6377_v51 = vpop.f32.mrf.mxu2 }
 0xca5   : > { %v6494_v21 = vpop.f32.mrf.mxu0 }
 0xca6   : > { %v13093_v32 = vpop.f32.mrf.mxu1 }
 0xca8   : > { %v6447_v59 = vpop.f32.mrf.mxu3  ;;  %8690 = vmatmul.msk.f32.gmra.mxu2 %vm384_vm0, %v12907_v48 }
 0xca9   : > { %v6489_v62 = vadd.f32 %v6488_v52, %v6447_v59 }
 0xcab   : > { %v6380_v8 = vpop.f32.mrf.mxu2 }
 0xcad   : > { %v6497_v6 = vpop.f32.mrf.mxu0 }
 0xcae   : > { %v13099_v24 = vpop.f32.mrf.mxu1 }
 0xcb0   : > { %v6450_v16 = vpop.f32.mrf.mxu3  ;;  %8691 = vmatmul.msk.f32.gmra.mxu2 %vm384_vm0, %v12945_v46 }
 0xcb1   : > { %v6492_v36 = vadd.f32 %v6491_v11, %v6450_v16 }
 0xcb3   : > { %v6383_v54 = vpop.f32.mrf.mxu2 }
 0xcb5   : > { %v6658_v63 = vpop.f32.mrf.mxu0 }
 0xcb6   : > { %v13101_v31 = vpop.f32.mrf.mxu1 }
 0xcb8   : > { %v6453_v15 = vpop.f32.mrf.mxu3  ;;  %8692 = vmatmul.msk.f32.gmra.mxu2 %vm384_vm0, %v12958_v7 }
 0xcb9   : > { %v6495_v5 = vadd.f32 %v6494_v21, %v6453_v15 }
 0xcbb   : > { %v13065_v33 = vpop.f32.mrf.mxu2 }
 0xcbd   : > { %v6661_v0 = vpop.f32.mrf.mxu0 }
 0xcbe   : > { %v6703_v17 = vpop.f32.mrf.mxu1 }
 0xcc0   : > { %v6456_v14 = vpop.f32.mrf.mxu3  ;;  %8693 = vmatmul.msk.f32.gmra.mxu2 %vm384_vm0, %v12971_v38 }
 0xcc1   : > { %v6498_v48 = vadd.f32 %v6497_v6, %v6456_v14 }
 0xcc3   : > { %v13071_v35 = vpop.f32.mrf.mxu2  ;;  %6814 = vmatpush.msra.mxu3 %v6498_v48 }
 0xcc5   : > { %6815 = vmatpush.msra.mxu3 %v6495_v5  ;;  %v6664_v49 = vpop.f32.mrf.mxu0 }
 0xcc6   : > { %v6706_v38 = vpop.f32.mrf.mxu1 }
 0xcc7   : > { %6816 = vmatpush.msra.mxu3 %v6492_v36 }
 0xcc8   : > { %8694 = vmatmul.msk.f32.gmra.mxu2 %vm384_vm0, %v12973_v37  ;;  %v6629_v58 = vpop.f32.mrf.mxu3 }
 0xcc9   : > { %6817 = vmatpush.msra.mxu3 %v6489_v62 }
 0xccb   : > { %v13075_v46 = vpop.f32.mrf.mxu2  ;;  %6818 = vmatpush.msra.mxu3 %v6486_v2  ;;  %v6182_v2 = vld [vmem:[%s13855_s4 + $0x48] sm:$0xff] }
 0xccd   : > { %6819 = vmatpush.msra.mxu3 %v6483_v1  ;;  %v6667_v53 = vpop.f32.mrf.mxu0  ;;  %v6215_v1 = vunpack.c.l.bf16 %v6182_v2 }
 0xcce   : > { %v6709_v23 = vpop.f32.mrf.mxu1 }
 0xccf   : > { %6820 = vmatpush.msra.mxu3 %v6480_v50 }
 0xcd0   : > { %8695 = vmatmul.msk.f32.gmra.mxu2 %vm384_vm0, %v6324_v45 }
 0xcd1   : > { %6821 = vmatpush.msra.mxu3 %v6477_v27 }
 0xcd3   : > { %v13081_v39 = vpop.f32.mrf.mxu2  ;;  %6822 = vmatpush.msra.mxu3 %v6383_v54 }
 0xcd5   : > { %6823 = vmatpush.msra.mxu3 %v6380_v8  ;;  %v6670_v18 = vpop.f32.mrf.mxu0  ;;  %v13108_v8 = vld [vmem:[%s13855_s4 + $0x40] sm:$0xff] }
 0xcd6   : > { %v6213_v16 = vunpack.c.l.bf16 %v13108_v8  ;;  %v6671_v45 = vadd.f32 %v6670_v18, %v6629_v58 }
 0xcd7   : > { %6824 = vmatpush.msra.mxu3 %v6377_v51 }
 0xcd9   : > { %6825 = vmatpush.msra.mxu3 %v6374_v61 }
 0xcdb   : > { %v13085_v42 = vpop.f32.mrf.mxu2  ;;  %6826 = vmatpush.msra.mxu3 %v6371_v13  ;;  %v6632_v13 = vpop.f32.mrf.mxu3 }
 0xcdd   : > { %6827 = vmatpush.msra.mxu3 %v6368_v43  ;;  %v6673_v9 = vpop.f32.mrf.mxu0 }
 0xcde   : > { %v6674_v5 = vadd.f32 %v6673_v9, %v6632_v13 }
 0xcdf   : > { %6828 = vmatpush.msra.mxu3 %v13047_v57 }
 0xce1   : > { %6829 = vmatpush.msra.mxu3 %v13043_v12  ;;  %v6712_v12 = vpop.f32.mrf.mxu1 }
 0xce2   : > { %6830 = vmatmul.f32.vlgmr.msra.gmra.mxu3 %v6213_v16 }
 0xce3   : > { %v13091_v56 = vpop.f32.mrf.mxu2  ;;  %v6635_v52 = vpop.f32.mrf.mxu3 }
 0xce5   : > { %v6676_v61 = vpop.f32.mrf.mxu0 }
 0xce6   : > { %v6677_v6 = vadd.f32 %v6676_v61, %v6635_v52 }
 0xce9   : > { %v6715_v43 = vpop.f32.mrf.mxu1 }
 0xcea   : > { %6833 = vmatmul.f32.gmra.mxu3 %v6215_v1 }
 0xceb   : > { %v13095_v7 = vpop.f32.mrf.mxu2  ;;  %v6638_v54 = vpop.f32.mrf.mxu3 }
 0xced   : > { %v6679_v11 = vpop.f32.mrf.mxu0 }
 0xcee   : > { %v6680_v15 = vadd.f32 %v6679_v11, %v6638_v54  ;;  %v6194_v54 = vld [vmem:[%s13855_s4 + $0xa8] sm:$0xff] }
 0xcf1   : > { %v6718_v26 = vpop.f32.mrf.mxu1 }
 0xcf2   : > { %v6732_v50 = vadd.f32 %v6718_v26, %v6674_v5  ;;  %v6196_v5 = vld [vmem:[%s13855_s4 + $0xb8] sm:$0xff] }
 0xcf3   : > { %v13097_v28 = vpop.f32.mrf.mxu2 }
 0xcf9   : > { %v6721_v51 = vpop.f32.mrf.mxu1 }
 0xcfa   : > { %v6733_v36 = vadd.f32 %v6721_v51, %v6677_v6  ;;  %v6195_v6 = vld [vmem:[%s13855_s4 + $0xb0] sm:$0xff] }
 0xcfb   : > { %v6617_v40 = vpop.f32.mrf.mxu2 }
 0xcfc   : > { %v6659_v55 = vadd.f32 %v6658_v63, %v6617_v40  ;;  %v6731_v63 = vadd.f32 %v6715_v43, %v6671_v45 }
 0xcfe   : > { %v6727_v47 = vadd.f32 %v6703_v17, %v6659_v55 }
 0xd01   : > { %v6724_v21 = vpop.f32.mrf.mxu1 }
 0xd02   : > { %v6734_v14 = vadd.f32 %v6724_v21, %v6680_v15  ;;  %v6239_v15 = vunpack.c.l.bf16 %v6194_v54 }
 0xd03   : > { %v6620_v22 = vpop.f32.mrf.mxu2 }
 0xd0b   : > { %v6623_v34 = vpop.f32.mrf.mxu2 }
 0xd0c   : > { %v6665_v17 = vadd.f32 %v6664_v49, %v6623_v34  ;;  %v6184_v34 = vld [vmem:[%s13855_s4 + $0x58] sm:$0xff] }
 0xd0d   : > { %v6219_v49 = vunpack.c.l.bf16 %v6184_v34 }
 0xd0e   : > { %v6729_v52 = vadd.f32 %v6709_v23, %v6665_v17  ;;  %v6185_v23 = vld [vmem:[%s13855_s4 + $0x60] sm:$0xff]  ;;  %v6240_v17 = vunpack.c.h.bf16 %v6194_v54 }
 0xd13   : > { %v6626_v37 = vpop.f32.mrf.mxu2 }
 0xd14   : > { %v6668_v27 = vadd.f32 %v6667_v53, %v6626_v37 }
 0xd16   : > { %v6730_v9 = vadd.f32 %v6712_v12, %v6668_v27  ;;  %v6190_v12 = vld [vmem:[%s13855_s4 + $0x88] sm:$0xff] }
 0xd17   : > { %v6231_v43 = vunpack.c.l.bf16 %v6190_v12 }
 0xd1b   : > { %v6780_v30 = vpop.f32.mrf.mxu2 }
 0xd1c   : > { %v13103_v25 = vadd.f32 %v6780_v30, %v6727_v47  ;;  %v6183_v47 = vld [vmem:[%s13855_s4 + $0x50] sm:$0xff]  ;;  %v6662_v30 = vadd.f32 %v6661_v0, %v6620_v22  ;;  %v6590_v22 = vadd.f32 %v13097_v28, %v13101_v31  ;;  %v6587_v0 = vadd.f32 %v13095_v7, %v13099_v24 }
 0xd1d   : > { %v6217_v61 = vunpack.c.l.bf16 %v6183_v47  ;;  %v6221_v28 = vunpack.c.l.bf16 %v6185_v23  ;;  %v6578_v31 = vadd.f32 %v13081_v39, %v13083_v10  ;;  %v6575_v7 = vadd.f32 %v13075_v46, %v13078_v41  ;;  %v6187_v46 = vld [vmem:[%s13855_s4 + $0x70] sm:$0xff]  ;;  %v6188_v41 = vld [vmem:[%s13855_s4 + $0x78] sm:$0xff] }
 0xd1e   : > { %v6728_v37 = vadd.f32 %v6706_v38, %v6662_v30  ;;  %v6584_v38 = vadd.f32 %v13091_v56, %v13093_v32  ;;  %v6572_v56 = vadd.f32 %v13071_v35, %v13069_v60  ;;  %v6186_v32 = vld [vmem:[%s13855_s4 + $0x68] sm:$0xff]  ;;  %v6216_v60 = vunpack.c.h.bf16 %v6182_v2  ;;  %v6197_v2 = vld [vmem:[%s13855_s4 + $0xc0] sm:$0xff] }
 0xd1f   : > { %6836 = vmatmul.f32.gmra.mxu3 %v6217_v61  ;;  %v6223_v39 = vunpack.c.l.bf16 %v6186_v32  ;;  %v6225_v35 = vunpack.c.l.bf16 %v6187_v46  ;;  %v6218_v10 = vunpack.c.h.bf16 %v6183_v47  ;;  %v6227_v24 = vunpack.c.l.bf16 %v6188_v41  ;;  %v6199_v47 = vld [vmem:[%s13855_s4 + $0xd0] sm:$0xff]  ;;  %v13186_v61 = vld [vmem:[%s13855_s4 + $0xd8] sm:$0xff] }
 0xd20   : > { %v6224_v26 = vunpack.c.h.bf16 %v6186_v32  ;;  %v6226_v51 = vunpack.c.h.bf16 %v6187_v46  ;;  %v6228_v11 = vunpack.c.h.bf16 %v6188_v41  ;;  %v6245_v45 = vunpack.c.l.bf16 %v6197_v2 }
 0xd21   : > { %v6249_v30 = vunpack.c.l.bf16 %v6199_v47 }
 0xd23   : > { %v6783_v44 = vpop.f32.mrf.mxu2 }
 0xd24   : > { %v6805_v58 = vadd.f32 %v6783_v44, %v6728_v37  ;;  %v6581_v44 = vadd.f32 %v13085_v42, %v13088_v4  ;;  %v6214_v42 = vunpack.c.h.bf16 %v13108_v8  ;;  %v6569_v4 = vadd.f32 %v13065_v33, %v13063_v29  ;;  %v6189_v29 = vld [vmem:[%s13855_s4 + $0x80] sm:$0xff]  ;;  %v13192_v37 = vld [vmem:[%s13854_s3 + $0xd] ss:$0 sm:$0xff] }
 0xd25   : > { %v6220_v33 = vunpack.c.h.bf16 %v6184_v34  ;;  %v6193_v8 = vld [vmem:[%s13855_s4 + $0xa0] sm:$0xff]  ;;  %v6230_v21 = vunpack.c.h.bf16 %v6189_v29 }
 0xd26   : > { %v6237_v16 = vunpack.c.l.bf16 %v6193_v8 }
 0xd27   : > { %6839 = vmatmul.f32.gmra.mxu3 %v6219_v49 }
 0xd2b   : > { %v6786_v57 = vpop.f32.mrf.mxu2 }
 0xd2c   : > { %v6806_v53 = vadd.f32 %v6786_v57, %v6729_v52  ;;  %v6222_v57 = vunpack.c.h.bf16 %v6185_v23  ;;  %v6251_v52 = vunpack.c.l.bf16 %v13186_v61 }
 0xd2f   : > { %6842 = vmatmul.f32.gmra.mxu3 %v6221_v28 }
 0xd33   : > { %v6789_v19 = vpop.f32.mrf.mxu2 }
 0xd34   : > { %v6807_v18 = vadd.f32 %v6789_v19, %v6730_v9  ;;  %v6191_v19 = vld [vmem:[%s13855_s4 + $0x90] sm:$0xff]  ;;  %v6242_v9 = vunpack.c.h.bf16 %v6195_v6 }
 0xd37   : > { %6845 = vmatmul.f32.gmra.mxu3 %v6223_v39 }
 0xd3b   : > { %v6792_v3 = vpop.f32.mrf.mxu2 }
 0xd3c   : > { %v6808_v13 = vadd.f32 %v6792_v3, %v6731_v63  ;;  %v6233_v3 = vunpack.c.l.bf16 %v6191_v19 }
 0xd3f   : > { %6848 = vmatmul.f32.gmra.mxu3 %v6225_v35 }
 0xd43   : > { %v6795_v20 = vpop.f32.mrf.mxu2 }
 0xd44   : > { %v6809_v55 = vadd.f32 %v6795_v20, %v6732_v50  ;;  %v6192_v20 = vld [vmem:[%s13855_s4 + $0x98] sm:$0xff]  ;;  %v6238_v50 = vunpack.c.h.bf16 %v6193_v8 }
 0xd45   : > { %v6236_v1 = vunpack.c.h.bf16 %v6192_v20 }
 0xd47   : > { %6851 = vmatmul.f32.gmra.mxu3 %v6227_v24  ;;  %v13227_v24 = vld [vmem:[%s13855_s4 + $0xf0] sm:$0xff] }
 0xd4b   : > { %v6798_v59 = vpop.f32.mrf.mxu2 }
 0xd4c   : > { %v6810_v40 = vadd.f32 %v6798_v59, %v6733_v36  ;;  %v6235_v59 = vunpack.c.l.bf16 %v6192_v20  ;;  %v6234_v36 = vunpack.c.h.bf16 %v6191_v19  ;;  %v6250_v19 = vunpack.c.h.bf16 %v6199_v47  ;;  %v14251_v20 = vld [vmem:[#allocation38_spill] sm:$0xff] }
 0xd53   : > { %v6801_v48 = vpop.f32.mrf.mxu2 }
 0xd54   : > { %v6811_v62 = vadd.f32 %v6801_v48, %v6734_v14  ;;  %v6232_v14 = vunpack.c.h.bf16 %v6190_v12  ;;  %v6241_v48 = vunpack.c.l.bf16 %v6195_v6  ;;  %v6257_v12 = vunpack.c.l.bf16 %v13227_v24 }
 0xd56   : > { %6927 = vmatpush.msrb.mxu0 %v6811_v62  ;;  %v6243_v62 = vunpack.c.l.bf16 %v6196_v5 }
 0xd58   : > { %6928 = vmatpush.msrb.mxu0 %v6810_v40  ;;  %v6198_v40 = vld [vmem:[%s13855_s4 + $0xc8] sm:$0xff] }
 0xd59   : > { %v6247_v63 = vunpack.c.l.bf16 %v6198_v40  ;;  %v6248_v46 = vunpack.c.h.bf16 %v6198_v40 }
 0xd5a   : > { %6929 = vmatpush.msrb.mxu0 %v6809_v55 }
 0xd5c   : > { %6930 = vmatpush.msrb.mxu0 %v6808_v13 }
 0xd5e   : > { %6931 = vmatpush.msrb.mxu0 %v6807_v18  ;;  %v6244_v18 = vunpack.c.h.bf16 %v6196_v5 }
 0xd60   : > { %6932 = vmatpush.msrb.mxu0 %v6806_v53 }
 0xd62   : > { %6933 = vmatpush.msrb.mxu0 %v6805_v58  ;;  %v13197_v58 = vld [vmem:[%s13855_s4 + $0xe0] sm:$0xff] }
 0xd63   : > { %v6253_v49 = vunpack.c.l.bf16 %v13197_v58 }
 0xd64   : > { %6934 = vmatpush.msrb.mxu0 %v13103_v25  ;;  %v6229_v25 = vunpack.c.l.bf16 %v6189_v29 }
 0xd65   : > { %v6831_v27 = vpop.f32.mrf.mxu3 }
 0xd66   : > { %6935 = vmatpush.msrb.mxu0 %v6590_v22  ;;  %6854 = vmatmul.f32.gmra.mxu3 %v6229_v25  ;;  %v6832_v34 = vadd.f32 %v13192_v37, %v6831_v27  ;;  %v6246_v22 = vunpack.c.h.bf16 %v6197_v2  ;;  %v14252_v2 = vld [vmem:[#allocation41_spill] sm:$0xff] }
 0xd68   : > { %6936 = vmatpush.msrb.mxu0 %v6587_v0  ;;  %v7747_v0 = vld [vmem:[%s13853_s2 + $0x278] sm:$0xff] }
 0xd69   : > { %7858 = vmatpush.msra.mxu1 %v7747_v0 }
 0xd6a   : > { %6937 = vmatpush.msrb.mxu0 %v6584_v38 }
 0xd6c   : > { %6938 = vmatpush.msrb.mxu0 %v6581_v44  ;;  %v7746_v44 = vld [vmem:[%s13853_s2 + $0x270] sm:$0xff] }
 0xd6d   : > { %v6834_v55 = vpop.f32.mrf.mxu3  ;;  %7859 = vmatpush.msra.mxu1 %v7746_v44  ;;  %v6254_v44 = vunpack.c.h.bf16 %v13197_v58 }
 0xd6e   : > { %6939 = vmatpush.msrb.mxu0 %v6578_v31  ;;  %6857 = vmatmul.f32.gmra.mxu3 %v6231_v43 }
 0xd70   : > { %6940 = vmatpush.msrb.mxu0 %v6575_v7  ;;  %v7745_v7 = vld [vmem:[%s13853_s2 + $0x268] sm:$0xff] }
 0xd71   : > { %7860 = vmatpush.msra.mxu1 %v7745_v7 }
 0xd72   : > { %6941 = vmatpush.msrb.mxu0 %v6572_v56  ;;  %v13215_v56 = vld [vmem:[%s13855_s4 + $0xe8] sm:$0xff] }
 0xd73   : > { %v6255_v39 = vunpack.c.l.bf16 %v13215_v56 }
 0xd74   : > { %6942 = vmatpush.msrb.mxu0 %v6569_v4  ;;  %v7744_v4 = vld [vmem:[%s13853_s2 + $0x260] sm:$0xff] }
 0xd75   : > { %6943 = vmatmul.f32.vlgmr.msrb.gmra.mxu0 %v6214_v42  ;;  %v6835_v42 = vadd.f32 %v13192_v37, %v6834_v55  ;;  %7861 = vmatpush.msra.mxu1 %v7744_v4 }
 0xd76   : > { %6860 = vmatmul.f32.gmra.mxu3 %v6233_v3 }
 0xd7d   : > { %6946 = vmatmul.f32.gmra.mxu0 %v6216_v60 }
 0xd7e   : > { %6863 = vmatmul.f32.gmra.mxu3 %v6235_v59 }
 0xd85   : > { %6949 = vmatmul.f32.gmra.mxu0 %v6218_v10 }
 0xd86   : > { %6866 = vmatmul.f32.gmra.mxu3 %v6237_v16 }
 0xd8d   : > { %6952 = vmatmul.f32.gmra.mxu0 %v6220_v33 }
 0xd8e   : > { %6869 = vmatmul.f32.gmra.mxu3 %v6239_v15 }
 0xd95   : > { %6955 = vmatmul.f32.gmra.mxu0 %v6222_v57  ;;  %v13234_v57 = vld [vmem:[%s13854_s3 + $0x8] ss:$0 sm:$0xff] }
 0xd96   : > { %6872 = vmatmul.f32.gmra.mxu3 %v6241_v48 }
 0xd9d   : > { %6958 = vmatmul.f32.gmra.mxu0 %v6224_v26 }
 0xd9e   : > { %6875 = vmatmul.f32.gmra.mxu3 %v6243_v62  ;;  %v6252_v62 = vunpack.c.h.bf16 %v13186_v61 }
 0xda2   : > { %v6837_v13 = vpop.f32.mrf.mxu3 }
 0xda3   : > { %v6838_v25 = vadd.f32 %v13192_v37, %v6837_v13 }
 0xda5   : > { %6961 = vmatmul.f32.gmra.mxu0 %v6226_v51  ;;  %v3125_v51 = vadd.f32 %v13234_v57, %v14251_v20 }
 0xda6   : > { %6878 = vmatmul.f32.gmra.mxu3 %v6245_v45 }
 0xdaa   : > { %v6840_v53 = vpop.f32.mrf.mxu3 }
 0xdad   : > { %6964 = vmatmul.f32.gmra.mxu0 %v6228_v11  ;;  %v13243_v11 = vld [vmem:[%s13855_s4 + $0xf8] sm:$0xff] }
 0xdae   : > { %6881 = vmatmul.f32.gmra.mxu3 %v6247_v63  ;;  %v6259_v15 = vunpack.c.l.bf16 %v13243_v11 }
 0xdb2   : > { %v13207_v28 = vpop.f32.mrf.mxu3 }
 0xdb3   : > { %v6844_v61 = vadd.f32 %v13192_v37, %v13207_v28 }
 0xdb5   : > { %6967 = vmatmul.f32.gmra.mxu0 %v6230_v21  ;;  %v6841_v21 = vadd.f32 %v13192_v37, %v6840_v53 }
 0xdb6   : > { %6884 = vmatmul.f32.gmra.mxu3 %v6249_v30 }
 0xdba   : > { %v13222_v41 = vpop.f32.mrf.mxu3 }
 0xdbd   : > { %6970 = vmatmul.f32.gmra.mxu0 %v6232_v14  ;;  %v9000_v14 = vld [vmem:[%s9107_s10] sm:$0xff] }
 0xdbe   : > { %6887 = vmatmul.f32.gmra.mxu3 %v6251_v52  ;;  %v3220_v48 = vadd.f32 %v9000_v14, %v3125_v51  ;;  %v13262_v52 = vld [vmem:[%s13855_s4 + $0x100] sm:$0xff] }
 0xdc0   : > { %v3252_v40 = vmax.f32 %v3220_v48, 0.0  ;;  %v14254_v48 = vld [vmem:[#allocation46_spill] sm:$0xff] }
 0xdc2   : > { %v13238_v59 = vpop.f32.mrf.mxu3  ;;  %v7072_v0 = vadd.f32 1.0, %v3252_v40 }
 0xdc5   : > { %6973 = vmatmul.f32.gmra.mxu0 %v6234_v36 }
 0xdc6   : > { %6890 = vmatmul.f32.gmra.mxu3 %v6253_v49  ;;  %v6261_v49 = vunpack.c.l.bf16 %v13262_v52 }
 0xdcd   : > { %6976 = vmatmul.f32.gmra.mxu0 %v6236_v1  ;;  %v3128_v1 = vadd.f32 %v13234_v57, %v14252_v2 }
 0xdce   : > { %6893 = vmatmul.f32.gmra.mxu3 %v6255_v39 }
 0xdd5   : > { %6979 = vmatmul.f32.gmra.mxu0 %v6238_v50 }
 0xdd6   : > { %6896 = vmatmul.f32.gmra.mxu3 %v6257_v12 }
 0xddd   : > { %6982 = vmatmul.f32.gmra.mxu0 %v6240_v17  ;;  %v13254_v17 = vpop.f32.mrf.mxu3 }
 0xdde   : > { %6899 = vmatmul.f32.gmra.mxu3 %v6259_v15  ;;  %v6256_v15 = vunpack.c.h.bf16 %v13215_v56 }
 0xde5   : > { %6985 = vmatmul.f32.gmra.mxu0 %v6242_v9  ;;  %v9001_v9 = vld [vmem:[%s9107_s10 + $0x8] sm:$0xff] }
 0xde6   : > { %v3221_v13 = vadd.f32 %v9001_v9, %v3128_v1  ;;  %6902 = vmatmul.f32.gmra.mxu3 %v6261_v49  ;;  %v6850_v9 = vadd.f32 %v13192_v37, %v13238_v59 }
 0xde8   : > { %v3253_v7 = vmax.f32 %v3221_v13, 0.0  ;;  %v13307_v13 = vld [vmem:[%s13855_s4 + $0x110] sm:$0xff] }
 0xde9   : > { %v13274_v58 = vpop.f32.mrf.mxu3 }
 0xdea   : > { %v7073_v12 = vadd.f32 1.0, %v3253_v7 }
 0xded   : > { %6988 = vmatmul.f32.gmra.mxu0 %v6244_v18 }
 0xdf2   : > { %v6944_v38 = vpop.f32.mrf.mxu0 }
 0xdf3   : > { %v6945_v23 = vadd.f32 %v6944_v38, %v6832_v34 }
 0xdf5   : > { %v7040_v31 = vmax.f32 %v6945_v23, 0.0  ;;  %6991 = vmatmul.f32.gmra.mxu0 %v6246_v22 }
 0xdf7   : > { %v8696_v32 = vmul.f32 -1.442695, %v7040_v31 }
 0xdf9   : > { %8817 = vpow2.f32 %v8696_v32 }
 0xdfa   : > { %v6947_v60 = vpop.f32.mrf.mxu0 }
 0xdfb   : > { %v6948_v35 = vadd.f32 %v6947_v60, %v6835_v42  ;;  %v14253_v60 = vld [vmem:[#allocation42_spill] sm:$0xff] }
 0xdfd   : > { %v7041_v10 = vmax.f32 %v6948_v35, 0.0  ;;  %6994 = vmatmul.f32.gmra.mxu0 %v6248_v46  ;;  %v3131_v35 = vadd.f32 %v13234_v57, %v14253_v60 }
 0xdff   : > { %v8818_v29 = vpop.eup %8817  ;;  %v8697_v33 = vmul.f32 -1.442695, %v7041_v10 }
 0xe00   : > { %v7200_v43 = vadd.f32 1.0, %v8818_v29 }
 0xe01   : > { %8819 = vpow2.f32 %v8697_v33 }
 0xe02   : > { %8821 = vrcp.f32 %v7200_v43  ;;  %v6950_v26 = vpop.f32.mrf.mxu0  ;;  %v7243_v63 = vand.u32 2147483648, %v7200_v43  ;;  %v7241_v47 = vand.u32 2147483647, %v7200_v43  ;;  %vm7237_vm9 = vweird.f32 %v7200_v43 }
 0xe03   : > { %v6951_v3 = vadd.f32 %v6950_v26, %v6838_v25 }
 0xe04   : > { %v7244_v38 = vor.u32 1.1754944e-38, %v7243_v63  ;;  %vm7242_vm11 = vcmp.eq.f32.partialorder %v7241_v47, 8.507059e+37  ;;  %v9003_v47 = vld [vmem:[%s9107_s10 + $0x18] sm:$0xff] }
 0xe05   : > { %v7042_v8 = vmax.f32 %v6951_v3, 0.0  ;;  %6997 = vmatmul.f32.gmra.mxu0 %v6250_v19  ;;  %v13283_v19 = vld [vmem:[%s13855_s4 + $0x108] sm:$0xff] }
 0xe06   : > { %v6263_v51 = vunpack.c.l.bf16 %v13283_v19 }
 0xe07   : > { %v8820_v16 = vpop.eup %8819  ;;  %v8698_v54 = vmul.f32 -1.442695, %v7042_v8 }
 0xe08   : > { %v8822_v6 = vpop.eup %8821  ;;  %v13248_v5 = vadd.f32 1.0, %v8820_v16  ;;  %v9002_v16 = vld [vmem:[%s9107_s10 + $0x10] sm:$0xff]  ;;  %6905 = vmatmul.f32.gmra.mxu3 %v6263_v51 }
 0xe09   : > { %v7233_v36 = vmul.f32 %v8822_v6, %v7200_v43  ;;  %8823 = vpow2.f32 %v8698_v54  ;;  %vm7238_vm8 = vweird.f32 %v8822_v6  ;;  %v6847_v43 = vadd.f32 %v13192_v37, %v13222_v41 }
 0xe0a   : > { %8825 = vrcp.f32 %v13248_v5  ;;  %v6953_v45 = vpop.f32.mrf.mxu0  ;;  %vm7239_vm10 = vmor %vm7237_vm9, %vm7238_vm8  ;;  %v7258_v10 = vand.u32 2147483648, %v13248_v5  ;;  %v7256_v25 = vand.u32 2147483647, %v13248_v5  ;;  %vm7252_vm13 = vweird.f32 %v13248_v5 }
 0xe0b   : > { %v7234_v50 = vsub.f32 1.0, %v7233_v36  ;;  %v6954_v27 = vadd.f32 %v6953_v45, %v6841_v21  ;;  %v3222_v54 = vadd.f32 %v9002_v16, %v3131_v35 }
 0xe0c   : > { %v7259_v41 = vor.u32 1.1754944e-38, %v7258_v10  ;;  %vm7257_vm15 = vcmp.eq.f32.partialorder %v7256_v25, 8.507059e+37  ;;  %v6853_v25 = vadd.f32 %v13192_v37, %v13254_v17 }
 0xe0d   : > { %v7235_v55 = vmul.f32 %v8822_v6, %v7234_v50  ;;  %v7043_v30 = vmax.f32 %v6954_v27, 0.0  ;;  %7000 = vmatmul.f32.gmra.mxu0 %v6252_v62  ;;  %v3254_v45 = vmax.f32 %v3222_v54, 0.0  ;;  %v13297_v27 = vpop.f32.mrf.mxu3 }
 0xe0f   : > { %v8824_v18 = vpop.eup %8823  ;;  %v7236_v53 = vadd.f32 %v8822_v6, %v7235_v55  ;;  %v8699_v34 = vmul.f32 -1.442695, %v7043_v30 }
 0xe10   : > { %v8826_v22 = vpop.eup %8825  ;;  %v13266_v23 = vadd.f32 1.0, %v8824_v18 }
 0xe11   : > { %v7248_v28 = vmul.f32 %v8826_v22, %v13248_v5  ;;  %8827 = vpow2.f32 %v8699_v34  ;;  %v7240_v31 = vsel %vm7239_vm10, %v8822_v6, %v7236_v53  ;;  %vm7253_vm12 = vweird.f32 %v8826_v22 }
 0xe12   : > { %8829 = vrcp.f32 %v13266_v23  ;;  %v6956_v32 = vpop.f32.mrf.mxu0  ;;  %v7245_v42 = vsel %vm7242_vm11, %v7244_v38, %v7240_v31  ;;  %vm7254_vm14 = vmor %vm7252_vm13, %vm7253_vm12  ;;  %v3134_v5 = vadd.f32 %v13234_v57, %v14254_v48  ;;  %v7273_v50 = vand.u32 2147483648, %v13266_v23 }
 0xe13   : > { %v7249_v4 = vsub.f32 1.0, %v7248_v28  ;;  %v6957_v39 = vadd.f32 %v6956_v32, %v6844_v61  ;;  %v7712_v46 = vmul.f32 %v7245_v42, %v7072_v0  ;;  %v7271_v55 = vand.u32 2147483647, %v13266_v23 }
 0xe14   : > { %v3223_v30 = vadd.f32 %v9003_v47, %v3134_v5  ;;  %vm7267_vm2 = vweird.f32 %v13266_v23  ;;  %v6265_v34 = vunpack.c.l.bf16 %v13307_v13  ;;  %v6258_v38 = vunpack.c.h.bf16 %v13227_v24 }
 0xe15   : > { %v7044_v29 = vmax.f32 %v6957_v39, 0.0  ;;  %7003 = vmatmul.f32.gmra.mxu0 %v6254_v44  ;;  %8728 = vmatmul.msk.f32.vlgmr.msra.gmra.mxu1 %vm384_vm0, %v7712_v46  ;;  %v7250_v33 = vmul.f32 %v8826_v22, %v7249_v4  ;;  %v7274_v59 = vor.u32 1.1754944e-38, %v7273_v50  ;;  %vm7272_vm4 = vcmp.eq.f32.partialorder %v7271_v55, 8.507059e+37  ;;  %v14255_v39 = vld [vmem:[#allocation30_spill] sm:$0xff]  ;;  %v13320_v60 = vpop.f32.mrf.mxu3 }
 0xe16   : > { %6908 = vmatmul.f32.gmra.mxu3 %v6265_v34  ;;  %v3255_v31 = vmax.f32 %v3223_v30, 0.0  ;;  %v3137_v24 = vadd.f32 %v13234_v57, %v14255_v39  ;;  %v6856_v47 = vadd.f32 %v13192_v37, %v13274_v58  ;;  %v13353_v30 = vld [vmem:[%s13855_s4 + $0x120] sm:$0xff] }
 0xe17   : > { %v8828_v26 = vpop.eup %8827  ;;  %v8700_v3 = vmul.f32 -1.442695, %v7044_v29  ;;  %v7251_v20 = vadd.f32 %v8826_v22, %v7250_v33 }
 0xe18   : > { %v8830_v8 = vpop.eup %8829  ;;  %v13288_v21 = vadd.f32 1.0, %v8828_v26  ;;  %v7075_v33 = vadd.f32 1.0, %v3255_v31 }
 0xe19   : > { %v7263_v6 = vmul.f32 %v8830_v8, %v13266_v23  ;;  %8831 = vpow2.f32 %v8700_v3  ;;  %v7255_v14 = vsel %vm7254_vm14, %v8826_v22, %v7251_v20  ;;  %vm7268_vm1 = vweird.f32 %v8830_v8 }
 0xe1a   : > { %8833 = vrcp.f32 %v13288_v21  ;;  %v6959_v36 = vpop.f32.mrf.mxu0  ;;  %v7260_v62 = vsel %vm7257_vm15, %v7259_v41, %v7255_v14  ;;  %v7074_v22 = vadd.f32 1.0, %v3254_v45  ;;  %vm7269_vm3 = vmor %vm7267_vm2, %vm7268_vm1  ;;  %v7288_v46 = vand.u32 2147483648, %v13288_v21  ;;  %v14256_v14 = vld [vmem:[#allocation37_spill] sm:$0xff] }
 0xe1b   : > { %v7264_v2 = vsub.f32 1.0, %v7263_v6  ;;  %v6960_v1 = vadd.f32 %v6959_v36, %v6847_v43  ;;  %v7713_v56 = vmul.f32 %v7260_v62, %v7073_v12  ;;  %v7286_v29 = vand.u32 2147483647, %v13288_v21  ;;  %v13329_v12 = vld [vmem:[%s13855_s4 + $0x118] sm:$0xff] }
 0xe1c   : > { %vm7282_vm6 = vweird.f32 %v13288_v21  ;;  %v6267_v20 = vunpack.c.l.bf16 %v13329_v12  ;;  %v7289_v17 = vor.u32 1.1754944e-38, %v7288_v46 }
 0xe1d   : > { %v7045_v40 = vmax.f32 %v6960_v1, 0.0  ;;  %7006 = vmatmul.f32.gmra.mxu0 %v6256_v15  ;;  %8729 = vmatmul.msk.f32.gmra.mxu1 %vm384_vm0, %v7713_v56  ;;  %v7265_v63 = vmul.f32 %v8830_v8, %v7264_v2  ;;  %v6260_v15 = vunpack.c.h.bf16 %v13243_v11  ;;  %vm7287_vm8 = vcmp.eq.f32.partialorder %v7286_v29, 8.507059e+37  ;;  %v13343_v56 = vpop.f32.mrf.mxu3 }
 0xe1e   : > { %6911 = vmatmul.f32.gmra.mxu3 %v6267_v20  ;;  %v6859_v29 = vadd.f32 %v13192_v37, %v13297_v27 }
 0xe1f   : > { %v8832_v61 = vpop.eup %8831  ;;  %v8701_v18 = vmul.f32 -1.442695, %v7045_v40  ;;  %v7266_v53 = vadd.f32 %v8830_v8, %v7265_v63  ;;  %v9005_v63 = vld [vmem:[%s9107_s10 + $0x28] sm:$0xff] }
 0xe20   : > { %v8834_v49 = vpop.eup %8833  ;;  %v13311_v0 = vadd.f32 1.0, %v8832_v61 }
 0xe21   : > { %v7278_v44 = vmul.f32 %v8834_v49, %v13288_v21  ;;  %8835 = vpow2.f32 %v8701_v18  ;;  %v7270_v28 = vsel %vm7269_vm3, %v8830_v8, %v7266_v53  ;;  %vm7283_vm5 = vweird.f32 %v8834_v49  ;;  %v9004_v8 = vld [vmem:[%s9107_s10 + $0x20] sm:$0xff] }
 0xe22   : > { %8837 = vrcp.f32 %v13311_v0  ;;  %v6962_v23 = vpop.f32.mrf.mxu0  ;;  %v7275_v7 = vsel %vm7272_vm4, %v7274_v59, %v7270_v28  ;;  %v3224_v16 = vadd.f32 %v9004_v8, %v3137_v24  ;;  %vm7284_vm7 = vmor %vm7282_vm6, %vm7283_vm5  ;;  %v3140_v21 = vadd.f32 %v13234_v57, %v14256_v14 }
 0xe23   : > { %v7279_v32 = vsub.f32 1.0, %v7278_v44  ;;  %v6963_v42 = vadd.f32 %v6962_v23, %v6850_v9  ;;  %v7714_v4 = vmul.f32 %v7275_v7, %v7074_v22  ;;  %v7303_v1 = vand.u32 2147483648, %v13311_v0 }
 0xe24   : > { %v3256_v2 = vmax.f32 %v3224_v16, 0.0  ;;  %v7301_v40 = vand.u32 2147483647, %v13311_v0  ;;  %v3225_v55 = vadd.f32 %v9005_v63, %v3140_v21  ;;  %vm7297_vm10 = vweird.f32 %v13311_v0 }
 0xe25   : > { %v7046_v35 = vmax.f32 %v6963_v42, 0.0  ;;  %7009 = vmatmul.f32.gmra.mxu0 %v6258_v38  ;;  %8730 = vmatmul.msk.f32.gmra.mxu1 %vm384_vm0, %v7714_v4  ;;  %v7280_v10 = vmul.f32 %v8834_v49, %v7279_v32  ;;  %v6269_v53 = vunpack.c.l.bf16 %v13353_v30  ;;  %v6262_v38 = vunpack.c.h.bf16 %v13262_v52  ;;  %v14257_v42 = vld [vmem:[#allocation47_spill] sm:$0xff]  ;;  %v13366_v39 = vpop.f32.mrf.mxu3 }
 0xe26   : > { %v7304_v58 = vor.u32 1.1754944e-38, %v7303_v1  ;;  %vm7302_vm12 = vcmp.eq.f32.partialorder %v7301_v40, 8.507059e+37  ;;  %v3257_v28 = vmax.f32 %v3225_v55, 0.0  ;;  %v3143_v52 = vadd.f32 %v13234_v57, %v14257_v42  ;;  %v13399_v55 = vld [vmem:[%s13855_s4 + $0x130] sm:$0xff] }
 0xe27   : > { %v8836_v43 = vpop.eup %8835  ;;  %v8702_v26 = vmul.f32 -1.442695, %v7046_v35  ;;  %v7281_v3 = vadd.f32 %v8834_v49, %v7280_v10  ;;  %6914 = vmatmul.f32.gmra.mxu3 %v6269_v53  ;;  %v6862_v63 = vadd.f32 %v13192_v37, %v13320_v60 }
 0xe28   : > { %v8838_v51 = vpop.eup %8837  ;;  %v13334_v54 = vadd.f32 1.0, %v8836_v43  ;;  %v7077_v10 = vadd.f32 1.0, %v3257_v28 }
 0xe29   : > { %v7293_v41 = vmul.f32 %v8838_v51, %v13311_v0  ;;  %8839 = vpow2.f32 %v8702_v26  ;;  %v7285_v6 = vsel %vm7284_vm7, %v8834_v49, %v7281_v3  ;;  %vm7298_vm9 = vweird.f32 %v8838_v51 }
 0xe2a   : > { %8841 = vrcp.f32 %v13334_v54  ;;  %v6965_v48 = vpop.f32.mrf.mxu0  ;;  %v7290_v5 = vsel %vm7287_vm8, %v7289_v17, %v7285_v6  ;;  %v7076_v49 = vadd.f32 1.0, %v3256_v2  ;;  %vm7299_vm11 = vmor %vm7297_vm10, %vm7298_vm9  ;;  %v7318_v4 = vand.u32 2147483648, %v13334_v54  ;;  %v14258_v6 = vld [vmem:[#allocation35_spill] sm:$0xff] }
 0xe2b   : > { %v7294_v36 = vsub.f32 1.0, %v7293_v41  ;;  %v6966_v62 = vadd.f32 %v6965_v48, %v6853_v25  ;;  %v7715_v11 = vmul.f32 %v7290_v5, %v7075_v33  ;;  %v7316_v35 = vand.u32 2147483647, %v13334_v54  ;;  %v13375_v33 = vld [vmem:[%s13855_s4 + $0x128] sm:$0xff] }
 0xe2c   : > { %vm7312_vm14 = vweird.f32 %v13334_v54  ;;  %v6271_v3 = vunpack.c.l.bf16 %v13375_v33  ;;  %v7319_v27 = vor.u32 1.1754944e-38, %v7318_v4 }
 0xe2d   : > { %v7047_v45 = vmax.f32 %v6966_v62, 0.0  ;;  %7012 = vmatmul.f32.gmra.mxu0 %v6260_v15  ;;  %8731 = vmatmul.msk.f32.gmra.mxu1 %vm384_vm0, %v7715_v11  ;;  %v7295_v50 = vmul.f32 %v8838_v51, %v7294_v36  ;;  %v6264_v15 = vunpack.c.h.bf16 %v13283_v19  ;;  %vm7317_vm1 = vcmp.eq.f32.partialorder %v7316_v35, 8.507059e+37  ;;  %v13389_v11 = vpop.f32.mrf.mxu3 }
 0xe2e   : > { %v6865_v35 = vadd.f32 %v13192_v37, %v13343_v56 }
 0xe2f   : > { %v8840_v9 = vpop.eup %8839  ;;  %v8703_v61 = vmul.f32 -1.442695, %v7047_v45  ;;  %v7296_v18 = vadd.f32 %v8838_v51, %v7295_v50  ;;  %6917 = vmatmul.f32.gmra.mxu3 %v6271_v3  ;;  %v9007_v50 = vld [vmem:[%s9107_s10 + $0x38] sm:$0xff] }
 0xe30   : > { %v8842_v34 = vpop.eup %8841  ;;  %v13357_v22 = vadd.f32 1.0, %v8840_v9 }
 0xe31   : > { %v7308_v59 = vmul.f32 %v8842_v34, %v13334_v54  ;;  %8843 = vpow2.f32 %v8703_v61  ;;  %v7300_v44 = vsel %vm7299_vm11, %v8838_v51, %v7296_v18  ;;  %vm7313_vm13 = vweird.f32 %v8842_v34  ;;  %v9006_v51 = vld [vmem:[%s9107_s10 + $0x30] sm:$0xff] }
 0xe32   : > { %8845 = vrcp.f32 %v13357_v22  ;;  %v6968_v0 = vpop.f32.mrf.mxu0  ;;  %v7305_v31 = vsel %vm7302_vm12, %v7304_v58, %v7300_v44  ;;  %v3226_v8 = vadd.f32 %v9006_v51, %v3143_v52  ;;  %vm7314_vm15 = vmor %vm7312_vm14, %vm7313_vm13  ;;  %v3146_v54 = vadd.f32 %v13234_v57, %v14258_v6 }
 0xe33   : > { %v7309_v23 = vsub.f32 1.0, %v7308_v59  ;;  %v6969_v7 = vadd.f32 %v6968_v0, %v6856_v47  ;;  %v7716_v32 = vmul.f32 %v7305_v31, %v7076_v49  ;;  %v7333_v62 = vand.u32 2147483648, %v13357_v22 }
 0xe34   : > { %v3258_v36 = vmax.f32 %v3226_v8, 0.0  ;;  %v7331_v45 = vand.u32 2147483647, %v13357_v22  ;;  %v3227_v40 = vadd.f32 %v9007_v50, %v3146_v54  ;;  %vm7327_vm3 = vweird.f32 %v13357_v22 }
 0xe35   : > { %v7048_v24 = vmax.f32 %v6969_v7, 0.0  ;;  %7015 = vmatmul.f32.gmra.mxu0 %v6262_v38  ;;  %8732 = vmatmul.msk.f32.gmra.mxu1 %vm384_vm0, %v7716_v32  ;;  %v7310_v46 = vmul.f32 %v8842_v34, %v7309_v23  ;;  %v6273_v18 = vunpack.c.l.bf16 %v13399_v55  ;;  %v6266_v38 = vunpack.c.h.bf16 %v13307_v13  ;;  %v14259_v7 = vld [vmem:[#allocation45_spill] sm:$0xff]  ;;  %v13412_v42 = vpop.f32.mrf.mxu3 }
 0xe36   : > { %v7334_v60 = vor.u32 1.1754944e-38, %v7333_v62  ;;  %vm7332_vm5 = vcmp.eq.f32.partialorder %v7331_v45, 8.507059e+37  ;;  %v3259_v44 = vmax.f32 %v3227_v40, 0.0  ;;  %v3149_v13 = vadd.f32 %v13234_v57, %v14259_v7 }
 0xe37   : > { %v8844_v25 = vpop.eup %8843  ;;  %v8704_v43 = vmul.f32 -1.442695, %v7048_v24  ;;  %v7311_v26 = vadd.f32 %v8842_v34, %v7310_v46  ;;  %6920 = vmatmul.f32.gmra.mxu3 %v6273_v18 }
 0xe38   : > { %v8846_v20 = vpop.eup %8845  ;;  %v13380_v16 = vadd.f32 1.0, %v8844_v25  ;;  %v7079_v46 = vadd.f32 1.0, %v3259_v44 }
 0xe39   : > { %v7323_v17 = vmul.f32 %v8846_v20, %v13357_v22  ;;  %8847 = vpow2.f32 %v8704_v43  ;;  %v7315_v41 = vsel %vm7314_vm15, %v8842_v34, %v7311_v26  ;;  %vm7328_vm2 = vweird.f32 %v8846_v20 }
 0xe3a   : > { %8849 = vrcp.f32 %v13380_v16  ;;  %v6971_v14 = vpop.f32.mrf.mxu0  ;;  %v7320_v21 = vsel %vm7317_vm1, %v7319_v27, %v7315_v41  ;;  %v7078_v34 = vadd.f32 1.0, %v3258_v36  ;;  %vm7329_vm4 = vmor %vm7327_vm3, %vm7328_vm2  ;;  %v7348_v32 = vand.u32 2147483648, %v13380_v16  ;;  %v14260_v41 = vld [vmem:[#allocation50_spill] sm:$0xff] }
 0xe3b   : > { %v7324_v48 = vsub.f32 1.0, %v7323_v17  ;;  %v6972_v5 = vadd.f32 %v6971_v14, %v6859_v29  ;;  %v7717_v19 = vmul.f32 %v7320_v21, %v7077_v10  ;;  %v7346_v24 = vand.u32 2147483647, %v13380_v16  ;;  %v13421_v10 = vld [vmem:[%s13855_s4 + $0x138] sm:$0xff] }
 0xe3c   : > { %vm7342_vm7 = vweird.f32 %v13380_v16  ;;  %v6275_v26 = vunpack.c.l.bf16 %v13421_v10  ;;  %v7349_v56 = vor.u32 1.1754944e-38, %v7348_v32 }
 0xe3d   : > { %v7049_v2 = vmax.f32 %v6972_v5, 0.0  ;;  %7018 = vmatmul.f32.gmra.mxu0 %v6264_v15  ;;  %8733 = vmatmul.msk.f32.gmra.mxu1 %vm384_vm0, %v7717_v19  ;;  %v7325_v1 = vmul.f32 %v8846_v20, %v7324_v48  ;;  %v6268_v15 = vunpack.c.h.bf16 %v13329_v12  ;;  %vm7347_vm9 = vcmp.eq.f32.partialorder %v7346_v24, 8.507059e+37  ;;  %v13435_v19 = vpop.f32.mrf.mxu3 }
 0xe3e   : > { %v6871_v24 = vadd.f32 %v13192_v37, %v13389_v11 }
 0xe3f   : > { %v8848_v47 = vpop.eup %8847  ;;  %v8705_v9 = vmul.f32 -1.442695, %v7049_v2  ;;  %v7326_v61 = vadd.f32 %v8846_v20, %v7325_v1  ;;  %6923 = vmatmul.f32.gmra.mxu3 %v6275_v26  ;;  %v9009_v1 = vld [vmem:[%s9107_s10 + $0x48] sm:$0xff]  ;;  %v6272_v26 = vunpack.c.h.bf16 %v13375_v33 }
 0xe40   : > { %v8850_v53 = vpop.eup %8849  ;;  %v13403_v49 = vadd.f32 1.0, %v8848_v47 }
 0xe41   : > { %v7338_v58 = vmul.f32 %v8850_v53, %v13380_v16  ;;  %8851 = vpow2.f32 %v8705_v9  ;;  %v7330_v59 = vsel %vm7329_vm4, %v8846_v20, %v7326_v61  ;;  %vm7343_vm6 = vweird.f32 %v8850_v53  ;;  %v9008_v20 = vld [vmem:[%s9107_s10 + $0x40] sm:$0xff] }
 0xe42   : > { %8853 = vrcp.f32 %v13403_v49  ;;  %v6974_v22 = vpop.f32.mrf.mxu0  ;;  %v7335_v28 = vsel %vm7332_vm5, %v7334_v60, %v7330_v59  ;;  %v3228_v51 = vadd.f32 %v9008_v20, %v3149_v13  ;;  %vm7344_vm8 = vmor %vm7342_vm7, %vm7343_vm6  ;;  %v3152_v16 = vadd.f32 %v13234_v57, %v14260_v41 }
 0xe43   : > { %v7339_v0 = vsub.f32 1.0, %v7338_v58  ;;  %v6975_v31 = vadd.f32 %v6974_v22, %v6862_v63  ;;  %v7718_v23 = vmul.f32 %v7335_v28, %v7078_v34  ;;  %v7363_v5 = vand.u32 2147483648, %v13403_v49  ;;  %v14261_v28 = vld [vmem:[#allocation49_spill] sm:$0xff] }
 0xe44   : > { %v3260_v48 = vmax.f32 %v3228_v51, 0.0  ;;  %v7361_v2 = vand.u32 2147483647, %v13403_v49  ;;  %v3229_v45 = vadd.f32 %v9009_v1, %v3152_v16  ;;  %v6868_v63 = vadd.f32 %v13192_v37, %v13366_v39 }
 0xe45   : > { %v7050_v52 = vmax.f32 %v6975_v31, 0.0  ;;  %7021 = vmatmul.f32.gmra.mxu0 %v6266_v38  ;;  %8734 = vmatmul.msk.f32.gmra.mxu1 %vm384_vm0, %v7718_v23  ;;  %v7340_v4 = vmul.f32 %v8850_v53, %v7339_v0  ;;  %vm7357_vm11 = vweird.f32 %v13403_v49  ;;  %v7364_v34 = vor.u32 1.1754944e-38, %v7363_v5  ;;  %v13451_v31 = vpop.f32.mrf.mxu3 }
 0xe46   : > { %v7080_v61 = vadd.f32 1.0, %v3260_v48  ;;  %vm7362_vm13 = vcmp.eq.f32.partialorder %v7361_v2, 8.507059e+37  ;;  %v3261_v58 = vmax.f32 %v3229_v45, 0.0  ;;  %v3155_v0 = vadd.f32 %v13234_v57, %v14261_v28 }
 0xe47   : > { %v8852_v29 = vpop.eup %8851  ;;  %v8706_v25 = vmul.f32 -1.442695, %v7050_v52  ;;  %v7341_v43 = vadd.f32 %v8850_v53, %v7340_v4 }
 0xe48   : > { %v8854_v3 = vpop.eup %8853  ;;  %v13426_v8 = vadd.f32 1.0, %v8852_v29  ;;  %v7081_v32 = vadd.f32 1.0, %v3261_v58  ;;  %v9010_v29 = vld [vmem:[%s9107_s10 + $0x50] sm:$0xff] }
 0xe49   : > { %v7353_v27 = vmul.f32 %v8854_v3, %v13403_v49  ;;  %8855 = vpow2.f32 %v8706_v25  ;;  %v7345_v17 = vsel %vm7344_vm8, %v8850_v53, %v7341_v43  ;;  %vm7358_vm10 = vweird.f32 %v8854_v3 }
 0xe4a   : > { %8857 = vrcp.f32 %v13426_v8  ;;  %v6977_v6 = vpop.f32.mrf.mxu0  ;;  %v7350_v54 = vsel %vm7347_vm9, %v7349_v56, %v7345_v17  ;;  %v6270_v53 = vunpack.c.h.bf16 %v13353_v30  ;;  %vm7359_vm12 = vmor %vm7357_vm11, %vm7358_vm10  ;;  %v7378_v30 = vand.u32 2147483648, %v13426_v8 }
 0xe4b   : > { %v7354_v14 = vsub.f32 1.0, %v7353_v27  ;;  %v6978_v21 = vadd.f32 %v6977_v6, %v6865_v35  ;;  %v7719_v12 = vmul.f32 %v7350_v54, %v7079_v46  ;;  %v7376_v13 = vand.u32 2147483647, %v13426_v8 }
 0xe4c   : > { %vm7372_vm15 = vweird.f32 %v13426_v8  ;;  %v3230_v25 = vadd.f32 %v9010_v29, %v3155_v0 }
 0xe4d   : > { %v7051_v36 = vmax.f32 %v6978_v21, 0.0  ;;  %7024 = vmatmul.f32.gmra.mxu0 %v6268_v15  ;;  %8735 = vmatmul.msk.f32.gmra.mxu1 %vm384_vm0, %v7719_v12  ;;  %v7355_v62 = vmul.f32 %v8854_v3, %v7354_v14  ;;  %vm7377_vm2 = vcmp.eq.f32.partialorder %v7376_v13, 8.507059e+37  ;;  %v14262_v15 = vld [vmem:[#allocation51_spill] sm:$0xff]  ;;  %v13467_v6 = vpop.f32.mrf.mxu3  ;;  %v9011_v12 = vld [vmem:[%s9107_s10 + $0x58] sm:$0xff]  ;;  %v9012_v13 = vld [vmem:[%s9107_s10 + $0x60] sm:$0xff] }
 0xe4e   : > { %v3158_v11 = vadd.f32 %v13234_v57, %v14262_v15  ;;  %v3262_v16 = vmax.f32 %v3230_v25, 0.0 }
 0xe4f   : > { %v8856_v50 = vpop.eup %8855  ;;  %v8707_v40 = vmul.f32 -1.442695, %v7051_v36  ;;  %v7356_v47 = vadd.f32 %v8854_v3, %v7355_v62  ;;  %v6874_v62 = vadd.f32 %v13192_v37, %v13412_v42 }
 0xe50   : > { %v8858_v9 = vpop.eup %8857  ;;  %v13443_v18 = vadd.f32 1.0, %v8856_v50  ;;  %v3231_v48 = vadd.f32 %v9011_v12, %v3158_v11  ;;  %v7082_v45 = vadd.f32 1.0, %v3262_v16 }
 0xe51   : > { %v7368_v38 = vmul.f32 %v8858_v9, %v13426_v8  ;;  %8859 = vpow2.f32 %v8707_v40  ;;  %v7360_v60 = vsel %vm7359_vm12, %v8854_v3, %v7356_v47  ;;  %vm7373_vm14 = vweird.f32 %v8858_v9 }
 0xe52   : > { %8861 = vrcp.f32 %v13443_v18  ;;  %v6980_v39 = vpop.f32.mrf.mxu0  ;;  %v7365_v59 = vsel %vm7362_vm13, %v7364_v34, %v7360_v60  ;;  %vm7374_vm1 = vmor %vm7372_vm15, %vm7373_vm14  ;;  %v7379_v3 = vor.u32 1.1754944e-38, %v7378_v30  ;;  %v7393_v33 = vand.u32 2147483648, %v13443_v18  ;;  %v14263_v60 = vld [vmem:[#allocation54_spill] sm:$0xff] }
 0xe53   : > { %v7369_v44 = vsub.f32 1.0, %v7368_v38  ;;  %v6981_v49 = vadd.f32 %v6980_v39, %v6868_v63  ;;  %v7720_v22 = vmul.f32 %v7365_v59, %v7080_v61  ;;  %v7391_v21 = vand.u32 2147483647, %v13443_v18 }
 0xe54   : > { %vm7387_vm4 = vweird.f32 %v13443_v18  ;;  %v6274_v40 = vunpack.c.h.bf16 %v13399_v55  ;;  %v7394_v63 = vor.u32 1.1754944e-38, %v7393_v33  ;;  %v3263_v61 = vmax.f32 %v3231_v48, 0.0 }
 0xe55   : > { %v7052_v23 = vmax.f32 %v6981_v49, 0.0  ;;  %7027 = vmatmul.f32.gmra.mxu0 %v6270_v53  ;;  %8736 = vmatmul.msk.f32.gmra.mxu1 %vm384_vm0, %v7720_v22  ;;  %v7370_v7 = vmul.f32 %v8858_v9, %v7369_v44  ;;  %vm7392_vm6 = vcmp.eq.f32.partialorder %v7391_v21, 8.507059e+37  ;;  %v3161_v58 = vadd.f32 %v13234_v57, %v14263_v60  ;;  %v13483_v39 = vpop.f32.mrf.mxu3 }
 0xe56   : > { %v7083_v22 = vadd.f32 1.0, %v3263_v61  ;;  %v6877_v30 = vadd.f32 %v13192_v37, %v13435_v19 }
 0xe57   : > { %v8860_v52 = vpop.eup %8859  ;;  %v8708_v4 = vmul.f32 -1.442695, %v7052_v23  ;;  %v7371_v46 = vadd.f32 %v8858_v9, %v7370_v7 }
 0xe58   : > { %v8862_v35 = vpop.eup %8861  ;;  %v13459_v43 = vadd.f32 1.0, %v8860_v52 }
 0xe59   : > { %v7383_v20 = vmul.f32 %v8862_v35, %v13443_v18  ;;  %8863 = vpow2.f32 %v8708_v4  ;;  %v7375_v51 = vsel %vm7374_vm1, %v8858_v9, %v7371_v46  ;;  %vm7388_vm3 = vweird.f32 %v8862_v35 }
 0xe5a   : > { %8865 = vrcp.f32 %v13459_v43  ;;  %v6983_v8 = vpop.f32.mrf.mxu0  ;;  %v7380_v56 = vsel %vm7377_vm2, %v7379_v3, %v7375_v51  ;;  %vm7389_vm5 = vmor %vm7387_vm4, %vm7388_vm3  ;;  %v7408_v55 = vand.u32 2147483648, %v13459_v43  ;;  %v7406_v49 = vand.u32 2147483647, %v13459_v43 }
 0xe5b   : > { %v7384_v27 = vsub.f32 1.0, %v7383_v20  ;;  %v6984_v17 = vadd.f32 %v6983_v8, %v6871_v24  ;;  %v7721_v41 = vmul.f32 %v7380_v56, %v7081_v32  ;;  %vm7402_vm8 = vweird.f32 %v13459_v43  ;;  %v14264_v20 = vld [vmem:[#allocation56_spill] sm:$0xff] }
 0xe5c   : > { %v3232_v32 = vadd.f32 %v9012_v13, %v3161_v58  ;;  %v6276_v4 = vunpack.c.h.bf16 %v13421_v10  ;;  %v7409_v24 = vor.u32 1.1754944e-38, %v7408_v55  ;;  %vm7407_vm10 = vcmp.eq.f32.partialorder %v7406_v49, 8.507059e+37 }
 0xe5d   : > { %v7053_v54 = vmax.f32 %v6984_v17, 0.0  ;;  %7030 = vmatmul.f32.gmra.mxu0 %v6272_v26  ;;  %8737 = vmatmul.msk.f32.gmra.mxu1 %vm384_vm0, %v7721_v41  ;;  %v7385_v14 = vmul.f32 %v8862_v35, %v7384_v27  ;;  %v3164_v51 = vadd.f32 %v13234_v57, %v14264_v20  ;;  %v13499_v15 = vpop.f32.mrf.mxu3  ;;  %v6880_v41 = vadd.f32 %v13192_v37, %v13451_v31 }
 0xe5e   : > { %v3264_v3 = vmax.f32 %v3232_v32, 0.0 }
 0xe5f   : > { %v8864_v5 = vpop.eup %8863  ;;  %v8709_v36 = vmul.f32 -1.442695, %v7053_v54  ;;  %v7386_v2 = vadd.f32 %v8862_v35, %v7385_v14  ;;  %v9013_v14 = vld [vmem:[%s9107_s10 + $0x68] sm:$0xff] }
 0xe60   : > { %v8866_v1 = vpop.eup %8865  ;;  %v13475_v50 = vadd.f32 1.0, %v8864_v5  ;;  %v7084_v54 = vadd.f32 1.0, %v3264_v3  ;;  %v3233_v21 = vadd.f32 %v9013_v14, %v3164_v51  ;;  %v9016_v51 = vld [vmem:[%s9107_s10 + $0x78] sm:$0xff]  ;;  %v13549_v14 = vld [vmem:[%s13854_s3 + $0x8] ss:$0 sm:$0xff] }
 0xe61   : > { %v7398_v47 = vmul.f32 %v8866_v1, %v13459_v43  ;;  %8867 = vpow2.f32 %v8709_v36  ;;  %v7390_v9 = vsel %vm7389_vm5, %v8862_v35, %v7386_v2  ;;  %vm7403_vm7 = vweird.f32 %v8866_v1 }
 0xe62   : > { %8869 = vrcp.f32 %v13475_v50  ;;  %v6986_v42 = vpop.f32.mrf.mxu0  ;;  %v7395_v53 = vsel %vm7392_vm6, %v7394_v63, %v7390_v9  ;;  %vm7404_vm9 = vmor %vm7402_vm8, %vm7403_vm7  ;;  %v7423_v10 = vand.u32 2147483648, %v13475_v50  ;;  %v7421_v56 = vand.u32 2147483647, %v13475_v50 }
 0xe63   : > { %v7399_v34 = vsub.f32 1.0, %v7398_v47  ;;  %v6987_v18 = vadd.f32 %v6986_v42, %v6874_v62  ;;  %v7722_v38 = vmul.f32 %v7395_v53, %v7082_v45  ;;  %vm7417_vm12 = vweird.f32 %v13475_v50 }
 0xe64   : > { %v7424_v48 = vor.u32 1.1754944e-38, %v7423_v10  ;;  %vm7422_vm14 = vcmp.eq.f32.partialorder %v7421_v56, 8.507059e+37  ;;  %v3265_v45 = vmax.f32 %v3233_v21, 0.0  ;;  %v14267_v21 = vld [vmem:[#allocation61_spill] sm:$0xff] }
 0xe65   : > { %v7054_v59 = vmax.f32 %v6987_v18, 0.0  ;;  %7033 = vmatmul.f32.gmra.mxu0 %v6274_v40  ;;  %8738 = vmatmul.msk.f32.gmra.mxu1 %vm384_vm0, %v7722_v38  ;;  %v7400_v44 = vmul.f32 %v8866_v1, %v7399_v34  ;;  %v13516_v42 = vpop.f32.mrf.mxu3  ;;  %v13521_v18 = vld [vmem:[%s13854_s3 + $0xd] ss:$0 sm:$0xff] }
 0xe66   : > { %v6883_v38 = vadd.f32 %v13521_v18, %v13467_v6  ;;  %v7085_v55 = vadd.f32 1.0, %v3265_v45 }
 0xe67   : > { %v8868_v28 = vpop.eup %8867  ;;  %v8710_v0 = vmul.f32 -1.442695, %v7054_v59  ;;  %v7401_v23 = vadd.f32 %v8866_v1, %v7400_v44  ;;  %v9015_v59 = vld [vmem:[%s9107_s10 + $0x70] sm:$0xff] }
 0xe68   : > { %v8870_v7 = vpop.eup %8869  ;;  %v13491_v52 = vadd.f32 1.0, %v8868_v28 }
 0xe69   : > { %v7413_v46 = vmul.f32 %v8870_v7, %v13475_v50  ;;  %8871 = vpow2.f32 %v8710_v0  ;;  %v7405_v35 = vsel %vm7404_vm9, %v8866_v1, %v7401_v23  ;;  %vm7418_vm11 = vweird.f32 %v8870_v7  ;;  %v14265_v50 = vld [vmem:[#allocation55_spill] sm:$0xff] }
 0xe6a   : > { %8873 = vrcp.f32 %v13491_v52  ;;  %v6989_v19 = vpop.f32.mrf.mxu0  ;;  %v7410_v29 = vsel %vm7407_vm10, %v7409_v24, %v7405_v35  ;;  %vm7419_vm13 = vmor %vm7417_vm12, %vm7418_vm11  ;;  %v3167_v40 = vadd.f32 %v13234_v57, %v14265_v50  ;;  %v7438_v63 = vand.u32 2147483648, %v13491_v52 }
 0xe6b   : > { %v7414_v25 = vsub.f32 1.0, %v7413_v46  ;;  %v6990_v43 = vadd.f32 %v6989_v19, %v6877_v30  ;;  %v7723_v26 = vmul.f32 %v7410_v29, %v7083_v22  ;;  %v7436_v61 = vand.u32 2147483647, %v13491_v52 }
 0xe6c   : > { %vm7432_vm1 = vweird.f32 %v13491_v52  ;;  %v3234_v44 = vadd.f32 %v9015_v59, %v3167_v40  ;;  %v7439_v22 = vor.u32 1.1754944e-38, %v7438_v63  ;;  %v9018_v40 = vld [vmem:[%s9107_s10 + $0x80] sm:$0xff] }
 0xe6d   : > { %v7055_v11 = vmax.f32 %v6990_v43, 0.0  ;;  %7036 = vmatmul.f32.gmra.mxu0 %v6276_v4  ;;  %8739 = vmatmul.msk.f32.gmra.mxu1 %vm384_vm0, %v7723_v26  ;;  %v7415_v8 = vmul.f32 %v8870_v7, %v7414_v25  ;;  %vm7437_vm3 = vcmp.eq.f32.partialorder %v7436_v61, 8.507059e+37  ;;  %v6886_v43 = vadd.f32 %v13521_v18, %v13483_v39  ;;  %v13539_v3 = vpop.f32.mrf.mxu3 }
 0xe6e   : > { %v3266_v32 = vmax.f32 %v3234_v44, 0.0  ;;  %v14268_v44 = vld [vmem:[#allocation60_spill] sm:$0xff] }
 0xe6f   : > { %v8872_v27 = vpop.eup %8871  ;;  %v8711_v17 = vmul.f32 -1.442695, %v7055_v11  ;;  %v7416_v16 = vadd.f32 %v8870_v7, %v7415_v8 }
 0xe70   : > { %v8874_v33 = vpop.eup %8873  ;;  %v13507_v12 = vadd.f32 1.0, %v8872_v27  ;;  %v7086_v20 = vadd.f32 1.0, %v3266_v32 }
 0xe71   : > { %v7428_v5 = vmul.f32 %v8874_v33, %v13491_v52  ;;  %8875 = vpow2.f32 %v8711_v17  ;;  %v7420_v36 = vsel %vm7419_vm13, %v8870_v7, %v7416_v16  ;;  %vm7433_vm15 = vweird.f32 %v8874_v33  ;;  %v14266_v52 = vld [vmem:[#allocation57_spill] sm:$0xff] }
 0xe72   : > { %8877 = vrcp.f32 %v13507_v12  ;;  %v6992_v62 = vpop.f32.mrf.mxu0  ;;  %v7425_v37 = vsel %vm7422_vm14, %v7424_v48, %v7420_v36  ;;  %vm7434_vm2 = vmor %vm7432_vm1, %vm7433_vm15  ;;  %v3170_v4 = vadd.f32 %v13234_v57, %v14266_v52  ;;  %v7453_v24 = vand.u32 2147483648, %v13507_v12 }
 0xe73   : > { %v7429_v31 = vsub.f32 1.0, %v7428_v5  ;;  %v6993_v2 = vadd.f32 %v6992_v62, %v6880_v41  ;;  %v7724_v1 = vmul.f32 %v7425_v37, %v7084_v54  ;;  %v7451_v19 = vand.u32 2147483647, %v13507_v12 }
 0xe74   : > { %vm7447_vm5 = vweird.f32 %v13507_v12  ;;  %v3235_v10 = vadd.f32 %v9016_v51, %v3170_v4  ;;  %v7454_v8 = vor.u32 1.1754944e-38, %v7453_v24  ;;  %v9019_v24 = vld [vmem:[%s9107_s10 + $0x88] sm:$0xff]  ;;  %vm7959_vm1 = vcmask 130048  }
 0xe75   : > { %v7056_v47 = vmax.f32 %v6993_v2, 0.0  ;;  %8740 = vmatmul.msk.f32.gmra.mxu1 %vm384_vm0, %v7724_v1  ;;  %v7430_v9 = vmul.f32 %v8874_v33, %v7429_v31  ;;  %vm7452_vm7 = vcmp.eq.f32.partialorder %v7451_v19, 8.507059e+37  ;;  %v6889_v2 = vadd.f32 %v13521_v18, %v13499_v15 }
 0xe76   : > { %v3267_v54 = vmax.f32 %v3235_v10, 0.0 }
 0xe77   : > { %v8876_v53 = vpop.eup %8875  ;;  %v8712_v34 = vmul.f32 -1.442695, %v7056_v47  ;;  %v7431_v60 = vadd.f32 %v8874_v33, %v7430_v9 }
 0xe78   : > { %v8878_v58 = vpop.eup %8877  ;;  %v13527_v49 = vadd.f32 1.0, %v8876_v53  ;;  %v7087_v50 = vadd.f32 1.0, %v3267_v54 }
 0xe79   : > { %v7443_v28 = vmul.f32 %v8878_v58, %v13507_v12  ;;  %8879 = vpow2.f32 %v8712_v34  ;;  %v7435_v0 = vsel %vm7434_vm2, %v8874_v33, %v7431_v60  ;;  %vm7448_vm4 = vweird.f32 %v8878_v58  ;;  %v13563_v34 = vpop.f32.mrf.mxu3 }
 0xe7a   : > { %8881 = vrcp.f32 %v13527_v49  ;;  %v6995_v30 = vpop.f32.mrf.mxu0  ;;  %v7440_v6 = vsel %vm7437_vm3, %v7439_v22, %v7435_v0  ;;  %vm7449_vm6 = vmor %vm7447_vm5, %vm7448_vm4  ;;  %v3173_v12 = vadd.f32 %v13549_v14, %v14267_v21  ;;  %v7468_v48 = vand.u32 2147483648, %v13527_v49 }
 0xe7b   : > { %v7444_v23 = vsub.f32 1.0, %v7443_v28  ;;  %v6996_v7 = vadd.f32 %v6995_v30, %v6883_v38  ;;  %v7725_v13 = vmul.f32 %v7440_v6, %v7085_v55  ;;  %v7466_v62 = vand.u32 2147483647, %v13527_v49 }
 0xe7c   : > { %vm7462_vm9 = vweird.f32 %v13527_v49  ;;  %v3236_v63 = vadd.f32 %v9018_v40, %v3173_v12  ;;  %v7469_v9 = vor.u32 1.1754944e-38, %v7468_v48  ;;  %v6895_v21 = vadd.f32 %v13521_v18, %v13539_v3 }
 0xe7d   : > { %v7057_v46 = vmax.f32 %v6996_v7, 0.0  ;;  %8741 = vmatmul.msk.f32.gmra.mxu1 %vm384_vm0, %v7725_v13  ;;  %v7445_v35 = vmul.f32 %v8878_v58, %v7444_v23  ;;  %vm7467_vm11 = vcmp.eq.f32.partialorder %v7466_v62, 8.507059e+37  ;;  %v6892_v7 = vadd.f32 %v13521_v18, %v13516_v42  ;;  %v13576_v13 = vld [vmem:[%s13854_s3 + $0xe] ss:$0 sm:$0xff] }
 0xe7e   : > { %v3268_v59 = vmax.f32 %v3236_v63, 0.0 }
 0xe7f   : > { %v8880_v29 = vpop.eup %8879  ;;  %v8713_v25 = vmul.f32 -1.442695, %v7057_v46  ;;  %v7446_v26 = vadd.f32 %v8878_v58, %v7445_v35 }
 0xe80   : > { %v8882_v57 = vpop.eup %8881  ;;  %v13542_v11 = vadd.f32 1.0, %v8880_v29  ;;  %v7088_v4 = vadd.f32 1.0, %v3268_v59 }
 0xe81   : > { %v7458_v56 = vmul.f32 %v8882_v57, %v13527_v49  ;;  %8883 = vpow2.f32 %v8713_v25  ;;  %v7450_v27 = vsel %vm7449_vm6, %v8878_v58, %v7446_v26  ;;  %vm7463_vm8 = vweird.f32 %v8882_v57 }
 0xe82   : > { %8885 = vrcp.f32 %v13542_v11  ;;  %v6998_v39 = vpop.f32.mrf.mxu0  ;;  %v7455_v17 = vsel %vm7452_vm7, %v7454_v8, %v7450_v27  ;;  %vm7464_vm10 = vmor %vm7462_vm9, %vm7463_vm8  ;;  %v3176_v49 = vadd.f32 %v13549_v14, %v14268_v44  ;;  %v7483_v22 = vand.u32 2147483648, %v13542_v11 }
 0xe83   : > { %v7459_v41 = vsub.f32 1.0, %v7458_v56  ;;  %v6999_v16 = vadd.f32 %v6998_v39, %v6886_v43  ;;  %v7726_v33 = vmul.f32 %v7455_v17, %v7086_v20  ;;  %v7481_v30 = vand.u32 2147483647, %v13542_v11  ;;  %v14269_v56 = vld [vmem:[#allocation62_spill] sm:$0xff] }
 0xe84   : > { %vm7477_vm13 = vweird.f32 %v13542_v11  ;;  %v3237_v46 = vadd.f32 %v9019_v24, %v3176_v49  ;;  %v7484_v19 = vor.u32 1.1754944e-38, %v7483_v22  ;;  %v3179_v27 = vadd.f32 %v13549_v14, %v14269_v56 }
 0xe85   : > { %v7058_v5 = vmax.f32 %v6999_v16, 0.0  ;;  %8742 = vmatmul.msk.f32.gmra.mxu1 %vm384_vm0, %v7726_v33  ;;  %v7460_v36 = vmul.f32 %v8882_v57, %v7459_v41  ;;  %vm7482_vm15 = vcmp.eq.f32.partialorder %v7481_v30, 8.507059e+37  ;;  %v6898_v22 = vadd.f32 %v13521_v18, %v13563_v34 }
 0xe86   : > { %v3269_v8 = vmax.f32 %v3237_v46, 0.0 }
 0xe87   : > { %v8884_v37 = vpop.eup %8883  ;;  %v8714_v31 = vmul.f32 -1.442695, %v7058_v5  ;;  %v7461_v1 = vadd.f32 %v8882_v57, %v7460_v36  ;;  %v9020_v36 = vld [vmem:[%s9107_s10 + $0x90] sm:$0xff] }
 0xe88   : > { %v8886_v45 = vpop.eup %8885  ;;  %v13560_v47 = vadd.f32 1.0, %v8884_v37  ;;  %v7089_v5 = vadd.f32 1.0, %v3269_v8  ;;  %v3238_v62 = vadd.f32 %v9020_v36, %v3179_v27 }
 0xe89   : > { %v7473_v61 = vmul.f32 %v8886_v45, %v13542_v11  ;;  %8887 = vpow2.f32 %v8714_v31  ;;  %v7465_v53 = vsel %vm7464_vm10, %v8882_v57, %v7461_v1  ;;  %vm7478_vm12 = vweird.f32 %v8886_v45  ;;  %v13592_v11 = vpop.f32.mrf.mxu3 }
 0xe8a   : > { %8889 = vrcp.f32 %v13560_v47  ;;  %v7001_v15 = vpop.f32.mrf.mxu0  ;;  %v7470_v38 = vsel %vm7467_vm11, %v7469_v9, %v7465_v53  ;;  %vm7479_vm14 = vmor %vm7477_vm13, %vm7478_vm12  ;;  %v7498_v39 = vand.u32 2147483648, %v13560_v47  ;;  %v7496_v16 = vand.u32 2147483647, %v13560_v47  ;;  %v14270_v53 = vld [vmem:[#allocation66_spill] sm:$0xff] }
 0xe8b   : > { %v7474_v60 = vsub.f32 1.0, %v7473_v61  ;;  %v7002_v58 = vadd.f32 %v7001_v15, %v6889_v2  ;;  %v7727_v55 = vmul.f32 %v7470_v38, %v7087_v50  ;;  %vm7492_vm3 = vweird.f32 %v13560_v47 }
 0xe8c   : > { %v7499_v31 = vor.u32 1.1754944e-38, %v7498_v39  ;;  %vm7497_vm5 = vcmp.eq.f32.partialorder %v7496_v16, 8.507059e+37  ;;  %v3270_v61 = vmax.f32 %v3238_v62, 0.0  ;;  %v3182_v15 = vadd.f32 %v13549_v14, %v14270_v53 }
 0xe8d   : > { %v7059_v28 = vmax.f32 %v7002_v58, 0.0  ;;  %8743 = vmatmul.msk.f32.gmra.mxu1 %vm384_vm0, %v7727_v55  ;;  %v7475_v0 = vmul.f32 %v8886_v45, %v7474_v60  ;;  %v6901_v27 = vadd.f32 %v13521_v18, %v13592_v11 }
 0xe8e   : > { %v7090_v30 = vadd.f32 1.0, %v3270_v61 }
 0xe8f   : > { %v8888_v6 = vpop.eup %8887  ;;  %v8715_v23 = vmul.f32 -1.442695, %v7059_v28  ;;  %v7476_v32 = vadd.f32 %v8886_v45, %v7475_v0 }
 0xe90   : > { %v8890_v52 = vpop.eup %8889  ;;  %v13580_v35 = vadd.f32 1.0, %v8888_v6  ;;  %v9021_v6 = vld [vmem:[%s9107_s10 + $0x98] sm:$0xff] }
 0xe91   : > { %v7488_v29 = vmul.f32 %v8890_v52, %v13560_v47  ;;  %8891 = vpow2.f32 %v8715_v23  ;;  %v7480_v42 = vsel %vm7479_vm14, %v8886_v45, %v7476_v32  ;;  %vm7493_vm2 = vweird.f32 %v8890_v52  ;;  %v13617_v59 = vpop.f32.mrf.mxu3 }
 0xe92   : > { %8893 = vrcp.f32 %v13580_v35  ;;  %v7004_v25 = vpop.f32.mrf.mxu0  ;;  %v7863_v43 = vpop.f32.mrf.mxu1  ;;  %v7485_v26 = vsel %vm7482_vm15, %v7484_v19, %v7480_v42  ;;  %vm7494_vm4 = vmor %vm7492_vm3, %vm7493_vm2  ;;  %v7513_v38 = vand.u32 2147483648, %v13580_v35  ;;  %v7511_v55 = vand.u32 2147483647, %v13580_v35 }
 0xe93   : > { %v7489_v57 = vsub.f32 1.0, %v7488_v29  ;;  %v7005_v20 = vadd.f32 %v7004_v25, %v6892_v7  ;;  %v7864_v51 = vadd.f32 %v13576_v13, %v7863_v43  ;;  %v7728_v10 = vmul.f32 %v7485_v26, %v7088_v4  ;;  %v14271_v43 = vld [vmem:[#allocation65_spill] sm:$0xff] }
 0xe94   : > { %vm7507_vm7 = vweird.f32 %v13580_v35  ;;  %v3239_v23 = vadd.f32 %v9021_v6, %v3182_v15  ;;  %v7514_v32 = vor.u32 1.1754944e-38, %v7513_v38  ;;  %vm7512_vm9 = vcmp.eq.f32.partialorder %v7511_v55, 8.507059e+37  ;;  %v9023_v55 = vld [vmem:[%s9107_s10 + $0xa8] sm:$0xff] }
 0xe95   : > { %v7060_v17 = vmax.f32 %v7005_v20, 0.0  ;;  %7960 = vst.msk [vmem:[%s13589_s29] sm:$0xff] %vm7959_vm1, %v7864_v51  ;;  %8744 = vmatmul.msk.f32.gmra.mxu1 %vm384_vm0, %v7728_v10  ;;  %v7490_v41 = vmul.f32 %v8890_v52, %v7489_v57  ;;  %v3185_v26 = vadd.f32 %v13549_v14, %v14271_v43  ;;  %v6904_v15 = vadd.f32 %v13521_v18, %v13617_v59 }
 0xe96   : > { %v3271_v25 = vmax.f32 %v3239_v23, 0.0 }
 0xe97   : > { %v8892_v33 = vpop.eup %8891  ;;  %v8716_v54 = vmul.f32 -1.442695, %v7060_v17  ;;  %v7491_v12 = vadd.f32 %v8890_v52, %v7490_v41 }
 0xe98   : > { %v8894_v48 = vpop.eup %8893  ;;  %v13605_v37 = vadd.f32 1.0, %v8892_v33  ;;  %v7091_v16 = vadd.f32 1.0, %v3271_v25  ;;  %v9022_v33 = vld [vmem:[%s9107_s10 + $0xa0] sm:$0xff] }
 0xe99   : > { %v7503_v2 = vmul.f32 %v8894_v48, %v13580_v35  ;;  %8895 = vpow2.f32 %v8716_v54  ;;  %v7495_v1 = vsel %vm7494_vm4, %v8890_v52, %v7491_v12  ;;  %vm7508_vm6 = vweird.f32 %v8894_v48  ;;  %v13638_v17 = vpop.f32.mrf.mxu3 }
 0xe9a   : > { %8897 = vrcp.f32 %v13605_v37  ;;  %v7007_v3 = vpop.f32.mrf.mxu0  ;;  %v7866_v45 = vpop.f32.mrf.mxu1  ;;  %v7500_v50 = vsel %vm7497_vm5, %v7499_v31, %v7495_v1  ;;  %vm7509_vm8 = vmor %vm7507_vm7, %vm7508_vm6  ;;  %v7528_v57 = vand.u32 2147483648, %v13605_v37  ;;  %v7526_v10 = vand.u32 2147483647, %v13605_v37 }
 0xe9b   : > { %v7504_v40 = vsub.f32 1.0, %v7503_v2  ;;  %v7008_v63 = vadd.f32 %v7007_v3, %v6895_v21  ;;  %v7867_v47 = vadd.f32 %v13576_v13, %v7866_v45  ;;  %v7729_v9 = vmul.f32 %v7500_v50, %v7089_v5  ;;  %v14272_v45 = vld [vmem:[#allocation67_spill] sm:$0xff] }
 0xe9c   : > { %vm7522_vm11 = vweird.f32 %v13605_v37  ;;  %v3240_v54 = vadd.f32 %v9022_v33, %v3185_v26  ;;  %v7529_v12 = vor.u32 1.1754944e-38, %v7528_v57  ;;  %vm7527_vm13 = vcmp.eq.f32.partialorder %v7526_v10, 8.507059e+37  ;;  %v9024_v10 = vld [vmem:[%s9107_s10 + $0xb0] sm:$0xff] }
 0xe9d   : > { %v7061_v60 = vmax.f32 %v7008_v63, 0.0  ;;  %7961 = vst.msk [vmem:[%s13589_s29 + $0x8] sm:$0xff] %vm7959_vm1, %v7867_v47  ;;  %8745 = vmatmul.msk.f32.gmra.mxu1 %vm384_vm0, %v7729_v9  ;;  %v7505_v58 = vmul.f32 %v8894_v48, %v7504_v40  ;;  %v3188_v50 = vadd.f32 %v13549_v14, %v14272_v45  ;;  %v6907_v26 = vadd.f32 %v13521_v18, %v13638_v17 }
 0xe9e   : > { %v3272_v3 = vmax.f32 %v3240_v54, 0.0 }
 0xe9f   : > { %v8896_v44 = vpop.eup %8895  ;;  %v8717_v49 = vmul.f32 -1.442695, %v7061_v60  ;;  %v7506_v28 = vadd.f32 %v8894_v48, %v7505_v58 }
 0xea0   : > { %v8898_v0 = vpop.eup %8897  ;;  %v13623_v7 = vadd.f32 1.0, %v8896_v44  ;;  %v7092_v58 = vadd.f32 1.0, %v3272_v3  ;;  %v3241_v44 = vadd.f32 %v9023_v55, %v3188_v50 }
 0xea1   : > { %v7518_v52 = vmul.f32 %v8898_v0, %v13605_v37  ;;  %8899 = vpow2.f32 %v8717_v49  ;;  %v7510_v4 = vsel %vm7509_vm8, %v8894_v48, %v7506_v28  ;;  %vm7523_vm10 = vweird.f32 %v8898_v0 }
 0xea2   : > { %8901 = vrcp.f32 %v13623_v7  ;;  %v7010_v34 = vpop.f32.mrf.mxu0  ;;  %v7869_v24 = vpop.f32.mrf.mxu1  ;;  %v7515_v46 = vsel %vm7512_vm9, %v7514_v32, %v7510_v4  ;;  %vm7524_vm12 = vmor %vm7522_vm11, %vm7523_vm10  ;;  %v7543_v40 = vand.u32 2147483648, %v13623_v7  ;;  %v7541_v9 = vand.u32 2147483647, %v13623_v7 }
 0xea3   : > { %v7519_v35 = vsub.f32 1.0, %v7518_v52  ;;  %v7011_v19 = vadd.f32 %v7010_v34, %v6898_v22  ;;  %v7870_v29 = vadd.f32 %v13576_v13, %v7869_v24  ;;  %v7730_v42 = vmul.f32 %v7515_v46, %v7090_v30  ;;  %v6909_v30 = vpop.f32.mrf.mxu3  ;;  %v14273_v24 = vld [vmem:[#allocation71_spill] sm:$0xff] }
 0xea4   : > { %vm7537_vm15 = vweird.f32 %v13623_v7  ;;  %v7544_v22 = vor.u32 1.1754944e-38, %v7543_v40  ;;  %vm7542_vm3 = vcmp.eq.f32.partialorder %v7541_v9, 8.507059e+37  ;;  %v3273_v34 = vmax.f32 %v3241_v44, 0.0  ;;  %v9025_v9 = vld [vmem:[%s9107_s10 + $0xb8] sm:$0xff] }
 0xea5   : > { %v7062_v20 = vmax.f32 %v7011_v19, 0.0  ;;  %7962 = vst.msk [vmem:[%s13589_s29 + $0x10] sm:$0xff] %vm7959_vm1, %v7870_v29  ;;  %8746 = vmatmul.msk.f32.gmra.mxu1 %vm384_vm0, %v7730_v42  ;;  %v7520_v51 = vmul.f32 %v8898_v0, %v7519_v35  ;;  %v3191_v46 = vadd.f32 %v13549_v14, %v14273_v24  ;;  %v6910_v50 = vadd.f32 %v13521_v18, %v6909_v30 }
 0xea7   : > { %v8900_v8 = vpop.eup %8899  ;;  %v8718_v56 = vmul.f32 -1.442695, %v7062_v20  ;;  %v7521_v39 = vadd.f32 %v8898_v0, %v7520_v51  ;;  %v7093_v51 = vadd.f32 1.0, %v3273_v34 }
 0xea8   : > { %v8902_v41 = vpop.eup %8901  ;;  %v13641_v21 = vadd.f32 1.0, %v8900_v8  ;;  %v3242_v8 = vadd.f32 %v9024_v10, %v3191_v46 }
 0xea9   : > { %v7533_v48 = vmul.f32 %v8902_v41, %v13623_v7  ;;  %8903 = vpow2.f32 %v8718_v56  ;;  %v7525_v5 = vsel %vm7524_vm12, %v8898_v0, %v7521_v39  ;;  %vm7538_vm14 = vweird.f32 %v8902_v41 }
 0xeaa   : > { %8905 = vrcp.f32 %v13641_v21  ;;  %v7013_v11 = vpop.f32.mrf.mxu0  ;;  %v7872_v36 = vpop.f32.mrf.mxu1  ;;  %v7530_v62 = vsel %vm7527_vm13, %v7529_v12, %v7525_v5  ;;  %vm7539_vm2 = vmor %vm7537_vm15, %vm7538_vm14  ;;  %v7558_v35 = vand.u32 2147483648, %v13641_v21  ;;  %v7556_v42 = vand.u32 2147483647, %v13641_v21 }
 0xeab   : > { %v7534_v37 = vsub.f32 1.0, %v7533_v48  ;;  %v7014_v31 = vadd.f32 %v7013_v11, %v6901_v27  ;;  %v7873_v2 = vadd.f32 %v13576_v13, %v7872_v36  ;;  %v7731_v1 = vmul.f32 %v7530_v62, %v7091_v16  ;;  %v6912_v5 = vpop.f32.mrf.mxu3  ;;  %v14274_v36 = vld [vmem:[#allocation70_spill] sm:$0xff] }
 0xeac   : > { %vm7552_vm5 = vweird.f32 %v13641_v21  ;;  %v7559_v27 = vor.u32 1.1754944e-38, %v7558_v35  ;;  %vm7557_vm7 = vcmp.eq.f32.partialorder %v7556_v42, 8.507059e+37  ;;  %v3274_v11 = vmax.f32 %v3242_v8, 0.0  ;;  %v9026_v42 = vld [vmem:[%s9107_s10 + $0xc0] sm:$0xff] }
 0xead   : > { %v7063_v63 = vmax.f32 %v7014_v31, 0.0  ;;  %7963 = vst.msk [vmem:[%s13589_s29 + $0x18] sm:$0xff] %vm7959_vm1, %v7873_v2  ;;  %8747 = vmatmul.msk.f32.gmra.mxu1 %vm384_vm0, %v7731_v1  ;;  %v7535_v47 = vmul.f32 %v8902_v41, %v7534_v37  ;;  %v3194_v62 = vadd.f32 %v13549_v14, %v14274_v36  ;;  %v6913_v46 = vadd.f32 %v13521_v18, %v6912_v5 }
 0xeaf   : > { %v8904_v61 = vpop.eup %8903  ;;  %v8719_v53 = vmul.f32 -1.442695, %v7063_v63  ;;  %v7536_v38 = vadd.f32 %v8902_v41, %v7535_v47  ;;  %v7094_v47 = vadd.f32 1.0, %v3274_v11 }
 0xeb0   : > { %v8906_v60 = vpop.eup %8905  ;;  %v13657_v49 = vadd.f32 1.0, %v8904_v61  ;;  %v3243_v61 = vadd.f32 %v9025_v9, %v3194_v62 }
 0xeb1   : > { %v7548_v28 = vmul.f32 %v8906_v60, %v13641_v21  ;;  %8907 = vpow2.f32 %v8719_v53  ;;  %v7540_v0 = vsel %vm7539_vm2, %v8902_v41, %v7536_v38  ;;  %vm7553_vm4 = vweird.f32 %v8906_v60 }
 0xeb2   : > { %8909 = vrcp.f32 %v13657_v49  ;;  %v7016_v59 = vpop.f32.mrf.mxu0  ;;  %v7875_v6 = vpop.f32.mrf.mxu1  ;;  %v7545_v23 = vsel %vm7542_vm3, %v7544_v22, %v7540_v0  ;;  %vm7554_vm6 = vmor %vm7552_vm5, %vm7553_vm4  ;;  %v7573_v37 = vand.u32 2147483648, %v13657_v49  ;;  %v7571_v1 = vand.u32 2147483647, %v13657_v49 }
 0xeb3   : > { %v7549_v7 = vsub.f32 1.0, %v7548_v28  ;;  %v7017_v32 = vadd.f32 %v7016_v59, %v6904_v15  ;;  %v7876_v52 = vadd.f32 %v13576_v13, %v7875_v6  ;;  %v7732_v4 = vmul.f32 %v7545_v23, %v7092_v58  ;;  %v14275_v59 = vld [vmem:[#allocation72_spill] sm:$0xff] }
 0xeb4   : > { %vm7567_vm9 = vweird.f32 %v13657_v49  ;;  %v7574_v15 = vor.u32 1.1754944e-38, %v7573_v37  ;;  %vm7572_vm11 = vcmp.eq.f32.partialorder %v7571_v1, 8.507059e+37  ;;  %v3275_v30 = vmax.f32 %v3243_v61, 0.0  ;;  %v9027_v1 = vld [vmem:[%s9107_s10 + $0xc8] sm:$0xff] }
 0xeb5   : > { %v7064_v19 = vmax.f32 %v7017_v32, 0.0  ;;  %7964 = vst.msk [vmem:[%s13589_s29 + $0x20] sm:$0xff] %vm7959_vm1, %v7876_v52  ;;  %8748 = vmatmul.msk.f32.gmra.mxu1 %vm384_vm0, %v7732_v4  ;;  %v7550_v29 = vmul.f32 %v8906_v60, %v7549_v7  ;;  %v3197_v6 = vadd.f32 %v13549_v14, %v14275_v59  ;;  %v6915_v4 = vpop.f32.mrf.mxu3 }
 0xeb6   : > { %v6916_v36 = vadd.f32 %v13521_v18, %v6915_v4 }
 0xeb7   : > { %v8908_v25 = vpop.eup %8907  ;;  %v8720_v43 = vmul.f32 -1.442695, %v7064_v19  ;;  %v7551_v57 = vadd.f32 %v8906_v60, %v7550_v29  ;;  %v7095_v29 = vadd.f32 1.0, %v3275_v30 }
 0xeb8   : > { %v8910_v20 = vpop.eup %8909  ;;  %v13673_v56 = vadd.f32 1.0, %v8908_v25  ;;  %v3244_v25 = vadd.f32 %v9026_v42, %v3197_v6 }
 0xeb9   : > { %v7563_v39 = vmul.f32 %v8910_v20, %v13657_v49  ;;  %8911 = vpow2.f32 %v8720_v43  ;;  %v7555_v41 = vsel %vm7554_vm6, %v8906_v60, %v7551_v57  ;;  %vm7568_vm8 = vweird.f32 %v8910_v20 }
 0xeba   : > { %8913 = vrcp.f32 %v13673_v56  ;;  %v7019_v17 = vpop.f32.mrf.mxu0  ;;  %v7878_v16 = vpop.f32.mrf.mxu1  ;;  %v7560_v33 = vsel %vm7557_vm7, %v7559_v27, %v7555_v41  ;;  %vm7569_vm10 = vmor %vm7567_vm9, %vm7568_vm8  ;;  %v7588_v23 = vand.u32 2147483648, %v13673_v56  ;;  %v7586_v52 = vand.u32 2147483647, %v13673_v56 }
 0xebb   : > { %v7564_v54 = vsub.f32 1.0, %v7563_v39  ;;  %v7020_v21 = vadd.f32 %v7019_v17, %v6907_v26  ;;  %v7879_v12 = vadd.f32 %v13576_v13, %v7878_v16  ;;  %v7733_v48 = vmul.f32 %v7560_v33, %v7093_v51  ;;  %v14276_v16 = vld [vmem:[#allocation76_spill] sm:$0xff] }
 0xebc   : > { %vm7582_vm13 = vweird.f32 %v13673_v56  ;;  %v7589_v26 = vor.u32 1.1754944e-38, %v7588_v23  ;;  %vm7587_vm15 = vcmp.eq.f32.partialorder %v7586_v52, 8.507059e+37  ;;  %v3276_v17 = vmax.f32 %v3244_v25, 0.0  ;;  %v9028_v52 = vld [vmem:[%s9107_s10 + $0xd0] sm:$0xff] }
 0xebd   : > { %v7065_v31 = vmax.f32 %v7020_v21, 0.0  ;;  %7965 = vst.msk [vmem:[%s13589_s29 + $0x28] sm:$0xff] %vm7959_vm1, %v7879_v12  ;;  %8749 = vmatmul.msk.f32.gmra.mxu1 %vm384_vm0, %v7733_v48  ;;  %v7565_v2 = vmul.f32 %v8910_v20, %v7564_v54  ;;  %v3200_v33 = vadd.f32 %v13549_v14, %v14276_v16  ;;  %v6918_v37 = vpop.f32.mrf.mxu3 }
 0xebe   : > { %v6919_v6 = vadd.f32 %v13521_v18, %v6918_v37 }
 0xebf   : > { %v8912_v3 = vpop.eup %8911  ;;  %v8721_v45 = vmul.f32 -1.442695, %v7065_v31  ;;  %v7566_v40 = vadd.f32 %v8910_v20, %v7565_v2  ;;  %v7096_v2 = vadd.f32 1.0, %v3276_v17 }
 0xec0   : > { %v8914_v63 = vpop.eup %8913  ;;  %v13688_v53 = vadd.f32 1.0, %v8912_v3  ;;  %v3245_v3 = vadd.f32 %v9027_v1, %v3200_v33 }
 0xec1   : > { %v7578_v38 = vmul.f32 %v8914_v63, %v13673_v56  ;;  %8915 = vpow2.f32 %v8721_v45  ;;  %v7570_v60 = vsel %vm7569_vm10, %v8910_v20, %v7566_v40  ;;  %vm7583_vm12 = vweird.f32 %v8914_v63 }
 0xec2   : > { %8917 = vrcp.f32 %v13688_v53  ;;  %v7022_v58 = vpop.f32.mrf.mxu0  ;;  %v7881_v55 = vpop.f32.mrf.mxu1  ;;  %v7575_v44 = vsel %vm7572_vm11, %v7574_v15, %v7570_v60  ;;  %vm7584_vm14 = vmor %vm7582_vm13, %vm7583_vm12  ;;  %v7603_v54 = vand.u32 2147483648, %v13688_v53  ;;  %v7601_v48 = vand.u32 2147483647, %v13688_v53 }
 0xec3   : > { %v7579_v49 = vsub.f32 1.0, %v7578_v38  ;;  %v7023_v22 = vadd.f32 %v7022_v58, %v6910_v50  ;;  %v7882_v28 = vadd.f32 %v13576_v13, %v7881_v55  ;;  %v7734_v0 = vmul.f32 %v7575_v44, %v7094_v47  ;;  %v14277_v55 = vld [vmem:[#allocation75_spill] sm:$0xff] }
 0xec4   : > { %vm7597_vm3 = vweird.f32 %v13688_v53  ;;  %v7604_v50 = vor.u32 1.1754944e-38, %v7603_v54  ;;  %vm7602_vm5 = vcmp.eq.f32.partialorder %v7601_v48, 8.507059e+37  ;;  %v3277_v58 = vmax.f32 %v3245_v3, 0.0  ;;  %v9029_v48 = vld [vmem:[%s9107_s10 + $0xd8] sm:$0xff] }
 0xec5   : > { %v7066_v7 = vmax.f32 %v7023_v22, 0.0  ;;  %7966 = vst.msk [vmem:[%s13589_s29 + $0x30] sm:$0xff] %vm7959_vm1, %v7882_v28  ;;  %8750 = vmatmul.msk.f32.gmra.mxu1 %vm384_vm0, %v7734_v0  ;;  %v7580_v32 = vmul.f32 %v8914_v63, %v7579_v49  ;;  %v3203_v44 = vadd.f32 %v13549_v14, %v14277_v55 }
 0xec7   : > { %v8916_v34 = vpop.eup %8915  ;;  %v8722_v24 = vmul.f32 -1.442695, %v7066_v7  ;;  %v7581_v35 = vadd.f32 %v8914_v63, %v7580_v32  ;;  %v7097_v32 = vadd.f32 1.0, %v3277_v58  ;;  %v3246_v4 = vadd.f32 %v9028_v52, %v3203_v44 }
 0xec8   : > { %v8918_v19 = vpop.eup %8917  ;;  %v13703_v43 = vadd.f32 1.0, %v8916_v34 }
 0xec9   : > { %v7593_v57 = vmul.f32 %v8918_v19, %v13688_v53  ;;  %8919 = vpow2.f32 %v8722_v24  ;;  %v7585_v20 = vsel %vm7584_vm14, %v8914_v63, %v7581_v35  ;;  %vm7598_vm2 = vweird.f32 %v8918_v19 }
 0xeca   : > { %8921 = vrcp.f32 %v13703_v43  ;;  %v7025_v51 = vpop.f32.mrf.mxu0  ;;  %v7884_v10 = vpop.f32.mrf.mxu1  ;;  %v7590_v8 = vsel %vm7587_vm15, %v7589_v26, %v7585_v20  ;;  %vm7599_vm4 = vmor %vm7597_vm3, %vm7598_vm2  ;;  %v7618_v49 = vand.u32 2147483648, %v13703_v43  ;;  %v7616_v0 = vand.u32 2147483647, %v13703_v43 }
 0xecb   : > { %v7594_v56 = vsub.f32 1.0, %v7593_v57  ;;  %v7026_v27 = vadd.f32 %v7025_v51, %v6913_v46  ;;  %v7885_v39 = vadd.f32 %v13576_v13, %v7884_v10  ;;  %v7735_v41 = vmul.f32 %v7590_v8, %v7095_v29  ;;  %v14278_v10 = vld [vmem:[#allocation77_spill] sm:$0xff] }
 0xecc   : > { %vm7612_vm7 = vweird.f32 %v13703_v43  ;;  %v7619_v24 = vor.u32 1.1754944e-38, %v7618_v49  ;;  %vm7617_vm9 = vcmp.eq.f32.partialorder %v7616_v0, 8.507059e+37  ;;  %v3278_v51 = vmax.f32 %v3246_v4, 0.0  ;;  %v9030_v0 = vld [vmem:[%s9107_s10 + $0xe0] sm:$0xff] }
 0xecd   : > { %v7067_v21 = vmax.f32 %v7026_v27, 0.0  ;;  %7967 = vst.msk [vmem:[%s13589_s29 + $0x38] sm:$0xff] %vm7959_vm1, %v7885_v39  ;;  %8751 = vmatmul.msk.f32.gmra.mxu1 %vm384_vm0, %v7735_v41  ;;  %v7595_v12 = vmul.f32 %v8918_v19, %v7594_v56  ;;  %v3206_v8 = vadd.f32 %v13549_v14, %v14278_v10 }
 0xecf   : > { %v8920_v5 = vpop.eup %8919  ;;  %v8723_v11 = vmul.f32 -1.442695, %v7067_v21  ;;  %v7596_v62 = vadd.f32 %v8918_v19, %v7595_v12  ;;  %v7098_v12 = vadd.f32 1.0, %v3278_v51 }
 0xed0   : > { %v8922_v31 = vpop.eup %8921  ;;  %v13718_v45 = vadd.f32 1.0, %v8920_v5  ;;  %v3247_v5 = vadd.f32 %v9029_v48, %v3206_v8 }
 0xed1   : > { %v7608_v40 = vmul.f32 %v8922_v31, %v13703_v43  ;;  %8923 = vpow2.f32 %v8723_v11  ;;  %v7600_v63 = vsel %vm7599_vm4, %v8918_v19, %v7596_v62  ;;  %vm7613_vm6 = vweird.f32 %v8922_v31  ;;  %v6921_v19 = vpop.f32.mrf.mxu3 }
 0xed2   : > { %8925 = vrcp.f32 %v13718_v45  ;;  %v7028_v47 = vpop.f32.mrf.mxu0  ;;  %v7887_v9 = vpop.f32.mrf.mxu1  ;;  %v7605_v61 = vsel %vm7602_vm5, %v7604_v50, %v7600_v63  ;;  %vm7614_vm8 = vmor %vm7612_vm7, %vm7613_vm6  ;;  %v7633_v56 = vand.u32 2147483648, %v13718_v45  ;;  %v7631_v41 = vand.u32 2147483647, %v13718_v45 }
 0xed3   : > { %v7609_v53 = vsub.f32 1.0, %v7608_v40  ;;  %v7029_v15 = vadd.f32 %v7028_v47, %v6916_v36  ;;  %v7888_v38 = vadd.f32 %v13576_v13, %v7887_v9  ;;  %v7736_v60 = vmul.f32 %v7605_v61, %v7096_v2  ;;  %v14279_v47 = vld [vmem:[#allocation81_spill] sm:$0xff] }
 0xed4   : > { %v6922_v33 = vadd.f32 %v13521_v18, %v6921_v19  ;;  %vm7627_vm11 = vweird.f32 %v13718_v45  ;;  %v7634_v36 = vor.u32 1.1754944e-38, %v7633_v56  ;;  %vm7632_vm13 = vcmp.eq.f32.partialorder %v7631_v41, 8.507059e+37  ;;  %v14280_v19 = vld [vmem:[#allocation80_spill] sm:$0xff]  ;;  %v9031_v56 = vld [vmem:[%s9107_s10 + $0xe8] sm:$0xff] }
 0xed5   : > { %v7068_v22 = vmax.f32 %v7029_v15, 0.0  ;;  %7968 = vst.msk [vmem:[%s13589_s29 + $0x40] sm:$0xff] %vm7959_vm1, %v7888_v38  ;;  %8752 = vmatmul.msk.f32.gmra.mxu1 %vm384_vm0, %v7736_v60  ;;  %v7610_v28 = vmul.f32 %v8922_v31, %v7609_v53  ;;  %v3279_v63 = vmax.f32 %v3247_v5, 0.0  ;;  %v3209_v9 = vadd.f32 %v13549_v14, %v14279_v47  ;;  %v14281_v5 = vld [vmem:[#allocation82_spill] sm:$0xff] }
 0xed7   : > { %v8924_v30 = vpop.eup %8923  ;;  %v8724_v59 = vmul.f32 -1.442695, %v7068_v22  ;;  %v7611_v23 = vadd.f32 %v8922_v31, %v7610_v28  ;;  %v7099_v28 = vadd.f32 1.0, %v3279_v63 }
 0xed8   : > { %v8926_v7 = vpop.eup %8925  ;;  %v13733_v34 = vadd.f32 1.0, %v8924_v30  ;;  %v3248_v30 = vadd.f32 %v9030_v0, %v3209_v9 }
 0xed9   : > { %v7623_v46 = vmul.f32 %v8926_v7, %v13718_v45  ;;  %8927 = vpow2.f32 %v8724_v59  ;;  %v7615_v35 = vsel %vm7614_vm8, %v8922_v31, %v7611_v23  ;;  %vm7628_vm10 = vweird.f32 %v8926_v7  ;;  %v6924_v61 = vpop.f32.mrf.mxu3 }
 0xeda   : > { %8929 = vrcp.f32 %v13733_v34  ;;  %v7031_v29 = vpop.f32.mrf.mxu0  ;;  %v7890_v42 = vpop.f32.mrf.mxu1  ;;  %v7620_v25 = vsel %vm7617_vm9, %v7619_v24, %v7615_v35  ;;  %vm7629_vm12 = vmor %vm7627_vm11, %vm7628_vm10  ;;  %v7648_v53 = vand.u32 2147483648, %v13733_v34  ;;  %v7646_v60 = vand.u32 2147483647, %v13733_v34 }
 0xedb   : > { %v7624_v43 = vsub.f32 1.0, %v7623_v46  ;;  %v7032_v26 = vadd.f32 %v7031_v29, %v6919_v6  ;;  %v7891_v57 = vadd.f32 %v13576_v13, %v7890_v42  ;;  %v7737_v20 = vmul.f32 %v7620_v25, %v7097_v32 }
 0xedc   : > { %v6925_v44 = vadd.f32 %v13521_v18, %v6924_v61  ;;  %vm7642_vm15 = vweird.f32 %v13733_v34  ;;  %v7649_v6 = vor.u32 1.1754944e-38, %v7648_v53  ;;  %vm7647_vm3 = vcmp.eq.f32.partialorder %v7646_v60, 8.507059e+37 }
 0xedd   : > { %v7069_v27 = vmax.f32 %v7032_v26, 0.0  ;;  %7969 = vst.msk [vmem:[%s13589_s29 + $0x48] sm:$0xff] %vm7959_vm1, %v7891_v57  ;;  %8753 = vmatmul.msk.f32.gmra.mxu1 %vm384_vm0, %v7737_v20  ;;  %v7625_v39 = vmul.f32 %v8926_v7, %v7624_v43  ;;  %v3280_v35 = vmax.f32 %v3248_v30, 0.0  ;;  %v3212_v29 = vadd.f32 %v13549_v14, %v14280_v19 }
 0xedf   : > { %v8928_v17 = vpop.eup %8927  ;;  %v8725_v16 = vmul.f32 -1.442695, %v7069_v27  ;;  %v7626_v54 = vadd.f32 %v8926_v7, %v7625_v39  ;;  %v7100_v8 = vadd.f32 1.0, %v3280_v35  ;;  %v3249_v27 = vadd.f32 %v9031_v56, %v3212_v29 }
 0xee0   : > { %v8930_v21 = vpop.eup %8929  ;;  %v13748_v11 = vadd.f32 1.0, %v8928_v17 }
 0xee1   : > { %v7638_v62 = vmul.f32 %v8930_v21, %v13733_v34  ;;  %8931 = vpow2.f32 %v8725_v16  ;;  %v7630_v37 = vsel %vm7629_vm12, %v8926_v7, %v7626_v54  ;;  %vm7643_vm14 = vweird.f32 %v8930_v21 }
 0xee2   : > { %8933 = vrcp.f32 %v13748_v11  ;;  %v7034_v31 = vpop.f32.mrf.mxu0  ;;  %v7893_v2 = vpop.f32.mrf.mxu1  ;;  %v7635_v1 = vsel %vm7632_vm13, %v7634_v36, %v7630_v37  ;;  %vm7644_vm2 = vmor %vm7642_vm15, %vm7643_vm14  ;;  %v7663_v42 = vand.u32 2147483648, %v13748_v11  ;;  %v7661_v26 = vand.u32 2147483647, %v13748_v11 }
 0xee3   : > { %v7639_v3 = vsub.f32 1.0, %v7638_v62  ;;  %v7035_v45 = vadd.f32 %v7034_v31, %v6922_v33  ;;  %v7894_v50 = vadd.f32 %v13576_v13, %v7893_v2  ;;  %v7738_v40 = vmul.f32 %v7635_v1, %v7098_v12 }
 0xee4   : > { %vm7657_vm5 = vweird.f32 %v13748_v11  ;;  %v7664_v41 = vor.u32 1.1754944e-38, %v7663_v42  ;;  %vm7662_vm7 = vcmp.eq.f32.partialorder %v7661_v26, 8.507059e+37  ;;  %v3281_v62 = vmax.f32 %v3249_v27, 0.0 }
 0xee5   : > { %v7070_v15 = vmax.f32 %v7035_v45, 0.0  ;;  %7970 = vst.msk [vmem:[%s13589_s29 + $0x50] sm:$0xff] %vm7959_vm1, %v7894_v50  ;;  %8754 = vmatmul.msk.f32.gmra.mxu1 %vm384_vm0, %v7738_v40  ;;  %v7640_v38 = vmul.f32 %v8930_v21, %v7639_v3  ;;  %v9032_v45 = vld [vmem:[%s9107_s10 + $0xf0] sm:$0xff] }
 0xee6   : > { %v7101_v47 = vadd.f32 1.0, %v3281_v62 }
 0xee7   : > { %v8932_v58 = vpop.eup %8931  ;;  %v8726_v55 = vmul.f32 -1.442695, %v7070_v15  ;;  %v7641_v49 = vadd.f32 %v8930_v21, %v7640_v38 }
 0xee8   : > { %v8934_v22 = vpop.eup %8933  ;;  %v13763_v59 = vadd.f32 1.0, %v8932_v58 }
 0xee9   : > { %v7653_v23 = vmul.f32 %v8934_v22, %v13748_v11  ;;  %8935 = vpow2.f32 %v8726_v55  ;;  %v7645_v7 = vsel %vm7644_vm2, %v8930_v21, %v7641_v49  ;;  %vm7658_vm4 = vweird.f32 %v8934_v22  ;;  %v14282_v49 = vld [vmem:[#allocation84_spill] sm:$0xff] }
 0xeea   : > { %8937 = vrcp.f32 %v13763_v59  ;;  %v7037_v18 = vpop.f32.mrf.mxu0  ;;  %v7896_v32 = vpop.f32.mrf.mxu1  ;;  %v7650_v52 = vsel %vm7647_vm3, %v7649_v6, %v7645_v7  ;;  %vm7659_vm6 = vmor %vm7657_vm5, %vm7658_vm4  ;;  %v3215_v11 = vadd.f32 %v13549_v14, %v14281_v5  ;;  %v7678_v36 = vand.u32 2147483648, %v13763_v59  ;;  %v9033_v7 = vld [vmem:[%s9107_s10 + $0xf8] sm:$0xff] }
 0xeeb   : > { %v7654_v4 = vsub.f32 1.0, %v7653_v23  ;;  %v7038_v34 = vadd.f32 %v7037_v18, %v6925_v44  ;;  %v7897_v24 = vadd.f32 %v13576_v13, %v7896_v32  ;;  %v7739_v46 = vmul.f32 %v7650_v52, %v7099_v28 }
 0xeec   : > { %v7676_v31 = vand.u32 2147483647, %v13763_v59  ;;  %vm7672_vm9 = vweird.f32 %v13763_v59  ;;  %v3250_v50 = vadd.f32 %v9032_v45, %v3215_v11  ;;  %v7679_v63 = vor.u32 1.1754944e-38, %v7678_v36 }
 0xeed   : > { %v7071_v25 = vmax.f32 %v7038_v34, 0.0  ;;  %7971 = vst.msk [vmem:[%s13589_s29 + $0x58] sm:$0xff] %vm7959_vm1, %v7897_v24  ;;  %8755 = vmatmul.msk.f32.gmra.mxu1 %vm384_vm0, %v7739_v46  ;;  %v7655_v43 = vmul.f32 %v8934_v22, %v7654_v4 }
 0xeee   : > { %vm7677_vm11 = vcmp.eq.f32.partialorder %v7676_v31, 8.507059e+37  ;;  %v3282_v55 = vmax.f32 %v3250_v50, 0.0  ;;  %v9034_v50 = vld [vmem:[%s13854_s3 + $0xe] ss:$0 sm:$0xff] }
 0xeef   : > { %v8936_v57 = vpop.eup %8935  ;;  %v8727_v20 = vmul.f32 -1.442695, %v7071_v25  ;;  %v7656_v51 = vadd.f32 %v8934_v22, %v7655_v43 }
 0xef0   : > { %v8938_v10 = vpop.eup %8937  ;;  %v7230_v39 = vadd.f32 1.0, %v8936_v57  ;;  %v7102_v6 = vadd.f32 1.0, %v3282_v55 }
 0xef1   : > { %v7668_v17 = vmul.f32 %v8938_v10, %v13763_v59  ;;  %8939 = vpow2.f32 %v8727_v20  ;;  %v7660_v16 = vsel %vm7659_vm6, %v8934_v22, %v7656_v51  ;;  %vm7673_vm8 = vweird.f32 %v8938_v10 }
 0xef2   : > { %8941 = vrcp.f32 %v7230_v39  ;;  %v7899_v33 = vpop.f32.mrf.mxu1  ;;  %v7665_v54 = vsel %vm7662_vm7, %v7664_v41, %v7660_v16  ;;  %vm7674_vm10 = vmor %vm7672_vm9, %vm7673_vm8  ;;  %v7693_v44 = vand.u32 2147483648, %v7230_v39  ;;  %v3218_v22 = vadd.f32 %v13549_v14, %v14282_v49 }
 0xef3   : > { %v7669_v21 = vsub.f32 1.0, %v7668_v17  ;;  %v7900_v12 = vadd.f32 %v13576_v13, %v7899_v33  ;;  %v7740_v48 = vmul.f32 %v7665_v54, %v7100_v8  ;;  %v7691_v0 = vand.u32 2147483647, %v7230_v39 }
 0xef4   : > { %vm7687_vm13 = vweird.f32 %v7230_v39  ;;  %v7694_v23 = vor.u32 1.1754944e-38, %v7693_v44  ;;  %v3251_v18 = vadd.f32 %v9033_v7, %v3218_v22 }
 0xef5   : > { %7972 = vst.msk [vmem:[%s13589_s29 + $0x60] sm:$0xff] %vm7959_vm1, %v7900_v12  ;;  %8756 = vmatmul.msk.f32.gmra.mxu1 %vm384_vm0, %v7740_v48  ;;  %v7670_v37 = vmul.f32 %v8938_v10, %v7669_v21  ;;  %vm7692_vm15 = vcmp.eq.f32.partialorder %v7691_v0, 8.507059e+37 }
 0xef6   : > { %v3283_v19 = vmax.f32 %v3251_v18, 0.0 }
 0xef7   : > { %v8940_v2 = vpop.eup %8939  ;;  %v7671_v1 = vadd.f32 %v8938_v10, %v7670_v37 }
 0xef8   : > { %v8942_v3 = vpop.eup %8941  ;;  %v7231_v40 = vadd.f32 1.0, %v8940_v2  ;;  %v7103_v26 = vadd.f32 1.0, %v3283_v19 }
 0xef9   : > { %v7683_v9 = vmul.f32 %v8942_v3, %v7230_v39  ;;  %v7675_v61 = vsel %vm7674_vm10, %v8938_v10, %v7671_v1  ;;  %vm7688_vm12 = vweird.f32 %v8942_v3 }
 0xefa   : > { %8943 = vrcp.f32 %v7231_v40  ;;  %v7902_v53 = vpop.f32.mrf.mxu1  ;;  %v7680_v15 = vsel %vm7677_vm11, %v7679_v63, %v7675_v61  ;;  %vm7689_vm14 = vmor %vm7687_vm13, %vm7688_vm12  ;;  %v7708_v35 = vand.u32 2147483648, %v7231_v40  ;;  %v7706_v42 = vand.u32 2147483647, %v7231_v40 }
 0xefb   : > { %v7684_v38 = vsub.f32 1.0, %v7683_v9  ;;  %v7903_v60 = vadd.f32 %v13576_v13, %v7902_v53  ;;  %v7741_v58 = vmul.f32 %v7680_v15, %v7101_v47  ;;  %vm7702_vm3 = vweird.f32 %v7231_v40 }
 0xefc   : > { %v7709_v43 = vor.u32 1.1754944e-38, %v7708_v35  ;;  %vm7707_vm5 = vcmp.eq.f32.partialorder %v7706_v42, 8.507059e+37 }
 0xefd   : > { %7973 = vst.msk [vmem:[%s13589_s29 + $0x68] sm:$0xff] %vm7959_vm1, %v7903_v60  ;;  %8757 = vmatmul.msk.f32.gmra.mxu1 %vm384_vm0, %v7741_v58  ;;  %v7685_v28 = vmul.f32 %v8942_v3, %v7684_v38 }
 0xeff   : > { %v7686_v30 = vadd.f32 %v8942_v3, %v7685_v28 }
 0xf00   : > { %v8944_v59 = vpop.eup %8943 }
 0xf01   : > { %v7698_v32 = vmul.f32 %v8944_v59, %v7231_v40  ;;  %v7690_v52 = vsel %vm7689_vm14, %v8942_v3, %v7686_v30  ;;  %vm7703_vm2 = vweird.f32 %v8944_v59 }
 0xf02   : > { %v7905_v14 = vpop.f32.mrf.mxu1  ;;  %v7695_v4 = vsel %vm7692_vm15, %v7694_v23, %v7690_v52  ;;  %vm7704_vm4 = vmor %vm7702_vm3, %vm7703_vm2 }
 0xf03   : > { %v7699_v34 = vsub.f32 1.0, %v7698_v32  ;;  %v7906_v24 = vadd.f32 %v13576_v13, %v7905_v14  ;;  %v7742_v46 = vmul.f32 %v7695_v4, %v7102_v6 }
 0xf05   : > { %7974 = vst.msk [vmem:[%s13589_s29 + $0x70] sm:$0xff] %vm7959_vm1, %v7906_v24  ;;  %8758 = vmatmul.msk.f32.gmra.mxu1 %vm384_vm0, %v7742_v46  ;;  %v7700_v29 = vmul.f32 %v8944_v59, %v7699_v34 }
 0xf07   : > { %v7701_v25 = vadd.f32 %v8944_v59, %v7700_v29 }
 0xf09   : > { %v7705_v57 = vsel %vm7704_vm4, %v8944_v59, %v7701_v25 }
 0xf0a   : > { %v7908_v20 = vpop.f32.mrf.mxu1  ;;  %v7710_v51 = vsel %vm7707_vm5, %v7709_v43, %v7705_v57 }
 0xf0b   : > { %v7909_v10 = vadd.f32 %v13576_v13, %v7908_v20  ;;  %v7743_v8 = vmul.f32 %v7710_v51, %v7103_v26 }
 0xf0d   : > { %7975 = vst.msk [vmem:[%s13589_s29 + $0x78] sm:$0xff] %vm7959_vm1, %v7909_v10  ;;  %8759 = vmatmul.msk.f32.gmra.mxu1 %vm384_vm0, %v7743_v8 }
 0xf12   : > { %v7911_v56 = vpop.f32.mrf.mxu1 }
 0xf13   : > { %v7912_v27 = vadd.f32 %v13576_v13, %v7911_v56 }
 0xf15   : > { %7976 = vst.msk [vmem:[%s13589_s29 + $0x80] sm:$0xff] %vm7959_vm1, %v7912_v27 }
 0xf1a   : > { %v7914_v39 = vpop.f32.mrf.mxu1 }
 0xf1b   : > { %v7915_v41 = vadd.f32 %v13576_v13, %v7914_v39 }
 0xf1d   : > { %7977 = vst.msk [vmem:[%s13589_s29 + $0x88] sm:$0xff] %vm7959_vm1, %v7915_v41 }
 0xf22   : > { %v7917_v17 = vpop.f32.mrf.mxu1 }
 0xf23   : > { %v7918_v16 = vadd.f32 %v13576_v13, %v7917_v17 }
 0xf25   : > { %7978 = vst.msk [vmem:[%s13589_s29 + $0x90] sm:$0xff] %vm7959_vm1, %v7918_v16 }
 0xf2a   : > { %v7920_v33 = vpop.f32.mrf.mxu1 }
 0xf2b   : > { %v7921_v54 = vadd.f32 %v13576_v13, %v7920_v33 }
 0xf2d   : > { %7979 = vst.msk [vmem:[%s13589_s29 + $0x98] sm:$0xff] %vm7959_vm1, %v7921_v54 }
 0xf32   : > { %v7923_v21 = vpop.f32.mrf.mxu1 }
 0xf33   : > { %v7924_v12 = vadd.f32 %v13576_v13, %v7923_v21 }
 0xf35   : > { %7980 = vst.msk [vmem:[%s13589_s29 + $0xa0] sm:$0xff] %vm7959_vm1, %v7924_v12 }
 0xf3a   : > { %v7926_v48 = vpop.f32.mrf.mxu1 }
 0xf3b   : > { %v7927_v5 = vadd.f32 %v13576_v13, %v7926_v48 }
 0xf3d   : > { %7981 = vst.msk [vmem:[%s13589_s29 + $0xa8] sm:$0xff] %vm7959_vm1, %v7927_v5 }
 0xf42   : > { %v7929_v11 = vpop.f32.mrf.mxu1 }
 0xf43   : > { %v7930_v36 = vadd.f32 %v13576_v13, %v7929_v11 }
 0xf45   : > { %7982 = vst.msk [vmem:[%s13589_s29 + $0xb0] sm:$0xff] %vm7959_vm1, %v7930_v36 }
 0xf4a   : > { %v7932_v62 = vpop.f32.mrf.mxu1 }
 0xf4b   : > { %v7933_v37 = vadd.f32 %v13576_v13, %v7932_v62 }
 0xf4d   : > { %7983 = vst.msk [vmem:[%s13589_s29 + $0xb8] sm:$0xff] %vm7959_vm1, %v7933_v37 }
 0xf52   : > { %v7935_v31 = vpop.f32.mrf.mxu1 }
 0xf53   : > { %v7936_v2 = vadd.f32 %v13576_v13, %v7935_v31 }
 0xf55   : > { %7984 = vst.msk [vmem:[%s13589_s29 + $0xc0] sm:$0xff] %vm7959_vm1, %v7936_v2 }
 0xf5a   : > { %v7938_v1 = vpop.f32.mrf.mxu1 }
 0xf5b   : > { %v7939_v3 = vadd.f32 %v13576_v13, %v7938_v1 }
 0xf5d   : > { %7985 = vst.msk [vmem:[%s13589_s29 + $0xc8] sm:$0xff] %vm7959_vm1, %v7939_v3 }
 0xf62   : > { %v7941_v45 = vpop.f32.mrf.mxu1 }
 0xf63   : > { %v7942_v40 = vadd.f32 %v9034_v50, %v7941_v45 }
 0xf65   : > { %7986 = vst.msk [vmem:[%s13589_s29 + $0xd0] sm:$0xff] %vm7959_vm1, %v7942_v40 }
 0xf6a   : > { %v7944_v63 = vpop.f32.mrf.mxu1 }
 0xf6b   : > { %v7945_v47 = vadd.f32 %v9034_v50, %v7944_v63 }
 0xf6d   : > { %7987 = vst.msk [vmem:[%s13589_s29 + $0xd8] sm:$0xff] %vm7959_vm1, %v7945_v47 }
 0xf72   : > { %v7947_v9 = vpop.f32.mrf.mxu1 }
 0xf73   : > { %v7948_v61 = vadd.f32 %v9034_v50, %v7947_v9 }
 0xf75   : > { %7988 = vst.msk [vmem:[%s13589_s29 + $0xe0] sm:$0xff] %vm7959_vm1, %v7948_v61 }
 0xf7a   : > { %v7950_v13 = vpop.f32.mrf.mxu1 }
 0xf7b   : > { %v7951_v53 = vadd.f32 %v9034_v50, %v7950_v13 }
 0xf7d   : > { %7989 = vst.msk [vmem:[%s13589_s29 + $0xe8] sm:$0xff] %vm7959_vm1, %v7951_v53 }
 0xf82   : > { %v7953_v15 = vpop.f32.mrf.mxu1 }
 0xf83   : > { %v7954_v38 = vadd.f32 %v9034_v50, %v7953_v15 }
 0xf85   : > { %7990 = vst.msk [vmem:[%s13589_s29 + $0xf0] sm:$0xff] %vm7959_vm1, %v7954_v38 }
 0xf8a   : > { %v7956_v60 = vpop.f32.mrf.mxu1 }
 0xf8b   : > { %v7957_v58 = vadd.f32 %v9034_v50, %v7956_v60 }
 0xf8d   : > { %7991 = vst.msk [vmem:[%s13589_s29 + $0xf8] sm:$0xff] %vm7959_vm1, %v7957_v58 }
 0xf8e PF: > { %s16_s21 = sadd.s32 1, %s9041_s21  }
 0xf8f   : > { %p13_p4 = scmp.ge.s32.totalorder %s16_s21, 4  }
 0xf91   :  { %15 = sbr.rel (!%p13_p4) target bundleno = 1 (0x1), region = 74 }

</bundles_post_ra>
